<compile_context>
chip_gen: v6e
topology: v6e:2x2x1
jax: 0.10.0
libtpu: 0.0.40
codegen_flags: <defaults>
</compile_context>

<pallas_src>
import functools

import jax
import jax.numpy as jnp
from jax import lax
from jax.experimental import pallas as pl
from jax.experimental.pallas import tpu as pltpu


def _se_kernel(x_ref, w1_ref, w2_ref, o_ref, *, inv_hw):
    # x_ref : (NB, C, HWp)  batch block, channels on sublanes, spatial on lanes
    # w1_ref: (Cse, C)      torch fc[0].weight (bias-free)
    # w2_ref: (C, Cse)      torch fc[2].weight (bias-free)
    x = x_ref[...]
    xf = x.astype(jnp.float32)

    # --- squeeze: global average pool over (padded) spatial; zero pad lanes add 0,
    #     and inv_hw = 1 / (true H*W), so the mean is exact. ---
    pooled = jnp.sum(xf, axis=-1) * inv_hw                       # (NB, C) f32

    # --- excitation: two tiny bias-free FCs, batched over NB, exact f32 on VPU ---
    w1 = w1_ref[...].astype(jnp.float32)                         # (Cse, C)
    w2 = w2_ref[...].astype(jnp.float32)                         # (C, Cse)
    h = jnp.maximum(
        jnp.sum(pooled[:, None, :] * w1[None, :, :], axis=-1), 0.0)   # (NB, Cse)
    s = jax.nn.sigmoid(
        jnp.sum(h[:, None, :] * w2[None, :, :], axis=-1))             # (NB, C)

    # --- scale: per-channel gate broadcast along the lane (spatial) axis ---
    o_ref[...] = (xf * s[:, :, None]).astype(o_ref.dtype)


def _pick_nb(n, bytes_per_batch, target_block_bytes):
    """Largest divisor of n whose block stays under the target byte budget."""
    cap = max(1, target_block_bytes // max(bytes_per_batch, 1))
    cap = min(cap, n)
    for nb in range(cap, 0, -1):
        if n % nb == 0:
            return nb
    return 1


def squeeze_excitation(x_nchw, fc1_w, fc2_w, *, target_block_bytes=3 << 20):
    """SqueezeExcitation forward.

    x_nchw : (N, C, H, W)
    fc1_w  : (Cse, C)  nn.Linear(in_channels, se_channels, bias=False).weight
    fc2_w  : (C, Cse)  nn.Linear(se_channels, in_channels, bias=False).weight
    returns (N, C, H, W), same dtype as x_nchw
    """
    N, C, H, W = x_nchw.shape
    Cse = fc1_w.shape[0]
    HW = H * W
    HWp = ((HW + 127) // 128) * 128          # lane-dense pad (unmasked stores)
    dtype = x_nchw.dtype

    # (N, C, H, W) -> (N, C, HWp): spatial becomes the lane axis; zero-pad if
    # H*W is not a multiple of 128 (the pad never affects the mean or output).
    x = x_nchw.reshape(N, C, HW)
    if HWp != HW:
        x = jnp.pad(x, ((0, 0), (0, 0), (0, HWp - HW)))

    # Batch-block the grid: blocks of a few MiB; NB divides N so every block is
    # full (no masked tail).  4 double-buffered x/out blocks stay < 16 MiB
    # (smallest default scoped VMEM, v5e), so no vmem_limit_bytes bump needed.
    bytes_per_batch = C * HWp * jnp.dtype(dtype).itemsize
    NB = _pick_nb(N, bytes_per_batch, target_block_bytes)
    grid = (N // NB,)

    kernel = functools.partial(_se_kernel, inv_hw=1.0 / HW)

    out = pl.pallas_call(
        kernel,
        out_shape=jax.ShapeDtypeStruct((N, C, HWp), dtype),
        grid=grid,
        in_specs=[
            pl.BlockSpec((NB, C, HWp), lambda n: (n, 0, 0)),
            pl.BlockSpec((Cse, C), lambda n: (0, 0)),
            pl.BlockSpec((C, Cse), lambda n: (0, 0)),
        ],
        out_specs=pl.BlockSpec((NB, C, HWp), lambda n: (n, 0, 0)),
        input_output_aliases={0: 0},          # every element of x is overwritten
        compiler_params=pltpu.CompilerParams(
            dimension_semantics=("parallel",)),   # v7x: shard batch blocks on 2 TCs
    )(x, fc1_w.astype(jnp.float32), fc2_w.astype(jnp.float32))

    if HWp != HW:
        out = out[:, :, :HW]
    return out.reshape(N, C, H, W)


# ---------------- pure-JAX reference (mirrors the PyTorch graph) ----------------
def _ref_forward(x, fc1_w, fc2_w):
    y = jnp.mean(x.astype(jnp.float32), axis=(2, 3))                    # (N, C)
    y = jnp.maximum(
        jnp.dot(y, fc1_w.T, precision=lax.Precision.HIGHEST), 0.0)      # (N, Cse)
    y = jax.nn.sigmoid(
        jnp.dot(y, fc2_w.T, precision=lax.Precision.HIGHEST))           # (N, C)
    return (x.astype(jnp.float32) * y[:, :, None, None]).astype(x.dtype)


def _check(N, C, H, W, Cse, seed):
    key = jax.random.PRNGKey(seed)
    k1, k2, k3 = jax.random.split(key, 3)
    x = jax.random.normal(k1, (N, C, H, W), jnp.float32)
    fc1_w = jax.random.normal(k2, (Cse, C), jnp.float32) * (1.0 / (C ** 0.5))
    fc2_w = jax.random.normal(k3, (C, Cse), jnp.float32) * (1.0 / (Cse ** 0.5))

    out = jax.block_until_ready(squeeze_excitation(x, fc1_w, fc2_w))
    assert out.shape == (N, C, H, W), out.shape

    ref = _ref_forward(x, fc1_w, fc2_w)
    max_err = float(jnp.max(jnp.abs(out - ref)))
    if not jnp.allclose(out, ref, atol=1e-3, rtol=1e-3):
        raise AssertionError(
            f"Pallas SqueezeExcitation mismatch vs JAX reference "
            f"(N={N},C={C},H={H},W={W},Cse={Cse}): max abs err {max_err}")


if __name__ == "__main__":
    # Main test shape: in_channels=64, se_channels=16, 16x16 spatial (HW=256, lane-dense).
    _check(N=2, C=64, H=16, W=16, Cse=16, seed=0)
    # Exercise the lane-padding guard: 14x14 spatial (HW=196 -> padded to 256).
    _check(N=2, C=32, H=14, W=14, Cse=8, seed=0)
    print("KERNEL_OK")
</pallas_src>

<mosaic_0001>
module attributes {stable_mosaic.version = 11 : i64} {
  func.func @_se_kernel(%arg0: i32, %arg1: memref<2x64x256xf32, #tpu.memory_space<vmem>>, %arg2: memref<16x64xf32, #tpu.memory_space<vmem>>, %arg3: memref<64x16xf32, #tpu.memory_space<vmem>>, %arg4: memref<2x64x256xf32, #tpu.memory_space<vmem>>) attributes {dimension_semantics = [#tpu.dimension_semantics<parallel>], iteration_bounds = array<i64: 1>, scalar_prefetch = 0 : i64, scratch_operands = 0 : i64, tpu.core_type = #tpu.core_type<tc>, window_params = [{transform_indices = @transform_0, window_bounds = array<i64: 2, 64, 256>}, {pipeline_mode = #tpu.pipeline_mode<synchronous>, transform_indices = @transform_1, window_bounds = array<i64: 16, 64>}, {pipeline_mode = #tpu.pipeline_mode<synchronous>, transform_indices = @transform_2, window_bounds = array<i64: 64, 16>}, {transform_indices = @transform_3, window_bounds = array<i64: 2, 64, 256>}]} {
    %c0 = arith.constant 0 : index
    %c0_0 = arith.constant 0 : index
    %c0_1 = arith.constant 0 : index
    %0 = vector.load %arg1[%c0, %c0_0, %c0_1] : memref<2x64x256xf32, #tpu.memory_space<vmem>>, vector<2x64x256xf32>
    %cst = arith.constant dense<0.000000e+00> : vector<2x64xf32>
    %1 = vector.multi_reduction <add>, %0, %cst [2] : vector<2x64x256xf32> to vector<2x64xf32>
    %cst_2 = arith.constant 3.906250e-03 : f32
    %2 = vector.broadcast %cst_2 : f32 to vector<2x64xf32>
    %3 = arith.mulf %1, %2 : vector<2x64xf32>
    %c0_3 = arith.constant 0 : index
    %c0_4 = arith.constant 0 : index
    %4 = vector.load %arg2[%c0_3, %c0_4] : memref<16x64xf32, #tpu.memory_space<vmem>>, vector<16x64xf32>
    %c0_5 = arith.constant 0 : index
    %c0_6 = arith.constant 0 : index
    %5 = vector.load %arg3[%c0_5, %c0_6] : memref<64x16xf32, #tpu.memory_space<vmem>>, vector<64x16xf32>
    %6 = vector.shape_cast %3 : vector<2x64xf32> to vector<2x1x64xf32>
    %7 = vector.shape_cast %4 : vector<16x64xf32> to vector<1x16x64xf32>
    %8 = vector.broadcast %6 : vector<2x1x64xf32> to vector<2x16x64xf32>
    %9 = vector.broadcast %7 : vector<1x16x64xf32> to vector<2x16x64xf32>
    %10 = arith.mulf %8, %9 : vector<2x16x64xf32>
    %cst_7 = arith.constant dense<0.000000e+00> : vector<2x16xf32>
    %11 = vector.multi_reduction <add>, %10, %cst_7 [2] : vector<2x16x64xf32> to vector<2x16xf32>
    %cst_8 = arith.constant 0.000000e+00 : f32
    %12 = vector.broadcast %cst_8 : f32 to vector<2x16xf32>
    %13 = arith.maximumf %11, %12 : vector<2x16xf32>
    %14 = vector.shape_cast %13 : vector<2x16xf32> to vector<2x1x16xf32>
    %15 = vector.shape_cast %5 : vector<64x16xf32> to vector<1x64x16xf32>
    %16 = vector.broadcast %14 : vector<2x1x16xf32> to vector<2x64x16xf32>
    %17 = vector.broadcast %15 : vector<1x64x16xf32> to vector<2x64x16xf32>
    %18 = arith.mulf %16, %17 : vector<2x64x16xf32>
    %cst_9 = arith.constant dense<0.000000e+00> : vector<2x64xf32>
    %19 = vector.multi_reduction <add>, %18, %cst_9 [2] : vector<2x64x16xf32> to vector<2x64xf32>
    %20 = arith.negf %19 : vector<2x64xf32>
    %21 = math.exp %20 : vector<2x64xf32>
    %cst_10 = arith.constant 1.000000e+00 : f32
    %22 = vector.broadcast %cst_10 : f32 to vector<2x64xf32>
    %23 = arith.addf %22, %21 : vector<2x64xf32>
    %24 = arith.divf %22, %23 : vector<2x64xf32>
    %25 = vector.shape_cast %24 : vector<2x64xf32> to vector<2x64x1xf32>
    %26 = vector.broadcast %25 : vector<2x64x1xf32> to vector<2x64x256xf32>
    %27 = arith.mulf %0, %26 : vector<2x64x256xf32>
    %c0_11 = arith.constant 0 : index
    %c0_12 = arith.constant 0 : index
    %c0_13 = arith.constant 0 : index
    %28 = vector.load %arg4[%c0_11, %c0_12, %c0_13] : memref<2x64x256xf32, #tpu.memory_space<vmem>>, vector<2x64x256xf32>
    tpu.vector_store %arg4[%c0_11, %c0_12, %c0_13], %27 {strides = array<i32>} : memref<2x64x256xf32, #tpu.memory_space<vmem>>, vector<2x64x256xf32>,
    return
  }
  func.func @transform_0(%arg0: i32) -> (i32, i32, i32) {
    %c0_i32 = arith.constant 0 : i32
    %c0_i32_0 = arith.constant 0 : i32
    %c0_i32_1 = arith.constant 0 : i32
    return %arg0, %c0_i32, %c0_i32_0 : i32, i32, i32
  }
  func.func @transform_1(%arg0: i32) -> (i32, i32) {
    %c0_i32 = arith.constant 0 : i32
    %c0_i32_0 = arith.constant 0 : i32
    %c0_i32_1 = arith.constant 0 : i32
    return %c0_i32, %c0_i32_0 : i32, i32
  }
  func.func @transform_2(%arg0: i32) -> (i32, i32) {
    %c0_i32 = arith.constant 0 : i32
    %c0_i32_0 = arith.constant 0 : i32
    %c0_i32_1 = arith.constant 0 : i32
    return %c0_i32, %c0_i32_0 : i32, i32
  }
  func.func @transform_3(%arg0: i32) -> (i32, i32, i32) {
    %c0_i32 = arith.constant 0 : i32
    %c0_i32_0 = arith.constant 0 : i32
    %c0_i32_1 = arith.constant 0 : i32
    return %arg0, %c0_i32, %c0_i32_0 : i32, i32, i32
  }
}

</mosaic_0001>

<bundles_post_ra>
// kernel: tpu_custom_call.1
= control target key start
LH: loop header
LB: loop body
LE: loop exit
PB: predicated region body
PF: predicated region fallthrough
CT: control target
= control target key end

     0   :  { %8 = vsyncpa [#allocation3], 0  ;;  %s12015_s0 = inlined_call_operand.hbm [shape: f32[2,64,256], index: 0, kind: input, shape index: {}, may-alias: {0,3}]   ;;  %s12016_s1 = inlined_call_operand.vmem [shape: f32[16,64], index: 1, kind: input, shape index: {}]   ;;  %s12017_s2 = inlined_call_operand.vmem [shape: f32[64,16], index: 2, kind: input, shape index: {}]   ;;  %s12018_s3 = inlined_call_operand.hbm [shape: f32[2,64,256], index: 3, kind: output, shape index: {}, may-alias: {0,3}]  }
   0x1   :  { %9 = vsyncpa [#allocation4], 0  ;;  %s7214_s12 = smov [#allocation2]  }
   0x2   :  { %s15_s13 = sshll.u32 %s7214_s12, 4  ;;  %s16_s13 = int_to_ptr.vmem [resolvable:$true] %s15_s13 }
   0x3   :  { %s7178_s14 = scalar_lea.vmem %s16_s13, 4096  ;;  %p7183_p1 = scmp.lt.s32.totalorder %s16_s13, %s16_s13 }
   0x4   :  { %p7179_p0 = scmp.ne.s32.totalorder %s16_s13, %s7178_s14  ;;  %p7184_p2 = scmp.lt.s32.totalorder %s7178_s14, %s7178_s14 }
   0x6   :  { %p7185_p3 = por %p7184_p2, %p7183_p1 }
   0x8   :  { %p7186_p4 = pnand %p7185_p3, %p7179_p0 }
   0xa   :  { %7189 = shalt.err (!%p7186_p4)
}
   0xb   :  { %s7215_s15 = smov 256   ;;  %s7216_s16 = smov 16  }
   0xc   :  { %21 = dma.hbm_to_vmem [thread:$0]  %s12015_s0, 4096, %s16_s13, [#allocation3], %s7215_s15, %s7215_s15, %s7216_s16  }
   0xd   :  { %7210 = dma.done.wait [#allocation3], 4096  }
   0xe   :  { %7211 = vsyncadd [#allocation3], 4294963200  ;;  %v137_v0 = vlaneseq  ;;  %v33_v13 = vld [vmem:[#allocation2 + $0x20] sm:$0xff]  ;;  %v34_v14 = vld [vmem:[#allocation2 + $0x28] sm:$0xff]  ;;  %vm2116_vm0 = vcmask 130112   ;;  %vm2123_vm1 = vcmask 195712  }
   0xf   :  { %v29_v15 = vld [vmem:[#allocation2] sm:$0xff]  ;;  %v67_v20 = vadd.f32 %v34_v14, %v33_v13  ;;  %v30_v21 = vld [vmem:[#allocation2 + $0x8] sm:$0xff]  ;;  %v35_v22 = vld [vmem:[#allocation2 + $0x30] sm:$0xff]  ;;  %vm2130_vm2 = vcmask 261312   ;;  %vm2137_vm3 = vcmask 326912   ;;  %vm2144_vm4 = vcmask 392512  }
  0x10   :  { %v7245_v1 = vshrl.u32 %v137_v0, 7  ;;  %v2106_v2 = vand.u32 127, %v137_v0  ;;  %v36_v23 = vld [vmem:[#allocation2 + $0x38] sm:$0xff]  ;;  %v61_v25 = vadd.f32 %v30_v21, %v29_v15  ;;  %v31_v26 = vld [vmem:[#allocation2 + $0x10] sm:$0xff]  ;;  %v37_v32 = vld [vmem:[#allocation2 + $0x40] sm:$0xff]  ;;  %vm2151_vm5 = vcmask 458112  }
  0x11   :  { %v32_v27 = vld [vmem:[#allocation2 + $0x18] sm:$0xff]  ;;  %68 = vadd.xlane.f32.xlu1 %v67_v20  ;;  %v70_v28 = vadd.f32 %v36_v23, %v35_v22  ;;  %v39_v30 = vld [vmem:[#allocation2 + $0x50] sm:$0xff]  ;;  %v38_v33 = vld [vmem:[#allocation2 + $0x48] sm:$0xff]  ;;  %vm2158_vm6 = vcmask 523712   ;;  %vm3369_vm7 = vcmask 1041409   ;;  %vm3371_vm8 = vcmask 1042434  }
  0x12   :  { %v7248_v3 = vsub.s32 %v2106_v2, %v7245_v1  ;;  %v2111_v4 = vadd.s32 4294967288, %v2106_v2  ;;  %v2118_v5 = vadd.s32 4294967280, %v2106_v2  ;;  %v2125_v6 = vadd.s32 4294967272, %v2106_v2  ;;  %62 = vadd.xlane.f32.xlu0 %v61_v25  ;;  %v40_v31 = vld [vmem:[#allocation2 + $0x58] sm:$0xff]  ;;  %v43_v36 = vld [vmem:[#allocation2 + $0x70] sm:$0xff]  ;;  %v41_v38 = vld [vmem:[#allocation2 + $0x60] sm:$0xff] }
  0x13   :  { %v2132_v7 = vadd.s32 4294967264, %v2106_v2  ;;  %v2139_v8 = vadd.s32 4294967256, %v2106_v2  ;;  %v2146_v9 = vadd.s32 4294967248, %v2106_v2  ;;  %v2153_v12 = vadd.s32 4294967240, %v2106_v2  ;;  %v44_v37 = vld [vmem:[#allocation2 + $0x78] sm:$0xff]  ;;  %v42_v39 = vld [vmem:[#allocation2 + $0x68] sm:$0xff] }
  0x14   :  { %12379 = vst [vmem:[#allocation8_spill] sm:$0xff] %v7248_v3  ;;  %v7251_v10 = vsub.s32 %v2111_v4, %v7245_v1  ;;  %v7254_v11 = vsub.s32 %v2118_v5, %v7245_v1  ;;  %v7257_v16 = vsub.s32 %v2125_v6, %v7245_v1  ;;  %v64_v29 = vadd.f32 %v32_v27, %v31_v26  ;;  %v47_v42 = vld [vmem:[#allocation2 + $0x90] sm:$0xff]  ;;  %v48_v43 = vld [vmem:[#allocation2 + $0x98] sm:$0xff]  ;;  %v45_v44 = vld [vmem:[#allocation2 + $0x80] sm:$0xff] }
  0x15   :  { %v7260_v17 = vsub.s32 %v2132_v7, %v7245_v1  ;;  %v7263_v18 = vsub.s32 %v2139_v8, %v7245_v1  ;;  %v7266_v19 = vsub.s32 %v2146_v9, %v7245_v1  ;;  %v7269_v24 = vsub.s32 %v2153_v12, %v7245_v1  ;;  %71 = vadd.xlane.f32.xlu1 %v70_v28  ;;  %v46_v45 = vld [vmem:[#allocation2 + $0x88] sm:$0xff]  ;;  %v51_v48 = vld [vmem:[#allocation2 + $0xb0] sm:$0xff]  ;;  %v52_v49 = vld [vmem:[#allocation2 + $0xb8] sm:$0xff] }
  0x16   :  { %12380 = vst [vmem:[#allocation9_spill] sm:$0xff] %v7251_v10  ;;  %12381 = vst [vmem:[#allocation10_spill] sm:$0xff] %v7254_v11  ;;  %v76_v34 = vadd.f32 %v40_v31, %v39_v30  ;;  %65 = vadd.xlane.f32.xlu0 %v64_v29  ;;  %v73_v35 = vadd.f32 %v38_v33, %v37_v32  ;;  %v82_v40 = vadd.f32 %v44_v37, %v43_v36  ;;  %v49_v50 = vld [vmem:[#allocation2 + $0xa0] sm:$0xff]  ;;  %v50_v51 = vld [vmem:[#allocation2 + $0xa8] sm:$0xff]  ;;  %vm3373_vm9 = vcmask 1043459  }
  0x17   :  { %12382 = vst [vmem:[#allocation11_spill] sm:$0xff] %v7257_v16  ;;  %12383 = vst [vmem:[#allocation12_spill] sm:$0xff] %v7260_v17  ;;  %v79_v41 = vadd.f32 %v42_v39, %v41_v38  ;;  %v88_v46 = vadd.f32 %v48_v43, %v47_v42  ;;  %v85_v47 = vadd.f32 %v46_v45, %v45_v44  ;;  %v55_v54 = vld [vmem:[#allocation2 + $0xd0] sm:$0xff]  ;;  %v56_v55 = vld [vmem:[#allocation2 + $0xd8] sm:$0xff]  ;;  %v7272_v4 = vsub.s32 0, %v7245_v1 }
  0x18   :  { %12384 = vst [vmem:[#allocation13_spill] sm:$0xff] %v7263_v18  ;;  %12385 = vst [vmem:[#allocation14_spill] sm:$0xff] %v7266_v19  ;;  %v94_v52 = vadd.f32 %v52_v49, %v51_v48  ;;  %v91_v53 = vadd.f32 %v50_v51, %v49_v50  ;;  %v53_v56 = vld [vmem:[#allocation2 + $0xc0] sm:$0xff]  ;;  %v54_v57 = vld [vmem:[#allocation2 + $0xc8] sm:$0xff]  ;;  %v100_v58 = vadd.f32 %v56_v55, %v55_v54  ;;  %v7282_v7 = vsub.s32 1, %v7245_v1 }
  0x19   :  { %12386 = vst [vmem:[#allocation15_spill] sm:$0xff] %v7269_v24  ;;  %77 = vadd.xlane.f32.xlu1 %v76_v34  ;;  %v97_v59 = vadd.f32 %v54_v57, %v53_v56  ;;  %v59_v60 = vld [vmem:[#allocation2 + $0xf0] sm:$0xff]  ;;  %v60_v61 = vld [vmem:[#allocation2 + $0xf8] sm:$0xff]  ;;  %v57_v62 = vld [vmem:[#allocation2 + $0xe0] sm:$0xff]  ;;  %v7287_v9 = vsub.s32 2, %v7245_v1  ;;  %v7292_v13 = vsub.s32 3, %v7245_v1 }
  0x1a   :  { %74 = vadd.xlane.f32.xlu0 %v73_v35  ;;  %v58_v63 = vld [vmem:[#allocation2 + $0xe8] sm:$0xff]  ;;  %v106_v0 = vadd.f32 %v60_v61, %v59_v60  ;;  %12387 = vst [vmem:[#allocation16_spill] sm:$0xff] %v7272_v4  ;;  %v7277_v5 = vld [vmem:[%s12016_s1] sm:$0xff]  ;;  %12388 = vst [vmem:[#allocation17_spill] sm:$0xff] %v7282_v7  ;;  %v7297_v15 = vsub.s32 4, %v7245_v1  ;;  %v7302_v21 = vsub.s32 5, %v7245_v1 }
  0x1b   :  { %v103_v2 = vadd.f32 %v58_v63, %v57_v62  ;;  %v140_v6 = vrot.slane %v7277_v5, %v7272_v4  ;;  %v175_v8 = vrot.slane %v7277_v5, %v7282_v7  ;;  %12389 = vst [vmem:[#allocation18_spill] sm:$0xff] %v7287_v9  ;;  %v210_v12 = vrot.slane %v7277_v5, %v7287_v9  ;;  %v7351_v43 = vld [vmem:[%s12016_s1 + $0x8] sm:$0xff] }
  0x1c   :  { %12390 = vst [vmem:[#allocation19_spill] sm:$0xff] %v7292_v13  ;;  %v245_v14 = vrot.slane %v7277_v5, %v7292_v13  ;;  %12391 = vst [vmem:[#allocation20_spill] sm:$0xff] %v7297_v15  ;;  %v280_v20 = vrot.slane %v7277_v5, %v7297_v15  ;;  %v315_v22 = vrot.slane %v7277_v5, %v7302_v21  ;;  %v7307_v23 = vsub.s32 6, %v7245_v1 }
  0x1d   :  { %83 = vadd.xlane.f32.xlu1 %v82_v40  ;;  %12392 = vst [vmem:[#allocation21_spill] sm:$0xff] %v7302_v21  ;;  %v7328_v34 = vsub.s32 7, %v7245_v1  ;;  %v455_v56 = vrot.slane %v7351_v43, %v7282_v7  ;;  %v595_v24 = vrot.slane %v7351_v43, %v7302_v21  ;;  %vm3375_vm10 = vcmask 1044484  }
  0x1e   :  { %80 = vadd.xlane.f32.xlu0 %v79_v41  ;;  %12393 = vst [vmem:[#allocation22_spill] sm:$0xff] %v7307_v23  ;;  %v350_v27 = vrot.slane %v7277_v5, %v7307_v23  ;;  %v630_v10 = vrot.slane %v7351_v43, %v7307_v23  ;;  %vm3377_vm11 = vcmask 1045509   ;;  %vm3379_vm12 = vcmask 1046534  }
  0x1f   :  { %12394 = vst [vmem:[#allocation23_spill] sm:$0xff] %v7328_v34  ;;  %v385_v37 = vrot.slane %v7277_v5, %v7328_v34  ;;  %vm3381_vm13 = vcmask 1047559   ;;  %vm3408_vm14 = vcmask 523264   ;;  %vm6825_vm15 = vcmask 130048  }
  0x21   :  { %89 = vadd.xlane.f32.xlu1 %v88_v46  ;;  %v420_v46 = vrot.slane %v7351_v43, %v7272_v4 }
  0x22   :  { %86 = vadd.xlane.f32.xlu0 %v85_v47  ;;  %v7217_v47 = vmov 0  }
  0x23   :  { %7072 = vset.pattern.permute.xlu0 %v7217_v47  ;;  %7073 = vset.pattern.permute.xlu1 %v7217_v47 }
  0x25   :  { %95 = vadd.xlane.f32.xlu1 %v94_v52 }
  0x26   :  { %92 = vadd.xlane.f32.xlu0 %v91_v53 }
  0x29   :  { %101 = vadd.xlane.f32.xlu1 %v100_v58 }
  0x2a   :  { %98 = vadd.xlane.f32.xlu0 %v97_v59 }
  0x2d   :  { %107 = vadd.xlane.f32.xlu1 %v106_v0 }
  0x2e   :  { %104 = vadd.xlane.f32.xlu0 %v103_v2  ;;  %v490_v2 = vrot.slane %v7351_v43, %v7287_v9 }
  0x3e   :  { %146 = vbcast.lane.b32.xlu1 %v140_v6, 264 }
  0x42   :  { %150 = vbcast.lane.b32.xlu1 %v140_v6, 272 }
  0x44   :  { %142 = vbcast.lane.b32.xlu0 %v140_v6, 256 }
  0x46   :  { %154 = vbcast.lane.b32.xlu1 %v140_v6, 280 }
  0x48   :  { %158 = vbcast.lane.b32.xlu0 %v140_v6, 288 }
  0x4a   :  { %162 = vbcast.lane.b32.xlu1 %v140_v6, 296 }
  0x4c   :  { %166 = vbcast.lane.b32.xlu0 %v140_v6, 304 }
  0x4e   :  { %170 = vbcast.lane.b32.xlu1 %v140_v6, 312 }
  0x50   :  { %177 = vbcast.lane.b32.xlu0 %v175_v8, 256 }
  0x52   :  { %181 = vbcast.lane.b32.xlu1 %v175_v8, 264 }
  0x54   :  { %185 = vbcast.lane.b32.xlu0 %v175_v8, 272 }
  0x56   :  { %189 = vbcast.lane.b32.xlu1 %v175_v8, 280 }
  0x58   :  { %193 = vbcast.lane.b32.xlu0 %v175_v8, 288 }
  0x5a   :  { %197 = vbcast.lane.b32.xlu1 %v175_v8, 296 }
  0x5c   :  { %201 = vbcast.lane.b32.xlu0 %v175_v8, 304 }
  0x5e   :  { %205 = vbcast.lane.b32.xlu1 %v175_v8, 312 }
  0x60   :  { %212 = vbcast.lane.b32.xlu0 %v210_v12, 256 }
  0x62   :  { %216 = vbcast.lane.b32.xlu1 %v210_v12, 264 }
  0x64   :  { %220 = vbcast.lane.b32.xlu0 %v210_v12, 272 }
  0x66   :  { %224 = vbcast.lane.b32.xlu1 %v210_v12, 280 }
  0x68   :  { %228 = vbcast.lane.b32.xlu0 %v210_v12, 288 }
  0x6a   :  { %232 = vbcast.lane.b32.xlu1 %v210_v12, 296 }
  0x6c   :  { %236 = vbcast.lane.b32.xlu0 %v210_v12, 304 }
  0x6e   :  { %240 = vbcast.lane.b32.xlu1 %v210_v12, 312 }
  0x70   :  { %247 = vbcast.lane.b32.xlu0 %v245_v14, 256 }
  0x72   :  { %251 = vbcast.lane.b32.xlu1 %v245_v14, 264 }
  0x74   :  { %255 = vbcast.lane.b32.xlu0 %v245_v14, 272 }
  0x76   :  { %259 = vbcast.lane.b32.xlu1 %v245_v14, 280 }
  0x78   :  { %263 = vbcast.lane.b32.xlu0 %v245_v14, 288 }
  0x7a   :  { %267 = vbcast.lane.b32.xlu1 %v245_v14, 296 }
  0x7c   :  { %271 = vbcast.lane.b32.xlu0 %v245_v14, 304 }
  0x7e   :  { %275 = vbcast.lane.b32.xlu1 %v245_v14, 312 }
  0x80   :  { %282 = vbcast.lane.b32.xlu0 %v280_v20, 256 }
  0x82   :  { %286 = vbcast.lane.b32.xlu1 %v280_v20, 264 }
  0x84   :  { %290 = vbcast.lane.b32.xlu0 %v280_v20, 272 }
  0x86   :  { %294 = vbcast.lane.b32.xlu1 %v280_v20, 280 }
  0x88   :  { %298 = vbcast.lane.b32.xlu0 %v280_v20, 288 }
  0x8a   :  { %302 = vbcast.lane.b32.xlu1 %v280_v20, 296 }
  0x8c   :  { %306 = vbcast.lane.b32.xlu0 %v280_v20, 304 }
  0x8e   :  { %310 = vbcast.lane.b32.xlu1 %v280_v20, 312 }
  0x90   :  { %317 = vbcast.lane.b32.xlu0 %v315_v22, 256 }
  0x92   :  { %321 = vbcast.lane.b32.xlu1 %v315_v22, 264 }
  0x94   :  { %325 = vbcast.lane.b32.xlu0 %v315_v22, 272 }
  0x96   :  { %329 = vbcast.lane.b32.xlu1 %v315_v22, 280 }
  0x98   :  { %333 = vbcast.lane.b32.xlu0 %v315_v22, 288 }
  0x9a   :  { %337 = vbcast.lane.b32.xlu1 %v315_v22, 296  ;;  %v7309_v25 = vpop.xlane.xlu1 %68 }
  0x9b   :  { %v7311_v26 = vpop.xlane.xlu0 %62 }
  0x9c   :  { %341 = vbcast.lane.b32.xlu0 %v315_v22, 304 }
  0x9e   :  { %345 = vbcast.lane.b32.xlu1 %v315_v22, 312  ;;  %v7315_v28 = vpop.xlane.xlu1 %71 }
  0x9f   :  { %v7317_v29 = vpop.xlane.xlu0 %65 }
  0xa0   :  { %352 = vbcast.lane.b32.xlu0 %v350_v27, 256 }
  0xa2   :  { %356 = vbcast.lane.b32.xlu1 %v350_v27, 264  ;;  %v7319_v30 = vpop.xlane.xlu1 %77 }
  0xa3   :  { %v7321_v31 = vpop.xlane.xlu0 %74 }
  0xa4   :  { %360 = vbcast.lane.b32.xlu0 %v350_v27, 272 }
  0xa6   :  { %364 = vbcast.lane.b32.xlu1 %v350_v27, 280  ;;  %v7323_v32 = vpop.xlane.xlu1 %83 }
  0xa7   :  { %v7325_v33 = vpop.xlane.xlu0 %80 }
  0xa8   :  { %368 = vbcast.lane.b32.xlu0 %v350_v27, 288 }
  0xaa   :  { %372 = vbcast.lane.b32.xlu1 %v350_v27, 296  ;;  %v7330_v35 = vpop.xlane.xlu1 %89 }
  0xab   :  { %12395 = vst [vmem:[#allocation24_spill] sm:$0xff] %v7330_v35  ;;  %v7332_v36 = vpop.xlane.xlu0 %86 }
  0xac   :  { %12396 = vst [vmem:[#allocation25_spill] sm:$0xff] %v7332_v36  ;;  %376 = vbcast.lane.b32.xlu0 %v350_v27, 304 }
  0xae   :  { %380 = vbcast.lane.b32.xlu1 %v350_v27, 312  ;;  %v7336_v38 = vpop.xlane.xlu1 %95 }
  0xaf   :  { %12397 = vst [vmem:[#allocation26_spill] sm:$0xff] %v7336_v38  ;;  %v7338_v39 = vpop.xlane.xlu0 %92 }
  0xb0   :  { %12398 = vst [vmem:[#allocation27_spill] sm:$0xff] %v7338_v39  ;;  %387 = vbcast.lane.b32.xlu0 %v385_v37, 256 }
  0xb2   :  { %391 = vbcast.lane.b32.xlu1 %v385_v37, 264  ;;  %v7340_v40 = vpop.xlane.xlu1 %101 }
  0xb3   :  { %12399 = vst [vmem:[#allocation28_spill] sm:$0xff] %v7340_v40  ;;  %v7342_v1 = vpop.xlane.xlu0 %98 }
  0xb4   :  { %12400 = vst [vmem:[#allocation29_spill] sm:$0xff] %v7342_v1  ;;  %395 = vbcast.lane.b32.xlu0 %v385_v37, 272 }
  0xb6   :  { %399 = vbcast.lane.b32.xlu1 %v385_v37, 280  ;;  %v7344_v41 = vpop.xlane.xlu1 %107 }
  0xb7   :  { %12401 = vst [vmem:[#allocation30_spill] sm:$0xff] %v7344_v41  ;;  %v7346_v42 = vpop.xlane.xlu0 %104 }
  0xb8   :  { %12402 = vst [vmem:[#allocation31_spill] sm:$0xff] %v7346_v42  ;;  %403 = vbcast.lane.b32.xlu0 %v385_v37, 288  ;;  %v560_v42 = vrot.slane %v7351_v43, %v7297_v15 }
  0xba   :  { %407 = vbcast.lane.b32.xlu1 %v385_v37, 296  ;;  %v7353_v44 = vpop.permute.xlu1 %146 }
  0xbb   :  { %12403 = vst [vmem:[#allocation32_spill] sm:$0xff] %v7353_v44  ;;  %v7355_v45 = vpop.permute.xlu0 %142 }
  0xbc   :  { %12404 = vst [vmem:[#allocation33_spill] sm:$0xff] %v7355_v45  ;;  %411 = vbcast.lane.b32.xlu0 %v385_v37, 304 }
  0xbe   :  { %415 = vbcast.lane.b32.xlu1 %v385_v37, 312  ;;  %v7359_v48 = vpop.permute.xlu1 %150  ;;  %v525_v37 = vrot.slane %v7351_v43, %v7292_v13 }
  0xbf   :  { %12405 = vst [vmem:[#allocation34_spill] sm:$0xff] %v7359_v48  ;;  %v7361_v49 = vpop.permute.xlu0 %158 }
  0xc0   :  { %12406 = vst [vmem:[#allocation35_spill] sm:$0xff] %v7361_v49  ;;  %422 = vbcast.lane.b32.xlu0 %v420_v46, 256 }
  0xc2   :  { %426 = vbcast.lane.b32.xlu1 %v420_v46, 264  ;;  %v7363_v50 = vpop.permute.xlu1 %154 }
  0xc3   :  { %12407 = vst [vmem:[#allocation36_spill] sm:$0xff] %v7363_v50  ;;  %v7365_v51 = vpop.permute.xlu0 %166 }
  0xc4   :  { %12408 = vst [vmem:[#allocation37_spill] sm:$0xff] %v7365_v51  ;;  %430 = vbcast.lane.b32.xlu0 %v420_v46, 272 }
  0xc6   :  { %434 = vbcast.lane.b32.xlu1 %v420_v46, 280  ;;  %v7367_v52 = vpop.permute.xlu1 %162 }
  0xc7   :  { %12409 = vst [vmem:[#allocation38_spill] sm:$0xff] %v7367_v52  ;;  %v7369_v53 = vpop.permute.xlu0 %177 }
  0xc8   :  { %12410 = vst [vmem:[#allocation39_spill] sm:$0xff] %v7369_v53  ;;  %438 = vbcast.lane.b32.xlu0 %v420_v46, 288 }
  0xca   :  { %442 = vbcast.lane.b32.xlu1 %v420_v46, 296  ;;  %v7371_v54 = vpop.permute.xlu1 %170 }
  0xcb   :  { %12411 = vst [vmem:[#allocation40_spill] sm:$0xff] %v7371_v54  ;;  %v7373_v55 = vpop.permute.xlu0 %185 }
  0xcc   :  { %12412 = vst [vmem:[#allocation41_spill] sm:$0xff] %v7373_v55  ;;  %446 = vbcast.lane.b32.xlu0 %v420_v46, 304 }
  0xce   :  { %450 = vbcast.lane.b32.xlu1 %v420_v46, 312  ;;  %v7377_v57 = vpop.permute.xlu1 %181 }
  0xcf   :  { %12413 = vst [vmem:[#allocation42_spill] sm:$0xff] %v7377_v57  ;;  %v7379_v58 = vpop.permute.xlu0 %193 }
  0xd0   :  { %12414 = vst [vmem:[#allocation43_spill] sm:$0xff] %v7379_v58  ;;  %457 = vbcast.lane.b32.xlu0 %v455_v56, 256 }
  0xd2   :  { %461 = vbcast.lane.b32.xlu1 %v455_v56, 264  ;;  %v7381_v59 = vpop.permute.xlu1 %189 }
  0xd3   :  { %12415 = vst [vmem:[#allocation44_spill] sm:$0xff] %v7381_v59  ;;  %v7383_v60 = vpop.permute.xlu0 %201 }
  0xd4   :  { %12416 = vst [vmem:[#allocation45_spill] sm:$0xff] %v7383_v60  ;;  %465 = vbcast.lane.b32.xlu0 %v455_v56, 272 }
  0xd6   :  { %469 = vbcast.lane.b32.xlu1 %v455_v56, 280  ;;  %v7385_v61 = vpop.permute.xlu1 %197 }
  0xd7   :  { %12417 = vst [vmem:[#allocation46_spill] sm:$0xff] %v7385_v61  ;;  %v7387_v62 = vpop.permute.xlu0 %212 }
  0xd8   :  { %12418 = vst [vmem:[#allocation47_spill] sm:$0xff] %v7387_v62  ;;  %473 = vbcast.lane.b32.xlu0 %v455_v56, 288 }
  0xda   :  { %477 = vbcast.lane.b32.xlu1 %v455_v56, 296  ;;  %v7389_v63 = vpop.permute.xlu1 %205 }
  0xdb   :  { %12419 = vst [vmem:[#allocation48_spill] sm:$0xff] %v7389_v63  ;;  %v7391_v0 = vpop.permute.xlu0 %220 }
  0xdc   :  { %12420 = vst [vmem:[#allocation49_spill] sm:$0xff] %v7391_v0  ;;  %481 = vbcast.lane.b32.xlu0 %v455_v56, 304 }
  0xde   :  { %485 = vbcast.lane.b32.xlu1 %v455_v56, 312  ;;  %v7395_v5 = vpop.permute.xlu1 %216 }
  0xdf   :  { %12421 = vst [vmem:[#allocation50_spill] sm:$0xff] %v7395_v5  ;;  %v7397_v6 = vpop.permute.xlu0 %228 }
  0xe0   :  { %12422 = vst [vmem:[#allocation51_spill] sm:$0xff] %v7397_v6  ;;  %492 = vbcast.lane.b32.xlu0 %v490_v2, 256 }
  0xe2   :  { %496 = vbcast.lane.b32.xlu1 %v490_v2, 264  ;;  %v7399_v8 = vpop.permute.xlu1 %224 }
  0xe3   :  { %12423 = vst [vmem:[#allocation52_spill] sm:$0xff] %v7399_v8  ;;  %v7401_v12 = vpop.permute.xlu0 %236 }
  0xe4   :  { %12424 = vst [vmem:[#allocation53_spill] sm:$0xff] %v7401_v12  ;;  %500 = vbcast.lane.b32.xlu0 %v490_v2, 272 }
  0xe6   :  { %504 = vbcast.lane.b32.xlu1 %v490_v2, 280  ;;  %v7403_v14 = vpop.permute.xlu1 %232 }
  0xe7   :  { %12425 = vst [vmem:[#allocation54_spill] sm:$0xff] %v7403_v14  ;;  %v7405_v20 = vpop.permute.xlu0 %247 }
  0xe8   :  { %12426 = vst [vmem:[#allocation55_spill] sm:$0xff] %v7405_v20  ;;  %508 = vbcast.lane.b32.xlu0 %v490_v2, 288 }
  0xea   :  { %512 = vbcast.lane.b32.xlu1 %v490_v2, 296  ;;  %v7407_v22 = vpop.permute.xlu1 %240 }
  0xeb   :  { %12427 = vst [vmem:[#allocation56_spill] sm:$0xff] %v7407_v22  ;;  %v7409_v27 = vpop.permute.xlu0 %255 }
  0xec   :  { %12428 = vst [vmem:[#allocation57_spill] sm:$0xff] %v7409_v27  ;;  %516 = vbcast.lane.b32.xlu0 %v490_v2, 304 }
  0xee   :  { %520 = vbcast.lane.b32.xlu1 %v490_v2, 312  ;;  %v7413_v46 = vpop.permute.xlu1 %251 }
  0xef   :  { %12429 = vst [vmem:[#allocation58_spill] sm:$0xff] %v7413_v46  ;;  %v7415_v47 = vpop.permute.xlu0 %263 }
  0xf0   :  { %12430 = vst [vmem:[#allocation59_spill] sm:$0xff] %v7415_v47  ;;  %527 = vbcast.lane.b32.xlu0 %v525_v37, 256 }
  0xf2   :  { %531 = vbcast.lane.b32.xlu1 %v525_v37, 264  ;;  %v7417_v56 = vpop.permute.xlu1 %259 }
  0xf3   :  { %12431 = vst [vmem:[#allocation60_spill] sm:$0xff] %v7417_v56  ;;  %v7419_v9 = vpop.permute.xlu0 %271 }
  0xf4   :  { %12432 = vst [vmem:[#allocation61_spill] sm:$0xff] %v7419_v9  ;;  %535 = vbcast.lane.b32.xlu0 %v525_v37, 272 }
  0xf6   :  { %539 = vbcast.lane.b32.xlu1 %v525_v37, 280  ;;  %v7421_v7 = vpop.permute.xlu1 %267 }
  0xf7   :  { %12433 = vst [vmem:[#allocation62_spill] sm:$0xff] %v7421_v7  ;;  %v7423_v4 = vpop.permute.xlu0 %282 }
  0xf8   :  { %12434 = vst [vmem:[#allocation63_spill] sm:$0xff] %v7423_v4  ;;  %543 = vbcast.lane.b32.xlu0 %v525_v37, 288 }
  0xfa   :  { %547 = vbcast.lane.b32.xlu1 %v525_v37, 296  ;;  %v7425_v13 = vpop.permute.xlu1 %275 }
  0xfb   :  { %12435 = vst [vmem:[#allocation64_spill] sm:$0xff] %v7425_v13  ;;  %v7427_v2 = vpop.permute.xlu0 %290 }
  0xfc   :  { %12436 = vst [vmem:[#allocation65_spill] sm:$0xff] %v7427_v2  ;;  %551 = vbcast.lane.b32.xlu0 %v525_v37, 304 }
  0xfe   :  { %555 = vbcast.lane.b32.xlu1 %v525_v37, 312  ;;  %v7431_v1 = vpop.permute.xlu1 %286 }
  0xff   :  { %12437 = vst [vmem:[#allocation66_spill] sm:$0xff] %v7431_v1  ;;  %v7433_v39 = vpop.permute.xlu0 %298 }
 0x100   :  { %12438 = vst [vmem:[#allocation67_spill] sm:$0xff] %v7433_v39  ;;  %562 = vbcast.lane.b32.xlu0 %v560_v42, 256 }
 0x102   :  { %566 = vbcast.lane.b32.xlu1 %v560_v42, 264  ;;  %v7435_v36 = vpop.permute.xlu1 %294 }
 0x103   :  { %12439 = vst [vmem:[#allocation68_spill] sm:$0xff] %v7435_v36  ;;  %v7437_v41 = vpop.permute.xlu0 %306 }
 0x104   :  { %12440 = vst [vmem:[#allocation69_spill] sm:$0xff] %v7437_v41  ;;  %570 = vbcast.lane.b32.xlu0 %v560_v42, 272 }
 0x106   :  { %574 = vbcast.lane.b32.xlu1 %v560_v42, 280  ;;  %v7439_v40 = vpop.permute.xlu1 %302 }
 0x107   :  { %12441 = vst [vmem:[#allocation70_spill] sm:$0xff] %v7439_v40  ;;  %v7441_v38 = vpop.permute.xlu0 %317 }
 0x108   :  { %12442 = vst [vmem:[#allocation71_spill] sm:$0xff] %v7441_v38  ;;  %578 = vbcast.lane.b32.xlu0 %v560_v42, 288 }
 0x10a   :  { %582 = vbcast.lane.b32.xlu1 %v560_v42, 296  ;;  %v7443_v15 = vpop.permute.xlu1 %310 }
 0x10b   :  { %12443 = vst [vmem:[#allocation72_spill] sm:$0xff] %v7443_v15  ;;  %v7445_v37 = vpop.permute.xlu0 %325 }
 0x10c   :  { %12444 = vst [vmem:[#allocation73_spill] sm:$0xff] %v7445_v37  ;;  %586 = vbcast.lane.b32.xlu0 %v560_v42, 304 }
 0x10e   :  { %590 = vbcast.lane.b32.xlu1 %v560_v42, 312  ;;  %v7449_v19 = vpop.permute.xlu1 %321 }
 0x10f   :  { %12445 = vst [vmem:[#allocation74_spill] sm:$0xff] %v7449_v19  ;;  %v7451_v18 = vpop.permute.xlu0 %333 }
 0x110   :  { %12446 = vst [vmem:[#allocation75_spill] sm:$0xff] %v7451_v18  ;;  %597 = vbcast.lane.b32.xlu0 %v595_v24, 256 }
 0x112   :  { %601 = vbcast.lane.b32.xlu1 %v595_v24, 264  ;;  %v7453_v16 = vpop.permute.xlu1 %329 }
 0x113   :  { %12447 = vst [vmem:[#allocation76_spill] sm:$0xff] %v7453_v16  ;;  %v7455_v17 = vpop.permute.xlu0 %341 }
 0x114   :  { %12448 = vst [vmem:[#allocation77_spill] sm:$0xff] %v7455_v17  ;;  %605 = vbcast.lane.b32.xlu0 %v595_v24, 272 }
 0x116   :  { %609 = vbcast.lane.b32.xlu1 %v595_v24, 280  ;;  %v7457_v3 = vpop.permute.xlu1 %337 }
 0x117   :  { %12449 = vst [vmem:[#allocation78_spill] sm:$0xff] %v7457_v3  ;;  %v7459_v11 = vpop.permute.xlu0 %352 }
 0x118   :  { %12450 = vst [vmem:[#allocation79_spill] sm:$0xff] %v7459_v11  ;;  %613 = vbcast.lane.b32.xlu0 %v595_v24, 288 }
 0x11a   :  { %617 = vbcast.lane.b32.xlu1 %v595_v24, 296  ;;  %v7461_v21 = vpop.permute.xlu1 %345 }
 0x11b   :  { %12451 = vst [vmem:[#allocation80_spill] sm:$0xff] %v7461_v21  ;;  %v7463_v42 = vpop.permute.xlu0 %360 }
 0x11c   :  { %12452 = vst [vmem:[#allocation81_spill] sm:$0xff] %v7463_v42  ;;  %621 = vbcast.lane.b32.xlu0 %v595_v24, 304 }
 0x11e   :  { %625 = vbcast.lane.b32.xlu1 %v595_v24, 312  ;;  %v7467_v35 = vpop.permute.xlu1 %356 }
 0x11f   :  { %12453 = vst [vmem:[#allocation82_spill] sm:$0xff] %v7467_v35  ;;  %v7469_v17 = vpop.permute.xlu0 %368 }
 0x120   :  { %12454 = vst [vmem:[#allocation83_spill] sm:$0xff] %v7469_v17  ;;  %632 = vbcast.lane.b32.xlu0 %v630_v10, 256  ;;  %v665_v17 = vrot.slane %v7351_v43, %v7328_v34  ;;  %v7502_v34 = vmul.f32 0.00390625, %v7311_v26  ;;  %v7519_v26 = vmul.f32 0.00390625, %v7309_v25 }
 0x122   :  { %636 = vbcast.lane.b32.xlu1 %v630_v10, 264  ;;  %v7471_v18 = vpop.permute.xlu1 %364  ;;  %12469 = vst [vmem:[#allocation98_spill] sm:$0xff] %v7502_v34  ;;  %12472 = vst [vmem:[#allocation101_spill] sm:$0xff] %v7519_v26 }
 0x123   :  { %12455 = vst [vmem:[#allocation84_spill] sm:$0xff] %v7471_v18  ;;  %v7473_v11 = vpop.permute.xlu0 %376 }
 0x124   :  { %12456 = vst [vmem:[#allocation85_spill] sm:$0xff] %v7473_v11  ;;  %640 = vbcast.lane.b32.xlu0 %v630_v10, 272 }
 0x126   :  { %644 = vbcast.lane.b32.xlu1 %v630_v10, 280  ;;  %v7475_v21 = vpop.permute.xlu1 %372 }
 0x127   :  { %12457 = vst [vmem:[#allocation86_spill] sm:$0xff] %v7475_v21  ;;  %v7477_v42 = vpop.permute.xlu0 %387 }
 0x128   :  { %12458 = vst [vmem:[#allocation87_spill] sm:$0xff] %v7477_v42  ;;  %648 = vbcast.lane.b32.xlu0 %v630_v10, 288 }
 0x12a   :  { %652 = vbcast.lane.b32.xlu1 %v630_v10, 296  ;;  %v7479_v23 = vpop.permute.xlu1 %380 }
 0x12b   :  { %12459 = vst [vmem:[#allocation88_spill] sm:$0xff] %v7479_v23  ;;  %v7481_v24 = vpop.permute.xlu0 %395 }
 0x12c   :  { %12460 = vst [vmem:[#allocation89_spill] sm:$0xff] %v7481_v24  ;;  %656 = vbcast.lane.b32.xlu0 %v630_v10, 304 }
 0x12e   :  { %660 = vbcast.lane.b32.xlu1 %v630_v10, 312  ;;  %v7485_v18 = vpop.permute.xlu1 %391 }
 0x12f   :  { %12461 = vst [vmem:[#allocation90_spill] sm:$0xff] %v7485_v18  ;;  %v7487_v11 = vpop.permute.xlu0 %403 }
 0x130   :  { %12462 = vst [vmem:[#allocation91_spill] sm:$0xff] %v7487_v11  ;;  %667 = vbcast.lane.b32.xlu0 %v665_v17, 256  ;;  %v7505_v11 = vmul.f32 0.00390625, %v7317_v29 }
 0x132   :  { %671 = vbcast.lane.b32.xlu1 %v665_v17, 264  ;;  %v7489_v21 = vpop.permute.xlu1 %399 }
 0x133   :  { %12463 = vst [vmem:[#allocation92_spill] sm:$0xff] %v7489_v21  ;;  %v7491_v42 = vpop.permute.xlu0 %411  ;;  %v7514_v21 = vmul.f32 0.00390625, %v7315_v28  ;;  %v827_v28 = vmul.f32 %v7359_v48, %v7519_v26 }
 0x134   :  { %12464 = vst [vmem:[#allocation93_spill] sm:$0xff] %v7491_v42  ;;  %675 = vbcast.lane.b32.xlu0 %v665_v17, 272  ;;  %v825_v42 = vmul.f32 %v7355_v45, %v7502_v34  ;;  %v7528_v45 = vmul.f32 0.00390625, %v7319_v30 }
 0x135   :  { %v828_v29 = vmul.f32 %v7363_v50, %v7514_v21 }
 0x136   :  { %679 = vbcast.lane.b32.xlu1 %v665_v17, 280  ;;  %v7493_v23 = vpop.permute.xlu1 %407  ;;  %v830_v25 = vmul.f32 %v7367_v52, %v7528_v45 }
 0x137   :  { %12465 = vst [vmem:[#allocation94_spill] sm:$0xff] %v7493_v23  ;;  %v7495_v24 = vpop.permute.xlu0 %422 }
 0x138   :  { %12466 = vst [vmem:[#allocation95_spill] sm:$0xff] %v7495_v24  ;;  %683 = vbcast.lane.b32.xlu0 %v665_v17, 288 }
 0x13a   :  { %687 = vbcast.lane.b32.xlu1 %v665_v17, 296  ;;  %v7497_v43 = vpop.permute.xlu1 %415 }
 0x13b   :  { %12467 = vst [vmem:[#allocation96_spill] sm:$0xff] %v7497_v43  ;;  %v7499_v10 = vpop.permute.xlu0 %430 }
 0x13c   :  { %12468 = vst [vmem:[#allocation97_spill] sm:$0xff] %v7499_v10  ;;  %691 = vbcast.lane.b32.xlu0 %v665_v17, 304  ;;  %v826_v10 = vmul.f32 %v7353_v44, %v7505_v11 }
 0x13e   :  { %695 = vbcast.lane.b32.xlu1 %v665_v17, 312  ;;  %v7509_v23 = vpop.permute.xlu1 %426 }
 0x13f   :  { %12470 = vst [vmem:[#allocation99_spill] sm:$0xff] %v7509_v23  ;;  %v7511_v24 = vpop.permute.xlu0 %438 }
 0x140   :  { %12471 = vst [vmem:[#allocation100_spill] sm:$0xff] %v7511_v24  ;;  %1338 = vperm.xlu0 %7072, %v825_v42   ;;  %v7533_v42 = vmul.f32 0.00390625, %v7321_v31 }
 0x142   :  { %v7523_v43 = vpop.permute.xlu1 %434  ;;  %1341 = vperm.xlu1 %7073, %v826_v10   ;;  %12475 = vst [vmem:[#allocation104_spill] sm:$0xff] %v7533_v42  ;;  %v7542_v10 = vmul.f32 0.00390625, %v7323_v32  ;;  %v829_v30 = vmul.f32 %v7361_v49, %v7533_v42  ;;  %v834_v32 = vmul.f32 %v7377_v57, %v7505_v11 }
 0x143   :  { %12473 = vst [vmem:[#allocation102_spill] sm:$0xff] %v7523_v43  ;;  %v7525_v17 = vpop.permute.xlu0 %446 }
 0x144   :  { %12474 = vst [vmem:[#allocation103_spill] sm:$0xff] %v7525_v17  ;;  %1347 = vperm.xlu0 %7072, %v828_v29   ;;  %12478 = vst [vmem:[#allocation107_spill] sm:$0xff] %v7542_v10  ;;  %v7547_v29 = vmul.f32 0.00390625, %v7325_v33  ;;  %v832_v31 = vmul.f32 %v7371_v54, %v7542_v10 }
 0x146   :  { %v7537_v24 = vpop.permute.xlu1 %442  ;;  %1344 = vperm.xlu1 %7073, %v827_v28   ;;  %12479 = vst [vmem:[#allocation108_spill] sm:$0xff] %v7547_v29  ;;  %v831_v28 = vmul.f32 %v7365_v51, %v7547_v29 }
 0x147   :  { %12476 = vst [vmem:[#allocation105_spill] sm:$0xff] %v7537_v24  ;;  %v7539_v50 = vpop.permute.xlu0 %457 }
 0x148   :  { %12477 = vst [vmem:[#allocation106_spill] sm:$0xff] %v7539_v50  ;;  %1353 = vperm.xlu0 %7072, %v830_v25   ;;  %v833_v25 = vmul.f32 %v7369_v53, %v7502_v34 }
 0x14a   :  { %v7551_v48 = vpop.permute.xlu1 %450  ;;  %1350 = vperm.xlu1 %7073, %v829_v30   ;;  %v836_v30 = vmul.f32 %v7381_v59, %v7514_v21 }
 0x14b   :  { %12480 = vst [vmem:[#allocation109_spill] sm:$0xff] %v7551_v48  ;;  %v7553_v17 = vpop.permute.xlu0 %465 }
 0x14c   :  { %12481 = vst [vmem:[#allocation110_spill] sm:$0xff] %v7553_v17  ;;  %1359 = vperm.xlu0 %7072, %v832_v31   ;;  %v835_v31 = vmul.f32 %v7373_v55, %v7519_v26 }
 0x14e   :  { %v7559_v49 = vpop.permute.xlu1 %461  ;;  %1356 = vperm.xlu1 %7073, %v831_v28   ;;  %v838_v28 = vmul.f32 %v7385_v61, %v7528_v45 }
 0x14f   :  { %12482 = vst [vmem:[#allocation111_spill] sm:$0xff] %v7559_v49  ;;  %v7561_v33 = vpop.permute.xlu0 %473 }
 0x150   :  { %12483 = vst [vmem:[#allocation112_spill] sm:$0xff] %v7561_v33  ;;  %1365 = vperm.xlu0 %7072, %v834_v32   ;;  %v837_v32 = vmul.f32 %v7379_v58, %v7533_v42 }
 0x152   :  { %v7567_v17 = vpop.permute.xlu1 %469  ;;  %1362 = vperm.xlu1 %7073, %v833_v25   ;;  %v840_v25 = vmul.f32 %v7389_v63, %v7542_v10 }
 0x153   :  { %12484 = vst [vmem:[#allocation113_spill] sm:$0xff] %v7567_v17  ;;  %v7569_v51 = vpop.permute.xlu0 %481 }
 0x154   :  { %12485 = vst [vmem:[#allocation114_spill] sm:$0xff] %v7569_v51  ;;  %1371 = vperm.xlu0 %7072, %v836_v30   ;;  %v839_v30 = vmul.f32 %v7383_v60, %v7547_v29 }
 0x156   :  { %v7575_v33 = vpop.permute.xlu1 %477  ;;  %1368 = vperm.xlu1 %7073, %v835_v31   ;;  %v842_v31 = vmul.f32 %v7395_v5, %v7505_v11 }
 0x157   :  { %12486 = vst [vmem:[#allocation115_spill] sm:$0xff] %v7575_v33  ;;  %v7577_v53 = vpop.permute.xlu0 %492 }
 0x158   :  { %12487 = vst [vmem:[#allocation116_spill] sm:$0xff] %v7577_v53  ;;  %1377 = vperm.xlu0 %7072, %v838_v28   ;;  %v841_v28 = vmul.f32 %v7387_v62, %v7502_v34 }
 0x15a   :  { %v7583_v51 = vpop.permute.xlu1 %485  ;;  %1374 = vperm.xlu1 %7073, %v837_v32   ;;  %v844_v32 = vmul.f32 %v7399_v8, %v7514_v21 }
 0x15b   :  { %12488 = vst [vmem:[#allocation117_spill] sm:$0xff] %v7583_v51  ;;  %v7585_v55 = vpop.permute.xlu0 %500 }
 0x15c   :  { %12489 = vst [vmem:[#allocation118_spill] sm:$0xff] %v7585_v55  ;;  %1383 = vperm.xlu0 %7072, %v840_v25   ;;  %v843_v25 = vmul.f32 %v7391_v0, %v7519_v26 }
 0x15e   :  { %v7591_v53 = vpop.permute.xlu1 %496  ;;  %1380 = vperm.xlu1 %7073, %v839_v30   ;;  %v846_v30 = vmul.f32 %v7403_v14, %v7528_v45 }
 0x15f   :  { %12490 = vst [vmem:[#allocation119_spill] sm:$0xff] %v7591_v53  ;;  %v7593_v58 = vpop.permute.xlu0 %508 }
 0x160   :  { %12491 = vst [vmem:[#allocation120_spill] sm:$0xff] %v7593_v58  ;;  %1389 = vperm.xlu0 %7072, %v842_v31   ;;  %v845_v31 = vmul.f32 %v7397_v6, %v7533_v42 }
 0x162   :  { %v7599_v55 = vpop.permute.xlu1 %504  ;;  %1386 = vperm.xlu1 %7073, %v841_v28   ;;  %v848_v28 = vmul.f32 %v7407_v22, %v7542_v10 }
 0x163   :  { %12492 = vst [vmem:[#allocation121_spill] sm:$0xff] %v7599_v55  ;;  %v7601_v60 = vpop.permute.xlu0 %516 }
 0x164   :  { %12493 = vst [vmem:[#allocation122_spill] sm:$0xff] %v7601_v60  ;;  %1395 = vperm.xlu0 %7072, %v844_v32   ;;  %v847_v32 = vmul.f32 %v7401_v12, %v7547_v29 }
 0x166   :  { %v7607_v58 = vpop.permute.xlu1 %512  ;;  %1392 = vperm.xlu1 %7073, %v843_v25   ;;  %v850_v25 = vmul.f32 %v7413_v46, %v7505_v11 }
 0x167   :  { %12494 = vst [vmem:[#allocation123_spill] sm:$0xff] %v7607_v58  ;;  %v7609_v62 = vpop.permute.xlu0 %527 }
 0x168   :  { %12495 = vst [vmem:[#allocation124_spill] sm:$0xff] %v7609_v62  ;;  %1401 = vperm.xlu0 %7072, %v846_v30   ;;  %v849_v30 = vmul.f32 %v7405_v20, %v7502_v34 }
 0x16a   :  { %v7615_v60 = vpop.permute.xlu1 %520  ;;  %1398 = vperm.xlu1 %7073, %v845_v31   ;;  %v852_v31 = vmul.f32 %v7417_v56, %v7514_v21 }
 0x16b   :  { %12496 = vst [vmem:[#allocation125_spill] sm:$0xff] %v7615_v60  ;;  %v7617_v0 = vpop.permute.xlu0 %535 }
 0x16c   :  { %12497 = vst [vmem:[#allocation126_spill] sm:$0xff] %v7617_v0  ;;  %1407 = vperm.xlu0 %7072, %v848_v28   ;;  %v851_v28 = vmul.f32 %v7409_v27, %v7519_v26 }
 0x16e   :  { %v7623_v62 = vpop.permute.xlu1 %531  ;;  %1404 = vperm.xlu1 %7073, %v847_v32   ;;  %v854_v32 = vmul.f32 %v7421_v7, %v7528_v45 }
 0x16f   :  { %12498 = vst [vmem:[#allocation127_spill] sm:$0xff] %v7623_v62  ;;  %v7625_v6 = vpop.permute.xlu0 %543 }
 0x170   :  { %12499 = vst [vmem:[#allocation128_spill] sm:$0xff] %v7625_v6  ;;  %1413 = vperm.xlu0 %7072, %v850_v25   ;;  %v853_v25 = vmul.f32 %v7415_v47, %v7533_v42 }
 0x172   :  { %v7631_v0 = vpop.permute.xlu1 %539  ;;  %1410 = vperm.xlu1 %7073, %v849_v30   ;;  %v856_v30 = vmul.f32 %v7425_v13, %v7542_v10 }
 0x173   :  { %12500 = vst [vmem:[#allocation129_spill] sm:$0xff] %v7631_v0  ;;  %v7633_v12 = vpop.permute.xlu0 %551 }
 0x174   :  { %12501 = vst [vmem:[#allocation130_spill] sm:$0xff] %v7633_v12  ;;  %1419 = vperm.xlu0 %7072, %v852_v31   ;;  %v855_v31 = vmul.f32 %v7419_v9, %v7547_v29 }
 0x176   :  { %v7639_v6 = vpop.permute.xlu1 %547  ;;  %1416 = vperm.xlu1 %7073, %v851_v28   ;;  %v858_v28 = vmul.f32 %v7431_v1, %v7505_v11 }
 0x177   :  { %12502 = vst [vmem:[#allocation131_spill] sm:$0xff] %v7639_v6  ;;  %v7641_v20 = vpop.permute.xlu0 %562 }
 0x178   :  { %12503 = vst [vmem:[#allocation132_spill] sm:$0xff] %v7641_v20  ;;  %1425 = vperm.xlu0 %7072, %v854_v32   ;;  %v857_v32 = vmul.f32 %v7423_v4, %v7502_v34 }
 0x17a   :  { %v7647_v12 = vpop.permute.xlu1 %555  ;;  %1422 = vperm.xlu1 %7073, %v853_v25   ;;  %v860_v25 = vmul.f32 %v7435_v36, %v7514_v21 }
 0x17b   :  { %12504 = vst [vmem:[#allocation133_spill] sm:$0xff] %v7647_v12  ;;  %v7649_v27 = vpop.permute.xlu0 %570 }
 0x17c   :  { %12505 = vst [vmem:[#allocation134_spill] sm:$0xff] %v7649_v27  ;;  %1431 = vperm.xlu0 %7072, %v856_v30   ;;  %v859_v30 = vmul.f32 %v7427_v2, %v7519_v26 }
 0x17e   :  { %v7655_v20 = vpop.permute.xlu1 %566  ;;  %1428 = vperm.xlu1 %7073, %v855_v31   ;;  %v862_v31 = vmul.f32 %v7439_v40, %v7528_v45 }
 0x17f   :  { %12506 = vst [vmem:[#allocation135_spill] sm:$0xff] %v7655_v20  ;;  %v7657_v47 = vpop.permute.xlu0 %578 }
 0x180   :  { %12507 = vst [vmem:[#allocation136_spill] sm:$0xff] %v7657_v47  ;;  %1437 = vperm.xlu0 %7072, %v858_v28   ;;  %v861_v28 = vmul.f32 %v7433_v39, %v7533_v42 }
 0x182   :  { %v7663_v27 = vpop.permute.xlu1 %574  ;;  %1434 = vperm.xlu1 %7073, %v857_v32   ;;  %v864_v32 = vmul.f32 %v7443_v15, %v7542_v10 }
 0x183   :  { %12508 = vst [vmem:[#allocation137_spill] sm:$0xff] %v7663_v27  ;;  %v7665_v9 = vpop.permute.xlu0 %586 }
 0x184   :  { %12509 = vst [vmem:[#allocation138_spill] sm:$0xff] %v7665_v9  ;;  %1443 = vperm.xlu0 %7072, %v860_v25   ;;  %v863_v25 = vmul.f32 %v7437_v41, %v7547_v29 }
 0x186   :  { %v7671_v47 = vpop.permute.xlu1 %582  ;;  %1440 = vperm.xlu1 %7073, %v859_v30   ;;  %v866_v30 = vmul.f32 %v7449_v19, %v7505_v11 }
 0x187   :  { %12510 = vst [vmem:[#allocation139_spill] sm:$0xff] %v7671_v47  ;;  %v7673_v4 = vpop.permute.xlu0 %597 }
 0x188   :  { %12511 = vst [vmem:[#allocation140_spill] sm:$0xff] %v7673_v4  ;;  %1449 = vperm.xlu0 %7072, %v862_v31   ;;  %v865_v31 = vmul.f32 %v7441_v38, %v7502_v34 }
 0x18a   :  { %v7679_v9 = vpop.permute.xlu1 %590  ;;  %1446 = vperm.xlu1 %7073, %v861_v28   ;;  %v868_v28 = vmul.f32 %v7453_v16, %v7514_v21 }
 0x18b   :  { %12512 = vst [vmem:[#allocation141_spill] sm:$0xff] %v7679_v9  ;;  %v7681_v2 = vpop.permute.xlu0 %605 }
 0x18c   :  { %12513 = vst [vmem:[#allocation142_spill] sm:$0xff] %v7681_v2  ;;  %1455 = vperm.xlu0 %7072, %v864_v32   ;;  %v867_v32 = vmul.f32 %v7445_v37, %v7519_v26 }
 0x18e   :  { %v7687_v4 = vpop.permute.xlu1 %601  ;;  %1452 = vperm.xlu1 %7073, %v863_v25   ;;  %v870_v25 = vmul.f32 %v7457_v3, %v7528_v45 }
 0x18f   :  { %12514 = vst [vmem:[#allocation143_spill] sm:$0xff] %v7687_v4  ;;  %v7689_v39 = vpop.permute.xlu0 %613 }
 0x190   :  { %12515 = vst [vmem:[#allocation144_spill] sm:$0xff] %v7689_v39  ;;  %1461 = vperm.xlu0 %7072, %v866_v30   ;;  %v12520_v30 = vld [vmem:[#allocation75_spill] sm:$0xff] }
 0x191   :  { %v869_v16 = vmul.f32 %v12520_v30, %v7533_v42 }
 0x192   :  { %v7695_v2 = vpop.permute.xlu1 %609  ;;  %1458 = vperm.xlu1 %7073, %v865_v31   ;;  %v12521_v31 = vld [vmem:[#allocation80_spill] sm:$0xff] }
 0x193   :  { %12516 = vst [vmem:[#allocation145_spill] sm:$0xff] %v7695_v2  ;;  %v7697_v41 = vpop.permute.xlu0 %621  ;;  %v872_v19 = vmul.f32 %v12521_v31, %v7542_v10 }
 0x194   :  { %12517 = vst [vmem:[#allocation146_spill] sm:$0xff] %v7697_v41  ;;  %1467 = vperm.xlu0 %7072, %v868_v28   ;;  %v12524_v28 = vld [vmem:[#allocation77_spill] sm:$0xff] }
 0x195   :  { %v871_v3 = vmul.f32 %v12524_v28, %v7547_v29 }
 0x196   :  { %v7703_v39 = vpop.permute.xlu1 %617  ;;  %1464 = vperm.xlu1 %7073, %v867_v32   ;;  %v874_v32 = vmul.f32 %v7467_v35, %v7505_v11 }
 0x197   :  { %12518 = vst [vmem:[#allocation147_spill] sm:$0xff] %v7703_v39  ;;  %v7705_v38 = vpop.permute.xlu0 %632 }
 0x198   :  { %12519 = vst [vmem:[#allocation148_spill] sm:$0xff] %v7705_v38  ;;  %1473 = vperm.xlu0 %7072, %v870_v25   ;;  %v12527_v25 = vld [vmem:[#allocation79_spill] sm:$0xff] }
 0x199   :  { %v873_v31 = vmul.f32 %v12527_v25, %v7502_v34 }
 0x19a   :  { %v7711_v41 = vpop.permute.xlu1 %625  ;;  %1470 = vperm.xlu1 %7073, %v869_v16   ;;  %v12528_v16 = vld [vmem:[#allocation84_spill] sm:$0xff] }
 0x19b   :  { %12522 = vst [vmem:[#allocation149_spill] sm:$0xff] %v7711_v41  ;;  %v7713_v37 = vpop.permute.xlu0 %640  ;;  %v876_v15 = vmul.f32 %v12528_v16, %v7514_v21 }
 0x19c   :  { %12523 = vst [vmem:[#allocation150_spill] sm:$0xff] %v7713_v37  ;;  %1479 = vperm.xlu0 %7072, %v872_v19   ;;  %v12531_v19 = vld [vmem:[#allocation81_spill] sm:$0xff] }
 0x19d   :  { %v875_v35 = vmul.f32 %v12531_v19, %v7519_v26 }
 0x19e   :  { %v7719_v38 = vpop.permute.xlu1 %636  ;;  %1476 = vperm.xlu1 %7073, %v871_v3   ;;  %v12532_v3 = vld [vmem:[#allocation86_spill] sm:$0xff] }
 0x19f   :  { %12525 = vst [vmem:[#allocation151_spill] sm:$0xff] %v7719_v38  ;;  %v7721_v30 = vpop.permute.xlu0 %648  ;;  %v878_v40 = vmul.f32 %v12532_v3, %v7528_v45 }
 0x1a0   :  { %12526 = vst [vmem:[#allocation152_spill] sm:$0xff] %v7721_v30  ;;  %1485 = vperm.xlu0 %7072, %v874_v32   ;;  %v12535_v32 = vld [vmem:[#allocation83_spill] sm:$0xff] }
 0x1a1   :  { %v877_v16 = vmul.f32 %v12535_v32, %v7533_v42 }
 0x1a2   :  { %v7727_v37 = vpop.permute.xlu1 %644  ;;  %1482 = vperm.xlu1 %7073, %v873_v31   ;;  %v12536_v31 = vld [vmem:[#allocation88_spill] sm:$0xff] }
 0x1a3   :  { %12529 = vst [vmem:[#allocation153_spill] sm:$0xff] %v7727_v37  ;;  %v7729_v28 = vpop.permute.xlu0 %656  ;;  %v880_v36 = vmul.f32 %v12536_v31, %v7542_v10 }
 0x1a4   :  { %12530 = vst [vmem:[#allocation154_spill] sm:$0xff] %v7729_v28  ;;  %1491 = vperm.xlu0 %7072, %v876_v15   ;;  %v12539_v15 = vld [vmem:[#allocation85_spill] sm:$0xff] }
 0x1a5   :  { %v879_v3 = vmul.f32 %v12539_v15, %v7547_v29 }
 0x1a6   :  { %v7735_v30 = vpop.permute.xlu1 %652  ;;  %1488 = vperm.xlu1 %7073, %v875_v35   ;;  %v882_v35 = vmul.f32 %v7485_v18, %v7505_v11  ;;  %v12545_v18 = vld [vmem:[#allocation94_spill] sm:$0xff] }
 0x1a7   :  { %12533 = vst [vmem:[#allocation155_spill] sm:$0xff] %v7735_v30  ;;  %v7737_v25 = vpop.permute.xlu0 %667  ;;  %v886_v13 = vmul.f32 %v12545_v18, %v7528_v45 }
 0x1a8   :  { %12534 = vst [vmem:[#allocation156_spill] sm:$0xff] %v7737_v25  ;;  %1497 = vperm.xlu0 %7072, %v878_v40   ;;  %v12541_v40 = vld [vmem:[#allocation87_spill] sm:$0xff] }
 0x1a9   :  { %v881_v32 = vmul.f32 %v12541_v40, %v7502_v34 }
 0x1aa   :  { %v7743_v28 = vpop.permute.xlu1 %660  ;;  %1494 = vperm.xlu1 %7073, %v877_v16   ;;  %v12543_v16 = vld [vmem:[#allocation92_spill] sm:$0xff] }
 0x1ab   :  { %12537 = vst [vmem:[#allocation157_spill] sm:$0xff] %v7743_v28  ;;  %v7745_v19 = vpop.permute.xlu0 %675  ;;  %v884_v1 = vmul.f32 %v12543_v16, %v7514_v21  ;;  %v12548_v16 = vld [vmem:[#allocation96_spill] sm:$0xff] }
 0x1ac   :  { %12538 = vst [vmem:[#allocation158_spill] sm:$0xff] %v7745_v19  ;;  %1503 = vperm.xlu0 %7072, %v880_v36   ;;  %v12544_v36 = vld [vmem:[#allocation89_spill] sm:$0xff]  ;;  %v888_v7 = vmul.f32 %v12548_v16, %v7542_v10 }
 0x1ad   :  { %v883_v15 = vmul.f32 %v12544_v36, %v7519_v26 }
 0x1ae   :  { %v7751_v25 = vpop.permute.xlu1 %671  ;;  %1500 = vperm.xlu1 %7073, %v879_v3  }
 0x1af   :  { %12540 = vst [vmem:[#allocation159_spill] sm:$0xff] %v7751_v25  ;;  %v7755_v31 = vpop.permute.xlu0 %683 }
 0x1b0   :  { %1509 = vperm.xlu0 %7072, %v882_v35   ;;  %12542 = vst [vmem:[#allocation160_spill] sm:$0xff] %v7755_v31  ;;  %v12547_v35 = vld [vmem:[#allocation91_spill] sm:$0xff] }
 0x1b1   :  { %v885_v31 = vmul.f32 %v12547_v35, %v7533_v42 }
 0x1b2   :  { %v7759_v19 = vpop.permute.xlu1 %679  ;;  %1506 = vperm.xlu1 %7073, %v881_v32  }
 0x1b3   :  { %v7767_v40 = vpop.permute.xlu0 %691 }
 0x1b4   :  { %1515 = vperm.xlu0 %7072, %v884_v1   ;;  %12546 = vst [vmem:[#allocation161_spill] sm:$0xff] %v7767_v40  ;;  %v12550_v1 = vld [vmem:[#allocation93_spill] sm:$0xff] }
 0x1b5   :  { %v887_v18 = vmul.f32 %v12550_v1, %v7547_v29 }
 0x1b6   :  { %v7765_v3 = vpop.permute.xlu1 %687  ;;  %1512 = vperm.xlu1 %7073, %v883_v15   ;;  %v890_v15 = vmul.f32 %v7509_v23, %v7505_v11 }
 0x1b8   :  { %1521 = vperm.xlu0 %7072, %v886_v13   ;;  %v892_v13 = vmul.f32 %v7523_v43, %v7514_v21  ;;  %v898_v43 = vmul.f32 %v7559_v49, %v7505_v11  ;;  %v904_v49 = vmul.f32 %v7583_v51, %v7542_v10  ;;  %v910_v51 = vmul.f32 %v7607_v58, %v7528_v45 }
 0x1b9   :  { %v916_v58 = vmul.f32 %v7631_v0, %v7514_v21  ;;  %v922_v0 = vmul.f32 %v7655_v20, %v7505_v11  ;;  %v928_v20 = vmul.f32 %v7679_v9, %v7542_v10  ;;  %v934_v9 = vmul.f32 %v7703_v39, %v7528_v45 }
 0x1ba   :  { %v7773_v32 = vpop.permute.xlu1 %695  ;;  %1518 = vperm.xlu1 %7073, %v885_v31  }
 0x1bb   :  { %12549 = vst [vmem:[#allocation162_spill] sm:$0xff] %v7773_v32  ;;  %v7775_v36 = vpop.permute.xlu0 %1338 }
 0x1bc   :  { %1527 = vperm.xlu0 %7072, %v888_v7   ;;  %v894_v7 = vmul.f32 %v7537_v24, %v7528_v45  ;;  %v900_v24 = vmul.f32 %v7567_v17, %v7514_v21  ;;  %v906_v17 = vmul.f32 %v7591_v53, %v7505_v11  ;;  %v912_v53 = vmul.f32 %v7615_v60, %v7542_v10 }
 0x1bd   :  { %v918_v60 = vmul.f32 %v7639_v6, %v7528_v45  ;;  %v924_v6 = vmul.f32 %v7663_v27, %v7514_v21  ;;  %v930_v27 = vmul.f32 %v7687_v4, %v7505_v11  ;;  %v12557_v4 = vld [vmem:[#allocation24_spill] sm:$0xff] }
 0x1be   :  { %v7781_v40 = vpop.permute.xlu1 %1341  ;;  %1524 = vperm.xlu1 %7073, %v887_v18   ;;  %v896_v18 = vmul.f32 %v7551_v48, %v7542_v10  ;;  %v902_v48 = vmul.f32 %v7575_v33, %v7528_v45  ;;  %v908_v33 = vmul.f32 %v7599_v55, %v7514_v21  ;;  %v914_v55 = vmul.f32 %v7623_v62, %v7505_v11 }
 0x1bf   :  { %v7783_v35 = vpop.permute.xlu0 %1347  ;;  %v920_v62 = vmul.f32 %v7647_v12, %v7542_v10  ;;  %v926_v12 = vmul.f32 %v7671_v47, %v7528_v45  ;;  %v932_v47 = vmul.f32 %v7695_v2, %v7514_v21 }
 0x1c0   :  { %1533 = vperm.xlu0 %7072, %v890_v15  }
 0x1c2   :  { %v7787_v16 = vpop.permute.xlu1 %1344 }
 0x1c3   :  { %v7789_v31 = vpop.permute.xlu0 %1353 }
 0x1c4   :  { %1539 = vperm.xlu0 %7072, %v892_v13  }
 0x1c6   :  { %v7793_v1 = vpop.permute.xlu1 %1350 }
 0x1c7   :  { %v7795_v23 = vpop.permute.xlu0 %1359 }
 0x1c8   :  { %1545 = vperm.xlu0 %7072, %v894_v7  }
 0x1ca   :  { %v7799_v15 = vpop.permute.xlu1 %1356 }
 0x1cb   :  { %v7801_v56 = vpop.permute.xlu0 %1365 }
 0x1cc   :  { %1551 = vperm.xlu0 %7072, %v896_v18  }
 0x1ce   :  { %v7805_v13 = vpop.permute.xlu1 %1362 }
 0x1cf   :  { %v7807_v46 = vpop.permute.xlu0 %1371 }
 0x1d0   :  { %1557 = vperm.xlu0 %7072, %v898_v43  }
 0x1d2   :  { %v7811_v7 = vpop.permute.xlu1 %1368 }
 0x1d3   :  { %v7813_v22 = vpop.permute.xlu0 %1377 }
 0x1d4   :  { %1563 = vperm.xlu0 %7072, %v900_v24  }
 0x1d6   :  { %v7817_v18 = vpop.permute.xlu1 %1374 }
 0x1d7   :  { %v7819_v14 = vpop.permute.xlu0 %1383 }
 0x1d8   :  { %1569 = vperm.xlu0 %7072, %v902_v48  }
 0x1da   :  { %v7823_v43 = vpop.permute.xlu1 %1380 }
 0x1db   :  { %v7825_v8 = vpop.permute.xlu0 %1389 }
 0x1dc   :  { %1575 = vperm.xlu0 %7072, %v904_v49  }
 0x1de   :  { %v7829_v24 = vpop.permute.xlu1 %1386 }
 0x1df   :  { %v7831_v50 = vpop.permute.xlu0 %1395 }
 0x1e0   :  { %1581 = vperm.xlu0 %7072, %v906_v17  }
 0x1e2   :  { %v7835_v48 = vpop.permute.xlu1 %1392 }
 0x1e3   :  { %v7837_v5 = vpop.permute.xlu0 %1401 }
 0x1e4   :  { %1587 = vperm.xlu0 %7072, %v908_v33  }
 0x1e6   :  { %v7841_v49 = vpop.permute.xlu1 %1398 }
 0x1e7   :  { %v7843_v29 = vpop.permute.xlu0 %1407 }
 0x1e8   :  { %1593 = vperm.xlu0 %7072, %v910_v51  }
 0x1ea   :  { %v7847_v17 = vpop.permute.xlu1 %1404 }
 0x1eb   :  { %v7849_v63 = vpop.permute.xlu0 %1413 }
 0x1ec   :  { %1599 = vperm.xlu0 %7072, %v912_v53  }
 0x1ee   :  { %v7853_v33 = vpop.permute.xlu1 %1410 }
 0x1ef   :  { %v7855_v42 = vpop.permute.xlu0 %1419 }
 0x1f0   :  { %1605 = vperm.xlu0 %7072, %v914_v55  }
 0x1f2   :  { %v7859_v51 = vpop.permute.xlu1 %1416 }
 0x1f3   :  { %v7861_v61 = vpop.permute.xlu0 %1425 }
 0x1f4   :  { %1611 = vperm.xlu0 %7072, %v916_v58  }
 0x1f6   :  { %v7865_v53 = vpop.permute.xlu1 %1422 }
 0x1f7   :  { %v7867_v26 = vpop.permute.xlu0 %1431 }
 0x1f8   :  { %12551 = vst [vmem:[#allocation163_spill] sm:$0xff] %v7867_v26  ;;  %1617 = vperm.xlu0 %7072, %v918_v60   ;;  %v7918_v26 = vmul.f32 0.00390625, %v12557_v4 }
 0x1fa   :  { %v7871_v55 = vpop.permute.xlu1 %1428  ;;  %12558 = vst [vmem:[#allocation24_spill] sm:$0xff] %v7918_v26  ;;  %v12562_v26 = vld [vmem:[#allocation8_spill] sm:$0xff] }
 0x1fb   :  { %v7873_v59 = vpop.permute.xlu0 %1437 }
 0x1fc   :  { %1623 = vperm.xlu0 %7072, %v920_v62  }
 0x1fe   :  { %v7877_v58 = vpop.permute.xlu1 %1434 }
 0x1ff   :  { %v7879_v34 = vpop.permute.xlu0 %1443 }
 0x200   :  { %1629 = vperm.xlu0 %7072, %v922_v0  }
 0x202   :  { %v7883_v60 = vpop.permute.xlu1 %1440 }
 0x203   :  { %v7885_v57 = vpop.permute.xlu0 %1449 }
 0x204   :  { %12552 = vst [vmem:[#allocation164_spill] sm:$0xff] %v7885_v57  ;;  %1635 = vperm.xlu0 %7072, %v924_v6   ;;  %v12563_v57 = vld [vmem:[#allocation12_spill] sm:$0xff] }
 0x206   :  { %v7889_v62 = vpop.permute.xlu1 %1446 }
 0x207   :  { %v7891_v54 = vpop.permute.xlu0 %1455 }
 0x208   :  { %12553 = vst [vmem:[#allocation165_spill] sm:$0xff] %v7891_v54  ;;  %1641 = vperm.xlu0 %7072, %v926_v12  }
 0x20a   :  { %v7895_v0 = vpop.permute.xlu1 %1452 }
 0x20b   :  { %12554 = vst [vmem:[#allocation166_spill] sm:$0xff] %v7895_v0  ;;  %v7897_v52 = vpop.permute.xlu0 %1461  ;;  %v12560_v0 = vld [vmem:[#allocation9_spill] sm:$0xff] }
 0x20c   :  { %1647 = vperm.xlu0 %7072, %v928_v20  }
 0x20e   :  { %v7901_v6 = vpop.permute.xlu1 %1458 }
 0x20f   :  { %v7903_v44 = vpop.permute.xlu0 %1467 }
 0x210   :  { %1653 = vperm.xlu0 %7072, %v930_v27   ;;  %v936_v27 = vmul.f32 %v7711_v41, %v7542_v10  ;;  %v2163_v41 = vrot.slane %v7805_v13, %v12562_v26  ;;  %v7946_v13 = vmul.f32 %v7743_v28, %v7542_v10  ;;  %v2206_v28 = vrot.slane %v7825_v8, %v12560_v0 }
 0x212   :  { %v7907_v12 = vpop.permute.xlu1 %1464 }
 0x213   :  { %v7909_v32 = vpop.permute.xlu0 %1473 }
 0x214   :  { %12555 = vst [vmem:[#allocation167_spill] sm:$0xff] %v7909_v32  ;;  %1659 = vperm.xlu0 %7072, %v932_v47   ;;  %v2115_v47 = vrot.slane %v7781_v40, %v12560_v0  ;;  %v940_v32 = vmul.f32 %v7727_v37, %v7514_v21  ;;  %v2110_v40 = vrot.slane %v7775_v36, %v12562_v26 }
 0x216   :  { %v7913_v20 = vpop.permute.xlu1 %1470 }
 0x217   :  { %v7915_v54 = vpop.permute.xlu0 %1479 }
 0x218   :  { %12556 = vst [vmem:[#allocation168_spill] sm:$0xff] %v7915_v54  ;;  %1665 = vperm.xlu0 %7072, %v934_v9   ;;  %v938_v9 = vmul.f32 %v7719_v38, %v7505_v11  ;;  %v12561_v54 = vld [vmem:[#allocation10_spill] sm:$0xff]  ;;  %v2202_v38 = vrot.slane %v7829_v24, %v12562_v26  ;;  %v7960_v24 = vmul.f32 %v7759_v19, %v7514_v21  ;;  %v12564_v21 = vld [vmem:[#allocation11_spill] sm:$0xff] }
 0x219   :  { %v2122_v4 = vrot.slane %v7787_v16, %v12561_v54  ;;  %v942_v16 = vmul.f32 %v7735_v30, %v7528_v45  ;;  %v2211_v36 = vrot.slane %v7835_v48, %v12561_v54  ;;  %v2117_v30 = vsel %vm2116_vm0, %v2115_v47, %v2110_v40 }
 0x21a   :  { %v7922_v2 = vpop.permute.xlu1 %1476  ;;  %v2129_v47 = vrot.slane %v7783_v35, %v12564_v21  ;;  %v2182_v40 = vrot.slane %v7817_v18, %v12563_v57 }
 0x21b   :  { %12559 = vst [vmem:[#allocation169_spill] sm:$0xff] %v7922_v2  ;;  %v7926_v39 = vpop.permute.xlu0 %1485  ;;  %v2172_v2 = vrot.slane %v7811_v7, %v12561_v54  ;;  %v7956_v7 = vmul.f32 %v7751_v25, %v7505_v11  ;;  %v2124_v48 = vsel %vm2123_vm1, %v2122_v4, %v2117_v30  ;;  %v2136_v11 = vrot.slane %v7793_v1, %v12563_v57 }
 0x21c   :  { %1671 = vperm.xlu0 %7072, %v936_v27   ;;  %v2167_v27 = vrot.slane %v7801_v56, %v12560_v0  ;;  %v7969_v56 = vmul.f32 %v7765_v3, %v7528_v45  ;;  %v2207_v45 = vsel %vm2116_vm0, %v2206_v28, %v2202_v38  ;;  %v2177_v30 = vrot.slane %v7807_v46, %v12564_v21 }
 0x21d   :  { %v2212_v4 = vsel %vm2123_vm1, %v2211_v36, %v2207_v45  ;;  %v2241_v1 = vrot.slane %v7853_v33, %v12562_v26  ;;  %v2216_v38 = vrot.slane %v7831_v50, %v12564_v21  ;;  %v2250_v46 = vrot.slane %v7859_v51, %v12561_v54  ;;  %v12567_v36 = vld [vmem:[#allocation15_spill] sm:$0xff] }
 0x21e   :  { %v7952_v37 = vpop.permute.xlu1 %1482  ;;  %v2168_v25 = vsel %vm2116_vm0, %v2167_v27, %v2163_v41  ;;  %v2221_v41 = vrot.slane %v7841_v49, %v12563_v57  ;;  %v12566_v49 = vld [vmem:[#allocation14_spill] sm:$0xff]  ;;  %v2260_v45 = vrot.slane %v7865_v53, %v12563_v57 }
 0x21f   :  { %v7965_v10 = vpop.permute.xlu0 %1491  ;;  %v2173_v8 = vsel %vm2123_vm1, %v2172_v2, %v2168_v25  ;;  %v2131_v25 = vsel %vm2130_vm2, %v2129_v47, %v2124_v48  ;;  %v2150_v33 = vrot.slane %v7799_v15, %v12566_v49  ;;  %v2157_v48 = vrot.slane %v7795_v23, %v12567_v36 }
 0x220   :  { %1677 = vperm.xlu0 %7072, %v938_v9   ;;  %v12565_v9 = vld [vmem:[#allocation13_spill] sm:$0xff]  ;;  %v2138_v18 = vsel %vm2137_vm3, %v2136_v11, %v2131_v25  ;;  %v2178_v27 = vsel %vm2130_vm2, %v2177_v30, %v2173_v8  ;;  %v2192_v51 = vrot.slane %v7823_v43, %v12566_v49  ;;  %v2217_v47 = vsel %vm2130_vm2, %v2216_v38, %v2212_v4 }
 0x221   :  { %v2143_v2 = vrot.slane %v7789_v31, %v12565_v9  ;;  %v2245_v31 = vrot.slane %v7849_v63, %v12560_v0  ;;  %v2183_v50 = vsel %vm2137_vm3, %v2182_v40, %v2178_v27  ;;  %v2187_v11 = vrot.slane %v7813_v22, %v12565_v9 }
 0x222   :  { %v7988_v35 = vpop.permute.xlu1 %1488  ;;  %v2222_v15 = vsel %vm2137_vm3, %v2221_v41, %v2217_v47  ;;  %v2231_v8 = vrot.slane %v7847_v17, %v12566_v49  ;;  %v2226_v40 = vrot.slane %v7837_v5, %v12565_v9  ;;  %v2197_v17 = vrot.slane %v7819_v14, %v12567_v36 }
 0x223   :  { %v7997_v28 = vpop.permute.xlu0 %1497  ;;  %v2246_v63 = vsel %vm2116_vm0, %v2245_v31, %v2241_v1  ;;  %v2145_v23 = vsel %vm2144_vm4, %v2143_v2, %v2138_v18  ;;  %v2188_v4 = vsel %vm2144_vm4, %v2187_v11, %v2183_v50  ;;  %v2255_v41 = vrot.slane %v7855_v42, %v12564_v21 }
 0x224   :  { %1683 = vperm.xlu0 %7072, %v940_v32   ;;  %v2251_v43 = vsel %vm2123_vm1, %v2250_v46, %v2246_v63  ;;  %v2152_v30 = vsel %vm2151_vm5, %v2150_v33, %v2145_v23  ;;  %v2193_v5 = vsel %vm2151_vm5, %v2192_v51, %v2188_v4  ;;  %v2236_v1 = vrot.slane %v7843_v29, %v12567_v36 }
 0x225   :  { %v2227_v53 = vsel %vm2144_vm4, %v2226_v40, %v2222_v15  ;;  %v2280_v2 = vrot.slane %v7877_v58, %v12562_v26  ;;  %v2256_v14 = vsel %vm2130_vm2, %v2255_v41, %v2251_v43  ;;  %v2289_v38 = vrot.slane %v7883_v60, %v12561_v54  ;;  %v12570_v41 = vld [vmem:[#allocation169_spill] sm:$0xff] }
 0x226   :  { %v8017_v32 = vpop.permute.xlu1 %1494  ;;  %v2232_v25 = vsel %vm2151_vm5, %v2231_v8, %v2227_v53  ;;  %v2319_v42 = vrot.slane %v7901_v6, %v12562_v26  ;;  %v2261_v46 = vsel %vm2137_vm3, %v2260_v45, %v2256_v14  ;;  %v2284_v29 = vrot.slane %v7873_v59, %v12560_v0 }
 0x227   :  { %v8025_v22 = vpop.permute.xlu0 %1503  ;;  %v2328_v58 = vrot.slane %v7907_v12, %v12561_v54  ;;  %v2358_v18 = vrot.slane %v7952_v37, %v12562_v26  ;;  %v8055_v27 = vsel %vm2158_vm6, %v2157_v48, %v2152_v30  ;;  %v2265_v60 = vrot.slane %v7861_v61, %v12565_v9 }
 0x228   :  { %1689 = vperm.xlu0 %7072, %v942_v16   ;;  %v2323_v6 = vrot.slane %v7897_v52, %v12560_v0  ;;  %v2367_v31 = vrot.slane %v7988_v35, %v12561_v54  ;;  %v8065_v59 = vsel %vm2158_vm6, %v2197_v17, %v2193_v5  ;;  %v8068_v37 = vsel %vm2158_vm6, %v2236_v1, %v2232_v25 }
 0x229   :  { %v2285_v12 = vsel %vm2116_vm0, %v2284_v29, %v2280_v2  ;;  %v2362_v48 = vrot.slane %v7926_v39, %v12560_v0  ;;  %v2266_v61 = vsel %vm2144_vm4, %v2265_v60, %v2261_v46  ;;  %v2299_v35 = vrot.slane %v7889_v62, %v12563_v57  ;;  %v12571_v2 = vld [vmem:[#allocation167_spill] sm:$0xff] }
 0x22a   :  { %v8045_v16 = vpop.permute.xlu1 %1500  ;;  %v2290_v52 = vsel %vm2123_vm1, %v2289_v38, %v2285_v12  ;;  %v2294_v51 = vrot.slane %v7879_v34, %v12564_v21  ;;  %v2338_v39 = vrot.slane %v7913_v20, %v12563_v57  ;;  %v2333_v8 = vrot.slane %v7903_v44, %v12564_v21  ;;  %v12568_v20 = vld [vmem:[#allocation164_spill] sm:$0xff] }
 0x22b   :  { %v1510_v33 = vpop.permute.xlu0 %1509  ;;  %v2363_v11 = vsel %vm2116_vm0, %v2362_v48, %v2358_v18  ;;  %v2377_v63 = vrot.slane %v8017_v32, %v12563_v57  ;;  %v2270_v34 = vrot.slane %v7871_v55, %v12566_v49  ;;  %v2304_v40 = vrot.slane %v12568_v20, %v12565_v9  ;;  %v12569_v32 = vld [vmem:[#allocation166_spill] sm:$0xff] }
 0x22c   :  { %1695 = vperm.xlu0 %7072, %v7946_v13   ;;  %v2324_v13 = vsel %vm2116_vm0, %v2323_v6, %v2319_v42  ;;  %v2368_v62 = vsel %vm2123_vm1, %v2367_v31, %v2363_v11  ;;  %v2295_v43 = vsel %vm2130_vm2, %v2294_v51, %v2290_v52  ;;  %v2372_v44 = vrot.slane %v7965_v10, %v12564_v21 }
 0x22d   :  { %v2329_v47 = vsel %vm2123_vm1, %v2328_v58, %v2324_v13  ;;  %v2300_v45 = vsel %vm2137_vm3, %v2299_v35, %v2295_v43  ;;  %v2309_v30 = vrot.slane %v12569_v32, %v12566_v49  ;;  %v2348_v5 = vrot.slane %v12570_v41, %v12566_v49 }
 0x22e   :  { %v1507_v50 = vpop.permute.xlu1 %1506  ;;  %v2334_v17 = vsel %vm2130_vm2, %v2333_v8, %v2329_v47  ;;  %v2373_v1 = vsel %vm2130_vm2, %v2372_v44, %v2368_v62  ;;  %v2343_v25 = vrot.slane %v12571_v2, %v12565_v9  ;;  %v2387_v38 = vrot.slane %v8045_v16, %v12566_v49 }
 0x22f   :  { %v1516_v15 = vpop.permute.xlu0 %1515  ;;  %v2397_v23 = vrot.slane %v1507_v50, %v12562_v26  ;;  %v2339_v55 = vsel %vm2137_vm3, %v2338_v39, %v2334_v17  ;;  %v2378_v14 = vsel %vm2137_vm3, %v2377_v63, %v2373_v1  ;;  %v2271_v46 = vsel %vm2151_vm5, %v2270_v34, %v2266_v61  ;;  %v12574_v50 = vld [vmem:[#allocation168_spill] sm:$0xff]  ;;  %v12575_v63 = vld [vmem:[#allocation107_spill] sm:$0xff] }
 0x230   :  { %1701 = vperm.xlu0 %7072, %v7956_v7   ;;  %v2401_v7 = vrot.slane %v1510_v33, %v12560_v0  ;;  %v2305_v29 = vsel %vm2144_vm4, %v2304_v40, %v2300_v45  ;;  %v2382_v58 = vrot.slane %v7997_v28, %v12565_v9  ;;  %v12572_v33 = vld [vmem:[#allocation163_spill] sm:$0xff]  ;;  %v2344_v16 = vsel %vm2144_vm4, %v2343_v25, %v2339_v55 }
 0x231   :  { %v2275_v60 = vrot.slane %v12572_v33, %v12567_v36  ;;  %v2310_v6 = vsel %vm2151_vm5, %v2309_v30, %v2305_v29  ;;  %v2411_v31 = vrot.slane %v1516_v15, %v12564_v21  ;;  %v2349_v61 = vsel %vm2151_vm5, %v2348_v5, %v2344_v16  ;;  %v12584_v16 = vld [vmem:[#allocation40_spill] sm:$0xff] }
 0x232   :  { %v1513_v4 = vpop.permute.xlu1 %1512  ;;  %v2402_v42 = vsel %vm2116_vm0, %v2401_v7, %v2397_v23  ;;  %v2383_v52 = vsel %vm2144_vm4, %v2382_v58, %v2378_v14  ;;  %v2353_v51 = vrot.slane %v12574_v50, %v12567_v36  ;;  %v3370_v11 = vsel %vm3369_vm7, %v8065_v59, %v8055_v27  ;;  %v12576_v23 = vld [vmem:[#allocation162_spill] sm:$0xff]  ;;  %v12577_v7 = vld [vmem:[#allocation24_spill] sm:$0xff] }
 0x233   :  { %v2406_v10 = vrot.slane %v1513_v4, %v12561_v54  ;;  %v1522_v53 = vpop.permute.xlu0 %1521  ;;  %v2276_v13 = vsel %vm2158_vm6, %v2275_v60, %v2271_v46  ;;  %v2388_v47 = vsel %vm2151_vm5, %v2387_v38, %v2383_v52  ;;  %v2392_v8 = vrot.slane %v8025_v22, %v12567_v36  ;;  %v12578_v4 = vld [vmem:[#allocation32_spill] sm:$0xff]  ;;  %v12582_v58 = vld [vmem:[#allocation38_spill] sm:$0xff] }
 0x234   :  { %1707 = vperm.xlu0 %7072, %v7960_v24   ;;  %v12573_v24 = vld [vmem:[#allocation165_spill] sm:$0xff]  ;;  %v952_v34 = vmul.f32 %v12576_v23, %v12575_v63  ;;  %v3372_v20 = vsel %vm3371_vm8, %v8068_v37, %v3370_v11  ;;  %v2354_v40 = vsel %vm2158_vm6, %v2353_v51, %v2349_v61  ;;  %v954_v55 = vmul.f32 %v12578_v4, %v12577_v7  ;;  %v12580_v14 = vld [vmem:[#allocation36_spill] sm:$0xff]  ;;  %v12583_v60 = vld [vmem:[#allocation30_spill] sm:$0xff] }
 0x235   :  { %v2407_v18 = vsel %vm2123_vm1, %v2406_v10, %v2402_v42  ;;  %v2314_v48 = vrot.slane %v12573_v24, %v12567_v36  ;;  %v3374_v27 = vsel %vm3373_vm9, %v2276_v13, %v3372_v20  ;;  %v2393_v22 = vsel %vm2158_vm6, %v2392_v8, %v2388_v47  ;;  %v12581_v46 = vld [vmem:[#allocation28_spill] sm:$0xff]  ;;  %v12585_v24 = vld [vmem:[#allocation42_spill] sm:$0xff]  ;;  %v12589_v47 = vld [vmem:[#allocation101_spill] sm:$0xff] }
 0x236   :  { %v1519_v12 = vpop.permute.xlu1 %1518  ;;  %v2412_v39 = vsel %vm2130_vm2, %v2411_v31, %v2407_v18  ;;  %v8175_v29 = vmul.f32 0.00390625, %v12581_v46  ;;  %v12586_v52 = vld [vmem:[#allocation98_spill] sm:$0xff]  ;;  %v12588_v13 = vld [vmem:[#allocation44_spill] sm:$0xff] }
 0x237   :  { %v2416_v28 = vrot.slane %v1519_v12, %v12563_v57  ;;  %v1528_v35 = vpop.permute.xlu0 %1527  ;;  %v2315_v15 = vsel %vm2158_vm6, %v2314_v48, %v2310_v6  ;;  %v8182_v6 = vmul.f32 0.00390625, %v12583_v60  ;;  %v962_v48 = vmul.f32 %v12585_v24, %v12577_v7  ;;  %v12592_v63 = vld [vmem:[#allocation104_spill] sm:$0xff]  ;;  %v12605_v24 = vld [vmem:[#allocation58_spill] sm:$0xff] }
 0x238   :  { %1713 = vperm.xlu0 %7072, %v7969_v56   ;;  %v2421_v56 = vrot.slane %v1522_v53, %v12565_v9  ;;  %v2431_v45 = vrot.slane %v1528_v35, %v12567_v36  ;;  %v3376_v37 = vsel %vm3375_vm10, %v2315_v15, %v3374_v27  ;;  %v12579_v53 = vld [vmem:[#allocation26_spill] sm:$0xff]  ;;  %v958_v18 = vmul.f32 %v12582_v58, %v8175_v29  ;;  %v12595_v27 = vld [vmem:[#allocation108_spill] sm:$0xff] }
 0x239   :  { %v2417_v62 = vsel %vm2137_vm3, %v2416_v28, %v2412_v39  ;;  %v3378_v17 = vsel %vm3377_vm11, %v2354_v40, %v3376_v37  ;;  %v8167_v2 = vmul.f32 0.00390625, %v12579_v53  ;;  %v960_v31 = vmul.f32 %v12584_v16, %v8182_v6  ;;  %v12587_v28 = vld [vmem:[#allocation95_spill] sm:$0xff]  ;;  %v12590_v39 = vld [vmem:[#allocation97_spill] sm:$0xff]  ;;  %v12591_v15 = vld [vmem:[#allocation46_spill] sm:$0xff] }
 0x23a   :  { %v1525_v43 = vpop.permute.xlu1 %1524  ;;  %v2422_v32 = vsel %vm2144_vm4, %v2421_v56, %v2417_v62  ;;  %v3380_v5 = vsel %vm3379_vm12, %v2393_v22, %v3378_v17  ;;  %v889_v35 = vmul.f32 %v12587_v28, %v12586_v52  ;;  %v891_v11 = vmul.f32 %v12590_v39, %v12589_v47  ;;  %v12594_v40 = vld [vmem:[#allocation48_spill] sm:$0xff]  ;;  %v12601_v53 = vld [vmem:[#allocation54_spill] sm:$0xff] }
 0x23b   :  { %v2426_v59 = vrot.slane %v1525_v43, %v12566_v49  ;;  %v8151_v44 = vpop.permute.xlu0 %1533  ;;  %v956_v38 = vmul.f32 %v12580_v14, %v8167_v2  ;;  %v964_v50 = vmul.f32 %v12588_v13, %v8167_v2  ;;  %v966_v8 = vmul.f32 %v12591_v15, %v8175_v29  ;;  %v12599_v4 = vld [vmem:[#allocation52_spill] sm:$0xff]  ;;  %v12604_v16 = vld [vmem:[#allocation114_spill] sm:$0xff] }
 0x23c   :  { %1719 = vperm.xlu0 %7072, %v952_v34   ;;  %v12593_v34 = vld [vmem:[#allocation100_spill] sm:$0xff]  ;;  %v968_v56 = vmul.f32 %v12594_v40, %v8182_v6 }
 0x23d   :  { %v2427_v30 = vsel %vm2151_vm5, %v2426_v59, %v2422_v32  ;;  %v893_v20 = vmul.f32 %v12593_v34, %v12592_v63  ;;  %v12596_v59 = vld [vmem:[#allocation103_spill] sm:$0xff]  ;;  %v12603_v58 = vld [vmem:[#allocation56_spill] sm:$0xff] }
 0x23e   :  { %v2432_v41 = vsel %vm2158_vm6, %v2431_v45, %v2427_v30  ;;  %v895_v22 = vmul.f32 %v12596_v59, %v12595_v27  ;;  %v12597_v45 = vld [vmem:[#allocation50_spill] sm:$0xff]  ;;  %v12606_v13 = vld [vmem:[#allocation116_spill] sm:$0xff] }
 0x23f   :  { %v8163_v1 = vpop.permute.xlu0 %1539  ;;  %v3382_v10 = vsel %vm3381_vm13, %v2432_v41, %v3380_v5  ;;  %v970_v32 = vmul.f32 %v12597_v45, %v12577_v7  ;;  %v12598_v30 = vld [vmem:[#allocation106_spill] sm:$0xff] }
 0x240   :  { %1725 = vperm.xlu0 %7072, %v954_v55   ;;  %v3409_v25 = vsel %vm3408_vm14, %v3382_v10, 0.0  ;;  %v897_v17 = vmul.f32 %v12598_v30, %v12586_v52  ;;  %v972_v55 = vmul.f32 %v12599_v4, %v8167_v2  ;;  %v12600_v5 = vld [vmem:[#allocation110_spill] sm:$0xff]  ;;  %v12611_v4 = vld [vmem:[#allocation64_spill] sm:$0xff] }
 0x241   :  { %3410 = vadd.xlane.f32.xlu1 %v3409_v25  ;;  %v899_v10 = vmul.f32 %v12600_v5, %v12589_v47  ;;  %v974_v25 = vmul.f32 %v12601_v53, %v8175_v29  ;;  %v12612_v53 = vld [vmem:[#allocation122_spill] sm:$0xff] }
 0x243   :  { %v8172_v42 = vpop.permute.xlu0 %1545 }
 0x244   :  { %1731 = vperm.xlu0 %7072, %v956_v38   ;;  %v12602_v38 = vld [vmem:[#allocation112_spill] sm:$0xff] }
 0x245   :  { %v901_v46 = vmul.f32 %v12602_v38, %v12592_v63 }
 0x247   :  { %v8179_v33 = vpop.permute.xlu0 %1551 }
 0x248   :  { %1737 = vperm.xlu0 %7072, %v958_v18   ;;  %v976_v18 = vmul.f32 %v12603_v58, %v8182_v6 }
 0x24b   :  { %v8186_v12 = vpop.permute.xlu0 %1557 }
 0x24c   :  { %1743 = vperm.xlu0 %7072, %v960_v31   ;;  %v903_v31 = vmul.f32 %v12604_v16, %v12595_v27 }
 0x24f   :  { %v8190_v61 = vpop.permute.xlu0 %1563 }
 0x250   :  { %1749 = vperm.xlu0 %7072, %v962_v48   ;;  %v978_v48 = vmul.f32 %v12605_v24, %v12577_v7 }
 0x252   :  { %1530 = vperm.xlu1 %7073, %v889_v35  }
 0x253   :  { %v8196_v51 = vpop.permute.xlu0 %1569 }
 0x254   :  { %1755 = vperm.xlu0 %7072, %v964_v50   ;;  %v905_v50 = vmul.f32 %v12606_v13, %v12586_v52  ;;  %v12635_v13 = vld [vmem:[#allocation142_spill] sm:$0xff] }
 0x256   :  { %1536 = vperm.xlu1 %7073, %v891_v11   ;;  %v12607_v11 = vld [vmem:[#allocation60_spill] sm:$0xff] }
 0x257   :  { %v8202_v62 = vpop.permute.xlu0 %1575  ;;  %v980_v15 = vmul.f32 %v12607_v11, %v8167_v2 }
 0x258   :  { %1761 = vperm.xlu0 %7072, %v966_v8  }
 0x25a   :  { %1542 = vperm.xlu1 %7073, %v893_v20   ;;  %v12608_v20 = vld [vmem:[#allocation118_spill] sm:$0xff] }
 0x25b   :  { %v8208_v43 = vpop.permute.xlu0 %1581  ;;  %v907_v40 = vmul.f32 %v12608_v20, %v12589_v47  ;;  %v12632_v20 = vld [vmem:[#allocation140_spill] sm:$0xff] }
 0x25c   :  { %1767 = vperm.xlu0 %7072, %v968_v56   ;;  %v12609_v56 = vld [vmem:[#allocation62_spill] sm:$0xff] }
 0x25e   :  { %1548 = vperm.xlu1 %7073, %v895_v22   ;;  %v982_v22 = vmul.f32 %v12609_v56, %v8175_v29  ;;  %v12617_v56 = vld [vmem:[#allocation70_spill] sm:$0xff] }
 0x25f   :  { %v8214_v37 = vpop.permute.xlu0 %1587 }
 0x260   :  { %1773 = vperm.xlu0 %7072, %v970_v32   ;;  %v12610_v32 = vld [vmem:[#allocation120_spill] sm:$0xff] }
 0x262   :  { %1554 = vperm.xlu1 %7073, %v897_v17   ;;  %v909_v17 = vmul.f32 %v12610_v32, %v12592_v63  ;;  %v12629_v32 = vld [vmem:[#allocation138_spill] sm:$0xff] }
 0x263   :  { %v8220_v41 = vpop.permute.xlu0 %1593 }
 0x264   :  { %1779 = vperm.xlu0 %7072, %v972_v55   ;;  %v984_v55 = vmul.f32 %v12611_v4, %v8182_v6  ;;  %v12618_v4 = vld [vmem:[#allocation128_spill] sm:$0xff] }
 0x266   :  { %1560 = vperm.xlu1 %7073, %v899_v10  }
 0x267   :  { %v8226_v14 = vpop.permute.xlu0 %1599 }
 0x268   :  { %1785 = vperm.xlu0 %7072, %v974_v25   ;;  %v911_v25 = vmul.f32 %v12612_v53, %v12595_v27  ;;  %v12627_v53 = vld [vmem:[#allocation136_spill] sm:$0xff] }
 0x26a   :  { %1566 = vperm.xlu1 %7073, %v901_v46   ;;  %v12613_v46 = vld [vmem:[#allocation66_spill] sm:$0xff] }
 0x26b   :  { %v8232_v60 = vpop.permute.xlu0 %1605  ;;  %v986_v58 = vmul.f32 %v12613_v46, %v12577_v7 }
 0x26c   :  { %1791 = vperm.xlu0 %7072, %v976_v18  }
 0x26e   :  { %1572 = vperm.xlu1 %7073, %v903_v31   ;;  %v12614_v31 = vld [vmem:[#allocation124_spill] sm:$0xff] }
 0x26f   :  { %v8238_v35 = vpop.permute.xlu0 %1611  ;;  %v913_v24 = vmul.f32 %v12614_v31, %v12586_v52  ;;  %v12624_v31 = vld [vmem:[#allocation134_spill] sm:$0xff] }
 0x270   :  { %1797 = vperm.xlu0 %7072, %v978_v48   ;;  %v12615_v48 = vld [vmem:[#allocation68_spill] sm:$0xff] }
 0x272   :  { %1578 = vperm.xlu1 %7073, %v905_v50   ;;  %v988_v50 = vmul.f32 %v12615_v48, %v8167_v2 }
 0x273   :  { %v8244_v8 = vpop.permute.xlu0 %1617 }
 0x274   :  { %1803 = vperm.xlu0 %7072, %v980_v15   ;;  %v12616_v15 = vld [vmem:[#allocation126_spill] sm:$0xff] }
 0x276   :  { %1584 = vperm.xlu1 %7073, %v907_v40   ;;  %v915_v40 = vmul.f32 %v12616_v15, %v12589_v47  ;;  %v12622_v15 = vld [vmem:[#allocation132_spill] sm:$0xff] }
 0x277   :  { %v8250_v45 = vpop.permute.xlu0 %1623 }
 0x278   :  { %1809 = vperm.xlu0 %7072, %v982_v22   ;;  %v990_v22 = vmul.f32 %v12617_v56, %v8175_v29 }
 0x27a   :  { %1590 = vperm.xlu1 %7073, %v909_v17  }
 0x27b   :  { %v8256_v10 = vpop.permute.xlu0 %1629 }
 0x27c   :  { %1815 = vperm.xlu0 %7072, %v984_v55   ;;  %v917_v55 = vmul.f32 %v12618_v4, %v12592_v63  ;;  %v921_v4 = vmul.f32 %v12622_v15, %v12586_v52  ;;  %v925_v15 = vmul.f32 %v12627_v53, %v12592_v63  ;;  %v929_v53 = vmul.f32 %v12632_v20, %v12586_v52 }
 0x27e   :  { %1596 = vperm.xlu1 %7073, %v911_v25   ;;  %v12619_v25 = vld [vmem:[#allocation72_spill] sm:$0xff] }
 0x27f   :  { %v8262_v18 = vpop.permute.xlu0 %1635  ;;  %v992_v46 = vmul.f32 %v12619_v25, %v8182_v6 }
 0x280   :  { %1821 = vperm.xlu0 %7072, %v986_v58  }
 0x282   :  { %1602 = vperm.xlu1 %7073, %v913_v24   ;;  %v12620_v24 = vld [vmem:[#allocation130_spill] sm:$0xff] }
 0x283   :  { %v8268_v11 = vpop.permute.xlu0 %1641  ;;  %v919_v48 = vmul.f32 %v12620_v24, %v12595_v27  ;;  %v923_v24 = vmul.f32 %v12624_v31, %v12589_v47  ;;  %v927_v31 = vmul.f32 %v12629_v32, %v12595_v27  ;;  %v931_v32 = vmul.f32 %v12635_v13, %v12589_v47 }
 0x284   :  { %1827 = vperm.xlu0 %7072, %v988_v50   ;;  %v12621_v50 = vld [vmem:[#allocation74_spill] sm:$0xff] }
 0x285   :  { %v994_v56 = vmul.f32 %v12621_v50, %v12577_v7 }
 0x286   :  { %1608 = vperm.xlu1 %7073, %v915_v40  }
 0x287   :  { %v8274_v17 = vpop.permute.xlu0 %1647 }
 0x288   :  { %1833 = vperm.xlu0 %7072, %v990_v22   ;;  %v12623_v22 = vld [vmem:[#allocation76_spill] sm:$0xff] }
 0x289   :  { %v996_v25 = vmul.f32 %v12623_v22, %v8167_v2 }
 0x28a   :  { %1614 = vperm.xlu1 %7073, %v917_v55  }
 0x28b   :  { %v8280_v58 = vpop.permute.xlu0 %1653 }
 0x28c   :  { %1839 = vperm.xlu0 %7072, %v992_v46   ;;  %v12625_v46 = vld [vmem:[#allocation78_spill] sm:$0xff] }
 0x28d   :  { %v998_v50 = vmul.f32 %v12625_v46, %v8175_v29 }
 0x28e   :  { %1620 = vperm.xlu1 %7073, %v919_v48  }
 0x28f   :  { %v8286_v40 = vpop.permute.xlu0 %1659 }
 0x290   :  { %1845 = vperm.xlu0 %7072, %v994_v56   ;;  %v12628_v56 = vld [vmem:[#allocation80_spill] sm:$0xff] }
 0x291   :  { %v1000_v22 = vmul.f32 %v12628_v56, %v8182_v6 }
 0x292   :  { %1626 = vperm.xlu1 %7073, %v921_v4  }
 0x293   :  { %v8292_v55 = vpop.permute.xlu0 %1665 }
 0x294   :  { %1851 = vperm.xlu0 %7072, %v996_v25   ;;  %v12630_v25 = vld [vmem:[#allocation82_spill] sm:$0xff] }
 0x295   :  { %v1002_v46 = vmul.f32 %v12630_v25, %v12577_v7 }
 0x296   :  { %1632 = vperm.xlu1 %7073, %v923_v24  }
 0x297   :  { %v8298_v48 = vpop.permute.xlu0 %1671 }
 0x298   :  { %12626 = vst [vmem:[#allocation10_spill] sm:$0xff] %v8298_v48  ;;  %1857 = vperm.xlu0 %7072, %v998_v50   ;;  %v12633_v50 = vld [vmem:[#allocation84_spill] sm:$0xff] }
 0x299   :  { %v1004_v56 = vmul.f32 %v12633_v50, %v8167_v2 }
 0x29a   :  { %1638 = vperm.xlu1 %7073, %v925_v15  }
 0x29b   :  { %v8304_v4 = vpop.permute.xlu0 %1677 }
 0x29c   :  { %1863 = vperm.xlu0 %7072, %v1000_v22   ;;  %v12636_v22 = vld [vmem:[#allocation86_spill] sm:$0xff] }
 0x29d   :  { %v1006_v25 = vmul.f32 %v12636_v22, %v8175_v29 }
 0x29e   :  { %1644 = vperm.xlu1 %7073, %v927_v31   ;;  %v12637_v31 = vld [vmem:[#allocation144_spill] sm:$0xff] }
 0x29f   :  { %v8310_v24 = vpop.permute.xlu0 %1683  ;;  %v933_v16 = vmul.f32 %v12637_v31, %v12592_v63 }
 0x2a0   :  { %12631 = vst [vmem:[#allocation12_spill] sm:$0xff] %v8310_v24  ;;  %1869 = vperm.xlu0 %7072, %v1002_v46   ;;  %v12639_v46 = vld [vmem:[#allocation88_spill] sm:$0xff] }
 0x2a1   :  { %v1008_v50 = vmul.f32 %v12639_v46, %v8182_v6 }
 0x2a2   :  { %1650 = vperm.xlu1 %7073, %v929_v53   ;;  %v12640_v53 = vld [vmem:[#allocation146_spill] sm:$0xff] }
 0x2a3   :  { %v8316_v15 = vpop.permute.xlu0 %1689  ;;  %v935_v20 = vmul.f32 %v12640_v53, %v12595_v27 }
 0x2a4   :  { %12634 = vst [vmem:[#allocation11_spill] sm:$0xff] %v8316_v15  ;;  %1875 = vperm.xlu0 %7072, %v1004_v56   ;;  %v12641_v56 = vld [vmem:[#allocation90_spill] sm:$0xff] }
 0x2a5   :  { %v1010_v13 = vmul.f32 %v12641_v56, %v12577_v7 }
 0x2a6   :  { %1656 = vperm.xlu1 %7073, %v931_v32   ;;  %v12643_v32 = vld [vmem:[#allocation148_spill] sm:$0xff] }
 0x2a7   :  { %v8324_v38 = vpop.permute.xlu0 %1695  ;;  %v937_v22 = vmul.f32 %v12643_v32, %v12586_v52 }
 0x2a8   :  { %12638 = vst [vmem:[#allocation13_spill] sm:$0xff] %v8324_v38  ;;  %1881 = vperm.xlu0 %7072, %v1006_v25   ;;  %v12644_v25 = vld [vmem:[#allocation92_spill] sm:$0xff]  ;;  %v12680_v38 = vld [vmem:[#allocation119_spill] sm:$0xff] }
 0x2a9   :  { %v1012_v31 = vmul.f32 %v12644_v25, %v8167_v2  ;;  %v1034_v48 = vmul.f32 %v12680_v38, %v12577_v7  ;;  %v12686_v38 = vld [vmem:[#allocation123_spill] sm:$0xff] }
 0x2aa   :  { %1662 = vperm.xlu1 %7073, %v933_v16   ;;  %v12645_v16 = vld [vmem:[#allocation150_spill] sm:$0xff] }
 0x2ab   :  { %v8332_v5 = vpop.permute.xlu0 %1701  ;;  %v939_v46 = vmul.f32 %v12645_v16, %v12589_v47 }
 0x2ac   :  { %1887 = vperm.xlu0 %7072, %v1008_v50   ;;  %12642 = vst [vmem:[#allocation15_spill] sm:$0xff] %v8332_v5  ;;  %v12647_v50 = vld [vmem:[#allocation94_spill] sm:$0xff] }
 0x2ad   :  { %v1014_v56 = vmul.f32 %v12647_v50, %v8175_v29 }
 0x2ae   :  { %1668 = vperm.xlu1 %7073, %v935_v20   ;;  %v12648_v20 = vld [vmem:[#allocation152_spill] sm:$0xff] }
 0x2af   :  { %v8340_v30 = vpop.permute.xlu0 %1707  ;;  %v941_v53 = vmul.f32 %v12648_v20, %v12592_v63 }
 0x2b0   :  { %1893 = vperm.xlu0 %7072, %v1010_v13   ;;  %12646 = vst [vmem:[#allocation164_spill] sm:$0xff] %v8340_v30  ;;  %v12649_v13 = vld [vmem:[#allocation96_spill] sm:$0xff] }
 0x2b1   :  { %v1016_v32 = vmul.f32 %v12649_v13, %v8182_v6 }
 0x2b2   :  { %1674 = vperm.xlu1 %7073, %v937_v22   ;;  %v12651_v22 = vld [vmem:[#allocation154_spill] sm:$0xff] }
 0x2b3   :  { %v8348_v59 = vpop.permute.xlu0 %1713  ;;  %v943_v25 = vmul.f32 %v12651_v22, %v12595_v27 }
 0x2b4   :  { %1899 = vperm.xlu0 %7072, %v1012_v31   ;;  %12650 = vst [vmem:[#allocation166_spill] sm:$0xff] %v8348_v59  ;;  %v12652_v31 = vld [vmem:[#allocation99_spill] sm:$0xff] }
 0x2b5   :  { %v1018_v16 = vmul.f32 %v12652_v31, %v12577_v7 }
 0x2b6   :  { %1680 = vperm.xlu1 %7073, %v939_v46   ;;  %v12653_v46 = vld [vmem:[#allocation156_spill] sm:$0xff] }
 0x2b7   :  { %v945_v50 = vmul.f32 %v12653_v46, %v12586_v52  ;;  %v8356_v34 = vpop.permute.xlu0 %1719 }
 0x2b8   :  { %1905 = vperm.xlu0 %7072, %v1014_v56   ;;  %12654 = vst [vmem:[#allocation169_spill] sm:$0xff] %v8356_v34  ;;  %v12655_v56 = vld [vmem:[#allocation102_spill] sm:$0xff] }
 0x2b9   :  { %v1020_v13 = vmul.f32 %v12655_v56, %v8167_v2 }
 0x2ba   :  { %1686 = vperm.xlu1 %7073, %v941_v53   ;;  %v12656_v53 = vld [vmem:[#allocation158_spill] sm:$0xff] }
 0x2bb   :  { %v947_v20 = vmul.f32 %v12656_v53, %v12589_v47  ;;  %v8364_v39 = vpop.permute.xlu0 %1725 }
 0x2bc   :  { %1911 = vperm.xlu0 %7072, %v1016_v32   ;;  %v12657_v32 = vld [vmem:[#allocation105_spill] sm:$0xff]  ;;  %12658 = vst [vmem:[#allocation167_spill] sm:$0xff] %v8364_v39 }
 0x2bd   :  { %v1022_v22 = vmul.f32 %v12657_v32, %v8175_v29  ;;  %v12664_v32 = vld [vmem:[#allocation25_spill] sm:$0xff] }
 0x2be   :  { %1692 = vperm.xlu1 %7073, %v943_v25   ;;  %v12659_v25 = vld [vmem:[#allocation160_spill] sm:$0xff]  ;;  %v8377_v53 = vmul.f32 0.00390625, %v12664_v32 }
 0x2bf   :  { %v949_v52 = vmul.f32 %v12659_v25, %v12592_v63 }
 0x2c0   :  { %1917 = vperm.xlu0 %7072, %v1018_v16   ;;  %v12660_v16 = vld [vmem:[#allocation109_spill] sm:$0xff] }
 0x2c1   :  { %v1024_v31 = vmul.f32 %v12660_v16, %v8182_v6  ;;  %v12667_v16 = vld [vmem:[#allocation27_spill] sm:$0xff] }
 0x2c2   :  { %1698 = vperm.xlu1 %7073, %v945_v50   ;;  %v12662_v50 = vld [vmem:[#allocation161_spill] sm:$0xff] }
 0x2c3   :  { %v951_v47 = vmul.f32 %v12662_v50, %v12595_v27  ;;  %v12668_v27 = vld [vmem:[#allocation113_spill] sm:$0xff] }
 0x2c4   :  { %1923 = vperm.xlu0 %7072, %v1020_v13   ;;  %v8374_v13 = vpop.permute.xlu0 %1731  ;;  %v1028_v50 = vmul.f32 %v12668_v27, %v8167_v2  ;;  %v12673_v27 = vld [vmem:[#allocation35_spill] sm:$0xff] }
 0x2c5   :  { %12663 = vst [vmem:[#allocation165_spill] sm:$0xff] %v8374_v13  ;;  %v12671_v13 = vld [vmem:[#allocation29_spill] sm:$0xff] }
 0x2c6   :  { %1704 = vperm.xlu1 %7073, %v947_v20   ;;  %v12665_v20 = vld [vmem:[#allocation111_spill] sm:$0xff]  ;;  %v8397_v25 = vmul.f32 0.00390625, %v12671_v13 }
 0x2c7   :  { %v1026_v39 = vmul.f32 %v12665_v20, %v12577_v7  ;;  %v12670_v20 = vld [vmem:[#allocation34_spill] sm:$0xff] }
 0x2c8   :  { %1929 = vperm.xlu0 %7072, %v1022_v22   ;;  %v12666_v22 = vld [vmem:[#allocation33_spill] sm:$0xff]  ;;  %v957_v46 = vmul.f32 %v12673_v27, %v8397_v25 }
 0x2ca   :  { %1710 = vperm.xlu1 %7073, %v949_v52   ;;  %v8370_v56 = vpop.xlane.xlu1 %3410  ;;  %v953_v52 = vmul.f32 %v12666_v22, %v8377_v53 }
 0x2cb   :  { %12661 = vst [vmem:[#allocation163_spill] sm:$0xff] %v8370_v56  ;;  %v8386_v56 = vmul.f32 0.00390625, %v12667_v16 }
 0x2cc   :  { %1935 = vperm.xlu0 %7072, %v1024_v31   ;;  %v8390_v31 = vpop.permute.xlu0 %1737 }
 0x2cd   :  { %12669 = vst [vmem:[#allocation168_spill] sm:$0xff] %v8390_v31 }
 0x2ce   :  { %1716 = vperm.xlu1 %7073, %v951_v47   ;;  %v8381_v63 = vpop.permute.xlu1 %1530  ;;  %v955_v47 = vmul.f32 %v12670_v20, %v8386_v56 }
 0x2d0   :  { %1941 = vperm.xlu0 %7072, %v1026_v39   ;;  %v12672_v39 = vld [vmem:[#allocation115_spill] sm:$0xff]  ;;  %v8405_v31 = vpop.permute.xlu0 %1743 }
 0x2d1   :  { %v1030_v22 = vmul.f32 %v12672_v39, %v8175_v29  ;;  %12674 = vst [vmem:[#allocation107_spill] sm:$0xff] %v8405_v31  ;;  %v12679_v39 = vld [vmem:[#allocation37_spill] sm:$0xff] }
 0x2d2   :  { %1722 = vperm.xlu1 %7073, %v953_v52   ;;  %v8392_v32 = vpop.permute.xlu1 %1536  ;;  %v12675_v52 = vld [vmem:[#allocation31_spill] sm:$0xff] }
 0x2d3   :  { %v8408_v34 = vmul.f32 0.00390625, %v12675_v52  ;;  %v12682_v52 = vld [vmem:[#allocation39_spill] sm:$0xff] }
 0x2d4   :  { %1947 = vperm.xlu0 %7072, %v1028_v50   ;;  %v12677_v50 = vld [vmem:[#allocation117_spill] sm:$0xff]  ;;  %v8418_v27 = vpop.permute.xlu0 %1749  ;;  %v961_v31 = vmul.f32 %v12682_v52, %v8377_v53 }
 0x2d5   :  { %12676 = vst [vmem:[#allocation162_spill] sm:$0xff] %v8408_v34  ;;  %v1032_v20 = vmul.f32 %v12677_v50, %v8182_v6  ;;  %12681 = vst [vmem:[#allocation32_spill] sm:$0xff] %v8418_v27 }
 0x2d6   :  { %1728 = vperm.xlu1 %7073, %v955_v47   ;;  %v8401_v16 = vpop.permute.xlu1 %1542  ;;  %v959_v47 = vmul.f32 %v12679_v39, %v8408_v34 }
 0x2d8   :  { %1953 = vperm.xlu0 %7072, %v1030_v22   ;;  %v8430_v30 = vpop.permute.xlu0 %1755 }
 0x2d9   :  { %12685 = vst [vmem:[#allocation26_spill] sm:$0xff] %v8430_v30 }
 0x2da   :  { %1734 = vperm.xlu1 %7073, %v957_v46   ;;  %v8412_v13 = vpop.permute.xlu1 %1548  ;;  %v12683_v46 = vld [vmem:[#allocation121_spill] sm:$0xff] }
 0x2db   :  { %12678 = vst [vmem:[#allocation24_spill] sm:$0xff] %v8412_v13  ;;  %v1036_v50 = vmul.f32 %v12683_v46, %v8167_v2 }
 0x2dc   :  { %1959 = vperm.xlu0 %7072, %v1032_v20   ;;  %v12684_v20 = vld [vmem:[#allocation41_spill] sm:$0xff]  ;;  %v8440_v5 = vpop.permute.xlu0 %1761 }
 0x2dd   :  { %v963_v39 = vmul.f32 %v12684_v20, %v8386_v56  ;;  %12689 = vst [vmem:[#allocation36_spill] sm:$0xff] %v8440_v5 }
 0x2de   :  { %1740 = vperm.xlu1 %7073, %v959_v47   ;;  %v8420_v22 = vpop.permute.xlu1 %1554  ;;  %v1038_v47 = vmul.f32 %v12686_v38, %v8175_v29 }
 0x2e0   :  { %1965 = vperm.xlu0 %7072, %v1034_v48   ;;  %v12687_v48 = vld [vmem:[#allocation43_spill] sm:$0xff]  ;;  %v8452_v13 = vpop.permute.xlu0 %1767 }
 0x2e1   :  { %v965_v52 = vmul.f32 %v12687_v48, %v8397_v25  ;;  %12694 = vst [vmem:[#allocation38_spill] sm:$0xff] %v8452_v13 }
 0x2e2   :  { %1746 = vperm.xlu1 %7073, %v961_v31   ;;  %v8426_v59 = vpop.permute.xlu1 %1560  ;;  %v12688_v31 = vld [vmem:[#allocation125_spill] sm:$0xff] }
 0x2e3   :  { %v1040_v46 = vmul.f32 %v12688_v31, %v8182_v6 }
 0x2e4   :  { %1971 = vperm.xlu0 %7072, %v1036_v50   ;;  %v12691_v50 = vld [vmem:[#allocation45_spill] sm:$0xff] }
 0x2e5   :  { %v967_v30 = vmul.f32 %v12691_v50, %v8408_v34 }
 0x2e6   :  { %1752 = vperm.xlu1 %7073, %v963_v39   ;;  %v8434_v27 = vpop.permute.xlu1 %1566  ;;  %v12692_v39 = vld [vmem:[#allocation127_spill] sm:$0xff] }
 0x2e7   :  { %v1042_v38 = vmul.f32 %v12692_v39, %v12577_v7 }
 0x2e8   :  { %1977 = vperm.xlu0 %7072, %v1038_v47   ;;  %v12693_v47 = vld [vmem:[#allocation47_spill] sm:$0xff] }
 0x2e9   :  { %v969_v48 = vmul.f32 %v12693_v47, %v8377_v53 }
 0x2ea   :  { %1758 = vperm.xlu1 %7073, %v965_v52   ;;  %v8442_v20 = vpop.permute.xlu1 %1572  ;;  %v12695_v52 = vld [vmem:[#allocation129_spill] sm:$0xff] }
 0x2eb   :  { %12690 = vst [vmem:[#allocation28_spill] sm:$0xff] %v8442_v20  ;;  %v1044_v31 = vmul.f32 %v12695_v52, %v8167_v2  ;;  %v8462_v20 = vpop.permute.xlu0 %1773 }
 0x2ec   :  { %1983 = vperm.xlu0 %7072, %v1040_v46   ;;  %v12696_v46 = vld [vmem:[#allocation49_spill] sm:$0xff]  ;;  %12698 = vst [vmem:[#allocation30_spill] sm:$0xff] %v8462_v20 }
 0x2ed   :  { %v971_v50 = vmul.f32 %v12696_v46, %v8386_v56 }
 0x2ee   :  { %1764 = vperm.xlu1 %7073, %v967_v30   ;;  %v8448_v15 = vpop.permute.xlu1 %1578  ;;  %v12697_v30 = vld [vmem:[#allocation131_spill] sm:$0xff] }
 0x2ef   :  { %v1046_v39 = vmul.f32 %v12697_v30, %v8175_v29  ;;  %v8474_v24 = vpop.permute.xlu0 %1779 }
 0x2f0   :  { %1989 = vperm.xlu0 %7072, %v1042_v38   ;;  %v12700_v38 = vld [vmem:[#allocation51_spill] sm:$0xff]  ;;  %12704 = vst [vmem:[#allocation98_spill] sm:$0xff] %v8474_v24 }
 0x2f1   :  { %v973_v13 = vmul.f32 %v12700_v38, %v8397_v25 }
 0x2f2   :  { %1770 = vperm.xlu1 %7073, %v969_v48   ;;  %v8456_v5 = vpop.permute.xlu1 %1584  ;;  %v12701_v48 = vld [vmem:[#allocation133_spill] sm:$0xff] }
 0x2f3   :  { %v1048_v52 = vmul.f32 %v12701_v48, %v8182_v6 }
 0x2f4   :  { %1995 = vperm.xlu0 %7072, %v1044_v31   ;;  %v12703_v31 = vld [vmem:[#allocation53_spill] sm:$0xff] }
 0x2f5   :  { %v975_v46 = vmul.f32 %v12703_v31, %v8408_v34 }
 0x2f6   :  { %1776 = vperm.xlu1 %7073, %v971_v50   ;;  %v8464_v47 = vpop.permute.xlu1 %1590  ;;  %v12705_v50 = vld [vmem:[#allocation135_spill] sm:$0xff] }
 0x2f7   :  { %12699 = vst [vmem:[#allocation40_spill] sm:$0xff] %v8464_v47  ;;  %v1050_v30 = vmul.f32 %v12705_v50, %v12577_v7 }
 0x2f8   :  { %2001 = vperm.xlu0 %7072, %v1046_v39   ;;  %v12707_v39 = vld [vmem:[#allocation55_spill] sm:$0xff] }
 0x2f9   :  { %v977_v38 = vmul.f32 %v12707_v39, %v8377_v53 }
 0x2fa   :  { %1782 = vperm.xlu1 %7073, %v973_v13   ;;  %v8470_v49 = vpop.permute.xlu1 %1596  ;;  %v12708_v13 = vld [vmem:[#allocation137_spill] sm:$0xff] }
 0x2fb   :  { %12702 = vst [vmem:[#allocation42_spill] sm:$0xff] %v8470_v49  ;;  %v1052_v48 = vmul.f32 %v12708_v13, %v8167_v2  ;;  %v8484_v49 = vpop.permute.xlu0 %1785 }
 0x2fc   :  { %2007 = vperm.xlu0 %7072, %v1048_v52   ;;  %12709 = vst [vmem:[#allocation44_spill] sm:$0xff] %v8484_v49  ;;  %v12711_v52 = vld [vmem:[#allocation57_spill] sm:$0xff] }
 0x2fd   :  { %v979_v24 = vmul.f32 %v12711_v52, %v8386_v56 }
 0x2fe   :  { %1788 = vperm.xlu1 %7073, %v975_v46   ;;  %v8478_v20 = vpop.permute.xlu1 %1602  ;;  %v12712_v46 = vld [vmem:[#allocation139_spill] sm:$0xff] }
 0x2ff   :  { %12706 = vst [vmem:[#allocation95_spill] sm:$0xff] %v8478_v20  ;;  %v1054_v50 = vmul.f32 %v12712_v46, %v8175_v29  ;;  %v8496_v20 = vpop.permute.xlu0 %1791 }
 0x300   :  { %2013 = vperm.xlu0 %7072, %v1050_v30   ;;  %v12714_v30 = vld [vmem:[#allocation59_spill] sm:$0xff]  ;;  %12715 = vst [vmem:[#allocation104_spill] sm:$0xff] %v8496_v20 }
 0x301   :  { %v981_v39 = vmul.f32 %v12714_v30, %v8397_v25 }
 0x302   :  { %1794 = vperm.xlu1 %7073, %v977_v38   ;;  %v8486_v31 = vpop.permute.xlu1 %1608  ;;  %v12716_v38 = vld [vmem:[#allocation141_spill] sm:$0xff] }
 0x303   :  { %12710 = vst [vmem:[#allocation101_spill] sm:$0xff] %v8486_v31  ;;  %v1056_v13 = vmul.f32 %v12716_v38, %v8182_v6 }
 0x304   :  { %2019 = vperm.xlu0 %7072, %v1052_v48   ;;  %v12718_v48 = vld [vmem:[#allocation61_spill] sm:$0xff] }
 0x305   :  { %v983_v52 = vmul.f32 %v12718_v48, %v8408_v34 }
 0x306   :  { %1800 = vperm.xlu1 %7073, %v979_v24   ;;  %v8492_v47 = vpop.permute.xlu1 %1614  ;;  %v12719_v24 = vld [vmem:[#allocation143_spill] sm:$0xff] }
 0x307   :  { %12713 = vst [vmem:[#allocation46_spill] sm:$0xff] %v8492_v47  ;;  %v1058_v46 = vmul.f32 %v12719_v24, %v12577_v7  ;;  %v8506_v47 = vpop.permute.xlu0 %1797 }
 0x308   :  { %2025 = vperm.xlu0 %7072, %v1054_v50   ;;  %12720 = vst [vmem:[#allocation108_spill] sm:$0xff] %v8506_v47  ;;  %v12722_v50 = vld [vmem:[#allocation63_spill] sm:$0xff] }
 0x309   :  { %v985_v20 = vmul.f32 %v12722_v50, %v8377_v53 }
 0x30a   :  { %1806 = vperm.xlu1 %7073, %v981_v39   ;;  %v8500_v49 = vpop.permute.xlu1 %1620  ;;  %v12723_v39 = vld [vmem:[#allocation145_spill] sm:$0xff] }
 0x30b   :  { %12717 = vst [vmem:[#allocation48_spill] sm:$0xff] %v8500_v49  ;;  %v1060_v38 = vmul.f32 %v12723_v39, %v8167_v2  ;;  %v8518_v31 = vpop.permute.xlu0 %1803 }
 0x30c   :  { %2031 = vperm.xlu0 %7072, %v1056_v13   ;;  %v12725_v13 = vld [vmem:[#allocation65_spill] sm:$0xff]  ;;  %12726 = vst [vmem:[#allocation54_spill] sm:$0xff] %v8518_v31 }
 0x30d   :  { %v987_v48 = vmul.f32 %v12725_v13, %v8386_v56 }
 0x30e   :  { %1812 = vperm.xlu1 %7073, %v983_v52   ;;  %v8508_v30 = vpop.permute.xlu1 %1626  ;;  %v12727_v52 = vld [vmem:[#allocation147_spill] sm:$0xff] }
 0x30f   :  { %12721 = vst [vmem:[#allocation50_spill] sm:$0xff] %v8508_v30  ;;  %v1062_v24 = vmul.f32 %v12727_v52, %v8175_v29 }
 0x310   :  { %2037 = vperm.xlu0 %7072, %v1058_v46   ;;  %v12729_v46 = vld [vmem:[#allocation67_spill] sm:$0xff] }
 0x311   :  { %v989_v50 = vmul.f32 %v12729_v46, %v8397_v25 }
 0x312   :  { %1818 = vperm.xlu1 %7073, %v985_v20   ;;  %v8514_v49 = vpop.permute.xlu1 %1632  ;;  %v12730_v20 = vld [vmem:[#allocation149_spill] sm:$0xff] }
 0x313   :  { %12724 = vst [vmem:[#allocation52_spill] sm:$0xff] %v8514_v49  ;;  %v1064_v39 = vmul.f32 %v12730_v20, %v8182_v6  ;;  %v8528_v49 = vpop.permute.xlu0 %1809 }
 0x314   :  { %2043 = vperm.xlu0 %7072, %v1060_v38   ;;  %12731 = vst [vmem:[#allocation58_spill] sm:$0xff] %v8528_v49  ;;  %v12733_v38 = vld [vmem:[#allocation69_spill] sm:$0xff] }
 0x315   :  { %v991_v31 = vmul.f32 %v12733_v38, %v8408_v34 }
 0x316   :  { %1824 = vperm.xlu1 %7073, %v987_v48   ;;  %v8522_v47 = vpop.permute.xlu1 %1638  ;;  %v12734_v48 = vld [vmem:[#allocation151_spill] sm:$0xff] }
 0x317   :  { %12728 = vst [vmem:[#allocation56_spill] sm:$0xff] %v8522_v47  ;;  %v1066_v52 = vmul.f32 %v12734_v48, %v12577_v7  ;;  %v8540_v30 = vpop.permute.xlu0 %1815 }
 0x318   :  { %2049 = vperm.xlu0 %7072, %v1062_v24   ;;  %v12736_v24 = vld [vmem:[#allocation71_spill] sm:$0xff]  ;;  %12737 = vst [vmem:[#allocation64_spill] sm:$0xff] %v8540_v30 }
 0x319   :  { %v993_v46 = vmul.f32 %v12736_v24, %v8377_v53 }
 0x31a   :  { %1830 = vperm.xlu1 %7073, %v989_v50   ;;  %v8530_v13 = vpop.permute.xlu1 %1644  ;;  %v12738_v50 = vld [vmem:[#allocation153_spill] sm:$0xff] }
 0x31b   :  { %12732 = vst [vmem:[#allocation60_spill] sm:$0xff] %v8530_v13  ;;  %v1068_v20 = vmul.f32 %v12738_v50, %v8167_v2  ;;  %v8550_v13 = vpop.permute.xlu0 %1821 }
 0x31c   :  { %2055 = vperm.xlu0 %7072, %v1064_v39   ;;  %v12740_v39 = vld [vmem:[#allocation73_spill] sm:$0xff]  ;;  %12742 = vst [vmem:[#allocation68_spill] sm:$0xff] %v8550_v13 }
 0x31d   :  { %v995_v38 = vmul.f32 %v12740_v39, %v8386_v56 }
 0x31e   :  { %1836 = vperm.xlu1 %7073, %v991_v31   ;;  %v8536_v47 = vpop.permute.xlu1 %1650  ;;  %v12741_v31 = vld [vmem:[#allocation155_spill] sm:$0xff] }
 0x31f   :  { %12735 = vst [vmem:[#allocation62_spill] sm:$0xff] %v8536_v47  ;;  %v1070_v48 = vmul.f32 %v12741_v31, %v8175_v29  ;;  %v8562_v47 = vpop.permute.xlu0 %1827 }
 0x320   :  { %2061 = vperm.xlu0 %7072, %v1066_v52   ;;  %v12744_v52 = vld [vmem:[#allocation75_spill] sm:$0xff]  ;;  %12748 = vst [vmem:[#allocation74_spill] sm:$0xff] %v8562_v47 }
 0x321   :  { %v997_v30 = vmul.f32 %v12744_v52, %v8397_v25 }
 0x322   :  { %1842 = vperm.xlu1 %7073, %v993_v46   ;;  %v8544_v49 = vpop.permute.xlu1 %1656  ;;  %v12745_v46 = vld [vmem:[#allocation157_spill] sm:$0xff] }
 0x323   :  { %12739 = vst [vmem:[#allocation66_spill] sm:$0xff] %v8544_v49  ;;  %v1072_v50 = vmul.f32 %v12745_v46, %v8182_v6 }
 0x324   :  { %2067 = vperm.xlu0 %7072, %v1068_v20   ;;  %v12747_v20 = vld [vmem:[#allocation77_spill] sm:$0xff] }
 0x325   :  { %v999_v39 = vmul.f32 %v12747_v20, %v8408_v34  ;;  %v12754_v20 = vld [vmem:[#allocation85_spill] sm:$0xff] }
 0x326   :  { %1848 = vperm.xlu1 %7073, %v995_v38   ;;  %v8552_v24 = vpop.permute.xlu1 %1662  ;;  %v12749_v38 = vld [vmem:[#allocation159_spill] sm:$0xff]  ;;  %v1007_v47 = vmul.f32 %v12754_v20, %v8408_v34  ;;  %v12759_v20 = vld [vmem:[#allocation93_spill] sm:$0xff] }
 0x327   :  { %12743 = vst [vmem:[#allocation70_spill] sm:$0xff] %v8552_v24  ;;  %v1074_v31 = vmul.f32 %v12749_v38, %v12577_v7  ;;  %v8578_v7 = vpop.permute.xlu0 %1833  ;;  %v12756_v38 = vld [vmem:[#allocation87_spill] sm:$0xff] }
 0x328   :  { %2073 = vperm.xlu0 %7072, %v1070_v48   ;;  %v12751_v48 = vld [vmem:[#allocation79_spill] sm:$0xff]  ;;  %12755 = vst [vmem:[#allocation78_spill] sm:$0xff] %v8578_v7  ;;  %v2436_v7 = vrot.slane %v8381_v63, %v12562_v26  ;;  %v2528_v63 = vrot.slane %v8214_v37, %v12564_v21 }
 0x329   :  { %v1001_v52 = vmul.f32 %v12751_v48, %v8377_v53  ;;  %v12757_v48 = vld [vmem:[#allocation89_spill] sm:$0xff] }
 0x32a   :  { %1854 = vperm.xlu1 %7073, %v997_v30   ;;  %v8558_v49 = vpop.permute.xlu1 %1668  ;;  %v12752_v30 = vld [vmem:[#allocation81_spill] sm:$0xff] }
 0x32b   :  { %12746 = vst [vmem:[#allocation72_spill] sm:$0xff] %v8558_v49  ;;  %v1003_v46 = vmul.f32 %v12752_v30, %v8386_v56  ;;  %v12753_v49 = vld [vmem:[#allocation83_spill] sm:$0xff]  ;;  %v8588_v30 = vmul.f32 %v12757_v48, %v8386_v56  ;;  %v2440_v48 = vrot.slane %v8151_v44, %v12560_v0  ;;  %v2445_v44 = vrot.slane %v8392_v32, %v12561_v54 }
 0x32c   :  { %2079 = vperm.xlu0 %7072, %v1072_v50   ;;  %v1005_v24 = vmul.f32 %v12753_v49, %v8397_v25  ;;  %v1076_v50 = vmul.f32 %v7759_v19, %v8167_v2  ;;  %v12758_v49 = vld [vmem:[#allocation91_spill] sm:$0xff]  ;;  %v8596_v19 = vmul.f32 %v12759_v20, %v8408_v34  ;;  %v8600_v2 = vmul.f32 %v12587_v28, %v8377_v53 }
 0x32d   :  { %v2460_v20 = vrot.slane %v8172_v42, %v12565_v9  ;;  %v2596_v28 = vrot.slane %v8256_v10, %v12560_v0  ;;  %v2514_v10 = vrot.slane %v8448_v15, %v12562_v26  ;;  %v2674_v15 = vrot.slane %v8304_v4, %v12560_v0 }
 0x32e   :  { %1860 = vperm.xlu1 %7073, %v999_v39   ;;  %v8566_v13 = vpop.permute.xlu1 %1674 }
 0x32f   :  { %12750 = vst [vmem:[#allocation76_spill] sm:$0xff] %v8566_v13  ;;  %v8592_v13 = vmul.f32 %v12758_v49, %v8397_v25  ;;  %v2450_v49 = vrot.slane %v8163_v1, %v12564_v21  ;;  %v2475_v1 = vrot.slane %v8420_v22, %v12562_v26 }
 0x330   :  { %2085 = vperm.xlu0 %7072, %v1074_v31   ;;  %v8584_v31 = vmul.f32 %v12756_v38, %v8377_v53  ;;  %v1080_v38 = vmul.f32 %v12576_v23, %v8182_v6  ;;  %v2489_v23 = vrot.slane %v8190_v61, %v12564_v21  ;;  %v2484_v61 = vrot.slane %v8426_v59, %v12561_v54 }
 0x332   :  { %1866 = vperm.xlu1 %7073, %v1001_v52   ;;  %v8580_v39 = vpop.permute.xlu1 %1680  ;;  %v1078_v52 = vmul.f32 %v7765_v3, %v8175_v29  ;;  %v2479_v3 = vrot.slane %v8186_v12, %v12560_v0  ;;  %v2499_v29 = vrot.slane %v8196_v51, %v12565_v9  ;;  %v2518_v12 = vrot.slane %v8208_v43, %v12560_v0 }
 0x333   :  { %v2557_v51 = vrot.slane %v8232_v60, %v12560_v0  ;;  %v2455_v60 = vrot.slane %v8401_v16, %v12563_v57  ;;  %v12763_v16 = vld [vmem:[#allocation24_spill] sm:$0xff] }
 0x334   :  { %2091 = vperm.xlu0 %7072, %v1076_v50   ;;  %v2441_v50 = vsel %vm2116_vm0, %v2440_v48, %v2436_v7  ;;  %v2494_v7 = vrot.slane %v8434_v27, %v12563_v57  ;;  %v12765_v27 = vld [vmem:[#allocation11_spill] sm:$0xff] }
 0x335   :  { %v2446_v22 = vsel %vm2123_vm1, %v2445_v44, %v2441_v50 }
 0x336   :  { %1872 = vperm.xlu1 %7073, %v1003_v46   ;;  %v8624_v42 = vpop.permute.xlu1 %1686  ;;  %v8642_v46 = vpop.permute.xlu0 %1839 }
 0x337   :  { %12760 = vst [vmem:[#allocation80_spill] sm:$0xff] %v8642_v46 }
 0x338   :  { %2097 = vperm.xlu0 %7072, %v1078_v52   ;;  %v2480_v52 = vsel %vm2116_vm0, %v2479_v3, %v2475_v1  ;;  %v2523_v3 = vrot.slane %v8456_v5, %v12561_v54  ;;  %v2451_v1 = vsel %vm2130_vm2, %v2450_v49, %v2446_v22  ;;  %v2519_v49 = vsel %vm2116_vm0, %v2518_v12, %v2514_v10  ;;  %v12766_v22 = vld [vmem:[#allocation95_spill] sm:$0xff]  ;;  %v12771_v12 = vld [vmem:[#allocation40_spill] sm:$0xff] }
 0x339   :  { %v2485_v37 = vsel %vm2123_vm1, %v2484_v61, %v2480_v52  ;;  %v12761_v61 = vld [vmem:[#allocation12_spill] sm:$0xff]  ;;  %v12762_v52 = vld [vmem:[#allocation14_spill] sm:$0xff]  ;;  %v2553_v50 = vrot.slane %v12766_v22, %v12562_v26  ;;  %v2533_v10 = vrot.slane %v12771_v12, %v12563_v57 }
 0x33a   :  { %1878 = vperm.xlu1 %7073, %v1005_v24   ;;  %v8657_v6 = vpop.permute.xlu1 %1692  ;;  %v2635_v24 = vrot.slane %v8280_v58, %v12560_v0  ;;  %v2456_v58 = vsel %vm2137_vm3, %v2455_v60, %v2451_v1  ;;  %v2465_v5 = vrot.slane %v12763_v16, %v12762_v52  ;;  %v8687_v48 = vpop.permute.xlu0 %1845  ;;  %v12767_v60 = vld [vmem:[#allocation15_spill] sm:$0xff]  ;;  %v12768_v16 = vld [vmem:[#allocation164_spill] sm:$0xff]  ;;  %v12772_v22 = vld [vmem:[#allocation50_spill] sm:$0xff] }
 0x33b   :  { %12764 = vst [vmem:[#allocation82_spill] sm:$0xff] %v8687_v48  ;;  %v2713_v1 = vrot.slane %v12767_v60, %v12560_v0  ;;  %v2461_v32 = vsel %vm2144_vm4, %v2460_v20, %v2456_v58  ;;  %v2592_v43 = vrot.slane %v12772_v22, %v12562_v26  ;;  %v2558_v12 = vsel %vm2116_vm0, %v2557_v51, %v2553_v50  ;;  %v12775_v22 = vld [vmem:[#allocation66_spill] sm:$0xff] }
 0x33c   :  { %2103 = vperm.xlu0 %7072, %v1080_v38   ;;  %v2490_v38 = vsel %vm2130_vm2, %v2489_v23, %v2485_v37  ;;  %v2723_v23 = vrot.slane %v12768_v16, %v12564_v21  ;;  %v2524_v37 = vsel %vm2123_vm1, %v2523_v3, %v2519_v49  ;;  %v8710_v60 = vsel %vm2151_vm5, %v2465_v5, %v2461_v32  ;;  %v12773_v3 = vld [vmem:[#allocation52_spill] sm:$0xff] }
 0x33d   :  { %v2495_v4 = vsel %vm2137_vm3, %v2494_v7, %v2490_v38  ;;  %v12770_v7 = vld [vmem:[#allocation28_spill] sm:$0xff]  ;;  %v2601_v49 = vrot.slane %v12773_v3, %v12561_v54  ;;  %v2640_v48 = vrot.slane %v12775_v22, %v12561_v54 }
 0x33e   :  { %1884 = vperm.xlu1 %7073, %v1007_v47   ;;  %v1699_v44 = vpop.permute.xlu1 %1698  ;;  %v12769_v47 = vld [vmem:[#allocation101_spill] sm:$0xff]  ;;  %v2504_v38 = vrot.slane %v12770_v7, %v12762_v52  ;;  %v2500_v16 = vsel %vm2144_vm4, %v2499_v29, %v2495_v4  ;;  %v2529_v7 = vsel %vm2130_vm2, %v2528_v63, %v2524_v37  ;;  %v12776_v32 = vld [vmem:[#allocation76_spill] sm:$0xff]  ;;  %v12777_v4 = vld [vmem:[#allocation46_spill] sm:$0xff]  ;;  %v8727_v46 = vpop.permute.xlu0 %1851  ;;  %v2597_v37 = vsel %vm2116_vm0, %v2596_v28, %v2592_v43 }
 0x33f   :  { %v2562_v59 = vrot.slane %v12769_v47, %v12561_v54  ;;  %v12774_v47 = vld [vmem:[#allocation62_spill] sm:$0xff]  ;;  %v2670_v5 = vrot.slane %v12776_v32, %v12562_v26  ;;  %v2572_v3 = vrot.slane %v12777_v4, %v12563_v57  ;;  %v2709_v63 = vrot.slane %v1699_v44, %v12562_v26  ;;  %v12779_v32 = vld [vmem:[#allocation56_spill] sm:$0xff] }
 0x340   :  { %v2631_v20 = vrot.slane %v12774_v47, %v12562_v26  ;;  %v2505_v51 = vsel %vm2151_vm5, %v2504_v38, %v2500_v16  ;;  %v2534_v50 = vsel %vm2137_vm3, %v2533_v10, %v2529_v7  ;;  %v2602_v22 = vsel %vm2123_vm1, %v2601_v49, %v2597_v37  ;;  %v12781_v10 = vld [vmem:[#allocation70_spill] sm:$0xff] }
 0x341   :  { %v2563_v29 = vsel %vm2123_vm1, %v2562_v59, %v2558_v12  ;;  %v12778_v59 = vld [vmem:[#allocation42_spill] sm:$0xff]  ;;  %v2611_v4 = vrot.slane %v12779_v32, %v12563_v57  ;;  %v12780_v38 = vrot.slane %v8238_v35, %v12564_v21  ;;  %v2650_v16 = vrot.slane %v12781_v10, %v12563_v57  ;;  %v12782_v35 = vld [vmem:[#allocation48_spill] sm:$0xff] }
 0x342   :  { %1890 = vperm.xlu1 %7073, %v8584_v31   ;;  %v1705_v58 = vpop.permute.xlu1 %1704  ;;  %v2679_v31 = vrot.slane %v8580_v39, %v12561_v54  ;;  %v2543_v12 = vrot.slane %v12778_v59, %v12762_v52  ;;  %v2636_v39 = vsel %vm2116_vm0, %v2635_v24, %v2631_v20  ;;  %v2675_v49 = vsel %vm2116_vm0, %v2674_v15, %v2670_v5 }
 0x343   :  { %v2718_v47 = vrot.slane %v1705_v58, %v12561_v54  ;;  %v2568_v28 = vsel %vm2130_vm2, %v12780_v38, %v2563_v29  ;;  %v2641_v43 = vsel %vm2123_vm1, %v2640_v48, %v2636_v39  ;;  %v2714_v24 = vsel %vm2116_vm0, %v2713_v1, %v2709_v63 }
 0x344   :  { %v2573_v58 = vsel %vm2137_vm3, %v2572_v3, %v2568_v28  ;;  %v2680_v7 = vsel %vm2123_vm1, %v2679_v31, %v2675_v49  ;;  %v2582_v20 = vrot.slane %v12782_v35, %v12762_v52  ;;  %v12783_v48 = vrot.slane %v8262_v18, %v12564_v21  ;;  %v12785_v31 = vld [vmem:[#allocation60_spill] sm:$0xff] }
 0x345   :  { %v2719_v37 = vsel %vm2123_vm1, %v2718_v47, %v2714_v24  ;;  %v12784_v5 = vrot.slane %v8220_v41, %v12565_v9  ;;  %v2621_v63 = vrot.slane %v12785_v31, %v12762_v52  ;;  %v12786_v18 = vrot.slane %v8286_v40, %v12564_v21  ;;  %v12794_v24 = vld [vmem:[#allocation10_spill] sm:$0xff] }
 0x346   :  { %1896 = vperm.xlu1 %7073, %v8588_v30   ;;  %v1711_v44 = vpop.permute.xlu1 %1710  ;;  %v2689_v30 = vrot.slane %v8624_v42, %v12563_v57  ;;  %v2607_v29 = vsel %vm2130_vm2, %v12783_v48, %v2602_v22  ;;  %v8768_v42 = vpop.permute.xlu0 %1857  ;;  %v12789_v40 = vrot.slane %v8244_v8, %v12565_v9  ;;  %v2724_v38 = vsel %vm2130_vm2, %v2723_v23, %v2719_v37 }
 0x347   :  { %v2728_v15 = vrot.slane %v1711_v44, %v12563_v57  ;;  %v2539_v3 = vsel %vm2144_vm4, %v12784_v5, %v2534_v50  ;;  %v2612_v1 = vsel %vm2137_vm3, %v2611_v4, %v2607_v29  ;;  %v2646_v59 = vsel %vm2130_vm2, %v12786_v18, %v2641_v43  ;;  %v12787_v50 = vld [vmem:[#allocation72_spill] sm:$0xff] }
 0x348   :  { %v2544_v22 = vsel %vm2151_vm5, %v2543_v12, %v2539_v3  ;;  %v2651_v41 = vsel %vm2137_vm3, %v2650_v16, %v2646_v59  ;;  %v2660_v32 = vrot.slane %v12787_v50, %v12762_v52  ;;  %v12788_v4 = vrot.slane %v12761_v61, %v12564_v21  ;;  %v12791_v16 = vld [vmem:[#allocation166_spill] sm:$0xff] }
 0x349   :  { %v2578_v44 = vsel %vm2144_vm4, %v12789_v40, %v2573_v58  ;;  %v2699_v12 = vrot.slane %v8657_v6, %v12762_v52  ;;  %v12790_v43 = vrot.slane %v8268_v11, %v12565_v9  ;;  %v2729_v10 = vsel %vm2137_vm3, %v2728_v15, %v2724_v38  ;;  %v12803_v38 = vld [vmem:[#allocation100_spill] sm:$0xff] }
 0x34a   :  { %1902 = vperm.xlu1 %7073, %v8592_v13   ;;  %v1717_v47 = vpop.permute.xlu1 %1716  ;;  %v2685_v39 = vsel %vm2130_vm2, %v12788_v4, %v2680_v7  ;;  %v2583_v28 = vsel %vm2151_vm5, %v2582_v20, %v2578_v44  ;;  %v2733_v49 = vrot.slane %v12791_v16, %v12565_v9  ;;  %v12792_v58 = vrot.slane %v8202_v62, %v12567_v36  ;;  %v8835_v15 = vpop.permute.xlu0 %1863 }
 0x34b   :  { %v2690_v13 = vsel %vm2137_vm3, %v2689_v30, %v2685_v39  ;;  %v2617_v61 = vsel %vm2144_vm4, %v12790_v43, %v2612_v1  ;;  %v2738_v8 = vrot.slane %v1717_v47, %v12762_v52  ;;  %v12793_v7 = vrot.slane %v8292_v55, %v12565_v9 }
 0x34c   :  { %v2510_v6 = vsel %vm2158_vm6, %v12792_v58, %v2505_v51  ;;  %v2622_v23 = vsel %vm2151_vm5, %v2621_v63, %v2617_v61  ;;  %v2665_v35 = vrot.slane %v12794_v24, %v12567_v36  ;;  %v12795_v20 = vrot.slane %v8226_v14, %v12567_v36  ;;  %v12801_v63 = vld [vmem:[#allocation169_spill] sm:$0xff]  ;;  %v12805_v58 = vld [vmem:[#allocation106_spill] sm:$0xff] }
 0x34d   :  { %v2656_v11 = vsel %vm2144_vm4, %v12793_v7, %v2651_v41  ;;  %v12796_v48 = vrot.slane %v12765_v27, %v12565_v9  ;;  %v12798_v37 = vrot.slane %v8250_v45, %v12567_v36  ;;  %v2734_v3 = vsel %vm2144_vm4, %v2733_v49, %v2729_v10  ;;  %v12799_v27 = vld [vmem:[#allocation13_spill] sm:$0xff]  ;;  %v12804_v10 = vld [vmem:[#allocation103_spill] sm:$0xff] }
 0x34e   :  { %1908 = vperm.xlu1 %7073, %v8596_v19   ;;  %v8813_v30 = vpop.permute.xlu1 %1722  ;;  %v2549_v62 = vsel %vm2158_vm6, %v12795_v20, %v2544_v22  ;;  %v2661_v51 = vsel %vm2151_vm5, %v2660_v32, %v2656_v11  ;;  %v12797_v19 = vrot.slane %v8179_v33, %v12567_v36  ;;  %v2704_v1 = vrot.slane %v12799_v27, %v12567_v36  ;;  %v8861_v44 = vpop.permute.xlu0 %1869  ;;  %v12806_v11 = vld [vmem:[#allocation110_spill] sm:$0xff]  ;;  %v12807_v20 = vld [vmem:[#allocation112_spill] sm:$0xff] }
 0x34f   :  { %v2695_v55 = vsel %vm2144_vm4, %v12796_v48, %v2690_v13  ;;  %v2588_v14 = vsel %vm2158_vm6, %v12798_v37, %v2583_v28  ;;  %v12800_v33 = vrot.slane %v8274_v17, %v12567_v36  ;;  %v2739_v45 = vsel %vm2151_vm5, %v2738_v8, %v2734_v3  ;;  %v12802_v17 = vld [vmem:[#allocation97_spill] sm:$0xff]  ;;  %v12811_v27 = vld [vmem:[#allocation118_spill] sm:$0xff] }
 0x350   :  { %v2471_v29 = vsel %vm2158_vm6, %v12797_v19, %v8710_v60  ;;  %v2700_v5 = vsel %vm2151_vm5, %v2699_v12, %v2695_v55  ;;  %v2743_v18 = vrot.slane %v12801_v63, %v12567_v36  ;;  %v2666_v47 = vsel %vm2158_vm6, %v2665_v35, %v2661_v51  ;;  %v12809_v55 = vld [vmem:[#allocation114_spill] sm:$0xff] }
 0x351   :  { %v3383_v31 = vsel %vm3369_vm7, %v2510_v6, %v2471_v29  ;;  %v2627_v60 = vsel %vm2158_vm6, %v12800_v33, %v2622_v23  ;;  %v2705_v50 = vsel %vm2158_vm6, %v2704_v1, %v2700_v5  ;;  %v1019_v32 = vmul.f32 %v12802_v17, %v8386_v56 }
 0x352   :  { %v3384_v59 = vsel %vm3371_vm8, %v2549_v62, %v3383_v31  ;;  %1914 = vperm.xlu1 %7073, %v8600_v2   ;;  %v8852_v22 = vpop.permute.xlu1 %1728  ;;  %v2744_v4 = vsel %vm2158_vm6, %v2743_v18, %v2739_v45  ;;  %v1021_v28 = vmul.f32 %v12803_v38, %v8397_v25  ;;  %v1023_v8 = vmul.f32 %v12804_v10, %v8408_v34  ;;  %v8874_v16 = vpop.permute.xlu0 %1875  ;;  %v12820_v38 = vld [vmem:[#allocation128_spill] sm:$0xff]  ;;  %v12821_v10 = vld [vmem:[#allocation130_spill] sm:$0xff] }
 0x353   :  { %v3385_v41 = vsel %vm3373_vm9, %v2588_v14, %v3384_v59  ;;  %v1025_v6 = vmul.f32 %v12805_v58, %v8377_v53  ;;  %v1027_v24 = vmul.f32 %v12806_v11, %v8386_v56  ;;  %v1029_v62 = vmul.f32 %v12807_v20, %v8397_v25  ;;  %v12810_v14 = vld [vmem:[#allocation116_spill] sm:$0xff]  ;;  %v12815_v59 = vld [vmem:[#allocation122_spill] sm:$0xff] }
 0x354   :  { %v3386_v39 = vsel %vm3375_vm10, %v2627_v60, %v3385_v41  ;;  %v1031_v19 = vmul.f32 %v12809_v55, %v8408_v34  ;;  %v1033_v5 = vmul.f32 %v12810_v14, %v8377_v53  ;;  %v1035_v1 = vmul.f32 %v12811_v27, %v8386_v56  ;;  %v12813_v60 = vld [vmem:[#allocation120_spill] sm:$0xff]  ;;  %v12825_v55 = vld [vmem:[#allocation134_spill] sm:$0xff] }
 0x355   :  { %v3387_v40 = vsel %vm3377_vm11, %v2666_v47, %v3386_v39  ;;  %v1037_v45 = vmul.f32 %v12813_v60, %v8397_v25  ;;  %v1039_v47 = vmul.f32 %v12815_v59, %v8408_v34  ;;  %v12818_v39 = vld [vmem:[#allocation126_spill] sm:$0xff]  ;;  %v12823_v11 = vld [vmem:[#allocation132_spill] sm:$0xff] }
 0x356   :  { %1920 = vperm.xlu1 %7073, %v1019_v32   ;;  %v8863_v13 = vpop.permute.xlu1 %1734  ;;  %v3388_v2 = vsel %vm3379_vm12, %v2705_v50, %v3387_v40  ;;  %v8880_v23 = vpop.permute.xlu0 %1881  ;;  %v12816_v50 = vld [vmem:[#allocation124_spill] sm:$0xff]  ;;  %v1043_v40 = vmul.f32 %v12818_v39, %v8386_v56 }
 0x357   :  { %v3389_v12 = vsel %vm3381_vm13, %v2744_v4, %v3388_v2  ;;  %v1041_v17 = vmul.f32 %v12816_v50, %v8377_v53 }
 0x358   :  { %v3412_v61 = vsel %vm3408_vm14, %v3389_v12, 0.0 }
 0x35a   :  { %1926 = vperm.xlu1 %7073, %v1021_v28   ;;  %v8869_v43 = vpop.permute.xlu1 %1740  ;;  %v8890_v51 = vpop.permute.xlu0 %1887  ;;  %v1045_v28 = vmul.f32 %v12820_v38, %v8397_v25  ;;  %v12832_v38 = vld [vmem:[#allocation142_spill] sm:$0xff] }
 0x35b   :  { %3413 = vadd.xlane.f32.xlu0 %v3412_v61  ;;  %12808 = vst [vmem:[#allocation84_spill] sm:$0xff] %v8890_v51 }
 0x35e   :  { %1932 = vperm.xlu1 %7073, %v1023_v8   ;;  %v8876_v49 = vpop.permute.xlu1 %1746  ;;  %v8896_v29 = vpop.permute.xlu0 %1893  ;;  %v1047_v8 = vmul.f32 %v12821_v10, %v8408_v34 }
 0x362   :  { %1938 = vperm.xlu1 %7073, %v1025_v6   ;;  %v8882_v7 = vpop.permute.xlu1 %1752  ;;  %v8906_v31 = vpop.permute.xlu0 %1899 }
 0x363   :  { %12812 = vst [vmem:[#allocation86_spill] sm:$0xff] %v8906_v31  ;;  %v12861_v31 = vld [vmem:[#allocation108_spill] sm:$0xff] }
 0x366   :  { %1944 = vperm.xlu1 %7073, %v1027_v24   ;;  %v8886_v35 = vpop.permute.xlu1 %1758  ;;  %v8912_v63 = vpop.permute.xlu0 %1905  ;;  %v1049_v24 = vmul.f32 %v12823_v11, %v8377_v53  ;;  %v12834_v11 = vld [vmem:[#allocation144_spill] sm:$0xff] }
 0x367   :  { %12814 = vst [vmem:[#allocation88_spill] sm:$0xff] %v8912_v63 }
 0x36a   :  { %1950 = vperm.xlu1 %7073, %v1029_v62   ;;  %v8892_v48 = vpop.permute.xlu1 %1764  ;;  %v8922_v32 = vpop.permute.xlu0 %1911 }
 0x36b   :  { %12817 = vst [vmem:[#allocation90_spill] sm:$0xff] %v8922_v32 }
 0x36e   :  { %1956 = vperm.xlu1 %7073, %v1031_v19   ;;  %v8898_v37 = vpop.permute.xlu1 %1770  ;;  %v8928_v2 = vpop.permute.xlu0 %1917  ;;  %v1051_v19 = vmul.f32 %v12825_v55, %v8386_v56 }
 0x36f   :  { %12819 = vst [vmem:[#allocation92_spill] sm:$0xff] %v8928_v2 }
 0x372   :  { %1962 = vperm.xlu1 %7073, %v1033_v5   ;;  %v8902_v3 = vpop.permute.xlu1 %1776  ;;  %v8938_v58 = vpop.permute.xlu0 %1923  ;;  %v12826_v5 = vld [vmem:[#allocation136_spill] sm:$0xff] }
 0x373   :  { %12822 = vst [vmem:[#allocation94_spill] sm:$0xff] %v8938_v58  ;;  %v1053_v27 = vmul.f32 %v12826_v5, %v8397_v25  ;;  %v12837_v5 = vld [vmem:[#allocation146_spill] sm:$0xff] }
 0x376   :  { %1968 = vperm.xlu1 %7073, %v1035_v1   ;;  %v8908_v33 = vpop.permute.xlu1 %1782  ;;  %v8944_v20 = vpop.permute.xlu0 %1929 }
 0x377   :  { %12824 = vst [vmem:[#allocation96_spill] sm:$0xff] %v8944_v20  ;;  %v12849_v20 = vld [vmem:[#allocation165_spill] sm:$0xff] }
 0x378   :  { %v2762_v58 = vrot.slane %v12849_v20, %v12564_v21  ;;  %v2757_v20 = vrot.slane %v8852_v22, %v12561_v54 }
 0x37a   :  { %1974 = vperm.xlu1 %7073, %v1037_v45   ;;  %v8914_v18 = vpop.permute.xlu1 %1788  ;;  %v8954_v1 = vpop.permute.xlu0 %1935  ;;  %v12829_v45 = vld [vmem:[#allocation138_spill] sm:$0xff] }
 0x37b   :  { %12827 = vst [vmem:[#allocation99_spill] sm:$0xff] %v8954_v1  ;;  %v1055_v59 = vmul.f32 %v12829_v45, %v8408_v34  ;;  %v12838_v45 = vld [vmem:[#allocation148_spill] sm:$0xff] }
 0x37e   :  { %1980 = vperm.xlu1 %7073, %v1039_v47   ;;  %v8918_v41 = vpop.permute.xlu1 %1794  ;;  %v8960_v47 = vpop.permute.xlu0 %1941 }
 0x37f   :  { %12830 = vst [vmem:[#allocation105_spill] sm:$0xff] %v8960_v47 }
 0x382   :  { %1986 = vperm.xlu1 %7073, %v1041_v17   ;;  %v8924_v4 = vpop.permute.xlu1 %1800  ;;  %v12831_v17 = vld [vmem:[#allocation140_spill] sm:$0xff]  ;;  %v8970_v10 = vpop.permute.xlu0 %1947 }
 0x383   :  { %v1057_v39 = vmul.f32 %v12831_v17, %v8377_v53  ;;  %12833 = vst [vmem:[#allocation109_spill] sm:$0xff] %v8970_v10  ;;  %v12839_v17 = vld [vmem:[#allocation150_spill] sm:$0xff] }
 0x386   :  { %1992 = vperm.xlu1 %7073, %v1043_v40   ;;  %v8930_v12 = vpop.permute.xlu1 %1806  ;;  %v8976_v55 = vpop.permute.xlu0 %1953 }
 0x387   :  { %12835 = vst [vmem:[#allocation25_spill] sm:$0xff] %v8976_v55 }
 0x38a   :  { %1998 = vperm.xlu1 %7073, %v1045_v28   ;;  %v8934_v61 = vpop.permute.xlu1 %1812  ;;  %v1059_v28 = vmul.f32 %v12832_v38, %v8386_v56  ;;  %v12840_v38 = vld [vmem:[#allocation152_spill] sm:$0xff]  ;;  %v9032_v51 = vpop.permute.xlu0 %1959 }
 0x38b   :  { %12857 = vst [vmem:[#allocation34_spill] sm:$0xff] %v9032_v51 }
 0x38e   :  { %2004 = vperm.xlu1 %7073, %v1047_v8   ;;  %v8940_v6 = vpop.permute.xlu1 %1818 }
 0x392   :  { %2010 = vperm.xlu1 %7073, %v1049_v24   ;;  %v8946_v62 = vpop.permute.xlu1 %1824  ;;  %v1061_v24 = vmul.f32 %v12834_v11, %v8397_v25  ;;  %v12841_v11 = vld [vmem:[#allocation154_spill] sm:$0xff] }
 0x393   :  { %v8992_v10 = vmul.f32 %v12841_v11, %v8408_v34  ;;  %v12850_v11 = vld [vmem:[#allocation168_spill] sm:$0xff] }
 0x394   :  { %v2772_v2 = vrot.slane %v12850_v11, %v12565_v9  ;;  %v2787_v11 = vrot.slane %v8876_v49, %v12562_v26  ;;  %v12865_v49 = vld [vmem:[#allocation68_spill] sm:$0xff] }
 0x396   :  { %2016 = vperm.xlu1 %7073, %v1051_v19   ;;  %v8950_v14 = vpop.permute.xlu1 %1830 }
 0x39a   :  { %2022 = vperm.xlu1 %7073, %v1053_v27   ;;  %v8956_v60 = vpop.permute.xlu1 %1836  ;;  %v1063_v27 = vmul.f32 %v12837_v5, %v8408_v34  ;;  %v12844_v5 = vld [vmem:[#allocation158_spill] sm:$0xff] }
 0x39b   :  { %12828 = vst [vmem:[#allocation102_spill] sm:$0xff] %v8956_v60  ;;  %v9000_v47 = vmul.f32 %v12844_v5, %v8386_v56 }
 0x39d   :  { %12845 = vst [vmem:[#allocation27_spill] sm:$0xff] %v9000_v47 }
 0x39e   :  { %2028 = vperm.xlu1 %7073, %v1055_v59   ;;  %v8962_v50 = vpop.permute.xlu1 %1842  ;;  %v1065_v59 = vmul.f32 %v12838_v45, %v8377_v53  ;;  %v12846_v45 = vld [vmem:[#allocation160_spill] sm:$0xff] }
 0x39f   :  { %v9004_v1 = vmul.f32 %v12846_v45, %v8397_v25 }
 0x3a1   :  { %12847 = vst [vmem:[#allocation113_spill] sm:$0xff] %v9004_v1  ;;  %v12856_v1 = vld [vmem:[#allocation30_spill] sm:$0xff] }
 0x3a2   :  { %2034 = vperm.xlu1 %7073, %v1057_v39   ;;  %v8966_v40 = vpop.permute.xlu1 %1848  ;;  %v1067_v39 = vmul.f32 %v12839_v17, %v8386_v56  ;;  %v12848_v17 = vld [vmem:[#allocation167_spill] sm:$0xff]  ;;  %v2748_v56 = vrot.slane %v8813_v30, %v12562_v26  ;;  %v2830_v63 = vrot.slane %v12856_v1, %v12560_v0  ;;  %v12862_v30 = vld [vmem:[#allocation54_spill] sm:$0xff] }
 0x3a6   :  { %2040 = vperm.xlu1 %7073, %v1059_v28   ;;  %v8972_v8 = vpop.permute.xlu1 %1854  ;;  %v8988_v28 = vmul.f32 %v12840_v38, %v8397_v25  ;;  %v2752_v38 = vrot.slane %v12848_v17, %v12560_v0  ;;  %v12852_v25 = vld [vmem:[#allocation32_spill] sm:$0xff]  ;;  %v12853_v17 = vld [vmem:[#allocation26_spill] sm:$0xff] }
 0x3a7   :  { %v2791_v45 = vrot.slane %v12852_v25, %v12560_v0  ;;  %v2801_v32 = vrot.slane %v12853_v17, %v12564_v21  ;;  %v2796_v25 = vrot.slane %v8882_v7, %v12561_v54  ;;  %v12858_v17 = vld [vmem:[#allocation98_spill] sm:$0xff]  ;;  %v12864_v7 = vld [vmem:[#allocation64_spill] sm:$0xff] }
 0x3a8   :  { %v2840_v22 = vrot.slane %v12858_v17, %v12564_v21  ;;  %v2753_v17 = vsel %vm2116_vm0, %v2752_v38, %v2748_v56  ;;  %v2826_v38 = vrot.slane %v8898_v37, %v12562_v26  ;;  %v12867_v56 = vld [vmem:[#allocation78_spill] sm:$0xff]  ;;  %v3006_v37 = vrot.slane %v8880_v23, %v12565_v9 }
 0x3a9   :  { %v2758_v47 = vsel %vm2123_vm1, %v2757_v20, %v2753_v17  ;;  %v2792_v1 = vsel %vm2116_vm0, %v2791_v45, %v2787_v11  ;;  %v12868_v20 = vld [vmem:[#allocation80_spill] sm:$0xff]  ;;  %v2835_v11 = vrot.slane %v8902_v3, %v12561_v54  ;;  %v2996_v3 = vrot.slane %v8874_v16, %v12564_v21 }
 0x3aa   :  { %2046 = vperm.xlu1 %7073, %v1061_v24   ;;  %v8978_v19 = vpop.permute.xlu1 %1860  ;;  %v12842_v24 = vld [vmem:[#allocation156_spill] sm:$0xff]  ;;  %v2874_v16 = vrot.slane %v8924_v4, %v12561_v54  ;;  %v2777_v4 = vrot.slane %v8869_v43, %v12762_v52 }
 0x3ab   :  { %12836 = vst [vmem:[#allocation111_spill] sm:$0xff] %v8978_v19  ;;  %v8996_v55 = vmul.f32 %v12842_v24, %v8377_v53  ;;  %v12854_v24 = vld [vmem:[#allocation36_spill] sm:$0xff]  ;;  %v12866_v19 = vld [vmem:[#allocation74_spill] sm:$0xff] }
 0x3ac   :  { %v2811_v34 = vrot.slane %v12854_v24, %v12565_v9  ;;  %v12859_v53 = vld [vmem:[#allocation44_spill] sm:$0xff]  ;;  %v2908_v24 = vrot.slane %v12865_v49, %v12560_v0  ;;  %v9081_v49 = vpop.permute.xlu0 %1965 }
 0x3ad   :  { %12843 = vst [vmem:[#allocation33_spill] sm:$0xff] %v8996_v55  ;;  %v2797_v55 = vsel %vm2123_vm1, %v2796_v25, %v2792_v1  ;;  %v2957_v25 = vrot.slane %v8727_v46, %v12564_v21  ;;  %v2763_v1 = vsel %vm2130_vm2, %v2762_v58, %v2758_v47  ;;  %v2831_v47 = vsel %vm2116_vm0, %v2830_v63, %v2826_v38 }
 0x3ae   :  { %2052 = vperm.xlu1 %7073, %v1063_v27   ;;  %v9016_v5 = vpop.permute.xlu1 %1866  ;;  %v2869_v27 = vrot.slane %v12861_v31, %v12560_v0  ;;  %v2767_v31 = vrot.slane %v8863_v13, %v12563_v57  ;;  %v12869_v13 = vld [vmem:[#allocation82_spill] sm:$0xff]  ;;  %v2836_v51 = vsel %vm2123_vm1, %v2835_v11, %v2831_v47  ;;  %v2913_v63 = vrot.slane %v8946_v62, %v12561_v54 }
 0x3af   :  { %v2947_v45 = vrot.slane %v12869_v13, %v12560_v0  ;;  %v2986_v13 = vrot.slane %v8861_v44, %v12560_v0  ;;  %v2845_v44 = vrot.slane %v8908_v33, %v12563_v57  ;;  %v2855_v11 = vrot.slane %v8914_v18, %v12762_v52 }
 0x3b0   :  { %v2768_v46 = vsel %vm2137_vm3, %v2767_v31, %v2763_v1  ;;  %v9122_v62 = vpop.permute.xlu0 %1971  ;;  %v12870_v18 = vrot.slane %v12862_v30, %v12564_v21  ;;  %v12872_v30 = vrot.slane %v12866_v19, %v12564_v21 }
 0x3b1   :  { %v2773_v31 = vsel %vm2144_vm4, %v2772_v2, %v2768_v46  ;;  %v2982_v2 = vrot.slane %v9016_v5, %v12562_v26  ;;  %v12871_v46 = vrot.slane %v12859_v53, %v12565_v9  ;;  %v12873_v53 = vld [vmem:[#allocation102_spill] sm:$0xff] }
 0x3b2   :  { %2058 = vperm.xlu1 %7073, %v1065_v59   ;;  %v9051_v60 = vpop.permute.xlu1 %1872  ;;  %v2806_v59 = vrot.slane %v8886_v35, %v12563_v57  ;;  %v2802_v35 = vsel %vm2130_vm2, %v2801_v32, %v2797_v55  ;;  %v2904_v32 = vrot.slane %v8940_v6, %v12562_v26  ;;  %v3025_v55 = vrot.slane %v8896_v29, %v12560_v0  ;;  %v12875_v19 = vld [vmem:[#allocation111_spill] sm:$0xff] }
 0x3b3   :  { %v2816_v6 = vrot.slane %v8892_v48, %v12762_v52  ;;  %v2952_v29 = vrot.slane %v8966_v40, %v12561_v54  ;;  %v2991_v43 = vrot.slane %v9051_v60, %v12561_v54  ;;  %v2884_v40 = vrot.slane %v8930_v12, %v12563_v57 }
 0x3b4   :  { %v2807_v58 = vsel %vm2137_vm3, %v2806_v59, %v2802_v35  ;;  %v2909_v5 = vsel %vm2116_vm0, %v2908_v24, %v2904_v32  ;;  %v2962_v12 = vrot.slane %v8972_v8, %v12563_v57  ;;  %v2987_v24 = vsel %vm2116_vm0, %v2986_v13, %v2982_v2 }
 0x3b5   :  { %v2894_v13 = vrot.slane %v8934_v61, %v12762_v52 }
 0x3b6   :  { %2064 = vperm.xlu1 %7073, %v1067_v39   ;;  %v9083_v17 = vpop.permute.xlu1 %1878  ;;  %v2865_v39 = vrot.slane %v8918_v41, %v12562_v26  ;;  %v2943_v41 = vrot.slane %v8962_v50, %v12562_v26  ;;  %v2812_v50 = vsel %vm2144_vm4, %v2811_v34, %v2807_v58  ;;  %v2914_v34 = vsel %vm2123_vm1, %v2913_v63, %v2909_v5  ;;  %v12874_v63 = vld [vmem:[#allocation33_spill] sm:$0xff] }
 0x3b7   :  { %v2919_v47 = vsel %vm2130_vm2, %v12872_v30, %v2914_v34  ;;  %v12879_v34 = vld [vmem:[#allocation86_spill] sm:$0xff] }
 0x3b8   :  { %v2870_v59 = vsel %vm2116_vm0, %v2869_v27, %v2865_v39  ;;  %v2948_v27 = vsel %vm2116_vm0, %v2947_v45, %v2943_v41  ;;  %v9165_v39 = vpop.permute.xlu0 %1977 }
 0x3b9   :  { %v2875_v48 = vsel %vm2123_vm1, %v2874_v16, %v2870_v59  ;;  %v2953_v35 = vsel %vm2123_vm1, %v2952_v29, %v2948_v27  ;;  %v2933_v16 = vrot.slane %v12873_v53, %v12762_v52  ;;  %v12880_v27 = vld [vmem:[#allocation38_spill] sm:$0xff] }
 0x3ba   :  { %2070 = vperm.xlu1 %7073, %v8988_v28   ;;  %v9112_v33 = vpop.permute.xlu1 %1884  ;;  %v2841_v28 = vsel %vm2130_vm2, %v2840_v22, %v2836_v51  ;;  %v2923_v51 = vrot.slane %v8950_v14, %v12563_v57  ;;  %v2817_v22 = vsel %vm2151_vm5, %v2816_v6, %v2812_v50  ;;  %v2880_v1 = vsel %vm2130_vm2, %v12870_v18, %v2875_v48  ;;  %v12876_v50 = vld [vmem:[#allocation58_spill] sm:$0xff] }
 0x3bb   :  { %v2846_v38 = vsel %vm2137_vm3, %v2845_v44, %v2841_v28  ;;  %v2992_v14 = vsel %vm2123_vm1, %v2991_v43, %v2987_v24  ;;  %v2885_v8 = vsel %vm2137_vm3, %v2884_v40, %v2880_v1  ;;  %v2958_v32 = vsel %vm2130_vm2, %v2957_v25, %v2953_v35 }
 0x3bc   :  { %v2851_v58 = vsel %vm2144_vm4, %v12871_v46, %v2846_v38  ;;  %v2924_v44 = vsel %vm2137_vm3, %v2923_v51, %v2919_v47  ;;  %v2963_v61 = vsel %vm2137_vm3, %v2962_v12, %v2958_v32  ;;  %v2972_v6 = vrot.slane %v12875_v19, %v12762_v52  ;;  %v12884_v12 = vld [vmem:[#allocation104_spill] sm:$0xff]  ;;  %v9219_v46 = vpop.permute.xlu0 %1983 }
 0x3bd   :  { %v2997_v29 = vsel %vm2130_vm2, %v2996_v3, %v2992_v14  ;;  %v12877_v28 = vrot.slane %v12876_v50, %v12565_v9  ;;  %v3011_v25 = vrot.slane %v9112_v33, %v12762_v52  ;;  %v2778_v48 = vsel %vm2151_vm5, %v2777_v4, %v2773_v31  ;;  %v12894_v50 = vld [vmem:[#allocation162_spill] sm:$0xff] }
 0x3be   :  { %2076 = vperm.xlu1 %7073, %v8992_v10   ;;  %v1891_v60 = vpop.permute.xlu1 %1890  ;;  %v3001_v10 = vrot.slane %v9083_v17, %v12563_v57  ;;  %v2856_v17 = vsel %vm2151_vm5, %v2855_v11, %v2851_v58  ;;  %v12878_v3 = vrot.slane %v12867_v56, %v12565_v9  ;;  %v3035_v51 = vrot.slane %v12879_v34, %v12564_v21  ;;  %v12883_v56 = vld [vmem:[#allocation27_spill] sm:$0xff] }
 0x3bf   :  { %v3021_v45 = vrot.slane %v1891_v60, %v12562_v26  ;;  %v2890_v59 = vsel %vm2144_vm4, %v12877_v28, %v2885_v8  ;;  %v12881_v60 = vrot.slane %v12880_v27, %v12567_v36  ;;  %v12882_v31 = vrot.slane %v8768_v42, %v12565_v9  ;;  %v12886_v42 = vld [vmem:[#allocation107_spill] sm:$0xff]  ;;  %v12895_v28 = vld [vmem:[#allocation161_spill] sm:$0xff] }
 0x3c0   :  { %v3002_v43 = vsel %vm2137_vm3, %v3001_v10, %v2997_v29  ;;  %v2895_v40 = vsel %vm2151_vm5, %v2894_v13, %v2890_v59  ;;  %v2929_v5 = vsel %vm2144_vm4, %v12878_v3, %v2924_v44  ;;  %v12885_v24 = vrot.slane %v12884_v12, %v12567_v36  ;;  %v9257_v3 = vpop.permute.xlu0 %1989 }
 0x3c1   :  { %v3026_v38 = vsel %vm2116_vm0, %v3025_v55, %v3021_v45  ;;  %v2822_v33 = vsel %vm2158_vm6, %v12881_v60, %v2817_v22  ;;  %v2934_v55 = vsel %vm2151_vm5, %v2933_v16, %v2929_v5  ;;  %v2968_v4 = vsel %vm2144_vm4, %v12882_v31, %v2963_v61  ;;  %v12893_v61 = vld [vmem:[#allocation113_spill] sm:$0xff] }
 0x3c2   :  { %2082 = vperm.xlu1 %7073, %v12874_v63   ;;  %v1897_v41 = vpop.permute.xlu1 %1896  ;;  %v2861_v18 = vsel %vm2158_vm6, %v12885_v24, %v2856_v17  ;;  %v2973_v1 = vsel %vm2151_vm5, %v2972_v6, %v2968_v4  ;;  %v3007_v22 = vsel %vm2144_vm4, %v3006_v37, %v3002_v43  ;;  %v12887_v10 = vrot.slane %v12886_v42, %v12567_v36  ;;  %v12889_v37 = vld [vmem:[#allocation84_spill] sm:$0xff]  ;;  %v12899_v31 = vld [vmem:[#allocation17_spill] sm:$0xff] }
 0x3c3   :  { %v3030_v2 = vrot.slane %v1897_v41, %v12561_v54  ;;  %v12888_v58 = vrot.slane %v12864_v7, %v12567_v36  ;;  %v3012_v13 = vsel %vm2151_vm5, %v3011_v25, %v3007_v22  ;;  %v3016_v30 = vrot.slane %v12889_v37, %v12567_v36  ;;  %v12891_v7 = vld [vmem:[#allocation88_spill] sm:$0xff]  ;;  %v12907_v37 = vld [vmem:[#allocation21_spill] sm:$0xff] }
 0x3c4   :  { %v2783_v45 = vsel %vm2158_vm6, %v12887_v10, %v2778_v48  ;;  %v12890_v17 = vrot.slane %v12868_v20, %v12567_v36  ;;  %v3045_v16 = vrot.slane %v12891_v7, %v12565_v9  ;;  %v12892_v63 = vrot.slane %v8835_v15, %v12567_v36  ;;  %v12896_v15 = vld [vmem:[#allocation90_spill] sm:$0xff] }
 0x3c5   :  { %v3031_v11 = vsel %vm2123_vm1, %v3030_v2, %v3026_v38  ;;  %v2900_v8 = vsel %vm2158_vm6, %v12888_v58, %v2895_v40  ;;  %v3390_v47 = vsel %vm3369_vm7, %v2822_v33, %v2783_v45  ;;  %v3017_v29 = vsel %vm2158_vm6, %v3016_v30, %v3012_v13  ;;  %v127_v2 = vld [vmem:[%s12017_s2] sm:$0xff] }
 0x3c6   :  { %2088 = vperm.xlu1 %7073, %v12883_v56   ;;  %v1903_v35 = vpop.permute.xlu1 %1902  ;;  %v3036_v23 = vsel %vm2130_vm2, %v3035_v51, %v3031_v11  ;;  %v2939_v44 = vsel %vm2158_vm6, %v12890_v17, %v2934_v55  ;;  %v3391_v32 = vsel %vm3371_vm8, %v2861_v18, %v3390_v47  ;;  %v2978_v41 = vsel %vm2158_vm6, %v12892_v63, %v2973_v1  ;;  %v12897_v51 = vld [vmem:[#allocation16_spill] sm:$0xff]  ;;  %v9272_v56 = vpop.permute.xlu0 %1995  ;;  %v12901_v18 = vld [vmem:[#allocation18_spill] sm:$0xff]  ;;  %v128_v63 = vld [vmem:[%s12017_s2 + $0x8] sm:$0xff] }
 0x3c7   :  { %v3040_v14 = vrot.slane %v1903_v35, %v12563_v57  ;;  %v3392_v6 = vsel %vm3373_vm9, %v2900_v8, %v3391_v32  ;;  %v1079_v59 = vmul.f32 %v12895_v28, %v12894_v50  ;;  %v3055_v43 = vrot.slane %v12896_v15, %v12567_v36  ;;  %v12905_v58 = vld [vmem:[#allocation20_spill] sm:$0xff]  ;;  %v12910_v17 = vld [vmem:[#allocation22_spill] sm:$0xff] }
 0x3c8   :  { %v3393_v38 = vsel %vm3375_vm10, %v2939_v44, %v3392_v6  ;;  %v9264_v27 = vrot.slane %v127_v2, %v12897_v51  ;;  %v3447_v4 = vrot.slane %v127_v2, %v12899_v31  ;;  %v9281_v1 = vrot.slane %v127_v2, %v12901_v18 }
 0x3c9   :  { %v3041_v53 = vsel %vm2137_vm3, %v3040_v14, %v3036_v23  ;;  %v3394_v40 = vsel %vm3377_vm11, %v2978_v41, %v3393_v38  ;;  %v12903_v14 = vld [vmem:[#allocation19_spill] sm:$0xff]  ;;  %v9295_v8 = vrot.slane %v127_v2, %v12905_v58  ;;  %v9303_v30 = vrot.slane %v127_v2, %v12907_v37 }
 0x3ca   :  { %2094 = vperm.xlu1 %7073, %v12893_v61   ;;  %v1909_v19 = vpop.permute.xlu1 %1908  ;;  %v3046_v25 = vsel %vm2144_vm4, %v3045_v16, %v3041_v53  ;;  %v3395_v34 = vsel %vm3379_vm12, %v3017_v29, %v3394_v40  ;;  %12898 = vst [vmem:[#allocation29_spill] sm:$0xff] %v9264_v27  ;;  %v9276_v12 = vpop.permute.xlu0 %2001  ;;  %12902 = vst [vmem:[#allocation35_spill] sm:$0xff] %v9281_v1  ;;  %v9287_v42 = vrot.slane %v127_v2, %v12903_v14  ;;  %v12912_v16 = vld [vmem:[#allocation23_spill] sm:$0xff] }
 0x3cb   :  { %v3050_v20 = vrot.slane %v1909_v19, %v12762_v52  ;;  %12906 = vst [vmem:[#allocation117_spill] sm:$0xff] %v9295_v8  ;;  %12908 = vst [vmem:[#allocation37_spill] sm:$0xff] %v9303_v30  ;;  %v9309_v44 = vrot.slane %v127_v2, %v12910_v17  ;;  %v9317_v32 = vrot.slane %v127_v2, %v12912_v16 }
 0x3cc   :  { %12904 = vst [vmem:[#allocation31_spill] sm:$0xff] %v9287_v42  ;;  %v9328_v19 = vrot.slane %v128_v63, %v12897_v51  ;;  %v9342_v50 = vrot.slane %v128_v63, %v12901_v18  ;;  %v9350_v15 = vrot.slane %v128_v63, %v12903_v14  ;;  %v9364_v40 = vrot.slane %v128_v63, %v12907_v37 }
 0x3cd   :  { %v3051_v48 = vsel %vm2151_vm5, %v3050_v20, %v3046_v25  ;;  %12911 = vst [vmem:[#allocation39_spill] sm:$0xff] %v9309_v44  ;;  %12913 = vst [vmem:[#allocation121_spill] sm:$0xff] %v9317_v32  ;;  %v9334_v20 = vrot.slane %v128_v63, %v12899_v31  ;;  %v9356_v25 = vrot.slane %v128_v63, %v12905_v58 }
 0x3ce   :  { %2100 = vperm.xlu1 %7073, %v1079_v59   ;;  %v9259_v5 = vpop.permute.xlu1 %1914  ;;  %v3056_v11 = vsel %vm2158_vm6, %v3055_v43, %v3051_v48  ;;  %v9289_v10 = vpop.permute.xlu0 %2007  ;;  %12914 = vst [vmem:[#allocation41_spill] sm:$0xff] %v9328_v19  ;;  %12917 = vst [vmem:[#allocation125_spill] sm:$0xff] %v9342_v50 }
 0x3cf   :  { %v3396_v60 = vsel %vm3381_vm13, %v3056_v11, %v3395_v34  ;;  %12915 = vst [vmem:[#allocation123_spill] sm:$0xff] %v9334_v20  ;;  %12918 = vst [vmem:[#allocation45_spill] sm:$0xff] %v9350_v15 }
 0x3d0   :  { %v3415_v33 = vsel %vm3408_vm14, %v3396_v60, 0.0  ;;  %12919 = vst [vmem:[#allocation127_spill] sm:$0xff] %v9356_v25  ;;  %12921 = vst [vmem:[#allocation129_spill] sm:$0xff] %v9364_v40  ;;  %v9372_v60 = vrot.slane %v128_v63, %v12910_v17 }
 0x3d1   :  { %3416 = vadd.xlane.f32.xlu0 %v3415_v33 }
 0x3d2   :  { %3438 = vbcast.lane.b32.xlu1 %v9264_v27, 256  ;;  %v9269_v55 = vpop.permute.xlu1 %1920  ;;  %v9297_v13 = vpop.permute.xlu0 %2013  ;;  %12923 = vst [vmem:[#allocation131_spill] sm:$0xff] %v9372_v60 }
 0x3d6   :  { %3449 = vbcast.lane.b32.xlu1 %v3447_v4, 256  ;;  %v9274_v35 = vpop.permute.xlu1 %1926  ;;  %v9311_v53 = vpop.permute.xlu0 %2019 }
 0x3da   :  { %3453 = vbcast.lane.b32.xlu1 %v3447_v4, 264  ;;  %v9278_v24 = vpop.permute.xlu1 %1932  ;;  %v9322_v41 = vpop.permute.xlu0 %2025  ;;  %v9378_v4 = vrot.slane %v128_v63, %v12912_v16 }
 0x3db   :  { %12900 = vst [vmem:[#allocation115_spill] sm:$0xff] %v9278_v24  ;;  %v3079_v24 = vrot.slane %v9274_v35, %v12563_v57 }
 0x3dc   :  { %12924 = vst [vmem:[#allocation51_spill] sm:$0xff] %v9378_v4 }
 0x3de   :  { %3460 = vbcast.lane.b32.xlu1 %v9281_v1, 256  ;;  %v9284_v22 = vpop.permute.xlu1 %1938  ;;  %v9336_v29 = vpop.permute.xlu0 %2031 }
 0x3e2   :  { %3471 = vbcast.lane.b32.xlu1 %v9287_v42, 256  ;;  %v9292_v45 = vpop.permute.xlu1 %1944  ;;  %v9344_v28 = vpop.permute.xlu0 %2037 }
 0x3e6   :  { %3482 = vbcast.lane.b32.xlu1 %v9295_v8, 256  ;;  %v9300_v23 = vpop.permute.xlu1 %1950  ;;  %v9358_v38 = vpop.permute.xlu0 %2043 }
 0x3ea   :  { %3493 = vbcast.lane.b32.xlu1 %v9303_v30, 256  ;;  %v9306_v47 = vpop.permute.xlu1 %1956  ;;  %v9366_v11 = vpop.permute.xlu0 %2049 }
 0x3eb   :  { %12909 = vst [vmem:[#allocation119_spill] sm:$0xff] %v9306_v47  ;;  %v3099_v47 = vrot.slane %v9284_v22, %v12562_v26 }
 0x3ee   :  { %3504 = vbcast.lane.b32.xlu1 %v9309_v44, 256  ;;  %v9314_v7 = vpop.permute.xlu1 %1962 }
 0x3f2   :  { %3515 = vbcast.lane.b32.xlu1 %v9317_v32, 256  ;;  %v9325_v61 = vpop.permute.xlu1 %1968 }
 0x3f6   :  { %3526 = vbcast.lane.b32.xlu1 %v9328_v19, 256  ;;  %v9331_v6 = vpop.permute.xlu1 %1974 }
 0x3fa   :  { %3537 = vbcast.lane.b32.xlu1 %v9334_v20, 256  ;;  %v9339_v2 = vpop.permute.xlu1 %1980 }
 0x3fb   :  { %12916 = vst [vmem:[#allocation43_spill] sm:$0xff] %v9339_v2  ;;  %v3069_v2 = vrot.slane %v9269_v55, %v12561_v54  ;;  %v3108_v55 = vrot.slane %v9292_v45, %v12561_v54 }
 0x3fe   :  { %3548 = vbcast.lane.b32.xlu1 %v9342_v50, 256  ;;  %v9347_v59 = vpop.permute.xlu1 %1986 }
 0x402   :  { %3559 = vbcast.lane.b32.xlu1 %v9350_v15, 256  ;;  %v9353_v43 = vpop.permute.xlu1 %1992  ;;  %v9383_v15 = vpop.permute.xlu0 %2055 }
 0x406   :  { %3570 = vbcast.lane.b32.xlu1 %v9356_v25, 256  ;;  %v9361_v48 = vpop.permute.xlu1 %1998  ;;  %v129_v25 = vld [vmem:[%s12017_s2 + $0x10] sm:$0xff]  ;;  %v9391_v20 = vpop.permute.xlu0 %2061 }
 0x407   :  { %12920 = vst [vmem:[#allocation47_spill] sm:$0xff] %v9361_v48  ;;  %v9389_v50 = vrot.slane %v129_v25, %v12897_v51  ;;  %v9397_v63 = vrot.slane %v129_v25, %v12899_v31  ;;  %v9463_v48 = vrot.slane %v129_v25, %v12912_v16  ;;  %v3138_v16 = vrot.slane %v9314_v7, %v12562_v26 }
 0x408   :  { %v3298_v35 = vrot.slane %v9391_v20, %v12560_v0 }
 0x409   :  { %12925 = vst [vmem:[#allocation133_spill] sm:$0xff] %v9389_v50  ;;  %12927 = vst [vmem:[#allocation135_spill] sm:$0xff] %v9397_v63 }
 0x40a   :  { %3581 = vbcast.lane.b32.xlu1 %v9364_v40, 256  ;;  %v9369_v34 = vpop.permute.xlu1 %2004  ;;  %v9405_v32 = vpop.permute.xlu0 %2067  ;;  %12946 = vst [vmem:[#allocation65_spill] sm:$0xff] %v9463_v48 }
 0x40b   :  { %12922 = vst [vmem:[#allocation49_spill] sm:$0xff] %v9369_v34 }
 0x40e   :  { %3592 = vbcast.lane.b32.xlu1 %v9372_v60, 256  ;;  %v9375_v33 = vpop.permute.xlu1 %2010  ;;  %v9413_v30 = vpop.permute.xlu0 %2073 }
 0x412   :  { %3603 = vbcast.lane.b32.xlu1 %v9378_v4, 256  ;;  %v9386_v40 = vpop.permute.xlu1 %2016  ;;  %v9403_v4 = vrot.slane %v129_v25, %v12901_v18  ;;  %v9427_v1 = vpop.permute.xlu0 %2079 }
 0x413   :  { %12935 = vst [vmem:[#allocation143_spill] sm:$0xff] %v9427_v1  ;;  %v12942_v1 = vld [vmem:[#allocation105_spill] sm:$0xff] }
 0x414   :  { %12929 = vst [vmem:[#allocation137_spill] sm:$0xff] %v9403_v4 }
 0x416   :  { %3614 = vbcast.lane.b32.xlu1 %v9389_v50, 256  ;;  %v9394_v60 = vpop.permute.xlu1 %2022  ;;  %v9411_v50 = vrot.slane %v129_v25, %v12903_v14  ;;  %v9455_v52 = vpop.permute.xlu0 %2085 }
 0x417   :  { %12926 = vst [vmem:[#allocation53_spill] sm:$0xff] %v9394_v60  ;;  %v12939_v60 = vld [vmem:[#allocation94_spill] sm:$0xff] }
 0x418   :  { %12930 = vst [vmem:[#allocation57_spill] sm:$0xff] %v9411_v50 }
 0x41a   :  { %3625 = vbcast.lane.b32.xlu1 %v9397_v63, 256  ;;  %v9400_v19 = vpop.permute.xlu1 %2028  ;;  %v9419_v63 = vrot.slane %v129_v25, %v12905_v58 }
 0x41b   :  { %12928 = vst [vmem:[#allocation55_spill] sm:$0xff] %v9400_v19  ;;  %v12938_v19 = vld [vmem:[#allocation92_spill] sm:$0xff] }
 0x41c   :  { %12932 = vst [vmem:[#allocation59_spill] sm:$0xff] %v9419_v63  ;;  %v3064_v34 = vrot.slane %v12938_v19, %v12560_v0  ;;  %v12945_v19 = vld [vmem:[#allocation34_spill] sm:$0xff] }
 0x41e   :  { %3636 = vbcast.lane.b32.xlu1 %v9403_v4, 256  ;;  %v9408_v44 = vpop.permute.xlu1 %2034  ;;  %v9425_v4 = vrot.slane %v129_v25, %v12907_v37  ;;  %v12941_v37 = vld [vmem:[#allocation99_spill] sm:$0xff] }
 0x420   :  { %12934 = vst [vmem:[#allocation61_spill] sm:$0xff] %v9425_v4 }
 0x422   :  { %3647 = vbcast.lane.b32.xlu1 %v9411_v50, 256  ;;  %v9416_v8 = vpop.permute.xlu1 %2040  ;;  %v9433_v50 = vrot.slane %v129_v25, %v12910_v17  ;;  %v12944_v17 = vld [vmem:[#allocation25_spill] sm:$0xff]  ;;  %v3181_v25 = vrot.slane %v9257_v3, %v12560_v0 }
 0x423   :  { %12931 = vst [vmem:[#allocation139_spill] sm:$0xff] %v9416_v8 }
 0x424   :  { %12937 = vst [vmem:[#allocation145_spill] sm:$0xff] %v9433_v50 }
 0x426   :  { %3658 = vbcast.lane.b32.xlu1 %v9419_v63, 256  ;;  %v9422_v42 = vpop.permute.xlu1 %2046  ;;  %v3074_v63 = vrot.slane %v12939_v60, %v12564_v21  ;;  %v3142_v60 = vrot.slane %v9081_v49, %v12560_v0  ;;  %v3259_v49 = vrot.slane %v9344_v28, %v12560_v0 }
 0x427   :  { %12933 = vst [vmem:[#allocation141_spill] sm:$0xff] %v9422_v42  ;;  %v12940_v42 = vld [vmem:[#allocation96_spill] sm:$0xff] }
 0x42a   :  { %3669 = vbcast.lane.b32.xlu1 %v9425_v4, 256  ;;  %v9430_v27 = vpop.permute.xlu1 %2052  ;;  %v3103_v4 = vrot.slane %v12942_v1, %v12560_v0  ;;  %v3060_v1 = vrot.slane %v9259_v5, %v12562_v26  ;;  %v9476_v5 = vld [vmem:[%s12017_s2 + $0x18] sm:$0xff] }
 0x42b   :  { %12936 = vst [vmem:[#allocation63_spill] sm:$0xff] %v9430_v27  ;;  %v12943_v27 = vld [vmem:[#allocation109_spill] sm:$0xff]  ;;  %v9539_v20 = vrot.slane %v9476_v5, %v12899_v31 }
 0x42c   :  { %v3113_v8 = vrot.slane %v12943_v27, %v12564_v21  ;;  %v3065_v45 = vsel %vm2116_vm0, %v3064_v34, %v3060_v1  ;;  %v3104_v28 = vsel %vm2116_vm0, %v3103_v4, %v3099_v47  ;;  %v9514_v1 = vpop.permute.xlu0 %2091  ;;  %v3147_v4 = vrot.slane %v9325_v61, %v12561_v54 }
 0x42d   :  { %v3070_v3 = vsel %vm2123_vm1, %v3069_v2, %v3065_v45  ;;  %12948 = vst [vmem:[#allocation67_spill] sm:$0xff] %v9539_v20  ;;  %v3177_v34 = vrot.slane %v9347_v59, %v12562_v26  ;;  %v12955_v47 = vrot.slane %v9122_v62, %v12564_v21 }
 0x42e   :  { %3680 = vbcast.lane.b32.xlu1 %v9433_v50, 256  ;;  %v9460_v27 = vpop.permute.xlu1 %2058  ;;  %v3220_v50 = vrot.slane %v9297_v13, %v12560_v0  ;;  %v9504_v13 = vrot.slane %v9476_v5, %v12897_v51  ;;  %v3118_v51 = vrot.slane %v9300_v23, %v12563_v57  ;;  %v3075_v7 = vsel %vm2130_vm2, %v3074_v63, %v3070_v3 }
 0x42f   :  { %v3080_v61 = vsel %vm2137_vm3, %v3079_v24, %v3075_v7  ;;  %v3143_v3 = vsel %vm2116_vm0, %v3142_v60, %v3138_v16  ;;  %v9555_v23 = vrot.slane %v9476_v5, %v12903_v14  ;;  %v3157_v24 = vrot.slane %v9331_v6, %v12563_v57 }
 0x430   :  { %12947 = vst [vmem:[#allocation147_spill] sm:$0xff] %v9504_v13  ;;  %v12949_v16 = vrot.slane %v12940_v42, %v12565_v9  ;;  %v3255_v60 = vrot.slane %v9408_v44, %v12562_v26  ;;  %v12952_v42 = vld [vmem:[#allocation119_spill] sm:$0xff]  ;;  %v3294_v44 = vrot.slane %v9460_v27, %v12562_v26 }
 0x431   :  { %v12956_v27 = vld [vmem:[#allocation47_spill] sm:$0xff] }
 0x432   :  { %3691 = vbcast.lane.b32.xlu1 %v9463_v48, 256  ;;  %v9500_v22 = vpop.permute.xlu1 %2064  ;;  %v3109_v48 = vsel %vm2123_vm1, %v3108_v55, %v3104_v28  ;;  %v9547_v55 = vrot.slane %v9476_v5, %v12901_v18  ;;  %v3148_v28 = vsel %vm2123_vm1, %v3147_v4, %v3143_v3  ;;  %v3085_v59 = vsel %vm2144_vm4, %v12949_v16, %v3080_v61  ;;  %v12953_v61 = vld [vmem:[#allocation139_spill] sm:$0xff] }
 0x433   :  { %v3114_v2 = vsel %vm2130_vm2, %v3113_v8, %v3109_v48  ;;  %v3186_v8 = vrot.slane %v9353_v43, %v12561_v54  ;;  %v3225_v48 = vrot.slane %v9386_v40, %v12561_v54  ;;  %v9577_v43 = vrot.slane %v9476_v5, %v12905_v58 }
 0x434   :  { %v3119_v63 = vsel %vm2137_vm3, %v3118_v51, %v3114_v2  ;;  %v3216_v51 = vrot.slane %v9375_v33, %v12562_v26  ;;  %v12950_v33 = vld [vmem:[#allocation14_spill] sm:$0xff]  ;;  %v12951_v2 = vld [vmem:[#allocation115_spill] sm:$0xff]  ;;  %v3264_v40 = vrot.slane %v12953_v61, %v12561_v54  ;;  %v12954_v3 = vrot.slane %v12944_v17, %v12565_v9 }
 0x435   :  { %v3089_v4 = vrot.slane %v12951_v2, %v12950_v33  ;;  %v3128_v7 = vrot.slane %v12952_v42, %v12950_v33  ;;  %v3182_v2 = vsel %vm2116_vm0, %v3181_v25, %v3177_v34  ;;  %v3303_v42 = vrot.slane %v9500_v22, %v12561_v54 }
 0x436   :  { %3702 = vbcast.lane.b32.xlu1 %v9504_v13, 256  ;;  %v9535_v45 = vpop.permute.xlu1 %2070  ;;  %v3124_v16 = vsel %vm2144_vm4, %v12954_v3, %v3119_v63  ;;  %v3187_v13 = vsel %vm2123_vm1, %v3186_v8, %v3182_v2  ;;  %v3196_v58 = vrot.slane %v12956_v27, %v12563_v57  ;;  %v3221_v17 = vsel %vm2116_vm0, %v3220_v50, %v3216_v51  ;;  %v12957_v63 = vld [vmem:[#allocation43_spill] sm:$0xff] }
 0x437   :  { %v3167_v3 = vrot.slane %v12957_v63, %v12950_v33  ;;  %v3226_v62 = vsel %vm2123_vm1, %v3225_v48, %v3221_v17  ;;  %v3260_v34 = vsel %vm2116_vm0, %v3259_v49, %v3255_v60  ;;  %v3299_v8 = vsel %vm2116_vm0, %v3298_v35, %v3294_v44  ;;  %v12962_v35 = vld [vmem:[#allocation49_spill] sm:$0xff]  ;;  %v12964_v27 = vld [vmem:[#allocation55_spill] sm:$0xff]  ;;  %v2098_v63 = vpop.permute.xlu0 %2097 }
 0x438   :  { %v12960_v51 = vrot.slane %v9272_v56, %v12564_v21  ;;  %v3304_v2 = vsel %vm2123_vm1, %v3303_v42, %v3299_v8  ;;  %v3313_v49 = vrot.slane %v9535_v45, %v12563_v57  ;;  %v3206_v44 = vrot.slane %v12962_v35, %v12950_v33 }
 0x439   :  { %v12963_v56 = vrot.slane %v9311_v53, %v12564_v21  ;;  %v3245_v17 = vrot.slane %v12964_v27, %v12950_v33  ;;  %v12976_v35 = vrot.slane %v12941_v37, %v12567_v36 }
 0x43a   :  { %3713 = vbcast.lane.b32.xlu1 %v9539_v20, 256  ;;  %v9573_v6 = vpop.permute.xlu1 %2076  ;;  %v3153_v20 = vsel %vm2130_vm2, %v12955_v47, %v3148_v28  ;;  %v12958_v47 = vld [vmem:[#allocation53_spill] sm:$0xff]  ;;  %v3265_v28 = vsel %vm2123_vm1, %v3264_v40, %v3260_v34  ;;  %v3192_v48 = vsel %vm2130_vm2, %v12960_v51, %v3187_v13 }
 0x43b   :  { %v3158_v61 = vsel %vm2137_vm3, %v3157_v24, %v3153_v20  ;;  %v3235_v25 = vrot.slane %v12958_v47, %v12563_v57  ;;  %v3129_v20 = vsel %vm2151_vm5, %v3128_v7, %v3124_v16  ;;  %v12959_v24 = vld [vmem:[#allocation141_spill] sm:$0xff]  ;;  %v12961_v7 = vrot.slane %v9165_v39, %v12565_v9  ;;  %v2104_v27 = vpop.permute.xlu0 %2103 }
 0x43c   :  { %v3274_v50 = vrot.slane %v12959_v24, %v12563_v57  ;;  %v3197_v16 = vsel %vm2137_vm3, %v3196_v58, %v3192_v48  ;;  %v3231_v13 = vsel %vm2130_vm2, %v12963_v56, %v3226_v62  ;;  %v12965_v39 = vrot.slane %v9358_v38, %v12564_v21  ;;  %v12966_v62 = vld [vmem:[#allocation63_spill] sm:$0xff] }
 0x43d   :  { %v3163_v40 = vsel %vm2144_vm4, %v12961_v7, %v3158_v61  ;;  %v3236_v45 = vsel %vm2137_vm3, %v3235_v25, %v3231_v13  ;;  %v3284_v47 = vrot.slane %v12966_v62, %v12950_v33  ;;  %v12968_v38 = vrot.slane %v9276_v12, %v12565_v9  ;;  %v12982_v62 = vld [vmem:[#allocation22_spill] sm:$0xff] }
 0x43e   :  { %3724 = vbcast.lane.b32.xlu1 %v9547_v55, 256  ;;  %v2083_v22 = vpop.permute.xlu1 %2082  ;;  %v3168_v42 = vsel %vm2151_vm5, %v3167_v3, %v3163_v40  ;;  %v3270_v58 = vsel %vm2130_vm2, %v12965_v39, %v3265_v28  ;;  %v12967_v3 = vrot.slane %v9405_v32, %v12564_v21  ;;  %v3323_v24 = vrot.slane %v9573_v6, %v12950_v33 }
 0x43f   :  { %v3333_v60 = vrot.slane %v2083_v22, %v12562_v26  ;;  %v3275_v53 = vsel %vm2137_vm3, %v3274_v50, %v3270_v58  ;;  %v3202_v22 = vsel %vm2144_vm4, %v12968_v38, %v3197_v16  ;;  %v12969_v50 = vrot.slane %v9455_v52, %v12560_v0  ;;  %v13028_v26 = vld [vmem:[#allocation135_spill] sm:$0xff] }
 0x440   :  { %v3309_v25 = vsel %vm2130_vm2, %v12967_v3, %v3304_v2  ;;  %v3090_v32 = vsel %vm2151_vm5, %v3089_v4, %v3085_v59  ;;  %v3207_v51 = vsel %vm2151_vm5, %v3206_v44, %v3202_v22  ;;  %v12971_v2 = vrot.slane %v12945_v19, %v12567_v36 }
 0x441   :  { %v3314_v28 = vsel %vm2137_vm3, %v3313_v49, %v3309_v25  ;;  %v3338_v8 = vsel %vm2116_vm0, %v12969_v50, %v3333_v60  ;;  %v12972_v49 = vrot.slane %v9366_v11, %v12565_v9  ;;  %v12974_v7 = vrot.slane %v9219_v46, %v12567_v36 }
 0x442   :  { %3735 = vbcast.lane.b32.xlu1 %v9555_v23, 256  ;;  %v2089_v61 = vpop.permute.xlu1 %2088  ;;  %v3134_v6 = vsel %vm2158_vm6, %v12971_v2, %v3129_v20  ;;  %v12975_v40 = vrot.slane %v9413_v30, %v12565_v9  ;;  %v3095_v44 = vsel %vm2158_vm6, %v12976_v35, %v3090_v32  ;;  %v12977_v56 = vrot.slane %v9289_v10, %v12567_v36  ;;  %v12995_v35 = vld [vmem:[#allocation35_spill] sm:$0xff] }
 0x443   :  { %v3342_v34 = vrot.slane %v2089_v61, %v12561_v54  ;;  %v12970_v54 = vrot.slane %v9322_v41, %v12565_v9  ;;  %v3280_v59 = vsel %vm2144_vm4, %v12972_v49, %v3275_v53  ;;  %v12973_v41 = vld [vmem:[#allocation21_spill] sm:$0xff]  ;;  %v3173_v19 = vsel %vm2158_vm6, %v12974_v7, %v3168_v42 }
 0x444   :  { %v9681_v60 = vrot.slane %v9476_v5, %v12973_v41  ;;  %v3285_v20 = vsel %vm2151_vm5, %v3284_v47, %v3280_v59  ;;  %v3319_v11 = vsel %vm2144_vm4, %v12975_v40, %v3314_v28  ;;  %v3212_v46 = vsel %vm2158_vm6, %v12977_v56, %v3207_v51  ;;  %v12993_v40 = vld [vmem:[#allocation29_spill] sm:$0xff] }
 0x445   :  { %v3241_v12 = vsel %vm2144_vm4, %v12970_v54, %v3236_v45  ;;  %v3343_v48 = vsel %vm2123_vm1, %v3342_v34, %v3338_v8  ;;  %v3324_v13 = vsel %vm2151_vm5, %v3323_v24, %v3319_v11  ;;  %v12978_v42 = vrot.slane %v9514_v1, %v12564_v21  ;;  %v12979_v45 = vld [vmem:[#allocation143_spill] sm:$0xff]  ;;  %v131_v8 = vld [vmem:[%s12017_s2 + $0x20] sm:$0xff] }
 0x446   :  { %v3246_v52 = vsel %vm2151_vm5, %v3245_v17, %v3241_v12  ;;  %3746 = vbcast.lane.b32.xlu1 %v9577_v43, 256  ;;  %v2095_v4 = vpop.permute.xlu1 %2094  ;;  %v3397_v37 = vsel %vm3369_vm7, %v3134_v6, %v3095_v44  ;;  %v12980_v17 = vrot.slane %v9336_v29, %v12567_v36  ;;  %v3357_v58 = vrot.slane %v2098_v63, %v12565_v9  ;;  %v12984_v24 = vld [vmem:[#allocation23_spill] sm:$0xff]  ;;  %v12986_v54 = vld [vmem:[#allocation16_spill] sm:$0xff] }
 0x447   :  { %v3352_v16 = vrot.slane %v2095_v4, %v12563_v57  ;;  %v3348_v30 = vsel %vm2130_vm2, %v12978_v42, %v3343_v48  ;;  %v3328_v57 = vrot.slane %v12979_v45, %v12567_v36  ;;  %v3398_v61 = vsel %vm3371_vm8, %v3173_v19, %v3397_v37  ;;  %v12991_v4 = vld [vmem:[#allocation20_spill] sm:$0xff]  ;;  %v12999_v45 = vld [vmem:[#allocation117_spill] sm:$0xff] }
 0x448   :  { %v3251_v10 = vsel %vm2158_vm6, %v12980_v17, %v3246_v52  ;;  %v12981_v21 = vrot.slane %v9383_v15, %v12567_v36  ;;  %v9723_v47 = vrot.slane %v9476_v5, %v12982_v62  ;;  %v3399_v29 = vsel %vm3373_vm9, %v3212_v46, %v3398_v61  ;;  %v12997_v46 = vld [vmem:[#allocation31_spill] sm:$0xff]  ;;  %v13001_v37 = vld [vmem:[#allocation37_spill] sm:$0xff] }
 0x449   :  { %v3353_v39 = vsel %vm2137_vm3, %v3352_v16, %v3348_v30  ;;  %v3329_v9 = vsel %vm2158_vm6, %v3328_v57, %v3324_v13  ;;  %v3367_v63 = vrot.slane %v2104_v27, %v12567_v36  ;;  %v3400_v15 = vsel %vm3375_vm10, %v3251_v10, %v3399_v29  ;;  %v132_v13 = vld [vmem:[%s12017_s2 + $0x28] sm:$0xff] }
 0x44a   :  { %v3290_v1 = vsel %vm2158_vm6, %v12981_v21, %v3285_v20  ;;  %3757 = vbcast.lane.b32.xlu1 %v9681_v60, 256  ;;  %v2101_v53 = vpop.permute.xlu1 %2100  ;;  %v3358_v25 = vsel %vm2144_vm4, %v3357_v58, %v3353_v39  ;;  %v9740_v50 = vrot.slane %v9476_v5, %v12984_v24  ;;  %v9751_v12 = vrot.slane %v131_v8, %v12986_v54  ;;  %v13003_v39 = vld [vmem:[#allocation39_spill] sm:$0xff]  ;;  %v13005_v21 = vld [vmem:[#allocation121_spill] sm:$0xff] }
 0x44b   :  { %v3362_v3 = vrot.slane %v2101_v53, %v12950_v33  ;;  %v3401_v38 = vsel %vm3377_vm11, %v3290_v1, %v3400_v15  ;;  %v9757_v48 = vrot.slane %v131_v8, %v12899_v31  ;;  %v9763_v6 = vrot.slane %v131_v8, %v12901_v18  ;;  %v13007_v29 = vld [vmem:[#allocation41_spill] sm:$0xff] }
 0x44c   :  { %v3402_v33 = vsel %vm3379_vm12, %v3329_v9, %v3401_v38  ;;  %v9769_v49 = vrot.slane %v131_v8, %v12903_v14  ;;  %v9775_v7 = vrot.slane %v131_v8, %v12991_v4  ;;  %v9781_v20 = vrot.slane %v131_v8, %v12973_v41 }
 0x44d   :  { %v3363_v34 = vsel %vm2151_vm5, %v3362_v3, %v3358_v25  ;;  %v9788_v16 = vrot.slane %v131_v8, %v12982_v62  ;;  %v9795_v56 = vrot.slane %v131_v8, %v12984_v24  ;;  %v9805_v30 = vrot.slane %v132_v13, %v12986_v54 }
 0x44e   :  { %3768 = vbcast.lane.b32.xlu1 %v9723_v47, 256  ;;  %v9734_v22 = vpop.permute.xlu1 %3438  ;;  %v3368_v28 = vsel %vm2158_vm6, %v3367_v63, %v3363_v34  ;;  %v9812_v27 = vrot.slane %v132_v13, %v12899_v31  ;;  %v9819_v10 = vrot.slane %v132_v13, %v12901_v18  ;;  %v9826_v61 = vrot.slane %v132_v13, %v12903_v14  ;;  %v13009_v63 = vld [vmem:[#allocation123_spill] sm:$0xff]  ;;  %v13011_v34 = vld [vmem:[#allocation125_spill] sm:$0xff] }
 0x44f   :  { %12983 = vst [vmem:[#allocation149_spill] sm:$0xff] %v9734_v22  ;;  %v3403_v36 = vsel %vm3381_vm13, %v3368_v28, %v3402_v33  ;;  %v9833_v53 = vrot.slane %v132_v13, %v12991_v4  ;;  %v9840_v9 = vrot.slane %v132_v13, %v12973_v41  ;;  %v9847_v15 = vrot.slane %v132_v13, %v12982_v62  ;;  %v13013_v33 = vld [vmem:[#allocation45_spill] sm:$0xff] }
 0x450   :  { %v3418_v32 = vsel %vm3408_vm14, %v3403_v36, 0.0  ;;  %v9854_v28 = vrot.slane %v132_v13, %v12984_v24  ;;  %v133_v36 = vld [vmem:[%s12017_s2 + $0x30] sm:$0xff]  ;;  %v13017_v13 = vld [vmem:[#allocation129_spill] sm:$0xff] }
 0x451   :  { %3419 = vadd.xlane.f32.xlu0 %v3418_v32  ;;  %v9864_v32 = vrot.slane %v133_v36, %v12986_v54  ;;  %v9906_v0 = vrot.slane %v133_v36, %v12982_v62 }
 0x452   :  { %3779 = vbcast.lane.b32.xlu1 %v9740_v50, 256  ;;  %v9748_v51 = vpop.permute.xlu1 %3449 }
 0x453   :  { %12985 = vst [vmem:[#allocation69_spill] sm:$0xff] %v9748_v51  ;;  %13030 = vst [vmem:[#allocation40_spill] sm:$0xff] %v9906_v0 }
 0x456   :  { %3790 = vbcast.lane.b32.xlu1 %v9751_v12, 256  ;;  %v9754_v5 = vpop.permute.xlu1 %3453 }
 0x457   :  { %12987 = vst [vmem:[#allocation151_spill] sm:$0xff] %v9754_v5  ;;  %v13031_v5 = vld [vmem:[#allocation137_spill] sm:$0xff] }
 0x45a   :  { %3801 = vbcast.lane.b32.xlu1 %v9757_v48, 256  ;;  %v9760_v2 = vpop.permute.xlu1 %3460 }
 0x45b   :  { %12988 = vst [vmem:[#allocation71_spill] sm:$0xff] %v9760_v2 }
 0x45e   :  { %3812 = vbcast.lane.b32.xlu1 %v9763_v6, 256  ;;  %v9766_v52 = vpop.permute.xlu1 %3471 }
 0x45f   :  { %12989 = vst [vmem:[#allocation153_spill] sm:$0xff] %v9766_v52 }
 0x462   :  { %3823 = vbcast.lane.b32.xlu1 %v9769_v49, 256  ;;  %v9772_v59 = vpop.permute.xlu1 %3482 }
 0x463   :  { %12990 = vst [vmem:[#allocation73_spill] sm:$0xff] %v9772_v59 }
 0x466   :  { %3834 = vbcast.lane.b32.xlu1 %v9775_v7, 256  ;;  %v9778_v19 = vpop.permute.xlu1 %3493 }
 0x467   :  { %12992 = vst [vmem:[#allocation155_spill] sm:$0xff] %v9778_v19  ;;  %3442 = vbcast.lane.b32.xlu0 %v12993_v40, 264  ;;  %v13015_v40 = vld [vmem:[#allocation127_spill] sm:$0xff] }
 0x46a   :  { %3845 = vbcast.lane.b32.xlu1 %v9781_v20, 256  ;;  %v9785_v11 = vpop.permute.xlu1 %3504 }
 0x46b   :  { %12994 = vst [vmem:[#allocation75_spill] sm:$0xff] %v9785_v11  ;;  %3464 = vbcast.lane.b32.xlu0 %v12995_v35, 264 }
 0x46e   :  { %3856 = vbcast.lane.b32.xlu1 %v9788_v16, 256  ;;  %v9792_v44 = vpop.permute.xlu1 %3515 }
 0x46f   :  { %12996 = vst [vmem:[#allocation157_spill] sm:$0xff] %v9792_v44  ;;  %3475 = vbcast.lane.b32.xlu0 %v12997_v46, 264  ;;  %v9871_v46 = vrot.slane %v133_v36, %v12899_v31 }
 0x472   :  { %3867 = vbcast.lane.b32.xlu1 %v9795_v56, 256  ;;  %v9802_v42 = vpop.permute.xlu1 %3526 }
 0x473   :  { %12998 = vst [vmem:[#allocation77_spill] sm:$0xff] %v9802_v42  ;;  %3486 = vbcast.lane.b32.xlu0 %v12999_v45, 264 }
 0x476   :  { %3878 = vbcast.lane.b32.xlu1 %v9805_v30, 256  ;;  %v9809_v57 = vpop.permute.xlu1 %3537 }
 0x477   :  { %13000 = vst [vmem:[#allocation159_spill] sm:$0xff] %v9809_v57  ;;  %3497 = vbcast.lane.b32.xlu0 %v13001_v37, 264  ;;  %v9878_v37 = vrot.slane %v133_v36, %v12901_v18 }
 0x47a   :  { %3889 = vbcast.lane.b32.xlu1 %v9812_v27, 256  ;;  %v9816_v17 = vpop.permute.xlu1 %3548 }
 0x47b   :  { %13002 = vst [vmem:[#allocation79_spill] sm:$0xff] %v9816_v17  ;;  %3508 = vbcast.lane.b32.xlu0 %v13003_v39, 264  ;;  %v13019_v39 = vld [vmem:[#allocation131_spill] sm:$0xff] }
 0x47e   :  { %3900 = vbcast.lane.b32.xlu1 %v9819_v10, 256  ;;  %v9823_v58 = vpop.permute.xlu1 %3559 }
 0x47f   :  { %13004 = vst [vmem:[#allocation81_spill] sm:$0xff] %v9823_v58  ;;  %3519 = vbcast.lane.b32.xlu0 %v13005_v21, 264 }
 0x482   :  { %3911 = vbcast.lane.b32.xlu1 %v9826_v61, 256  ;;  %v9830_v1 = vpop.permute.xlu1 %3570 }
 0x483   :  { %13006 = vst [vmem:[#allocation83_spill] sm:$0xff] %v9830_v1  ;;  %3530 = vbcast.lane.b32.xlu0 %v13007_v29, 264  ;;  %v9885_v29 = vrot.slane %v133_v36, %v12903_v14 }
 0x485   :  { %13021 = vst [vmem:[#allocation11_spill] sm:$0xff] %v9885_v29 }
 0x486   :  { %3922 = vbcast.lane.b32.xlu1 %v9833_v53, 256  ;;  %v9837_v3 = vpop.permute.xlu1 %3581 }
 0x487   :  { %13008 = vst [vmem:[#allocation85_spill] sm:$0xff] %v9837_v3  ;;  %3541 = vbcast.lane.b32.xlu0 %v13009_v63, 264  ;;  %v13022_v63 = vld [vmem:[#allocation51_spill] sm:$0xff] }
 0x48a   :  { %3933 = vbcast.lane.b32.xlu1 %v9840_v9, 256  ;;  %v9844_v25 = vpop.permute.xlu1 %3592 }
 0x48b   :  { %13010 = vst [vmem:[#allocation87_spill] sm:$0xff] %v9844_v25  ;;  %3552 = vbcast.lane.b32.xlu0 %v13011_v34, 264 }
 0x48e   :  { %3944 = vbcast.lane.b32.xlu1 %v9847_v15, 256  ;;  %v9851_v38 = vpop.permute.xlu1 %3603 }
 0x48f   :  { %13012 = vst [vmem:[#allocation89_spill] sm:$0xff] %v9851_v38  ;;  %3563 = vbcast.lane.b32.xlu0 %v13013_v33, 264  ;;  %v9892_v33 = vrot.slane %v133_v36, %v12991_v4 }
 0x491   :  { %13024 = vst [vmem:[#allocation15_spill] sm:$0xff] %v9892_v33 }
 0x492   :  { %3955 = vbcast.lane.b32.xlu1 %v9854_v28, 256  ;;  %v9861_v8 = vpop.permute.xlu1 %3614 }
 0x493   :  { %13014 = vst [vmem:[#allocation91_spill] sm:$0xff] %v9861_v8  ;;  %3574 = vbcast.lane.b32.xlu0 %v13015_v40, 264  ;;  %v13025_v40 = vld [vmem:[#allocation133_spill] sm:$0xff] }
 0x496   :  { %3966 = vbcast.lane.b32.xlu1 %v9864_v32, 256  ;;  %v9868_v35 = vpop.permute.xlu1 %3625 }
 0x497   :  { %13016 = vst [vmem:[#allocation93_spill] sm:$0xff] %v9868_v35  ;;  %3585 = vbcast.lane.b32.xlu0 %v13017_v13, 264 }
 0x49a   :  { %3977 = vbcast.lane.b32.xlu1 %v9871_v46, 256  ;;  %v9875_v45 = vpop.permute.xlu1 %3636 }
 0x49b   :  { %13018 = vst [vmem:[#allocation12_spill] sm:$0xff] %v9875_v45  ;;  %3596 = vbcast.lane.b32.xlu0 %v13019_v39, 264  ;;  %v9899_v39 = vrot.slane %v133_v36, %v12973_v41 }
 0x49d   :  { %13027 = vst [vmem:[#allocation101_spill] sm:$0xff] %v9899_v39 }
 0x49e   :  { %3988 = vbcast.lane.b32.xlu1 %v9878_v37, 256  ;;  %v9882_v21 = vpop.permute.xlu1 %3647 }
 0x49f   :  { %13020 = vst [vmem:[#allocation24_spill] sm:$0xff] %v9882_v21  ;;  %3607 = vbcast.lane.b32.xlu0 %v13022_v63, 264 }
 0x4a2   :  { %3999 = vbcast.lane.b32.xlu1 %v9885_v29, 256  ;;  %v9889_v34 = vpop.permute.xlu1 %3658  ;;  %v13034_v29 = vld [vmem:[#allocation57_spill] sm:$0xff] }
 0x4a3   :  { %13023 = vst [vmem:[#allocation95_spill] sm:$0xff] %v9889_v34  ;;  %3618 = vbcast.lane.b32.xlu0 %v13025_v40, 264 }
 0x4a6   :  { %4010 = vbcast.lane.b32.xlu1 %v9892_v33, 256  ;;  %v9896_v13 = vpop.permute.xlu1 %3669  ;;  %v9913_v33 = vrot.slane %v133_v36, %v12984_v24 }
 0x4a7   :  { %13026 = vst [vmem:[#allocation164_spill] sm:$0xff] %v9896_v13  ;;  %3629 = vbcast.lane.b32.xlu0 %v13028_v26, 264  ;;  %v134_v26 = vld [vmem:[%s12017_s2 + $0x38] sm:$0xff]  ;;  %s7218_s2 = smov [#allocation5]  }
 0x4a8   :  { %13033 = vst [vmem:[#allocation52_spill] sm:$0xff] %v9913_v33  ;;  %v9930_v36 = vrot.slane %v134_v26, %v12899_v31  ;;  %v13046_v31 = vld [vmem:[#allocation65_spill] sm:$0xff]  ;;  %s7039_s10 = sshll.u32 %s7218_s2, 4  ;;  %s7040_s10 = int_to_ptr.vmem [resolvable:$true] %s7039_s10 }
 0x4a9   :  { %s7190_s11 = scalar_lea.vmem %s7040_s10, 4096  ;;  %p7195_p6 = scmp.lt.s32.totalorder %s7040_s10, %s7040_s10 }
 0x4aa   :  { %4021 = vbcast.lane.b32.xlu1 %v9899_v39, 256  ;;  %v9903_v63 = vpop.permute.xlu1 %3680  ;;  %13039 = vst [vmem:[#allocation46_spill] sm:$0xff] %v9930_v36  ;;  %p7191_p5 = scmp.ne.s32.totalorder %s7040_s10, %s7190_s11  ;;  %p7196_p7 = scmp.lt.s32.totalorder %s7190_s11, %s7190_s11 }
 0x4ab   :  { %13029 = vst [vmem:[#allocation28_spill] sm:$0xff] %v9903_v63  ;;  %3640 = vbcast.lane.b32.xlu0 %v13031_v5, 264  ;;  %v9923_v63 = vrot.slane %v134_v26, %v12986_v54  ;;  %v13037_v5 = vld [vmem:[#allocation59_spill] sm:$0xff]  ;;  %v13043_v54 = vld [vmem:[#allocation145_spill] sm:$0xff] }
 0x4ac   :  { %p7197_p8 = por %p7196_p7, %p7195_p6 }
 0x4ad   :  { %13036 = vst [vmem:[#allocation66_spill] sm:$0xff] %v9923_v63 }
 0x4ae   :  { %4032 = vbcast.lane.b32.xlu1 %v9906_v0, 256  ;;  %v9910_v40 = vpop.permute.xlu1 %3691  ;;  %p7198_p9 = pnand %p7197_p8, %p7191_p5 }
 0x4af   :  { %13032 = vst [vmem:[#allocation50_spill] sm:$0xff] %v9910_v40  ;;  %3651 = vbcast.lane.b32.xlu0 %v13034_v29, 264  ;;  %v13040_v29 = vld [vmem:[#allocation61_spill] sm:$0xff] }
 0x4b2   :  { %4043 = vbcast.lane.b32.xlu1 %v9913_v33, 256  ;;  %v9920_v39 = vpop.permute.xlu1 %3702  ;;  %v9937_v33 = vrot.slane %v134_v26, %v12901_v18  ;;  %v13048_v18 = vld [vmem:[#allocation147_spill] sm:$0xff] }
 0x4b3   :  { %13035 = vst [vmem:[#allocation62_spill] sm:$0xff] %v9920_v39  ;;  %3662 = vbcast.lane.b32.xlu0 %v13037_v5, 264 }
 0x4b4   :  { %13042 = vst [vmem:[#allocation56_spill] sm:$0xff] %v9937_v33 }
 0x4b6   :  { %4054 = vbcast.lane.b32.xlu1 %v9923_v63, 256  ;;  %v9927_v0 = vpop.permute.xlu1 %3713  ;;  %v9944_v63 = vrot.slane %v134_v26, %v12903_v14  ;;  %v13051_v14 = vld [vmem:[#allocation67_spill] sm:$0xff] }
 0x4b7   :  { %13038 = vst [vmem:[#allocation76_spill] sm:$0xff] %v9927_v0  ;;  %3673 = vbcast.lane.b32.xlu0 %v13040_v29, 264 }
 0x4b8   :  { %13045 = vst [vmem:[#allocation48_spill] sm:$0xff] %v9944_v63 }
 0x4ba   :  { %4065 = vbcast.lane.b32.xlu1 %v9930_v36, 256  ;;  %v9934_v40 = vpop.permute.xlu1 %3724  ;;  %v9951_v36 = vrot.slane %v134_v26, %v12991_v4 }
 0x4bb   :  { %13041 = vst [vmem:[#allocation42_spill] sm:$0xff] %v9934_v40  ;;  %3684 = vbcast.lane.b32.xlu0 %v13043_v54, 264 }
 0x4be   :  { %4076 = vbcast.lane.b32.xlu1 %v9937_v33, 256  ;;  %v9941_v5 = vpop.permute.xlu1 %3735  ;;  %v9958_v33 = vrot.slane %v134_v26, %v12973_v41  ;;  %v13055_v41 = vld [vmem:[#allocation163_spill] sm:$0xff] }
 0x4bf   :  { %13044 = vst [vmem:[#allocation70_spill] sm:$0xff] %v9941_v5  ;;  %3695 = vbcast.lane.b32.xlu0 %v13046_v31, 264 }
 0x4c0   :  { %13050 = vst [vmem:[#allocation166_spill] sm:$0xff] %v9958_v33 }
 0x4c2   :  { %4087 = vbcast.lane.b32.xlu1 %v9944_v63, 256  ;;  %v9948_v29 = vpop.permute.xlu1 %3746  ;;  %v9965_v63 = vrot.slane %v134_v26, %v12982_v62 }
 0x4c3   :  { %13047 = vst [vmem:[#allocation60_spill] sm:$0xff] %v9948_v29  ;;  %3706 = vbcast.lane.b32.xlu0 %v13048_v18, 264  ;;  %v9972_v18 = vrot.slane %v134_v26, %v12984_v24 }
 0x4c4   :  { %13053 = vst [vmem:[#allocation13_spill] sm:$0xff] %v9965_v63 }
 0x4c6   :  { %4098 = vbcast.lane.b32.xlu1 %v9951_v36, 256  ;;  %v9955_v54 = vpop.permute.xlu1 %3757 }
 0x4c7   :  { %13049 = vst [vmem:[#allocation72_spill] sm:$0xff] %v9955_v54  ;;  %3717 = vbcast.lane.b32.xlu0 %v13051_v14, 264  ;;  %v9976_v14 = vmax.f32 %v13055_v41, 0.0 }
 0x4ca   :  { %4109 = vbcast.lane.b32.xlu1 %v9958_v33, 256  ;;  %v9962_v31 = vpop.permute.xlu1 %3768  ;;  %v9978_v33 = vpop.xlane.xlu0 %3413 }
 0x4cb   :  { %13052 = vst [vmem:[#allocation10_spill] sm:$0xff] %v9962_v31  ;;  %3728 = vbcast.lane.b32.xlu0 %v9547_v55, 264  ;;  %v4265_v55 = vmul.f32 %v9734_v22, %v9976_v14 }
 0x4ce   :  { %4120 = vbcast.lane.b32.xlu1 %v9965_v63, 256  ;;  %v9969_v4 = vpop.permute.xlu1 %3779  ;;  %v9986_v63 = vpop.xlane.xlu0 %3416 }
 0x4cf   :  { %13054 = vst [vmem:[#allocation169_spill] sm:$0xff] %v9969_v4  ;;  %3739 = vbcast.lane.b32.xlu0 %v9555_v23, 264  ;;  %13056 = vst [vmem:[#allocation97_spill] sm:$0xff] %v9986_v63  ;;  %v4267_v23 = vmul.f32 %v9748_v51, %v9976_v14  ;;  %v13086_v63 = vld [vmem:[#allocation11_spill] sm:$0xff] }
 0x4d2   :  { %4131 = vbcast.lane.b32.xlu1 %v9972_v18, 256  ;;  %v9981_v62 = vpop.permute.xlu1 %3790 }
 0x4d3   :  { %3750 = vbcast.lane.b32.xlu0 %v9577_v43, 264  ;;  %v4269_v43 = vmul.f32 %v9760_v2, %v9976_v14 }
 0x4d6   :  { %4778 = vperm.xlu1 %7073, %v4265_v55   ;;  %v9988_v24 = vpop.permute.xlu1 %3801 }
 0x4d7   :  { %13057 = vst [vmem:[#allocation100_spill] sm:$0xff] %v9988_v24  ;;  %3761 = vbcast.lane.b32.xlu0 %v9681_v60, 264  ;;  %v4271_v60 = vmul.f32 %v9766_v52, %v9976_v14 }
 0x4da   :  { %4784 = vperm.xlu1 %7073, %v4267_v23   ;;  %v9993_v26 = vpop.permute.xlu1 %3812  ;;  %v9995_v41 = vpop.xlane.xlu0 %3419 }
 0x4db   :  { %13058 = vst [vmem:[#allocation103_spill] sm:$0xff] %v9993_v26  ;;  %13059 = vst [vmem:[#allocation106_spill] sm:$0xff] %v9995_v41  ;;  %3772 = vbcast.lane.b32.xlu0 %v9723_v47, 264  ;;  %v4273_v47 = vmul.f32 %v9772_v59, %v9976_v14 }
 0x4de   :  { %4790 = vperm.xlu1 %7073, %v4269_v43   ;;  %v10000_v22 = vpop.permute.xlu1 %3823  ;;  %v10002_v55 = vpop.permute.xlu0 %3442 }
 0x4df   :  { %13060 = vst [vmem:[#allocation110_spill] sm:$0xff] %v10002_v55  ;;  %3783 = vbcast.lane.b32.xlu0 %v9740_v50, 264  ;;  %v4275_v50 = vmul.f32 %v9778_v19, %v9976_v14 }
 0x4e2   :  { %4796 = vperm.xlu1 %7073, %v4271_v60   ;;  %v10007_v23 = vpop.permute.xlu1 %3834  ;;  %v10009_v51 = vpop.permute.xlu0 %3464 }
 0x4e3   :  { %13061 = vst [vmem:[#allocation112_spill] sm:$0xff] %v10009_v51  ;;  %3794 = vbcast.lane.b32.xlu0 %v9751_v12, 264  ;;  %v4277_v12 = vmul.f32 %v9785_v11, %v9976_v14 }
 0x4e6   :  { %4802 = vperm.xlu1 %7073, %v4273_v47   ;;  %v10014_v43 = vpop.permute.xlu1 %3845  ;;  %v10016_v41 = vpop.permute.xlu0 %3475 }
 0x4e7   :  { %13062 = vst [vmem:[#allocation114_spill] sm:$0xff] %v10016_v41  ;;  %3805 = vbcast.lane.b32.xlu0 %v9757_v48, 264  ;;  %v4279_v48 = vmul.f32 %v9792_v44, %v9976_v14 }
 0x4ea   :  { %4808 = vperm.xlu1 %7073, %v4275_v50   ;;  %v10021_v60 = vpop.permute.xlu1 %3856  ;;  %v10023_v52 = vpop.permute.xlu0 %3486 }
 0x4eb   :  { %13063 = vst [vmem:[#allocation116_spill] sm:$0xff] %v10023_v52  ;;  %3816 = vbcast.lane.b32.xlu0 %v9763_v6, 264  ;;  %v4281_v6 = vmul.f32 %v9802_v42, %v9976_v14 }
 0x4ee   :  { %4814 = vperm.xlu1 %7073, %v4277_v12   ;;  %v10028_v47 = vpop.permute.xlu1 %3867  ;;  %v10030_v59 = vpop.permute.xlu0 %3497 }
 0x4ef   :  { %13064 = vst [vmem:[#allocation118_spill] sm:$0xff] %v10030_v59  ;;  %3827 = vbcast.lane.b32.xlu0 %v9769_v49, 264  ;;  %v4283_v49 = vmul.f32 %v9809_v57, %v9976_v14 }
 0x4f2   :  { %4820 = vperm.xlu1 %7073, %v4279_v48   ;;  %v10035_v50 = vpop.permute.xlu1 %3878  ;;  %v10037_v19 = vpop.permute.xlu0 %3508 }
 0x4f3   :  { %13065 = vst [vmem:[#allocation120_spill] sm:$0xff] %v10037_v19  ;;  %3838 = vbcast.lane.b32.xlu0 %v9775_v7, 264  ;;  %v4285_v7 = vmul.f32 %v9816_v17, %v9976_v14 }
 0x4f6   :  { %4826 = vperm.xlu1 %7073, %v4281_v6   ;;  %v10042_v12 = vpop.permute.xlu1 %3889  ;;  %v10044_v11 = vpop.permute.xlu0 %3519 }
 0x4f7   :  { %13066 = vst [vmem:[#allocation122_spill] sm:$0xff] %v10044_v11  ;;  %3849 = vbcast.lane.b32.xlu0 %v9781_v20, 264  ;;  %v4287_v20 = vmul.f32 %v9823_v58, %v9976_v14 }
 0x4fa   :  { %4832 = vperm.xlu1 %7073, %v4283_v49   ;;  %v10049_v48 = vpop.permute.xlu1 %3900  ;;  %v10051_v44 = vpop.permute.xlu0 %3530 }
 0x4fb   :  { %13067 = vst [vmem:[#allocation124_spill] sm:$0xff] %v10051_v44  ;;  %3860 = vbcast.lane.b32.xlu0 %v9788_v16, 264  ;;  %v4289_v16 = vmul.f32 %v9830_v1, %v9976_v14 }
 0x4fe   :  { %4838 = vperm.xlu1 %7073, %v4285_v7   ;;  %v10056_v6 = vpop.permute.xlu1 %3911  ;;  %v10058_v42 = vpop.permute.xlu0 %3541 }
 0x4ff   :  { %13068 = vst [vmem:[#allocation126_spill] sm:$0xff] %v10058_v42  ;;  %3871 = vbcast.lane.b32.xlu0 %v9795_v56, 264  ;;  %v4291_v56 = vmul.f32 %v9837_v3, %v9976_v14 }
 0x502   :  { %4844 = vperm.xlu1 %7073, %v4287_v20   ;;  %v10063_v49 = vpop.permute.xlu1 %3922  ;;  %v10065_v57 = vpop.permute.xlu0 %3552 }
 0x503   :  { %13069 = vst [vmem:[#allocation128_spill] sm:$0xff] %v10065_v57  ;;  %3882 = vbcast.lane.b32.xlu0 %v9805_v30, 264  ;;  %v4293_v30 = vmul.f32 %v9844_v25, %v9976_v14 }
 0x506   :  { %4850 = vperm.xlu1 %7073, %v4289_v16   ;;  %v10070_v7 = vpop.permute.xlu1 %3933  ;;  %v10072_v17 = vpop.permute.xlu0 %3563 }
 0x507   :  { %13070 = vst [vmem:[#allocation130_spill] sm:$0xff] %v10072_v17  ;;  %3893 = vbcast.lane.b32.xlu0 %v9812_v27, 264  ;;  %v4295_v27 = vmul.f32 %v9851_v38, %v9976_v14 }
 0x50a   :  { %4856 = vperm.xlu1 %7073, %v4291_v56   ;;  %v10077_v20 = vpop.permute.xlu1 %3944  ;;  %v10079_v58 = vpop.permute.xlu0 %3574 }
 0x50b   :  { %13071 = vst [vmem:[#allocation132_spill] sm:$0xff] %v10079_v58  ;;  %3904 = vbcast.lane.b32.xlu0 %v9819_v10, 264  ;;  %v4297_v10 = vmul.f32 %v9861_v8, %v9976_v14 }
 0x50e   :  { %4862 = vperm.xlu1 %7073, %v4293_v30   ;;  %v10084_v16 = vpop.permute.xlu1 %3955  ;;  %v10086_v1 = vpop.permute.xlu0 %3585 }
 0x50f   :  { %3915 = vbcast.lane.b32.xlu0 %v9826_v61, 264  ;;  %v4299_v61 = vmul.f32 %v9868_v35, %v9976_v14 }
 0x512   :  { %4868 = vperm.xlu1 %7073, %v4295_v27   ;;  %v10091_v56 = vpop.permute.xlu1 %3966  ;;  %v10093_v3 = vpop.permute.xlu0 %3596 }
 0x513   :  { %13072 = vst [vmem:[#allocation134_spill] sm:$0xff] %v10091_v56  ;;  %3926 = vbcast.lane.b32.xlu0 %v9833_v53, 264  ;;  %v4301_v53 = vmul.f32 %v9875_v45, %v9976_v14 }
 0x516   :  { %4874 = vperm.xlu1 %7073, %v4297_v10   ;;  %v10098_v30 = vpop.permute.xlu1 %3977  ;;  %v10100_v25 = vpop.permute.xlu0 %3607 }
 0x517   :  { %13073 = vst [vmem:[#allocation136_spill] sm:$0xff] %v10098_v30  ;;  %3937 = vbcast.lane.b32.xlu0 %v9840_v9, 264  ;;  %v4303_v9 = vmul.f32 %v9882_v21, %v9976_v14 }
 0x51a   :  { %4880 = vperm.xlu1 %7073, %v4299_v61   ;;  %v10105_v27 = vpop.permute.xlu1 %3988  ;;  %v10107_v38 = vpop.permute.xlu0 %3618 }
 0x51b   :  { %13074 = vst [vmem:[#allocation138_spill] sm:$0xff] %v10105_v27  ;;  %3948 = vbcast.lane.b32.xlu0 %v9847_v15, 264  ;;  %v4305_v15 = vmul.f32 %v9889_v34, %v9976_v14 }
 0x51e   :  { %4886 = vperm.xlu1 %7073, %v4301_v53   ;;  %v10112_v10 = vpop.permute.xlu1 %3999  ;;  %v10114_v8 = vpop.permute.xlu0 %3629 }
 0x51f   :  { %13075 = vst [vmem:[#allocation140_spill] sm:$0xff] %v10112_v10  ;;  %13076 = vst [vmem:[#allocation142_spill] sm:$0xff] %v10114_v8  ;;  %3959 = vbcast.lane.b32.xlu0 %v9854_v28, 264  ;;  %v4307_v28 = vmul.f32 %v9896_v13, %v9976_v14 }
 0x522   :  { %4892 = vperm.xlu1 %7073, %v4303_v9   ;;  %v10119_v61 = vpop.permute.xlu1 %4010  ;;  %v10121_v35 = vpop.permute.xlu0 %3640 }
 0x523   :  { %13077 = vst [vmem:[#allocation144_spill] sm:$0xff] %v10119_v61  ;;  %13078 = vst [vmem:[#allocation146_spill] sm:$0xff] %v10121_v35  ;;  %3970 = vbcast.lane.b32.xlu0 %v9864_v32, 264  ;;  %v13083_v32 = vld [vmem:[#allocation28_spill] sm:$0xff] }
 0x524   :  { %v4309_v34 = vmul.f32 %v13083_v32, %v9976_v14 }
 0x526   :  { %4898 = vperm.xlu1 %7073, %v4305_v15   ;;  %v10126_v53 = vpop.permute.xlu1 %4021  ;;  %v10128_v45 = vpop.permute.xlu0 %3651 }
 0x527   :  { %13079 = vst [vmem:[#allocation148_spill] sm:$0xff] %v10126_v53  ;;  %13080 = vst [vmem:[#allocation150_spill] sm:$0xff] %v10128_v45  ;;  %3981 = vbcast.lane.b32.xlu0 %v9871_v46, 264  ;;  %v13087_v46 = vld [vmem:[#allocation50_spill] sm:$0xff] }
 0x528   :  { %v4311_v13 = vmul.f32 %v13087_v46, %v9976_v14 }
 0x52a   :  { %4904 = vperm.xlu1 %7073, %v4307_v28   ;;  %v10133_v9 = vpop.permute.xlu1 %4032  ;;  %v10135_v21 = vpop.permute.xlu0 %3662 }
 0x52b   :  { %13081 = vst [vmem:[#allocation152_spill] sm:$0xff] %v10133_v9  ;;  %13082 = vst [vmem:[#allocation154_spill] sm:$0xff] %v10135_v21  ;;  %3992 = vbcast.lane.b32.xlu0 %v9878_v37, 264  ;;  %v13090_v21 = vld [vmem:[#allocation15_spill] sm:$0xff]  ;;  %v4313_v37 = vmul.f32 %v9920_v39, %v9976_v14 }
 0x52e   :  { %4910 = vperm.xlu1 %7073, %v4309_v34   ;;  %v10140_v15 = vpop.permute.xlu1 %4043  ;;  %v10142_v2 = vpop.permute.xlu0 %3673 }
 0x52f   :  { %13084 = vst [vmem:[#allocation156_spill] sm:$0xff] %v10140_v15  ;;  %13085 = vst [vmem:[#allocation158_spill] sm:$0xff] %v10142_v2  ;;  %4003 = vbcast.lane.b32.xlu0 %v13086_v63, 264  ;;  %v13093_v2 = vld [vmem:[#allocation101_spill] sm:$0xff]  ;;  %v4315_v63 = vmul.f32 %v9927_v0, %v9976_v14 }
 0x532   :  { %4916 = vperm.xlu1 %7073, %v4311_v13   ;;  %v10147_v28 = vpop.permute.xlu1 %4054  ;;  %v10149_v45 = vpop.permute.xlu0 %3684 }
 0x533   :  { %13088 = vst [vmem:[#allocation160_spill] sm:$0xff] %v10147_v28  ;;  %13089 = vst [vmem:[#allocation167_spill] sm:$0xff] %v10149_v45  ;;  %4014 = vbcast.lane.b32.xlu0 %v13090_v21, 264  ;;  %v13096_v45 = vld [vmem:[#allocation40_spill] sm:$0xff]  ;;  %v4317_v21 = vmul.f32 %v9934_v40, %v9976_v14 }
 0x536   :  { %4922 = vperm.xlu1 %7073, %v4313_v37   ;;  %v10154_v34 = vpop.permute.xlu1 %4065  ;;  %v10156_v32 = vpop.permute.xlu0 %3695 }
 0x537   :  { %13091 = vst [vmem:[#allocation165_spill] sm:$0xff] %v10154_v34  ;;  %13092 = vst [vmem:[#allocation168_spill] sm:$0xff] %v10156_v32  ;;  %4025 = vbcast.lane.b32.xlu0 %v13093_v2, 264  ;;  %v13099_v32 = vld [vmem:[#allocation52_spill] sm:$0xff]  ;;  %v4319_v2 = vmul.f32 %v9941_v5, %v9976_v14 }
 0x53a   :  { %4928 = vperm.xlu1 %7073, %v4315_v63   ;;  %v10161_v13 = vpop.permute.xlu1 %4076  ;;  %v10163_v46 = vpop.permute.xlu0 %3706 }
 0x53b   :  { %13094 = vst [vmem:[#allocation32_spill] sm:$0xff] %v10161_v13  ;;  %13095 = vst [vmem:[#allocation26_spill] sm:$0xff] %v10163_v46  ;;  %4036 = vbcast.lane.b32.xlu0 %v13096_v45, 264  ;;  %v13102_v46 = vld [vmem:[#allocation66_spill] sm:$0xff]  ;;  %v4321_v45 = vmul.f32 %v9948_v29, %v9976_v14 }
 0x53e   :  { %4934 = vperm.xlu1 %7073, %v4317_v21   ;;  %v10168_v37 = vpop.permute.xlu1 %4087  ;;  %v10170_v39 = vpop.permute.xlu0 %3717 }
 0x53f   :  { %13097 = vst [vmem:[#allocation36_spill] sm:$0xff] %v10168_v37  ;;  %13098 = vst [vmem:[#allocation30_spill] sm:$0xff] %v10170_v39  ;;  %4047 = vbcast.lane.b32.xlu0 %v13099_v32, 264  ;;  %v13105_v39 = vld [vmem:[#allocation46_spill] sm:$0xff]  ;;  %v4323_v32 = vmul.f32 %v9955_v54, %v9976_v14 }
 0x542   :  { %4940 = vperm.xlu1 %7073, %v4319_v2   ;;  %v10175_v63 = vpop.permute.xlu1 %4098  ;;  %v10177_v0 = vpop.permute.xlu0 %3728 }
 0x543   :  { %13100 = vst [vmem:[#allocation98_spill] sm:$0xff] %v10175_v63  ;;  %13101 = vst [vmem:[#allocation44_spill] sm:$0xff] %v10177_v0  ;;  %4058 = vbcast.lane.b32.xlu0 %v13102_v46, 264  ;;  %v13108_v0 = vld [vmem:[#allocation56_spill] sm:$0xff]  ;;  %v4325_v46 = vmul.f32 %v9962_v31, %v9976_v14 }
 0x546   :  { %4946 = vperm.xlu1 %7073, %v4321_v45   ;;  %v10182_v21 = vpop.permute.xlu1 %4109  ;;  %v10184_v40 = vpop.permute.xlu0 %3739 }
 0x547   :  { %13103 = vst [vmem:[#allocation108_spill] sm:$0xff] %v10182_v21  ;;  %13104 = vst [vmem:[#allocation54_spill] sm:$0xff] %v10184_v40  ;;  %4069 = vbcast.lane.b32.xlu0 %v13105_v39, 264  ;;  %v13111_v40 = vld [vmem:[#allocation48_spill] sm:$0xff]  ;;  %v4327_v39 = vmul.f32 %v9969_v4, %v9976_v14  ;;  %v13119_v4 = vld [vmem:[#allocation13_spill] sm:$0xff] }
 0x54a   :  { %4952 = vperm.xlu1 %7073, %v4323_v32   ;;  %v10189_v2 = vpop.permute.xlu1 %4120  ;;  %v10191_v5 = vpop.permute.xlu0 %3750 }
 0x54b   :  { %13106 = vst [vmem:[#allocation64_spill] sm:$0xff] %v10189_v2  ;;  %13107 = vst [vmem:[#allocation68_spill] sm:$0xff] %v10191_v5  ;;  %4080 = vbcast.lane.b32.xlu0 %v13108_v0, 264  ;;  %v4329_v0 = vmul.f32 %v9981_v62, %v9976_v14 }
 0x54e   :  { %4958 = vperm.xlu1 %7073, %v4325_v46   ;;  %v10196_v45 = vpop.permute.xlu1 %4131  ;;  %v10198_v29 = vpop.permute.xlu0 %3761 }
 0x54f   :  { %13109 = vst [vmem:[#allocation74_spill] sm:$0xff] %v10196_v45  ;;  %13110 = vst [vmem:[#allocation78_spill] sm:$0xff] %v10198_v29  ;;  %4091 = vbcast.lane.b32.xlu0 %v13111_v40, 264  ;;  %v13116_v29 = vld [vmem:[#allocation166_spill] sm:$0xff]  ;;  %v4331_v40 = vmul.f32 %v9988_v24, %v9976_v14 }
 0x552   :  { %4964 = vperm.xlu1 %7073, %v4327_v39   ;;  %v10203_v32 = vpop.permute.xlu1 %4778  ;;  %v10205_v54 = vpop.permute.xlu0 %3772 }
 0x553   :  { %13112 = vst [vmem:[#allocation80_spill] sm:$0xff] %v10203_v32  ;;  %13113 = vst [vmem:[#allocation82_spill] sm:$0xff] %v10205_v54  ;;  %4102 = vbcast.lane.b32.xlu0 %v9951_v36, 264  ;;  %v4333_v36 = vmul.f32 %v9993_v26, %v9976_v14 }
 0x556   :  { %4970 = vperm.xlu1 %7073, %v4329_v0   ;;  %v10210_v46 = vpop.permute.xlu1 %4784  ;;  %v10212_v31 = vpop.permute.xlu0 %3783 }
 0x557   :  { %13114 = vst [vmem:[#allocation102_spill] sm:$0xff] %v10210_v46  ;;  %13115 = vst [vmem:[#allocation33_spill] sm:$0xff] %v10212_v31  ;;  %4113 = vbcast.lane.b32.xlu0 %v13116_v29, 264  ;;  %v10229_v29 = vmax.f32 %v9978_v33, 0.0  ;;  %v13124_v33 = vld [vmem:[#allocation151_spill] sm:$0xff] }
 0x55a   :  { %4976 = vperm.xlu1 %7073, %v4331_v40   ;;  %v10217_v39 = vpop.permute.xlu1 %4790  ;;  %v10219_v32 = vpop.permute.xlu0 %3794  ;;  %v4335_v40 = vmul.f32 %v10000_v22, %v9976_v14 }
 0x55b   :  { %13117 = vst [vmem:[#allocation111_spill] sm:$0xff] %v10217_v39  ;;  %13118 = vst [vmem:[#allocation58_spill] sm:$0xff] %v10219_v32  ;;  %4124 = vbcast.lane.b32.xlu0 %v13119_v4, 264  ;;  %v4266_v39 = vmul.f32 %v10002_v55, %v10229_v29 }
 0x55e   :  { %4982 = vperm.xlu1 %7073, %v4333_v36   ;;  %v10224_v0 = vpop.permute.xlu1 %4796  ;;  %v10226_v46 = vpop.permute.xlu0 %3805  ;;  %v4337_v36 = vmul.f32 %v10007_v23, %v9976_v14 }
 0x55f   :  { %13120 = vst [vmem:[#allocation86_spill] sm:$0xff] %v10224_v0  ;;  %13121 = vst [vmem:[#allocation38_spill] sm:$0xff] %v10226_v46  ;;  %4135 = vbcast.lane.b32.xlu0 %v9972_v18, 264  ;;  %v4268_v0 = vmul.f32 %v13124_v33, %v10229_v29 }
 0x562   :  { %4988 = vperm.xlu1 %7073, %v4335_v40   ;;  %v10236_v4 = vpop.permute.xlu1 %4802  ;;  %v10238_v26 = vpop.permute.xlu0 %3816  ;;  %v4339_v40 = vmul.f32 %v10014_v43, %v9976_v14 }
 0x563   :  { %13122 = vst [vmem:[#allocation27_spill] sm:$0xff] %v10236_v4  ;;  %13123 = vst [vmem:[#allocation104_spill] sm:$0xff] %v10238_v26  ;;  %4781 = vperm.xlu0 %7072, %v4266_v39   ;;  %v4270_v4 = vmul.f32 %v10009_v51, %v10229_v29 }
 0x566   :  { %4994 = vperm.xlu1 %7073, %v4337_v36   ;;  %v10244_v18 = vpop.permute.xlu1 %4808  ;;  %v10246_v24 = vpop.permute.xlu0 %3827  ;;  %v4341_v36 = vmul.f32 %v10021_v60, %v9976_v14 }
 0x567   :  { %13125 = vst [vmem:[#allocation107_spill] sm:$0xff] %v10244_v18  ;;  %13126 = vst [vmem:[#allocation84_spill] sm:$0xff] %v10246_v24  ;;  %4787 = vperm.xlu0 %7072, %v4268_v0   ;;  %v4272_v18 = vmul.f32 %v10016_v41, %v10229_v29 }
 0x56a   :  { %5000 = vperm.xlu1 %7073, %v4339_v40   ;;  %v10252_v39 = vpop.permute.xlu1 %4814  ;;  %v10254_v55 = vpop.permute.xlu0 %3838  ;;  %v4343_v40 = vmul.f32 %v10028_v47, %v9976_v14 }
 0x56b   :  { %13127 = vst [vmem:[#allocation88_spill] sm:$0xff] %v10252_v39  ;;  %13128 = vst [vmem:[#allocation113_spill] sm:$0xff] %v10254_v55  ;;  %4793 = vperm.xlu0 %7072, %v4270_v4   ;;  %v4274_v39 = vmul.f32 %v10023_v52, %v10229_v29 }
 0x56e   :  { %5006 = vperm.xlu1 %7073, %v4341_v36   ;;  %v10260_v0 = vpop.permute.xlu1 %4820  ;;  %v10262_v33 = vpop.permute.xlu0 %3849  ;;  %v4345_v36 = vmul.f32 %v10035_v50, %v9976_v14 }
 0x56f   :  { %13129 = vst [vmem:[#allocation162_spill] sm:$0xff] %v10260_v0  ;;  %13130 = vst [vmem:[#allocation161_spill] sm:$0xff] %v10262_v33  ;;  %4799 = vperm.xlu0 %7072, %v4272_v18   ;;  %v4276_v0 = vmul.f32 %v10030_v59, %v10229_v29 }
 0x572   :  { %5012 = vperm.xlu1 %7073, %v4343_v40   ;;  %v10268_v4 = vpop.permute.xlu1 %4826  ;;  %v10270_v51 = vpop.permute.xlu0 %3860  ;;  %v4347_v40 = vmul.f32 %v10042_v12, %v9976_v14 }
 0x573   :  { %13131 = vst [vmem:[#allocation90_spill] sm:$0xff] %v10268_v4  ;;  %13132 = vst [vmem:[#allocation17_spill] sm:$0xff] %v10270_v51  ;;  %4805 = vperm.xlu0 %7072, %v4274_v39   ;;  %v4278_v4 = vmul.f32 %v10037_v19, %v10229_v29 }
 0x576   :  { %5018 = vperm.xlu1 %7073, %v4345_v36   ;;  %v10276_v18 = vpop.permute.xlu1 %4832  ;;  %v10278_v41 = vpop.permute.xlu0 %3871  ;;  %v4349_v36 = vmul.f32 %v10049_v48, %v9976_v14 }
 0x577   :  { %13133 = vst [vmem:[#allocation18_spill] sm:$0xff] %v10276_v18  ;;  %13134 = vst [vmem:[#allocation19_spill] sm:$0xff] %v10278_v41  ;;  %4811 = vperm.xlu0 %7072, %v4276_v0   ;;  %v4280_v18 = vmul.f32 %v10044_v11, %v10229_v29 }
 0x57a   :  { %5024 = vperm.xlu1 %7073, %v4347_v40   ;;  %v10284_v39 = vpop.permute.xlu1 %4838  ;;  %v10286_v52 = vpop.permute.xlu0 %3882  ;;  %v4351_v40 = vmul.f32 %v10056_v6, %v9976_v14 }
 0x57b   :  { %13135 = vst [vmem:[#allocation92_spill] sm:$0xff] %v10284_v39  ;;  %13136 = vst [vmem:[#allocation94_spill] sm:$0xff] %v10286_v52  ;;  %4817 = vperm.xlu0 %7072, %v4278_v4   ;;  %v4282_v39 = vmul.f32 %v10051_v44, %v10229_v29 }
 0x57e   :  { %5030 = vperm.xlu1 %7073, %v4349_v36   ;;  %v10292_v0 = vpop.permute.xlu1 %4844  ;;  %v10294_v59 = vpop.permute.xlu0 %3893  ;;  %v4353_v36 = vmul.f32 %v10063_v49, %v9976_v14 }
 0x57f   :  { %13137 = vst [vmem:[#allocation96_spill] sm:$0xff] %v10292_v0  ;;  %13138 = vst [vmem:[#allocation99_spill] sm:$0xff] %v10294_v59  ;;  %4823 = vperm.xlu0 %7072, %v4280_v18   ;;  %v4284_v0 = vmul.f32 %v10058_v42, %v10229_v29 }
 0x582   :  { %5036 = vperm.xlu1 %7073, %v4351_v40   ;;  %v10300_v4 = vpop.permute.xlu1 %4850  ;;  %v10302_v19 = vpop.permute.xlu0 %3904  ;;  %v4355_v40 = vmul.f32 %v10070_v7, %v9976_v14 }
 0x583   :  { %13139 = vst [vmem:[#allocation105_spill] sm:$0xff] %v10300_v4  ;;  %13140 = vst [vmem:[#allocation109_spill] sm:$0xff] %v10302_v19  ;;  %4829 = vperm.xlu0 %7072, %v4282_v39   ;;  %v4286_v4 = vmul.f32 %v10065_v57, %v10229_v29 }
 0x586   :  { %5042 = vperm.xlu1 %7073, %v4353_v36   ;;  %v10308_v18 = vpop.permute.xlu1 %4856  ;;  %v10310_v11 = vpop.permute.xlu0 %3915  ;;  %v4357_v36 = vmul.f32 %v10077_v20, %v9976_v14 }
 0x587   :  { %13141 = vst [vmem:[#allocation25_spill] sm:$0xff] %v10308_v18  ;;  %13142 = vst [vmem:[#allocation34_spill] sm:$0xff] %v10310_v11  ;;  %4835 = vperm.xlu0 %7072, %v4284_v0   ;;  %v4288_v18 = vmul.f32 %v10072_v17, %v10229_v29 }
 0x58a   :  { %5048 = vperm.xlu1 %7073, %v4355_v40   ;;  %v10316_v39 = vpop.permute.xlu1 %4862  ;;  %v10318_v44 = vpop.permute.xlu0 %3926  ;;  %v4359_v40 = vmul.f32 %v10084_v16, %v9976_v14 }
 0x58b   :  { %13143 = vst [vmem:[#allocation14_spill] sm:$0xff] %v10316_v39  ;;  %13144 = vst [vmem:[#allocation115_spill] sm:$0xff] %v10318_v44  ;;  %4841 = vperm.xlu0 %7072, %v4286_v4   ;;  %v4290_v39 = vmul.f32 %v10079_v58, %v10229_v29 }
 0x58e   :  { %5054 = vperm.xlu1 %7073, %v4357_v36   ;;  %v10324_v0 = vpop.permute.xlu1 %4868  ;;  %v10326_v42 = vpop.permute.xlu0 %3937  ;;  %v4361_v36 = vmul.f32 %v10091_v56, %v9976_v14 }
 0x58f   :  { %13145 = vst [vmem:[#allocation119_spill] sm:$0xff] %v10324_v0  ;;  %13146 = vst [vmem:[#allocation139_spill] sm:$0xff] %v10326_v42  ;;  %4847 = vperm.xlu0 %7072, %v4288_v18   ;;  %v4292_v0 = vmul.f32 %v10086_v1, %v10229_v29 }
 0x592   :  { %5060 = vperm.xlu1 %7073, %v4359_v40   ;;  %v10332_v4 = vpop.permute.xlu1 %4874  ;;  %v10334_v57 = vpop.permute.xlu0 %3948  ;;  %v4363_v40 = vmul.f32 %v10098_v30, %v9976_v14 }
 0x593   :  { %13147 = vst [vmem:[#allocation47_spill] sm:$0xff] %v10332_v4  ;;  %13148 = vst [vmem:[#allocation43_spill] sm:$0xff] %v10334_v57  ;;  %4853 = vperm.xlu0 %7072, %v4290_v39   ;;  %v4294_v4 = vmul.f32 %v10093_v3, %v10229_v29 }
 0x596   :  { %5066 = vperm.xlu1 %7073, %v4361_v36   ;;  %v10340_v18 = vpop.permute.xlu1 %4880  ;;  %v10342_v17 = vpop.permute.xlu0 %3959  ;;  %v4365_v36 = vmul.f32 %v10105_v27, %v9976_v14 }
 0x597   :  { %13149 = vst [vmem:[#allocation53_spill] sm:$0xff] %v10340_v18  ;;  %13150 = vst [vmem:[#allocation141_spill] sm:$0xff] %v10342_v17  ;;  %4859 = vperm.xlu0 %7072, %v4292_v0   ;;  %v4296_v18 = vmul.f32 %v10100_v25, %v10229_v29 }
 0x59a   :  { %5072 = vperm.xlu1 %7073, %v4363_v40   ;;  %v10348_v39 = vpop.permute.xlu1 %4886  ;;  %v10350_v58 = vpop.permute.xlu0 %3970  ;;  %v4367_v40 = vmul.f32 %v10112_v10, %v9976_v14 }
 0x59b   :  { %13151 = vst [vmem:[#allocation49_spill] sm:$0xff] %v10348_v39  ;;  %4865 = vperm.xlu0 %7072, %v4294_v4   ;;  %v4298_v39 = vmul.f32 %v10107_v38, %v10229_v29 }
 0x59e   :  { %5078 = vperm.xlu1 %7073, %v4365_v36   ;;  %v10356_v0 = vpop.permute.xlu1 %4892  ;;  %v10358_v56 = vpop.permute.xlu0 %3981  ;;  %v4369_v36 = vmul.f32 %v10119_v61, %v9976_v14 }
 0x59f   :  { %13152 = vst [vmem:[#allocation55_spill] sm:$0xff] %v10356_v0  ;;  %4871 = vperm.xlu0 %7072, %v4296_v18   ;;  %v4300_v0 = vmul.f32 %v10114_v8, %v10229_v29 }
 0x5a2   :  { %5084 = vperm.xlu1 %7073, %v4367_v40   ;;  %v10364_v4 = vpop.permute.xlu1 %4898  ;;  %v10366_v30 = vpop.permute.xlu0 %3992  ;;  %v4371_v40 = vmul.f32 %v10126_v53, %v9976_v14 }
 0x5a3   :  { %13153 = vst [vmem:[#allocation63_spill] sm:$0xff] %v10364_v4  ;;  %4877 = vperm.xlu0 %7072, %v4298_v39   ;;  %v4302_v4 = vmul.f32 %v10121_v35, %v10229_v29 }
 0x5a6   :  { %5090 = vperm.xlu1 %7073, %v4369_v36   ;;  %v10372_v18 = vpop.permute.xlu1 %4904  ;;  %v10374_v27 = vpop.permute.xlu0 %4003  ;;  %v4373_v36 = vmul.f32 %v10133_v9, %v9976_v14 }
 0x5a7   :  { %13154 = vst [vmem:[#allocation21_spill] sm:$0xff] %v10372_v18  ;;  %4883 = vperm.xlu0 %7072, %v4300_v0   ;;  %v13156_v18 = vld [vmem:[#allocation150_spill] sm:$0xff] }
 0x5a8   :  { %v4304_v61 = vmul.f32 %v13156_v18, %v10229_v29 }
 0x5aa   :  { %5096 = vperm.xlu1 %7073, %v4371_v40   ;;  %v10380_v39 = vpop.permute.xlu1 %4910  ;;  %v10382_v10 = vpop.permute.xlu0 %4014  ;;  %v4375_v40 = vmul.f32 %v10140_v15, %v9976_v14 }
 0x5ab   :  { %13155 = vst [vmem:[#allocation143_spill] sm:$0xff] %v10380_v39  ;;  %4889 = vperm.xlu0 %7072, %v4302_v4   ;;  %v13158_v39 = vld [vmem:[#allocation154_spill] sm:$0xff] }
 0x5ac   :  { %v4306_v53 = vmul.f32 %v13158_v39, %v10229_v29 }
 0x5ae   :  { %5102 = vperm.xlu1 %7073, %v4373_v36   ;;  %v10388_v0 = vpop.permute.xlu1 %4916  ;;  %v10390_v8 = vpop.permute.xlu0 %4025  ;;  %v4377_v36 = vmul.f32 %v10147_v28, %v9976_v14 }
 0x5af   :  { %13157 = vst [vmem:[#allocation22_spill] sm:$0xff] %v10388_v0  ;;  %4895 = vperm.xlu0 %7072, %v4304_v61   ;;  %v13160_v0 = vld [vmem:[#allocation158_spill] sm:$0xff] }
 0x5b0   :  { %v4308_v9 = vmul.f32 %v13160_v0, %v10229_v29 }
 0x5b2   :  { %5108 = vperm.xlu1 %7073, %v4375_v40   ;;  %v10396_v4 = vpop.permute.xlu1 %4922  ;;  %v10398_v35 = vpop.permute.xlu0 %4036  ;;  %v4379_v40 = vmul.f32 %v10154_v34, %v9976_v14 }
 0x5b3   :  { %13159 = vst [vmem:[#allocation23_spill] sm:$0xff] %v10396_v4  ;;  %4901 = vperm.xlu0 %7072, %v4306_v53   ;;  %v13163_v4 = vld [vmem:[#allocation167_spill] sm:$0xff] }
 0x5b4   :  { %v4310_v15 = vmul.f32 %v13163_v4, %v10229_v29 }
 0x5b6   :  { %5114 = vperm.xlu1 %7073, %v4377_v36   ;;  %v10404_v61 = vpop.permute.xlu1 %4928  ;;  %v10406_v18 = vpop.permute.xlu0 %4047  ;;  %v4381_v36 = vmul.f32 %v10161_v13, %v9976_v14 }
 0x5b7   :  { %13161 = vst [vmem:[#allocation16_spill] sm:$0xff] %v10404_v61  ;;  %13162 = vst [vmem:[#allocation20_spill] sm:$0xff] %v10406_v18  ;;  %4907 = vperm.xlu0 %7072, %v4308_v9   ;;  %v13165_v61 = vld [vmem:[#allocation168_spill] sm:$0xff] }
 0x5b8   :  { %v4312_v28 = vmul.f32 %v13165_v61, %v10229_v29 }
 0x5ba   :  { %5120 = vperm.xlu1 %7073, %v4379_v40   ;;  %v10412_v53 = vpop.permute.xlu1 %4934  ;;  %v10414_v39 = vpop.permute.xlu0 %4058  ;;  %v4383_v40 = vmul.f32 %v10168_v37, %v9976_v14 }
 0x5bb   :  { %13164 = vst [vmem:[#allocation29_spill] sm:$0xff] %v10412_v53  ;;  %4913 = vperm.xlu0 %7072, %v4310_v15   ;;  %v13167_v53 = vld [vmem:[#allocation26_spill] sm:$0xff] }
 0x5bc   :  { %v4314_v34 = vmul.f32 %v13167_v53, %v10229_v29 }
 0x5be   :  { %5126 = vperm.xlu1 %7073, %v4381_v36   ;;  %v10420_v9 = vpop.permute.xlu1 %4940  ;;  %v10422_v0 = vpop.permute.xlu0 %4069  ;;  %v4385_v36 = vmul.f32 %v10175_v63, %v9976_v14 }
 0x5bf   :  { %13166 = vst [vmem:[#allocation35_spill] sm:$0xff] %v10420_v9  ;;  %4919 = vperm.xlu0 %7072, %v4312_v28   ;;  %v13169_v9 = vld [vmem:[#allocation30_spill] sm:$0xff] }
 0x5c0   :  { %v4316_v13 = vmul.f32 %v13169_v9, %v10229_v29 }
 0x5c2   :  { %5132 = vperm.xlu1 %7073, %v4383_v40   ;;  %v10428_v15 = vpop.permute.xlu1 %4946  ;;  %v10430_v4 = vpop.permute.xlu0 %4080  ;;  %v4387_v40 = vmul.f32 %v10182_v21, %v9976_v14  ;;  %v13175_v21 = vld [vmem:[#allocation97_spill] sm:$0xff] }
 0x5c3   :  { %13168 = vst [vmem:[#allocation31_spill] sm:$0xff] %v10428_v15  ;;  %4925 = vperm.xlu0 %7072, %v4314_v34   ;;  %v13171_v15 = vld [vmem:[#allocation44_spill] sm:$0xff] }
 0x5c4   :  { %v4318_v37 = vmul.f32 %v13171_v15, %v10229_v29  ;;  %v10457_v15 = vmax.f32 %v13175_v21, 0.0 }
 0x5c6   :  { %5138 = vperm.xlu1 %7073, %v4385_v36   ;;  %v10436_v28 = vpop.permute.xlu1 %4952  ;;  %v10438_v61 = vpop.permute.xlu0 %4091  ;;  %v4389_v36 = vmul.f32 %v10189_v2, %v9976_v14 }
 0x5c7   :  { %13170 = vst [vmem:[#allocation117_spill] sm:$0xff] %v10436_v28  ;;  %4931 = vperm.xlu0 %7072, %v4316_v13   ;;  %v13173_v28 = vld [vmem:[#allocation54_spill] sm:$0xff] }
 0x5c8   :  { %v4320_v63 = vmul.f32 %v13173_v28, %v10229_v29 }
 0x5ca   :  { %5144 = vperm.xlu1 %7073, %v4387_v40   ;;  %v10444_v34 = vpop.permute.xlu1 %4958  ;;  %v10446_v53 = vpop.permute.xlu0 %4102  ;;  %v4391_v40 = vmul.f32 %v10196_v45, %v9976_v14  ;;  %v13180_v14 = vld [vmem:[#allocation69_spill] sm:$0xff] }
 0x5cb   :  { %13172 = vst [vmem:[#allocation37_spill] sm:$0xff] %v10444_v34  ;;  %4937 = vperm.xlu0 %7072, %v4318_v37   ;;  %v4322_v37 = vmul.f32 %v10191_v5, %v10229_v29  ;;  %v4395_v45 = vmul.f32 %v13180_v14, %v10457_v15  ;;  %v13185_v14 = vld [vmem:[#allocation153_spill] sm:$0xff] }
 0x5ce   :  { %5150 = vperm.xlu1 %7073, %v4389_v36   ;;  %v10452_v13 = vpop.permute.xlu1 %4964  ;;  %v10454_v9 = vpop.permute.xlu0 %4113  ;;  %v13177_v36 = vld [vmem:[#allocation149_spill] sm:$0xff] }
 0x5cf   :  { %13174 = vst [vmem:[#allocation39_spill] sm:$0xff] %v10452_v13  ;;  %4943 = vperm.xlu0 %7072, %v4320_v63   ;;  %v4393_v2 = vmul.f32 %v13177_v36, %v10457_v15  ;;  %v13178_v63 = vld [vmem:[#allocation78_spill] sm:$0xff]  ;;  %v13183_v36 = vld [vmem:[#allocation71_spill] sm:$0xff] }
 0x5d0   :  { %v4324_v28 = vmul.f32 %v13178_v63, %v10229_v29  ;;  %v4397_v5 = vmul.f32 %v13183_v36, %v10457_v15  ;;  %v13187_v36 = vld [vmem:[#allocation73_spill] sm:$0xff] }
 0x5d2   :  { %5156 = vperm.xlu1 %7073, %v4391_v40   ;;  %v10463_v34 = vpop.permute.xlu1 %4970  ;;  %v10467_v13 = vpop.permute.xlu0 %4124  ;;  %v4326_v40 = vmul.f32 %v10205_v54, %v10229_v29  ;;  %v4399_v54 = vmul.f32 %v13185_v14, %v10457_v15  ;;  %v13189_v14 = vld [vmem:[#allocation155_spill] sm:$0xff] }
 0x5d3   :  { %13176 = vst [vmem:[#allocation121_spill] sm:$0xff] %v10463_v34  ;;  %4949 = vperm.xlu0 %7072, %v4322_v37  }
 0x5d6   :  { %v10471_v21 = vpop.permute.xlu1 %4976  ;;  %5162 = vperm.xlu1 %7073, %v4393_v2   ;;  %v10477_v34 = vpop.permute.xlu0 %4135 }
 0x5d7   :  { %13179 = vst [vmem:[#allocation41_spill] sm:$0xff] %v10471_v21  ;;  %4955 = vperm.xlu0 %7072, %v4324_v28   ;;  %13181 = vst [vmem:[#allocation123_spill] sm:$0xff] %v10477_v34  ;;  %v4328_v21 = vmul.f32 %v10212_v31, %v10229_v29  ;;  %v4401_v31 = vmul.f32 %v13187_v36, %v10457_v15  ;;  %v13191_v36 = vld [vmem:[#allocation75_spill] sm:$0xff] }
 0x5da   :  { %v10479_v37 = vpop.permute.xlu1 %4982  ;;  %5168 = vperm.xlu1 %7073, %v4395_v45  }
 0x5db   :  { %13182 = vst [vmem:[#allocation125_spill] sm:$0xff] %v10479_v37  ;;  %4961 = vperm.xlu0 %7072, %v4326_v40   ;;  %v4330_v37 = vmul.f32 %v10219_v32, %v10229_v29  ;;  %v4403_v32 = vmul.f32 %v13189_v14, %v10457_v15  ;;  %v13193_v14 = vld [vmem:[#allocation157_spill] sm:$0xff] }
 0x5de   :  { %v10485_v2 = vpop.permute.xlu1 %4988  ;;  %5174 = vperm.xlu1 %7073, %v4397_v5   ;;  %v10487_v28 = vpop.permute.xlu0 %4781  ;;  %v4332_v5 = vmul.f32 %v10226_v46, %v10229_v29  ;;  %v4405_v46 = vmul.f32 %v13191_v36, %v10457_v15  ;;  %v13195_v36 = vld [vmem:[#allocation77_spill] sm:$0xff] }
 0x5df   :  { %13184 = vst [vmem:[#allocation45_spill] sm:$0xff] %v10485_v2  ;;  %4967 = vperm.xlu0 %7072, %v4328_v21  }
 0x5e2   :  { %v10493_v45 = vpop.permute.xlu1 %4994  ;;  %5180 = vperm.xlu1 %7073, %v4399_v54   ;;  %v10495_v40 = vpop.permute.xlu0 %4787  ;;  %v4334_v54 = vmul.f32 %v10238_v26, %v10229_v29  ;;  %v4407_v26 = vmul.f32 %v13193_v14, %v10457_v15  ;;  %v13197_v14 = vld [vmem:[#allocation159_spill] sm:$0xff] }
 0x5e3   :  { %13186 = vst [vmem:[#allocation127_spill] sm:$0xff] %v10493_v45  ;;  %4973 = vperm.xlu0 %7072, %v4330_v37  }
 0x5e6   :  { %v10501_v2 = vpop.permute.xlu1 %5000  ;;  %5186 = vperm.xlu1 %7073, %v4401_v31   ;;  %v10503_v21 = vpop.permute.xlu0 %4793  ;;  %v4336_v31 = vmul.f32 %v10246_v24, %v10229_v29  ;;  %v4409_v24 = vmul.f32 %v13195_v36, %v10457_v15  ;;  %v13199_v36 = vld [vmem:[#allocation79_spill] sm:$0xff] }
 0x5e7   :  { %13188 = vst [vmem:[#allocation129_spill] sm:$0xff] %v10501_v2  ;;  %4979 = vperm.xlu0 %7072, %v4332_v5  }
 0x5ea   :  { %v10509_v45 = vpop.permute.xlu1 %5006  ;;  %5192 = vperm.xlu1 %7073, %v4403_v32   ;;  %v10511_v37 = vpop.permute.xlu0 %4799  ;;  %v4338_v32 = vmul.f32 %v10254_v55, %v10229_v29  ;;  %v4411_v55 = vmul.f32 %v13197_v14, %v10457_v15  ;;  %v13202_v14 = vld [vmem:[#allocation81_spill] sm:$0xff] }
 0x5eb   :  { %13190 = vst [vmem:[#allocation131_spill] sm:$0xff] %v10509_v45  ;;  %4985 = vperm.xlu0 %7072, %v4334_v54  }
 0x5ee   :  { %v10517_v2 = vpop.permute.xlu1 %5012  ;;  %5198 = vperm.xlu1 %7073, %v4405_v46   ;;  %v10519_v5 = vpop.permute.xlu0 %4805  ;;  %v4340_v46 = vmul.f32 %v10262_v33, %v10229_v29  ;;  %v4413_v33 = vmul.f32 %v13199_v36, %v10457_v15  ;;  %v13205_v36 = vld [vmem:[#allocation83_spill] sm:$0xff] }
 0x5ef   :  { %13192 = vst [vmem:[#allocation51_spill] sm:$0xff] %v10517_v2  ;;  %4991 = vperm.xlu0 %7072, %v4336_v31  }
 0x5f2   :  { %v10525_v45 = vpop.permute.xlu1 %5018  ;;  %5204 = vperm.xlu1 %7073, %v4407_v26   ;;  %v10527_v54 = vpop.permute.xlu0 %4811  ;;  %v4342_v26 = vmul.f32 %v10270_v51, %v10229_v29  ;;  %v4415_v51 = vmul.f32 %v13202_v14, %v10457_v15  ;;  %v13208_v14 = vld [vmem:[#allocation85_spill] sm:$0xff] }
 0x5f3   :  { %13194 = vst [vmem:[#allocation133_spill] sm:$0xff] %v10525_v45  ;;  %4997 = vperm.xlu0 %7072, %v4338_v32  }
 0x5f6   :  { %v10533_v2 = vpop.permute.xlu1 %5024  ;;  %5210 = vperm.xlu1 %7073, %v4409_v24   ;;  %v10535_v31 = vpop.permute.xlu0 %4817  ;;  %v4344_v24 = vmul.f32 %v10278_v41, %v10229_v29  ;;  %v4417_v41 = vmul.f32 %v13205_v36, %v10457_v15  ;;  %v13211_v36 = vld [vmem:[#allocation87_spill] sm:$0xff] }
 0x5f7   :  { %13196 = vst [vmem:[#allocation135_spill] sm:$0xff] %v10533_v2  ;;  %5003 = vperm.xlu0 %7072, %v4340_v46  }
 0x5fa   :  { %v10541_v45 = vpop.permute.xlu1 %5030  ;;  %5216 = vperm.xlu1 %7073, %v4411_v55   ;;  %v10543_v32 = vpop.permute.xlu0 %4823  ;;  %v4346_v55 = vmul.f32 %v10286_v52, %v10229_v29 }
 0x5fb   :  { %13198 = vst [vmem:[#allocation137_spill] sm:$0xff] %v10541_v45  ;;  %5009 = vperm.xlu0 %7072, %v4342_v26  }
 0x5fe   :  { %v10549_v2 = vpop.permute.xlu1 %5036  ;;  %5222 = vperm.xlu1 %7073, %v4413_v33   ;;  %v10551_v46 = vpop.permute.xlu0 %4829  ;;  %v4348_v33 = vmul.f32 %v10294_v59, %v10229_v29 }
 0x5ff   :  { %13200 = vst [vmem:[#allocation57_spill] sm:$0xff] %v10549_v2  ;;  %13201 = vst [vmem:[#allocation59_spill] sm:$0xff] %v10551_v46  ;;  %5015 = vperm.xlu0 %7072, %v4344_v24   ;;  %v4419_v46 = vmul.f32 %v13208_v14, %v10457_v15  ;;  %v13214_v14 = vld [vmem:[#allocation89_spill] sm:$0xff] }
 0x602   :  { %v10557_v45 = vpop.permute.xlu1 %5042  ;;  %5228 = vperm.xlu1 %7073, %v4415_v51   ;;  %v10559_v26 = vpop.permute.xlu0 %4835  ;;  %v4350_v51 = vmul.f32 %v10302_v19, %v10229_v29 }
 0x603   :  { %13203 = vst [vmem:[#allocation61_spill] sm:$0xff] %v10557_v45  ;;  %13204 = vst [vmem:[#allocation145_spill] sm:$0xff] %v10559_v26  ;;  %5021 = vperm.xlu0 %7072, %v4346_v55   ;;  %v4421_v26 = vmul.f32 %v13211_v36, %v10457_v15  ;;  %v13216_v36 = vld [vmem:[#allocation91_spill] sm:$0xff] }
 0x606   :  { %v10565_v2 = vpop.permute.xlu1 %5048  ;;  %5234 = vperm.xlu1 %7073, %v4417_v41   ;;  %v10567_v24 = vpop.permute.xlu0 %4841  ;;  %v4352_v41 = vmul.f32 %v10310_v11, %v10229_v29 }
 0x607   :  { %13206 = vst [vmem:[#allocation65_spill] sm:$0xff] %v10565_v2  ;;  %13207 = vst [vmem:[#allocation147_spill] sm:$0xff] %v10567_v24  ;;  %5027 = vperm.xlu0 %7072, %v4348_v33   ;;  %v4423_v24 = vmul.f32 %v13214_v14, %v10457_v15  ;;  %v13218_v14 = vld [vmem:[#allocation93_spill] sm:$0xff] }
 0x60a   :  { %v10573_v45 = vpop.permute.xlu1 %5054  ;;  %5240 = vperm.xlu1 %7073, %v4419_v46   ;;  %v10575_v55 = vpop.permute.xlu0 %4847  ;;  %v4354_v46 = vmul.f32 %v10318_v44, %v10229_v29 }
 0x60b   :  { %13209 = vst [vmem:[#allocation67_spill] sm:$0xff] %v10573_v45  ;;  %13210 = vst [vmem:[#allocation163_spill] sm:$0xff] %v10575_v55  ;;  %5033 = vperm.xlu0 %7072, %v4350_v51   ;;  %v4425_v55 = vmul.f32 %v13216_v36, %v10457_v15  ;;  %v13220_v36 = vld [vmem:[#allocation12_spill] sm:$0xff] }
 0x60e   :  { %v10581_v2 = vpop.permute.xlu1 %5060  ;;  %5246 = vperm.xlu1 %7073, %v4421_v26   ;;  %v10583_v33 = vpop.permute.xlu0 %4853  ;;  %v4356_v26 = vmul.f32 %v10326_v42, %v10229_v29  ;;  %v4429_v42 = vmul.f32 %v13220_v36, %v10457_v15  ;;  %v13224_v36 = vld [vmem:[#allocation95_spill] sm:$0xff] }
 0x60f   :  { %13212 = vst [vmem:[#allocation11_spill] sm:$0xff] %v10581_v2  ;;  %13213 = vst [vmem:[#allocation15_spill] sm:$0xff] %v10583_v33  ;;  %5039 = vperm.xlu0 %7072, %v4352_v41   ;;  %v4427_v33 = vmul.f32 %v13218_v14, %v10457_v15  ;;  %v13222_v14 = vld [vmem:[#allocation24_spill] sm:$0xff] }
 0x612   :  { %v10589_v45 = vpop.permute.xlu1 %5066  ;;  %5252 = vperm.xlu1 %7073, %v4423_v24   ;;  %v10591_v51 = vpop.permute.xlu0 %4859  ;;  %v4358_v24 = vmul.f32 %v10334_v57, %v10229_v29  ;;  %v4431_v57 = vmul.f32 %v13222_v14, %v10457_v15  ;;  %v13226_v14 = vld [vmem:[#allocation164_spill] sm:$0xff] }
 0x613   :  { %13215 = vst [vmem:[#allocation101_spill] sm:$0xff] %v10591_v51  ;;  %5045 = vperm.xlu0 %7072, %v4354_v46   ;;  %v4435_v44 = vmul.f32 %v13226_v14, %v10457_v15  ;;  %v13230_v14 = vld [vmem:[#allocation50_spill] sm:$0xff] }
 0x614   :  { %v4439_v19 = vmul.f32 %v13230_v14, %v10457_v15  ;;  %v13236_v14 = vld [vmem:[#allocation76_spill] sm:$0xff] }
 0x615   :  { %v4443_v52 = vmul.f32 %v13236_v14, %v10457_v15  ;;  %v13242_v14 = vld [vmem:[#allocation70_spill] sm:$0xff] }
 0x616   :  { %v10597_v2 = vpop.permute.xlu1 %5072  ;;  %5258 = vperm.xlu1 %7073, %v4425_v55   ;;  %v10599_v41 = vpop.permute.xlu0 %4865  ;;  %v4360_v55 = vmul.f32 %v10342_v17, %v10229_v29  ;;  %v4433_v17 = vmul.f32 %v13224_v36, %v10457_v15  ;;  %v13228_v36 = vld [vmem:[#allocation28_spill] sm:$0xff] }
 0x617   :  { %13217 = vst [vmem:[#allocation40_spill] sm:$0xff] %v10599_v41  ;;  %5051 = vperm.xlu0 %7072, %v4356_v26   ;;  %v4437_v11 = vmul.f32 %v13228_v36, %v10457_v15  ;;  %v13233_v36 = vld [vmem:[#allocation62_spill] sm:$0xff] }
 0x618   :  { %v4441_v59 = vmul.f32 %v13233_v36, %v10457_v15  ;;  %v13239_v36 = vld [vmem:[#allocation42_spill] sm:$0xff] }
 0x61a   :  { %v10605_v51 = vpop.permute.xlu1 %5078  ;;  %5264 = vperm.xlu1 %7073, %v4427_v33   ;;  %v10607_v46 = vpop.permute.xlu0 %4871  ;;  %v4362_v33 = vmul.f32 %v10350_v58, %v10229_v29 }
 0x61b   :  { %13219 = vst [vmem:[#allocation52_spill] sm:$0xff] %v10607_v46  ;;  %5057 = vperm.xlu0 %7072, %v4358_v24  }
 0x61e   :  { %v10613_v41 = vpop.permute.xlu1 %5084  ;;  %5270 = vperm.xlu1 %7073, %v4429_v42   ;;  %v10615_v26 = vpop.permute.xlu0 %4877  ;;  %v4364_v42 = vmul.f32 %v10358_v56, %v10229_v29 }
 0x61f   :  { %13221 = vst [vmem:[#allocation66_spill] sm:$0xff] %v10615_v26  ;;  %5063 = vperm.xlu0 %7072, %v4360_v55  }
 0x622   :  { %v10621_v46 = vpop.permute.xlu1 %5090  ;;  %5276 = vperm.xlu1 %7073, %v4431_v57   ;;  %v10623_v24 = vpop.permute.xlu0 %4883  ;;  %v4366_v57 = vmul.f32 %v10366_v30, %v10229_v29 }
 0x623   :  { %13223 = vst [vmem:[#allocation46_spill] sm:$0xff] %v10623_v24  ;;  %5069 = vperm.xlu0 %7072, %v4362_v33  }
 0x626   :  { %v10629_v26 = vpop.permute.xlu1 %5096  ;;  %5282 = vperm.xlu1 %7073, %v4433_v17   ;;  %v10631_v55 = vpop.permute.xlu0 %4889  ;;  %v4368_v17 = vmul.f32 %v10374_v27, %v10229_v29 }
 0x627   :  { %13225 = vst [vmem:[#allocation56_spill] sm:$0xff] %v10631_v55  ;;  %5075 = vperm.xlu0 %7072, %v4364_v42  }
 0x62a   :  { %v10637_v24 = vpop.permute.xlu1 %5102  ;;  %5288 = vperm.xlu1 %7073, %v4435_v44   ;;  %v10639_v33 = vpop.permute.xlu0 %4895  ;;  %v4370_v44 = vmul.f32 %v10382_v10, %v10229_v29 }
 0x62b   :  { %13227 = vst [vmem:[#allocation48_spill] sm:$0xff] %v10639_v33  ;;  %5081 = vperm.xlu0 %7072, %v4366_v57  }
 0x62e   :  { %v10645_v55 = vpop.permute.xlu1 %5108  ;;  %5294 = vperm.xlu1 %7073, %v4437_v11   ;;  %v10647_v42 = vpop.permute.xlu0 %4901  ;;  %v4372_v11 = vmul.f32 %v10390_v8, %v10229_v29 }
 0x62f   :  { %13229 = vst [vmem:[#allocation166_spill] sm:$0xff] %v10647_v42  ;;  %5087 = vperm.xlu0 %7072, %v4368_v17  }
 0x632   :  { %v10653_v33 = vpop.permute.xlu1 %5114  ;;  %5300 = vperm.xlu1 %7073, %v4439_v19   ;;  %v10655_v57 = vpop.permute.xlu0 %4907  ;;  %v4374_v19 = vmul.f32 %v10398_v35, %v10229_v29 }
 0x633   :  { %13231 = vst [vmem:[#allocation13_spill] sm:$0xff] %v10653_v33  ;;  %13232 = vst [vmem:[#allocation97_spill] sm:$0xff] %v10655_v57  ;;  %5093 = vperm.xlu0 %7072, %v4370_v44   ;;  %v4445_v57 = vmul.f32 %v13239_v36, %v10457_v15  ;;  %v13245_v36 = vld [vmem:[#allocation60_spill] sm:$0xff] }
 0x636   :  { %v10661_v42 = vpop.permute.xlu1 %5120  ;;  %5306 = vperm.xlu1 %7073, %v4441_v59   ;;  %v10663_v17 = vpop.permute.xlu0 %4913  ;;  %v4376_v59 = vmul.f32 %v10406_v18, %v10229_v29 }
 0x637   :  { %13234 = vst [vmem:[#allocation149_spill] sm:$0xff] %v10661_v42  ;;  %13235 = vst [vmem:[#allocation78_spill] sm:$0xff] %v10663_v17  ;;  %5099 = vperm.xlu0 %7072, %v4372_v11   ;;  %v4447_v17 = vmul.f32 %v13242_v14, %v10457_v15  ;;  %v13248_v14 = vld [vmem:[#allocation72_spill] sm:$0xff] }
 0x63a   :  { %v10669_v33 = vpop.permute.xlu1 %5126  ;;  %5312 = vperm.xlu1 %7073, %v4443_v52   ;;  %v10671_v44 = vpop.permute.xlu0 %4919  ;;  %v4378_v52 = vmul.f32 %v10414_v39, %v10229_v29 }
 0x63b   :  { %13237 = vst [vmem:[#allocation69_spill] sm:$0xff] %v10669_v33  ;;  %13238 = vst [vmem:[#allocation71_spill] sm:$0xff] %v10671_v44  ;;  %5105 = vperm.xlu0 %7072, %v4374_v19   ;;  %v4449_v44 = vmul.f32 %v13245_v36, %v10457_v15  ;;  %v13251_v36 = vld [vmem:[#allocation10_spill] sm:$0xff] }
 0x63e   :  { %v10677_v42 = vpop.permute.xlu1 %5132  ;;  %5318 = vperm.xlu1 %7073, %v4445_v57   ;;  %v10679_v11 = vpop.permute.xlu0 %4925  ;;  %v4380_v57 = vmul.f32 %v10422_v0, %v10229_v29 }
 0x63f   :  { %13240 = vst [vmem:[#allocation153_spill] sm:$0xff] %v10677_v42  ;;  %13241 = vst [vmem:[#allocation73_spill] sm:$0xff] %v10679_v11  ;;  %5111 = vperm.xlu0 %7072, %v4376_v59   ;;  %v4451_v11 = vmul.f32 %v13248_v14, %v10457_v15  ;;  %v13254_v14 = vld [vmem:[#allocation169_spill] sm:$0xff] }
 0x642   :  { %v10685_v33 = vpop.permute.xlu1 %5138  ;;  %5324 = vperm.xlu1 %7073, %v4447_v17   ;;  %v10687_v19 = vpop.permute.xlu0 %4931  ;;  %v4382_v17 = vmul.f32 %v10430_v4, %v10229_v29 }
 0x643   :  { %13243 = vst [vmem:[#allocation155_spill] sm:$0xff] %v10685_v33  ;;  %13244 = vst [vmem:[#allocation75_spill] sm:$0xff] %v10687_v19  ;;  %5117 = vperm.xlu0 %7072, %v4378_v52   ;;  %v4453_v19 = vmul.f32 %v13251_v36, %v10457_v15  ;;  %v4457_v36 = vmul.f32 %v9981_v62, %v10457_v15  ;;  %v13260_v62 = vld [vmem:[#allocation103_spill] sm:$0xff] }
 0x646   :  { %v10693_v42 = vpop.permute.xlu1 %5144  ;;  %5330 = vperm.xlu1 %7073, %v4449_v44   ;;  %v10695_v59 = vpop.permute.xlu0 %4937  ;;  %v4384_v44 = vmul.f32 %v10438_v61, %v10229_v29 }
 0x647   :  { %13246 = vst [vmem:[#allocation157_spill] sm:$0xff] %v10693_v42  ;;  %13247 = vst [vmem:[#allocation77_spill] sm:$0xff] %v10695_v59  ;;  %5123 = vperm.xlu0 %7072, %v4380_v57   ;;  %v4455_v59 = vmul.f32 %v13254_v14, %v10457_v15  ;;  %v13257_v14 = vld [vmem:[#allocation100_spill] sm:$0xff] }
 0x64a   :  { %v10701_v33 = vpop.permute.xlu1 %5150  ;;  %5336 = vperm.xlu1 %7073, %v4451_v11   ;;  %v10703_v52 = vpop.permute.xlu0 %4943  ;;  %v4386_v11 = vmul.f32 %v10446_v53, %v10229_v29 }
 0x64b   :  { %13249 = vst [vmem:[#allocation159_spill] sm:$0xff] %v10701_v33  ;;  %13250 = vst [vmem:[#allocation79_spill] sm:$0xff] %v10703_v52  ;;  %5129 = vperm.xlu0 %7072, %v4382_v17   ;;  %v4392_v52 = vmul.f32 %v10477_v34, %v10229_v29 }
 0x64e   :  { %v10709_v42 = vpop.permute.xlu1 %5156  ;;  %5342 = vperm.xlu1 %7073, %v4453_v19   ;;  %v10711_v57 = vpop.permute.xlu0 %4949  ;;  %v4388_v19 = vmul.f32 %v10454_v9, %v10229_v29 }
 0x64f   :  { %13252 = vst [vmem:[#allocation81_spill] sm:$0xff] %v10709_v42  ;;  %13253 = vst [vmem:[#allocation83_spill] sm:$0xff] %v10711_v57  ;;  %5135 = vperm.xlu0 %7072, %v4384_v44   ;;  %v4390_v57 = vmul.f32 %v10467_v13, %v10229_v29  ;;  %v4465_v29 = vmul.f32 %v10007_v23, %v10457_v15  ;;  %v4469_v23 = vmul.f32 %v10021_v60, %v10457_v15 }
 0x650   :  { %v4473_v60 = vmul.f32 %v10035_v50, %v10457_v15  ;;  %v4477_v50 = vmul.f32 %v10049_v48, %v10457_v15  ;;  %v4481_v48 = vmul.f32 %v10063_v49, %v10457_v15  ;;  %v4485_v49 = vmul.f32 %v10077_v20, %v10457_v15 }
 0x652   :  { %5348 = vperm.xlu1 %7073, %v4455_v59   ;;  %v10717_v17 = vpop.permute.xlu1 %5162  ;;  %v10719_v33 = vpop.permute.xlu0 %4955  ;;  %v4459_v59 = vmul.f32 %v13257_v14, %v10457_v15  ;;  %v13261_v14 = vld [vmem:[#allocation106_spill] sm:$0xff] }
 0x653   :  { %13255 = vst [vmem:[#allocation85_spill] sm:$0xff] %v10719_v33  ;;  %5141 = vperm.xlu0 %7072, %v4386_v11   ;;  %v10746_v18 = vmax.f32 %v13261_v14, 0.0 }
 0x655   :  { %v4490_v20 = vmul.f32 %v10350_v58, %v10746_v18  ;;  %v4506_v58 = vmul.f32 %v10414_v39, %v10746_v18  ;;  %v13295_v39 = vld [vmem:[#allocation142_spill] sm:$0xff] }
 0x656   :  { %5354 = vperm.xlu1 %7073, %v4457_v36   ;;  %v10725_v44 = vpop.permute.xlu1 %5168  ;;  %v10727_v42 = vpop.permute.xlu0 %4961  ;;  %v4461_v36 = vmul.f32 %v13260_v62, %v10457_v15 }
 0x657   :  { %13256 = vst [vmem:[#allocation87_spill] sm:$0xff] %v10727_v42  ;;  %5147 = vperm.xlu0 %7072, %v4388_v19  }
 0x65a   :  { %5360 = vperm.xlu1 %7073, %v4459_v59   ;;  %v10733_v11 = vpop.permute.xlu1 %5174  ;;  %v10735_v33 = vpop.permute.xlu0 %4967  ;;  %v4463_v59 = vmul.f32 %v10000_v22, %v10457_v15  ;;  %v4467_v22 = vmul.f32 %v10014_v43, %v10457_v15  ;;  %v4471_v43 = vmul.f32 %v10028_v47, %v10457_v15  ;;  %v4475_v47 = vmul.f32 %v10042_v12, %v10457_v15 }
 0x65b   :  { %13258 = vst [vmem:[#allocation89_spill] sm:$0xff] %v10733_v11  ;;  %13259 = vst [vmem:[#allocation91_spill] sm:$0xff] %v10735_v33  ;;  %5153 = vperm.xlu0 %7072, %v4390_v57   ;;  %v13262_v57 = vld [vmem:[#allocation110_spill] sm:$0xff]  ;;  %v4479_v12 = vmul.f32 %v10056_v6, %v10457_v15  ;;  %v4483_v6 = vmul.f32 %v10070_v7, %v10457_v15  ;;  %v4487_v7 = vmul.f32 %v10084_v16, %v10457_v15 }
 0x65c   :  { %v4394_v33 = vmul.f32 %v13262_v57, %v10746_v18  ;;  %v4492_v16 = vmul.f32 %v10358_v56, %v10746_v18  ;;  %v4426_v56 = vmul.f32 %v10107_v38, %v10746_v18  ;;  %v4510_v38 = vmul.f32 %v10430_v4, %v10746_v18 }
 0x65d   :  { %v4512_v4 = vmul.f32 %v10438_v61, %v10746_v18  ;;  %v4514_v61 = vmul.f32 %v10446_v53, %v10746_v18  ;;  %v4516_v53 = vmul.f32 %v10454_v9, %v10746_v18  ;;  %v4518_v9 = vmul.f32 %v10467_v13, %v10746_v18  ;;  %v13321_v13 = vld [vmem:[#allocation74_spill] sm:$0xff] }
 0x65e   :  { %5366 = vperm.xlu1 %7073, %v4461_v36   ;;  %v10741_v19 = vpop.permute.xlu1 %5180  ;;  %v10743_v42 = vpop.permute.xlu0 %4973  ;;  %v13264_v36 = vld [vmem:[#allocation151_spill] sm:$0xff] }
 0x65f   :  { %5159 = vperm.xlu0 %7072, %v4392_v52   ;;  %v4396_v14 = vmul.f32 %v13264_v36, %v10746_v18 }
 0x662   :  { %5372 = vperm.xlu1 %7073, %v4463_v59   ;;  %v10752_v62 = vpop.permute.xlu1 %5186  ;;  %v10754_v11 = vpop.permute.xlu0 %4979  ;;  %v13266_v59 = vld [vmem:[#allocation112_spill] sm:$0xff] }
 0x663   :  { %13263 = vst [vmem:[#allocation93_spill] sm:$0xff] %v10752_v62  ;;  %5165 = vperm.xlu0 %7072, %v4394_v33   ;;  %v4398_v57 = vmul.f32 %v13266_v59, %v10746_v18 }
 0x666   :  { %5378 = vperm.xlu1 %7073, %v4465_v29   ;;  %v10760_v52 = vpop.permute.xlu1 %5192  ;;  %v10762_v34 = vpop.permute.xlu0 %4985  ;;  %v13268_v29 = vld [vmem:[#allocation114_spill] sm:$0xff] }
 0x667   :  { %13265 = vst [vmem:[#allocation12_spill] sm:$0xff] %v10760_v52  ;;  %5171 = vperm.xlu0 %7072, %v4396_v14   ;;  %v4400_v36 = vmul.f32 %v13268_v29, %v10746_v18 }
 0x66a   :  { %5384 = vperm.xlu1 %7073, %v4467_v22   ;;  %v10768_v33 = vpop.permute.xlu1 %5198  ;;  %v10770_v62 = vpop.permute.xlu0 %4991  ;;  %v13270_v22 = vld [vmem:[#allocation116_spill] sm:$0xff] }
 0x66b   :  { %13267 = vst [vmem:[#allocation24_spill] sm:$0xff] %v10768_v33  ;;  %5177 = vperm.xlu0 %7072, %v4398_v57   ;;  %v4402_v59 = vmul.f32 %v13270_v22, %v10746_v18 }
 0x66e   :  { %5390 = vperm.xlu1 %7073, %v4469_v23   ;;  %v10776_v14 = vpop.permute.xlu1 %5204  ;;  %v10778_v52 = vpop.permute.xlu0 %4997  ;;  %v13272_v23 = vld [vmem:[#allocation118_spill] sm:$0xff] }
 0x66f   :  { %13269 = vst [vmem:[#allocation95_spill] sm:$0xff] %v10776_v14  ;;  %5183 = vperm.xlu0 %7072, %v4400_v36   ;;  %v4404_v29 = vmul.f32 %v13272_v23, %v10746_v18 }
 0x672   :  { %5396 = vperm.xlu1 %7073, %v4471_v43   ;;  %v10784_v57 = vpop.permute.xlu1 %5210  ;;  %v10786_v33 = vpop.permute.xlu0 %5003  ;;  %v13274_v43 = vld [vmem:[#allocation120_spill] sm:$0xff] }
 0x673   :  { %13271 = vst [vmem:[#allocation164_spill] sm:$0xff] %v10784_v57  ;;  %5189 = vperm.xlu0 %7072, %v4402_v59   ;;  %v4406_v22 = vmul.f32 %v13274_v43, %v10746_v18 }
 0x676   :  { %5402 = vperm.xlu1 %7073, %v4473_v60   ;;  %v10792_v36 = vpop.permute.xlu1 %5216  ;;  %v10794_v14 = vpop.permute.xlu0 %5009  ;;  %v13276_v60 = vld [vmem:[#allocation122_spill] sm:$0xff] }
 0x677   :  { %13273 = vst [vmem:[#allocation28_spill] sm:$0xff] %v10792_v36  ;;  %5195 = vperm.xlu0 %7072, %v4404_v29   ;;  %v4408_v23 = vmul.f32 %v13276_v60, %v10746_v18 }
 0x67a   :  { %5408 = vperm.xlu1 %7073, %v4475_v47   ;;  %v10800_v59 = vpop.permute.xlu1 %5222  ;;  %v10802_v57 = vpop.permute.xlu0 %5015  ;;  %v13279_v47 = vld [vmem:[#allocation124_spill] sm:$0xff] }
 0x67b   :  { %13275 = vst [vmem:[#allocation50_spill] sm:$0xff] %v10800_v59  ;;  %5201 = vperm.xlu0 %7072, %v4406_v22   ;;  %v4410_v43 = vmul.f32 %v13279_v47, %v10746_v18 }
 0x67e   :  { %5414 = vperm.xlu1 %7073, %v4477_v50   ;;  %v10808_v29 = vpop.permute.xlu1 %5228  ;;  %v10810_v36 = vpop.permute.xlu0 %5021  ;;  %v13282_v50 = vld [vmem:[#allocation126_spill] sm:$0xff] }
 0x67f   :  { %13277 = vst [vmem:[#allocation62_spill] sm:$0xff] %v10808_v29  ;;  %13278 = vst [vmem:[#allocation76_spill] sm:$0xff] %v10810_v36  ;;  %5207 = vperm.xlu0 %7072, %v4408_v23   ;;  %v4412_v60 = vmul.f32 %v13282_v50, %v10746_v18 }
 0x682   :  { %5420 = vperm.xlu1 %7073, %v4479_v12   ;;  %v10816_v22 = vpop.permute.xlu1 %5234  ;;  %v10818_v59 = vpop.permute.xlu0 %5027  ;;  %v13285_v12 = vld [vmem:[#allocation128_spill] sm:$0xff] }
 0x683   :  { %13280 = vst [vmem:[#allocation42_spill] sm:$0xff] %v10816_v22  ;;  %13281 = vst [vmem:[#allocation70_spill] sm:$0xff] %v10818_v59  ;;  %5213 = vperm.xlu0 %7072, %v4410_v43   ;;  %v4414_v47 = vmul.f32 %v13285_v12, %v10746_v18 }
 0x686   :  { %5426 = vperm.xlu1 %7073, %v4481_v48   ;;  %v10824_v23 = vpop.permute.xlu1 %5240  ;;  %v10826_v29 = vpop.permute.xlu0 %5033  ;;  %v13288_v48 = vld [vmem:[#allocation130_spill] sm:$0xff] }
 0x687   :  { %13283 = vst [vmem:[#allocation60_spill] sm:$0xff] %v10824_v23  ;;  %13284 = vst [vmem:[#allocation72_spill] sm:$0xff] %v10826_v29  ;;  %5219 = vperm.xlu0 %7072, %v4412_v60   ;;  %v4416_v50 = vmul.f32 %v13288_v48, %v10746_v18 }
 0x68a   :  { %5432 = vperm.xlu1 %7073, %v4483_v6   ;;  %v10832_v43 = vpop.permute.xlu1 %5246  ;;  %v10834_v22 = vpop.permute.xlu0 %5039  ;;  %v13291_v6 = vld [vmem:[#allocation132_spill] sm:$0xff] }
 0x68b   :  { %13286 = vst [vmem:[#allocation10_spill] sm:$0xff] %v10832_v43  ;;  %13287 = vst [vmem:[#allocation169_spill] sm:$0xff] %v10834_v22  ;;  %5225 = vperm.xlu0 %7072, %v4414_v47   ;;  %v4418_v12 = vmul.f32 %v13291_v6, %v10746_v18 }
 0x68e   :  { %5438 = vperm.xlu1 %7073, %v4485_v49   ;;  %v10840_v60 = vpop.permute.xlu1 %5252  ;;  %v10842_v23 = vpop.permute.xlu0 %5045  ;;  %v4420_v49 = vmul.f32 %v10086_v1, %v10746_v18  ;;  %v4424_v1 = vmul.f32 %v10100_v25, %v10746_v18  ;;  %v4494_v25 = vmul.f32 %v10366_v30, %v10746_v18  ;;  %v4496_v30 = vmul.f32 %v10374_v27, %v10746_v18 }
 0x68f   :  { %13289 = vst [vmem:[#allocation100_spill] sm:$0xff] %v10840_v60  ;;  %13290 = vst [vmem:[#allocation103_spill] sm:$0xff] %v10842_v23  ;;  %5231 = vperm.xlu0 %7072, %v4416_v50   ;;  %v4498_v27 = vmul.f32 %v10382_v10, %v10746_v18  ;;  %v4500_v10 = vmul.f32 %v10390_v8, %v10746_v18  ;;  %v4502_v8 = vmul.f32 %v10398_v35, %v10746_v18  ;;  %v13317_v35 = vld [vmem:[#allocation156_spill] sm:$0xff] }
 0x692   :  { %5444 = vperm.xlu1 %7073, %v4487_v7   ;;  %v10848_v47 = vpop.permute.xlu1 %5258  ;;  %v10850_v43 = vpop.permute.xlu0 %5051  ;;  %v4422_v7 = vmul.f32 %v10093_v3, %v10746_v18  ;;  %v4508_v3 = vmul.f32 %v10422_v0, %v10746_v18  ;;  %v13296_v0 = vld [vmem:[#allocation146_spill] sm:$0xff] }
 0x693   :  { %13292 = vst [vmem:[#allocation106_spill] sm:$0xff] %v10850_v43  ;;  %5237 = vperm.xlu0 %7072, %v4418_v12  }
 0x696   :  { %v10856_v48 = vpop.permute.xlu1 %5264  ;;  %5453 = vperm.xlu1 %7073, %v4490_v20   ;;  %v10858_v50 = vpop.permute.xlu0 %5057 }
 0x697   :  { %13293 = vst [vmem:[#allocation110_spill] sm:$0xff] %v10858_v50  ;;  %5243 = vperm.xlu0 %7072, %v4420_v49  }
 0x69a   :  { %v10864_v6 = vpop.permute.xlu1 %5270  ;;  %5459 = vperm.xlu1 %7073, %v4492_v16   ;;  %v10866_v12 = vpop.permute.xlu0 %5063 }
 0x69b   :  { %13294 = vst [vmem:[#allocation151_spill] sm:$0xff] %v10866_v12  ;;  %5249 = vperm.xlu0 %7072, %v4422_v7  }
 0x69e   :  { %v10872_v20 = vpop.permute.xlu1 %5276  ;;  %5501 = vperm.xlu1 %7073, %v4506_v58   ;;  %v10874_v49 = vpop.permute.xlu0 %5069  ;;  %v4428_v58 = vmul.f32 %v13295_v39, %v10746_v18 }
 0x69f   :  { %5255 = vperm.xlu0 %7072, %v4424_v1  }
 0x6a2   :  { %v10880_v16 = vpop.permute.xlu1 %5282  ;;  %5507 = vperm.xlu1 %7073, %v4508_v3   ;;  %v10882_v7 = vpop.permute.xlu0 %5075  ;;  %v4430_v3 = vmul.f32 %v13296_v0, %v10746_v18 }
 0x6a3   :  { %5261 = vperm.xlu0 %7072, %v4426_v56  }
 0x6a6   :  { %v10888_v60 = vpop.permute.xlu1 %5288  ;;  %5465 = vperm.xlu1 %7073, %v4494_v25   ;;  %v10890_v1 = vpop.permute.xlu0 %5081  ;;  %v13297_v25 = vld [vmem:[#allocation150_spill] sm:$0xff] }
 0x6a7   :  { %5267 = vperm.xlu0 %7072, %v4428_v58   ;;  %v4432_v39 = vmul.f32 %v13297_v25, %v10746_v18 }
 0x6aa   :  { %v10896_v12 = vpop.permute.xlu1 %5294  ;;  %5513 = vperm.xlu1 %7073, %v4510_v38   ;;  %v10898_v56 = vpop.permute.xlu0 %5087  ;;  %v13299_v38 = vld [vmem:[#allocation154_spill] sm:$0xff] }
 0x6ab   :  { %5273 = vperm.xlu0 %7072, %v4430_v3   ;;  %v4434_v0 = vmul.f32 %v13299_v38, %v10746_v18 }
 0x6ae   :  { %v10904_v50 = vpop.permute.xlu1 %5300  ;;  %5471 = vperm.xlu1 %7073, %v4496_v30   ;;  %v10906_v58 = vpop.permute.xlu0 %5093  ;;  %v13301_v30 = vld [vmem:[#allocation158_spill] sm:$0xff] }
 0x6af   :  { %13298 = vst [vmem:[#allocation112_spill] sm:$0xff] %v10904_v50  ;;  %5279 = vperm.xlu0 %7072, %v4432_v39   ;;  %v4436_v25 = vmul.f32 %v13301_v30, %v10746_v18 }
 0x6b2   :  { %v10912_v43 = vpop.permute.xlu1 %5306  ;;  %5519 = vperm.xlu1 %7073, %v4512_v4   ;;  %v10914_v3 = vpop.permute.xlu0 %5099  ;;  %v13303_v4 = vld [vmem:[#allocation167_spill] sm:$0xff] }
 0x6b3   :  { %13300 = vst [vmem:[#allocation114_spill] sm:$0xff] %v10912_v43  ;;  %5285 = vperm.xlu0 %7072, %v4434_v0   ;;  %v4438_v38 = vmul.f32 %v13303_v4, %v10746_v18 }
 0x6b6   :  { %v10920_v23 = vpop.permute.xlu1 %5312  ;;  %5477 = vperm.xlu1 %7073, %v4498_v27   ;;  %v10922_v39 = vpop.permute.xlu0 %5105  ;;  %v13305_v27 = vld [vmem:[#allocation168_spill] sm:$0xff] }
 0x6b7   :  { %13302 = vst [vmem:[#allocation116_spill] sm:$0xff] %v10920_v23  ;;  %5291 = vperm.xlu0 %7072, %v4436_v25   ;;  %v4440_v30 = vmul.f32 %v13305_v27, %v10746_v18 }
 0x6ba   :  { %v10928_v22 = vpop.permute.xlu1 %5318  ;;  %5525 = vperm.xlu1 %7073, %v4514_v61   ;;  %v10930_v0 = vpop.permute.xlu0 %5111  ;;  %v13308_v61 = vld [vmem:[#allocation26_spill] sm:$0xff] }
 0x6bb   :  { %13304 = vst [vmem:[#allocation118_spill] sm:$0xff] %v10928_v22  ;;  %5297 = vperm.xlu0 %7072, %v4438_v38   ;;  %v4442_v4 = vmul.f32 %v13308_v61, %v10746_v18  ;;  %v13338_v22 = vld [vmem:[#allocation107_spill] sm:$0xff] }
 0x6be   :  { %v10936_v29 = vpop.permute.xlu1 %5324  ;;  %5483 = vperm.xlu1 %7073, %v4500_v10   ;;  %v10938_v25 = vpop.permute.xlu0 %5117  ;;  %v13311_v10 = vld [vmem:[#allocation30_spill] sm:$0xff] }
 0x6bf   :  { %13306 = vst [vmem:[#allocation120_spill] sm:$0xff] %v10936_v29  ;;  %13307 = vst [vmem:[#allocation122_spill] sm:$0xff] %v10938_v25  ;;  %5303 = vperm.xlu0 %7072, %v4440_v30   ;;  %v4444_v27 = vmul.f32 %v13311_v10, %v10746_v18  ;;  %v4503_v10 = vmul.f32 %v13317_v35, %v10457_v15  ;;  %v4452_v35 = vmul.f32 %v13178_v63, %v10746_v18 }
 0x6c2   :  { %v10944_v36 = vpop.permute.xlu1 %5330  ;;  %5531 = vperm.xlu1 %7073, %v4516_v53   ;;  %v10946_v38 = vpop.permute.xlu0 %5123  ;;  %v13314_v53 = vld [vmem:[#allocation44_spill] sm:$0xff] }
 0x6c3   :  { %13309 = vst [vmem:[#allocation124_spill] sm:$0xff] %v10944_v36  ;;  %13310 = vst [vmem:[#allocation126_spill] sm:$0xff] %v10946_v38  ;;  %5309 = vperm.xlu0 %7072, %v4442_v4   ;;  %v4446_v61 = vmul.f32 %v13314_v53, %v10746_v18  ;;  %v4519_v53 = vmul.f32 %v13321_v13, %v10457_v15 }
 0x6c6   :  { %v10952_v25 = vpop.permute.xlu1 %5336  ;;  %5489 = vperm.xlu1 %7073, %v4502_v8   ;;  %v10954_v30 = vpop.permute.xlu0 %5129  ;;  %v13318_v8 = vld [vmem:[#allocation54_spill] sm:$0xff] }
 0x6c7   :  { %13312 = vst [vmem:[#allocation128_spill] sm:$0xff] %v10952_v25  ;;  %13313 = vst [vmem:[#allocation130_spill] sm:$0xff] %v10954_v30  ;;  %5315 = vperm.xlu0 %7072, %v4444_v27   ;;  %v4448_v59 = vmul.f32 %v13318_v8, %v10746_v18 }
 0x6ca   :  { %v10960_v38 = vpop.permute.xlu1 %5342  ;;  %5537 = vperm.xlu1 %7073, %v4518_v9   ;;  %v10962_v4 = vpop.permute.xlu0 %5135  ;;  %v13322_v9 = vld [vmem:[#allocation68_spill] sm:$0xff] }
 0x6cb   :  { %13315 = vst [vmem:[#allocation132_spill] sm:$0xff] %v10960_v38  ;;  %13316 = vst [vmem:[#allocation142_spill] sm:$0xff] %v10962_v4  ;;  %5321 = vperm.xlu0 %7072, %v4446_v61   ;;  %v4450_v38 = vmul.f32 %v13322_v9, %v10746_v18  ;;  %v13328_v9 = vld [vmem:[#allocation82_spill] sm:$0xff] }
 0x6ce   :  { %v10968_v30 = vpop.permute.xlu1 %5348  ;;  %5492 = vperm.xlu1 %7073, %v4503_v10   ;;  %v10970_v27 = vpop.permute.xlu0 %5141 }
 0x6cf   :  { %13319 = vst [vmem:[#allocation146_spill] sm:$0xff] %v10968_v30  ;;  %13320 = vst [vmem:[#allocation150_spill] sm:$0xff] %v10970_v27  ;;  %5327 = vperm.xlu0 %7072, %v4448_v59   ;;  %v13327_v59 = vld [vmem:[#allocation9_spill] sm:$0xff] }
 0x6d0   :  { %v5561_v27 = vrot.slane %v10495_v40, %v13327_v59  ;;  %v5570_v13 = vrot.slane %v10503_v21, %v13327_v59  ;;  %v5552_v63 = vrot.slane %v10487_v28, %v13327_v59  ;;  %v5588_v40 = vrot.slane %v10519_v5, %v13327_v59  ;;  %v13337_v5 = vld [vmem:[#allocation27_spill] sm:$0xff] }
 0x6d2   :  { %v10976_v4 = vpop.permute.xlu1 %5354  ;;  %5540 = vperm.xlu1 %7073, %v4519_v53   ;;  %v10978_v61 = vpop.permute.xlu0 %5147  ;;  %v4454_v53 = vmul.f32 %v13328_v9, %v10746_v18  ;;  %v13334_v9 = vld [vmem:[#allocation80_spill] sm:$0xff] }
 0x6d3   :  { %13323 = vst [vmem:[#allocation154_spill] sm:$0xff] %v10976_v4  ;;  %13324 = vst [vmem:[#allocation158_spill] sm:$0xff] %v10978_v61  ;;  %5333 = vperm.xlu0 %7072, %v4450_v38   ;;  %v13329_v4 = vld [vmem:[#allocation8_spill] sm:$0xff]  ;;  %v13330_v61 = vld [vmem:[#allocation102_spill] sm:$0xff] }
 0x6d4   :  { %v5557_v38 = vrot.slane %v13330_v61, %v13329_v4  ;;  %v5548_v25 = vrot.slane %v13334_v9, %v13329_v4  ;;  %v13335_v61 = vld [vmem:[#allocation86_spill] sm:$0xff]  ;;  %v5606_v9 = vrot.slane %v10535_v31, %v13327_v59 }
 0x6d5   :  { %v5575_v36 = vrot.slane %v13335_v61, %v13329_v4  ;;  %v5593_v61 = vrot.slane %v13338_v22, %v13329_v4  ;;  %v13341_v22 = vld [vmem:[#allocation162_spill] sm:$0xff] }
 0x6d6   :  { %v10982_v8 = vpop.permute.xlu1 %5360  ;;  %v10984_v10 = vpop.permute.xlu0 %5153  ;;  %v5562_v28 = vsel %vm2116_vm0, %v5561_v27, %v5557_v38  ;;  %v5553_v27 = vsel %vm2116_vm0, %v5552_v63, %v5548_v25  ;;  %v5611_v23 = vrot.slane %v13341_v22, %v13329_v4  ;;  %v13342_v63 = vld [vmem:[#allocation58_spill] sm:$0xff]  ;;  %v13344_v22 = vld [vmem:[#allocation104_spill] sm:$0xff] }
 0x6d7   :  { %13325 = vst [vmem:[#allocation167_spill] sm:$0xff] %v10982_v8  ;;  %13326 = vst [vmem:[#allocation168_spill] sm:$0xff] %v10984_v10  ;;  %5339 = vperm.xlu0 %7072, %v4452_v35   ;;  %v5579_v8 = vrot.slane %v10511_v37, %v13327_v59  ;;  %v13331_v10 = vld [vmem:[#allocation111_spill] sm:$0xff]  ;;  %v5597_v37 = vrot.slane %v10527_v54, %v13327_v59  ;;  %v5615_v54 = vrot.slane %v10543_v32, %v13327_v59 }
 0x6d8   :  { %v5566_v30 = vrot.slane %v13331_v10, %v13329_v4  ;;  %v13336_v10 = vld [vmem:[#allocation33_spill] sm:$0xff] }
 0x6d9   :  { %v4456_v29 = vmul.f32 %v13336_v10, %v10746_v18  ;;  %v5580_v38 = vsel %vm2116_vm0, %v5579_v8, %v5575_v36  ;;  %v5598_v36 = vsel %vm2116_vm0, %v5597_v37, %v5593_v61 }
 0x6da   :  { %v11002_v35 = vpop.permute.xlu1 %5366  ;;  %v11004_v21 = vpop.permute.xlu0 %5159 }
 0x6db   :  { %13332 = vst [vmem:[#allocation26_spill] sm:$0xff] %v11002_v35  ;;  %13333 = vst [vmem:[#allocation30_spill] sm:$0xff] %v11004_v21  ;;  %5345 = vperm.xlu0 %7072, %v4454_v53   ;;  %v5584_v35 = vrot.slane %v13337_v5, %v13329_v4  ;;  %v5571_v21 = vsel %vm2116_vm0, %v5570_v13, %v5566_v30  ;;  %v13339_v53 = vld [vmem:[#allocation88_spill] sm:$0xff]  ;;  %v6697_v5 = vsel %vm3369_vm7, %v5562_v28, %v5553_v27  ;;  %v13343_v27 = vld [vmem:[#allocation38_spill] sm:$0xff] }
 0x6dc   :  { %v5602_v10 = vrot.slane %v13339_v53, %v13329_v4  ;;  %v6698_v25 = vsel %vm3371_vm8, %v5571_v21, %v6697_v5  ;;  %v4458_v28 = vmul.f32 %v13342_v63, %v10746_v18  ;;  %v4460_v53 = vmul.f32 %v13343_v27, %v10746_v18  ;;  %v13351_v27 = vld [vmem:[#allocation41_spill] sm:$0xff] }
 0x6dd   :  { %v5589_v30 = vsel %vm2116_vm0, %v5588_v40, %v5584_v35  ;;  %v6699_v32 = vsel %vm3373_vm9, %v5580_v38, %v6698_v25  ;;  %v5616_v35 = vsel %vm2116_vm0, %v5615_v54, %v5611_v23  ;;  %v4462_v21 = vmul.f32 %v13344_v22, %v10746_v18  ;;  %v13347_v38 = vld [vmem:[#allocation113_spill] sm:$0xff] }
 0x6de   :  { %v11030_v13 = vpop.permute.xlu1 %5372  ;;  %v11032_v31 = vpop.permute.xlu0 %5165  ;;  %v5607_v8 = vsel %vm2116_vm0, %v5606_v9, %v5602_v10  ;;  %v6700_v40 = vsel %vm3375_vm10, %v5589_v30, %v6699_v32  ;;  %v13346_v9 = vld [vmem:[#allocation84_spill] sm:$0xff]  ;;  %v11057_v10 = vmul.f32 %v13347_v38, %v10746_v18  ;;  %v13348_v23 = vld [vmem:[#allocation161_spill] sm:$0xff]  ;;  %v5845_v22 = vrot.slane %v13351_v27, %v13329_v4 }
 0x6df   :  { %13340 = vst [vmem:[#allocation44_spill] sm:$0xff] %v11030_v13  ;;  %5351 = vperm.xlu0 %7072, %v4456_v29   ;;  %v6701_v37 = vsel %vm3377_vm11, %v5598_v36, %v6700_v40  ;;  %v4464_v61 = vmul.f32 %v13346_v9, %v10746_v18  ;;  %v11061_v54 = vmul.f32 %v13348_v23, %v10746_v18  ;;  %v13349_v25 = vld [vmem:[#allocation17_spill] sm:$0xff] }
 0x6e0   :  { %v6702_v30 = vsel %vm3379_vm12, %v5607_v8, %v6701_v37  ;;  %v11066_v32 = vmul.f32 %v13349_v25, %v10746_v18  ;;  %v13350_v36 = vld [vmem:[#allocation121_spill] sm:$0xff]  ;;  %v5849_v8 = vrot.slane %v10754_v11, %v13327_v59  ;;  %v13354_v37 = vld [vmem:[#allocation127_spill] sm:$0xff]  ;;  %v5858_v27 = vrot.slane %v10762_v34, %v13327_v59 }
 0x6e1   :  { %v5836_v63 = vrot.slane %v13350_v36, %v13329_v4  ;;  %v6703_v40 = vsel %vm3381_vm13, %v5616_v35, %v6702_v30  ;;  %v13352_v9 = vld [vmem:[#allocation125_spill] sm:$0xff]  ;;  %v5872_v25 = vrot.slane %v13354_v37, %v13329_v4  ;;  %v13356_v35 = vld [vmem:[#allocation131_spill] sm:$0xff]  ;;  %v5840_v11 = vrot.slane %v10743_v42, %v13327_v59 }
 0x6e2   :  { %v11048_v5 = vpop.permute.xlu1 %5378  ;;  %v11050_v29 = vpop.permute.xlu0 %5171  ;;  %v5854_v38 = vrot.slane %v13352_v9, %v13329_v4  ;;  %v13355_v36 = vld [vmem:[#allocation129_spill] sm:$0xff]  ;;  %v5890_v30 = vrot.slane %v13356_v35, %v13329_v4  ;;  %v5867_v37 = vrot.slane %v10770_v62, %v13327_v59  ;;  %v5980_v34 = vrot.slane %v10589_v45, %v13329_v4 }
 0x6e3   :  { %13345 = vst [vmem:[#allocation156_spill] sm:$0xff] %v11048_v5  ;;  %5357 = vperm.xlu0 %7072, %v4458_v28   ;;  %v13353_v28 = vld [vmem:[#allocation45_spill] sm:$0xff]  ;;  %v5881_v5 = vrot.slane %v13355_v36, %v13329_v4  ;;  %v11098_v36 = vsel %vm6825_vm15, %v6703_v40, 0.0  ;;  %v5989_v35 = vrot.slane %v10597_v2, %v13329_v4  ;;  %v6007_v42 = vrot.slane %v10613_v41, %v13329_v4 }
 0x6e4   :  { %v5863_v23 = vrot.slane %v13353_v28, %v13329_v4  ;;  %v13358_v28 = vld [vmem:[#allocation51_spill] sm:$0xff]  ;;  %v6016_v62 = vrot.slane %v10621_v46, %v13329_v4  ;;  %v5885_v45 = vrot.slane %v10786_v33, %v13327_v59  ;;  %v6025_v2 = vrot.slane %v10629_v26, %v13329_v4 }
 0x6e5   :  { %v5899_v43 = vrot.slane %v13358_v28, %v13329_v4  ;;  %v5876_v28 = vrot.slane %v10778_v52, %v13327_v59  ;;  %v6043_v52 = vrot.slane %v10645_v55, %v13329_v4  ;;  %v5859_v40 = vsel %vm2116_vm0, %v5858_v27, %v5854_v38 }
 0x6e6   :  { %v11087_v13 = vpop.permute.xlu1 %5384  ;;  %v11089_v9 = vpop.permute.xlu0 %5177  ;;  %v6124_v46 = vrot.slane %v10717_v17, %v13329_v4  ;;  %v5868_v33 = vsel %vm2116_vm0, %v5867_v37, %v5863_v23  ;;  %v5993_v26 = vrot.slane %v10882_v7, %v13327_v59  ;;  %v5894_v38 = vrot.slane %v10794_v14, %v13327_v59 }
 0x6e7   :  { %13357 = vst [vmem:[#allocation54_spill] sm:$0xff] %v11087_v13  ;;  %5363 = vperm.xlu0 %7072, %v4460_v53   ;;  %v5998_v13 = vrot.slane %v10605_v51, %v13329_v4  ;;  %v5850_v53 = vsel %vm2116_vm0, %v5849_v8, %v5845_v22  ;;  %v6034_v51 = vrot.slane %v10637_v24, %v13329_v4 }
 0x6e8   :  { %v5841_v22 = vsel %vm2116_vm0, %v5840_v11, %v5836_v63  ;;  %v5877_v8 = vsel %vm2116_vm0, %v5876_v28, %v5872_v25  ;;  %v5903_v27 = vrot.slane %v10802_v57, %v13327_v59  ;;  %v5886_v63 = vsel %vm2116_vm0, %v5885_v45, %v5881_v5  ;;  %v13359_v25 = vld [vmem:[#allocation89_spill] sm:$0xff] }
 0x6e9   :  { %v6725_v24 = vsel %vm3369_vm7, %v5850_v53, %v5841_v22  ;;  %v5984_v23 = vrot.slane %v10874_v49, %v13327_v59  ;;  %v6002_v7 = vrot.slane %v10890_v1, %v13327_v59  ;;  %v6142_v11 = vrot.slane %v13359_v25, %v13329_v4  ;;  %v13360_v53 = vld [vmem:[#allocation93_spill] sm:$0xff] }
 0x6ea   :  { %v11122_v41 = vpop.permute.xlu1 %5390  ;;  %v5184_v50 = vpop.permute.xlu0 %5183  ;;  %v6726_v17 = vsel %vm3371_vm8, %v5859_v40, %v6725_v24  ;;  %v6011_v57 = vrot.slane %v10898_v56, %v13327_v59  ;;  %v6151_v49 = vrot.slane %v10741_v19, %v13329_v4  ;;  %v5994_v1 = vsel %vm2116_vm0, %v5993_v26, %v5989_v35 }
 0x6eb   :  { %5369 = vperm.xlu0 %7072, %v4462_v21   ;;  %v6133_v21 = vrot.slane %v10725_v44, %v13329_v4  ;;  %v6727_v14 = vsel %vm3373_vm9, %v5868_v33, %v6726_v17  ;;  %v6020_v44 = vrot.slane %v10906_v58, %v13327_v59  ;;  %v6160_v45 = vrot.slane %v13360_v53, %v13329_v4 }
 0x6ec   :  { %v6728_v28 = vsel %vm3375_vm10, %v5877_v8, %v6727_v14  ;;  %v5895_v40 = vsel %vm2116_vm0, %v5894_v38, %v5890_v30  ;;  %v5904_v56 = vsel %vm2116_vm0, %v5903_v27, %v5899_v43  ;;  %v5985_v33 = vsel %vm2116_vm0, %v5984_v23, %v5980_v34 }
 0x6ed   :  { %v6729_v22 = vsel %vm3377_vm11, %v5886_v63, %v6728_v28  ;;  %v6003_v19 = vsel %vm2116_vm0, %v6002_v7, %v5998_v13  ;;  %v6029_v35 = vrot.slane %v10914_v3, %v13327_v59  ;;  %v6137_v58 = vrot.slane %v11050_v29, %v13327_v59 }
 0x6ee   :  { %v11149_v37 = vpop.permute.xlu1 %5396  ;;  %v5190_v5 = vpop.permute.xlu0 %5189  ;;  %v6012_v26 = vsel %vm2116_vm0, %v6011_v57, %v6007_v42  ;;  %v6038_v30 = vrot.slane %v10922_v39, %v13327_v59  ;;  %v6146_v43 = vrot.slane %v11089_v9, %v13327_v59  ;;  %v6021_v13 = vsel %vm2116_vm0, %v6020_v44, %v6016_v62  ;;  %v13361_v39 = vld [vmem:[#allocation12_spill] sm:$0xff] }
 0x6ef   :  { %5375 = vperm.xlu0 %7072, %v4464_v61   ;;  %v6739_v61 = vsel %vm3369_vm7, %v5994_v1, %v5985_v33  ;;  %v6047_v3 = vrot.slane %v10930_v0, %v13327_v59  ;;  %v6128_v29 = vrot.slane %v11032_v31, %v13327_v59  ;;  %v6155_v8 = vrot.slane %v5184_v50, %v13327_v59 }
 0x6f0   :  { %v6169_v42 = vrot.slane %v13361_v39, %v13329_v4  ;;  %v6740_v9 = vsel %vm3371_vm8, %v6003_v19, %v6739_v61  ;;  %v6164_v38 = vrot.slane %v5190_v5, %v13327_v59  ;;  %v6730_v27 = vsel %vm3379_vm12, %v5895_v40, %v6729_v22  ;;  %v13364_v19 = vld [vmem:[#allocation19_spill] sm:$0xff] }
 0x6f1   :  { %v6741_v62 = vsel %vm3373_vm9, %v6012_v26, %v6740_v9  ;;  %v6030_v0 = vsel %vm2116_vm0, %v6029_v35, %v6025_v2  ;;  %v6138_v17 = vsel %vm2116_vm0, %v6137_v58, %v6133_v21  ;;  %v6147_v63 = vsel %vm2116_vm0, %v6146_v43, %v6142_v11  ;;  %v13367_v39 = vld [vmem:[#allocation99_spill] sm:$0xff] }
 0x6f2   :  { %v11174_v24 = vpop.permute.xlu1 %5402  ;;  %v5196_v34 = vpop.permute.xlu0 %5195  ;;  %v6742_v50 = vsel %vm3375_vm10, %v6021_v13, %v6741_v62  ;;  %v6731_v7 = vsel %vm3381_vm13, %v5904_v56, %v6730_v27  ;;  %v6129_v25 = vsel %vm2116_vm0, %v6128_v29, %v6124_v46  ;;  %v6156_v14 = vsel %vm2116_vm0, %v6155_v8, %v6151_v49 }
 0x6f3   :  { %5381 = vperm.xlu0 %7072, %v11057_v10   ;;  %v6173_v31 = vrot.slane %v5196_v34, %v13327_v59  ;;  %v6039_v10 = vsel %vm2116_vm0, %v6038_v30, %v6034_v51  ;;  %v6048_v51 = vsel %vm2116_vm0, %v6047_v3, %v6043_v52  ;;  %v6753_v57 = vsel %vm3369_vm7, %v6138_v17, %v6129_v25  ;;  %v13370_v17 = vld [vmem:[#allocation34_spill] sm:$0xff]  ;;  %v13374_v25 = vld [vmem:[#allocation139_spill] sm:$0xff] }
 0x6f4   :  { %v6165_v46 = vsel %vm2116_vm0, %v6164_v38, %v6160_v45  ;;  %v6743_v5 = vsel %vm3377_vm11, %v6030_v0, %v6742_v50  ;;  %v6754_v49 = vsel %vm3371_vm8, %v6147_v63, %v6753_v57  ;;  %v13363_v45 = vld [vmem:[#allocation95_spill] sm:$0xff]  ;;  %v4472_v35 = vmul.f32 %v13364_v19, %v10746_v18  ;;  %v13368_v38 = vld [vmem:[#allocation109_spill] sm:$0xff]  ;;  %v13386_v19 = vld [vmem:[#allocation138_spill] sm:$0xff] }
 0x6f5   :  { %v6174_v28 = vsel %vm2116_vm0, %v6173_v31, %v6169_v42  ;;  %v6744_v1 = vsel %vm3379_vm12, %v6039_v10, %v6743_v5  ;;  %v6755_v55 = vsel %vm3373_vm9, %v6156_v14, %v6754_v49  ;;  %v6187_v40 = vrot.slane %v13363_v45, %v13329_v4  ;;  %v13372_v63 = vld [vmem:[#allocation115_spill] sm:$0xff]  ;;  %v13380_v5 = vld [vmem:[#allocation134_spill] sm:$0xff] }
 0x6f6   :  { %6827 = vadd.xlane.f32.xlu1 %v11098_v36  ;;  %v5202_v23 = vpop.permute.xlu0 %5201  ;;  %v11199_v2 = vpop.permute.xlu1 %5408  ;;  %v13362_v36 = vld [vmem:[#allocation24_spill] sm:$0xff]  ;;  %v6745_v53 = vsel %vm3381_vm13, %v6048_v51, %v6744_v1  ;;  %v6756_v56 = vsel %vm3375_vm10, %v6165_v46, %v6755_v55  ;;  %v4476_v42 = vmul.f32 %v13367_v39, %v10746_v18  ;;  %v4478_v27 = vmul.f32 %v13368_v38, %v10746_v18 }
 0x6f7   :  { %v6182_v21 = vrot.slane %v5202_v23, %v13327_v59  ;;  %5387 = vperm.xlu0 %7072, %v11061_v54   ;;  %v6178_v11 = vrot.slane %v13362_v36, %v13329_v4  ;;  %v6838_v54 = vsel %vm6825_vm15, %v6731_v7, 0.0  ;;  %v6757_v33 = vsel %vm3377_vm11, %v6174_v28, %v6756_v56  ;;  %v13377_v36 = vld [vmem:[#allocation43_spill] sm:$0xff]  ;;  %v13385_v56 = vld [vmem:[#allocation165_spill] sm:$0xff] }
 0x6f8   :  { %v6844_v61 = vsel %vm6825_vm15, %v6745_v53, 0.0  ;;  %v4480_v31 = vmul.f32 %v13370_v17, %v10746_v18  ;;  %v4482_v23 = vmul.f32 %v13372_v63, %v10746_v18  ;;  %v4484_v14 = vmul.f32 %v13374_v25, %v10746_v18  ;;  %v13390_v17 = vld [vmem:[#allocation140_spill] sm:$0xff] }
 0x6f9   :  { %v6183_v52 = vsel %vm2116_vm0, %v6182_v21, %v6178_v11  ;;  %v4486_v11 = vmul.f32 %v13377_v36, %v10746_v18  ;;  %v4489_v49 = vmul.f32 %v13380_v5, %v10457_v15  ;;  %v6277_v39 = vrot.slane %v10856_v48, %v13329_v4 }
 0x6fa   :  { %6839 = vadd.xlane.f32.xlu1 %v6838_v54  ;;  %v5208_v44 = vpop.permute.xlu0 %5207  ;;  %v11227_v58 = vpop.permute.xlu1 %5414  ;;  %v6758_v30 = vsel %vm3379_vm12, %v6183_v52, %v6757_v33  ;;  %v13381_v54 = vld [vmem:[#allocation136_spill] sm:$0xff]  ;;  %v6286_v63 = vrot.slane %v10864_v6, %v13329_v4  ;;  %v6268_v25 = vrot.slane %v10848_v47, %v13329_v4  ;;  %v6295_v48 = vrot.slane %v10872_v20, %v13329_v4 }
 0x6fb   :  { %v6191_v22 = vrot.slane %v5208_v44, %v13327_v59  ;;  %5393 = vperm.xlu0 %7072, %v11066_v32   ;;  %v13365_v32 = vld [vmem:[#allocation94_spill] sm:$0xff]  ;;  %v4491_v1 = vmul.f32 %v13381_v54, %v10457_v15  ;;  %v13383_v44 = vld [vmem:[#allocation160_spill] sm:$0xff]  ;;  %v6313_v6 = vrot.slane %v10888_v60, %v13329_v4  ;;  %v6322_v20 = vrot.slane %v10896_v12, %v13329_v4 }
 0x6fc   :  { %v4474_v13 = vmul.f32 %v13365_v32, %v10746_v18  ;;  %v4505_v53 = vmul.f32 %v13383_v44, %v10457_v15  ;;  %v13393_v12 = vld [vmem:[#allocation112_spill] sm:$0xff] }
 0x6fd   :  { %v6192_v26 = vsel %vm2116_vm0, %v6191_v22, %v6187_v40  ;;  %v4507_v22 = vmul.f32 %v13385_v56, %v10457_v15 }
 0x6fe   :  { %6845 = vadd.xlane.f32.xlu1 %v6844_v61  ;;  %v11232_v43 = vpop.permute.xlu0 %5213  ;;  %v6759_v34 = vsel %vm3381_vm13, %v6192_v26, %v6758_v30  ;;  %v11240_v8 = vpop.permute.xlu1 %5420  ;;  %v13388_v30 = vld [vmem:[#allocation32_spill] sm:$0xff] }
 0x6ff   :  { %5399 = vperm.xlu0 %7072, %v4472_v35   ;;  %v6850_v3 = vsel %vm6825_vm15, %v6759_v34, 0.0  ;;  %13366 = vst [vmem:[#allocation74_spill] sm:$0xff] %v11240_v8  ;;  %v4493_v35 = vmul.f32 %v13386_v19, %v10457_v15  ;;  %v4509_v34 = vmul.f32 %v13388_v30, %v10457_v15  ;;  %v6331_v19 = vrot.slane %v13393_v12, %v13329_v4  ;;  %v13404_v12 = vld [vmem:[#allocation64_spill] sm:$0xff] }
 0x702   :  { %6851 = vadd.xlane.f32.xlu1 %v6850_v3  ;;  %v11238_v29 = vpop.permute.xlu0 %5219  ;;  %v11248_v62 = vpop.permute.xlu1 %5426 }
 0x703   :  { %5405 = vperm.xlu0 %7072, %v4474_v13   ;;  %13369 = vst [vmem:[#allocation68_spill] sm:$0xff] %v11248_v62 }
 0x706   :  { %v11244_v9 = vpop.permute.xlu0 %5225  ;;  %v11256_v10 = vpop.permute.xlu1 %5432 }
 0x707   :  { %5411 = vperm.xlu0 %7072, %v4476_v42   ;;  %13371 = vst [vmem:[#allocation9_spill] sm:$0xff] %v11256_v10  ;;  %v13452_v10 = vld [vmem:[#allocation101_spill] sm:$0xff] }
 0x70a   :  { %v11250_v0 = vpop.permute.xlu0 %5231  ;;  %v11264_v21 = vpop.permute.xlu1 %5438 }
 0x70b   :  { %5417 = vperm.xlu0 %7072, %v4478_v27   ;;  %13375 = vst [vmem:[#allocation8_spill] sm:$0xff] %v11264_v21 }
 0x70e   :  { %v11254_v50 = vpop.permute.xlu0 %5237  ;;  %v11272_v46 = vpop.permute.xlu1 %5444 }
 0x70f   :  { %5423 = vperm.xlu0 %7072, %v4480_v31   ;;  %13379 = vst [vmem:[#allocation80_spill] sm:$0xff] %v11272_v46  ;;  %v4495_v31 = vmul.f32 %v13390_v17, %v10457_v15  ;;  %v13437_v46 = vld [vmem:[#allocation39_spill] sm:$0xff] }
 0x712   :  { %v11260_v7 = vpop.permute.xlu0 %5243  ;;  %v11278_v55 = vpop.permute.xlu1 %5453 }
 0x713   :  { %13373 = vst [vmem:[#allocation82_spill] sm:$0xff] %v11260_v7  ;;  %5429 = vperm.xlu0 %7072, %v4482_v23   ;;  %13382 = vst [vmem:[#allocation86_spill] sm:$0xff] %v11278_v55  ;;  %v13460_v7 = vld [vmem:[#allocation67_spill] sm:$0xff] }
 0x716   :  { %v11266_v51 = vpop.permute.xlu0 %5249  ;;  %v11282_v40 = vpop.permute.xlu1 %5459 }
 0x717   :  { %13376 = vst [vmem:[#allocation102_spill] sm:$0xff] %v11266_v51  ;;  %5435 = vperm.xlu0 %7072, %v4484_v14   ;;  %13384 = vst [vmem:[#allocation33_spill] sm:$0xff] %v11282_v40  ;;  %v13441_v40 = vld [vmem:[#allocation135_spill] sm:$0xff]  ;;  %v13458_v51 = vld [vmem:[#allocation166_spill] sm:$0xff] }
 0x71a   :  { %v11270_v57 = vpop.permute.xlu0 %5255  ;;  %v11288_v61 = vpop.permute.xlu1 %5501 }
 0x71b   :  { %13378 = vst [vmem:[#allocation111_spill] sm:$0xff] %v11270_v57  ;;  %5441 = vperm.xlu0 %7072, %v4486_v11   ;;  %13387 = vst [vmem:[#allocation27_spill] sm:$0xff] %v11288_v61  ;;  %v6304_v11 = vrot.slane %v10880_v16, %v13329_v4  ;;  %v13440_v61 = vld [vmem:[#allocation133_spill] sm:$0xff] }
 0x71e   :  { %v5262_v28 = vpop.permute.xlu0 %5261  ;;  %v11296_v42 = vpop.permute.xlu1 %5507 }
 0x71f   :  { %5450 = vperm.xlu0 %7072, %v4489_v49   ;;  %13389 = vst [vmem:[#allocation107_spill] sm:$0xff] %v11296_v42  ;;  %v6272_v38 = vrot.slane %v5262_v28, %v13327_v59 }
 0x721   :  { %v6273_v28 = vsel %vm2116_vm0, %v6272_v38, %v6268_v25  ;;  %v13397_v25 = vld [vmem:[#allocation98_spill] sm:$0xff] }
 0x722   :  { %v5268_v52 = vpop.permute.xlu0 %5267 }
 0x723   :  { %5456 = vperm.xlu0 %7072, %v4491_v1   ;;  %v6281_v32 = vrot.slane %v5268_v52, %v13327_v59  ;;  %v13391_v52 = vld [vmem:[#allocation36_spill] sm:$0xff] }
 0x724   :  { %v4511_v44 = vmul.f32 %v13391_v52, %v10457_v15 }
 0x725   :  { %v6282_v14 = vsel %vm2116_vm0, %v6281_v32, %v6277_v39 }
 0x726   :  { %v5274_v45 = vpop.permute.xlu0 %5273  ;;  %v6767_v1 = vsel %vm3369_vm7, %v6282_v14, %v6273_v28 }
 0x727   :  { %5498 = vperm.xlu0 %7072, %v4505_v53   ;;  %v6290_v13 = vrot.slane %v5274_v45, %v13327_v59  ;;  %v11325_v53 = vpop.permute.xlu1 %5465 }
 0x728   :  { %13392 = vst [vmem:[#allocation88_spill] sm:$0xff] %v11325_v53  ;;  %v13443_v53 = vld [vmem:[#allocation137_spill] sm:$0xff] }
 0x729   :  { %v6291_v5 = vsel %vm2116_vm0, %v6290_v13, %v6286_v63 }
 0x72a   :  { %v5280_v33 = vpop.permute.xlu0 %5279  ;;  %v6768_v60 = vsel %vm3371_vm8, %v6291_v5, %v6767_v1 }
 0x72b   :  { %5504 = vperm.xlu0 %7072, %v4507_v22   ;;  %v6299_v27 = vrot.slane %v5280_v33, %v13327_v59 }
 0x72d   :  { %v6300_v47 = vsel %vm2116_vm0, %v6299_v27, %v6295_v48  ;;  %v13395_v27 = vld [vmem:[#allocation114_spill] sm:$0xff]  ;;  %v4513_v48 = vmul.f32 %v13397_v25, %v10457_v15  ;;  %v13411_v25 = vld [vmem:[#allocation105_spill] sm:$0xff] }
 0x72e   :  { %v5286_v26 = vpop.permute.xlu0 %5285  ;;  %v6769_v56 = vsel %vm3373_vm9, %v6300_v47, %v6768_v60  ;;  %v6340_v17 = vrot.slane %v13395_v27, %v13329_v4  ;;  %v13402_v60 = vld [vmem:[#allocation108_spill] sm:$0xff] }
 0x72f   :  { %5462 = vperm.xlu0 %7072, %v4493_v35   ;;  %v6308_v23 = vrot.slane %v5286_v26, %v13327_v59 }
 0x731   :  { %v6309_v16 = vsel %vm2116_vm0, %v6308_v23, %v6304_v11  ;;  %v13398_v11 = vld [vmem:[#allocation116_spill] sm:$0xff] }
 0x732   :  { %v5292_v3 = vpop.permute.xlu0 %5291  ;;  %v6770_v35 = vsel %vm3375_vm10, %v6309_v16, %v6769_v56  ;;  %v6349_v5 = vrot.slane %v13398_v11, %v13329_v4  ;;  %v13401_v16 = vld [vmem:[#allocation118_spill] sm:$0xff] }
 0x733   :  { %5510 = vperm.xlu0 %7072, %v4509_v34   ;;  %v6317_v36 = vrot.slane %v5292_v3, %v13327_v59  ;;  %v13394_v34 = vld [vmem:[#allocation144_spill] sm:$0xff]  ;;  %v6358_v52 = vrot.slane %v13401_v16, %v13329_v4  ;;  %v13413_v11 = vld [vmem:[#allocation14_spill] sm:$0xff] }
 0x734   :  { %v4497_v32 = vmul.f32 %v13394_v34, %v10457_v15 }
 0x735   :  { %v6318_v45 = vsel %vm2116_vm0, %v6317_v36, %v6313_v6  ;;  %v13399_v6 = vld [vmem:[#allocation148_spill] sm:$0xff] }
 0x736   :  { %v5298_v49 = vpop.permute.xlu0 %5297  ;;  %v6771_v30 = vsel %vm3377_vm11, %v6318_v45, %v6770_v35  ;;  %v4499_v28 = vmul.f32 %v13399_v6, %v10457_v15  ;;  %v4515_v45 = vmul.f32 %v13402_v60, %v10457_v15  ;;  %v13405_v35 = vld [vmem:[#allocation90_spill] sm:$0xff]  ;;  %v13418_v60 = vld [vmem:[#allocation49_spill] sm:$0xff]  ;;  %v13423_v6 = vld [vmem:[#allocation143_spill] sm:$0xff] }
 0x737   :  { %v6326_v54 = vrot.slane %v5298_v49, %v13327_v59  ;;  %5468 = vperm.xlu0 %7072, %v4495_v31   ;;  %v11343_v31 = vpop.permute.xlu1 %5513 }
 0x738   :  { %13396 = vst [vmem:[#allocation162_spill] sm:$0xff] %v11343_v31 }
 0x739   :  { %v6327_v22 = vsel %vm2116_vm0, %v6326_v54, %v6322_v20 }
 0x73a   :  { %v5304_v33 = vpop.permute.xlu0 %5303  ;;  %v6772_v3 = vsel %vm3379_vm12, %v6327_v22, %v6771_v30  ;;  %v13403_v22 = vld [vmem:[#allocation152_spill] sm:$0xff] }
 0x73b   :  { %v6335_v26 = vrot.slane %v5304_v33, %v13327_v59  ;;  %5516 = vperm.xlu0 %7072, %v4511_v44   ;;  %v11355_v47 = vpop.permute.xlu1 %5471  ;;  %v4501_v33 = vmul.f32 %v13403_v22, %v10457_v15  ;;  %v13424_v22 = vld [vmem:[#allocation22_spill] sm:$0xff] }
 0x73c   :  { %13400 = vst [vmem:[#allocation58_spill] sm:$0xff] %v11355_v47 }
 0x73d   :  { %v6336_v13 = vsel %vm2116_vm0, %v6335_v26, %v6331_v19  ;;  %v4517_v19 = vmul.f32 %v13404_v12, %v10457_v15  ;;  %v5620_v26 = vrot.slane %v13405_v35, %v13329_v4  ;;  %v13410_v15 = vld [vmem:[#allocation96_spill] sm:$0xff] }
 0x73e   :  { %v5310_v39 = vpop.permute.xlu0 %5309  ;;  %v6773_v38 = vsel %vm3381_vm13, %v6336_v13, %v6772_v3  ;;  %v13407_v3 = vld [vmem:[#allocation92_spill] sm:$0xff] }
 0x73f   :  { %v6344_v63 = vrot.slane %v5310_v39, %v13327_v59  ;;  %5474 = vperm.xlu0 %7072, %v4497_v32   ;;  %v6856_v23 = vsel %vm6825_vm15, %v6773_v38, 0.0  ;;  %v13406_v32 = vld [vmem:[#allocation18_spill] sm:$0xff]  ;;  %v13408_v38 = vld [vmem:[#allocation120_spill] sm:$0xff] }
 0x740   :  { %6857 = vadd.xlane.f32.xlu1 %v6856_v23  ;;  %v5629_v13 = vrot.slane %v13406_v32, %v13329_v4  ;;  %v6367_v27 = vrot.slane %v13408_v38, %v13329_v4  ;;  %v5647_v23 = vrot.slane %v13410_v15, %v13329_v4  ;;  %v13421_v38 = vld [vmem:[#allocation21_spill] sm:$0xff]  ;;  %v13427_v15 = vld [vmem:[#allocation16_spill] sm:$0xff] }
 0x741   :  { %v6345_v14 = vsel %vm2116_vm0, %v6344_v63, %v6340_v17  ;;  %v11378_v17 = vpop.permute.xlu1 %5519  ;;  %v13426_v32 = vld [vmem:[#allocation145_spill] sm:$0xff] }
 0x742   :  { %v5316_v36 = vpop.permute.xlu0 %5315  ;;  %13409 = vst [vmem:[#allocation38_spill] sm:$0xff] %v11378_v17 }
 0x743   :  { %v6353_v49 = vrot.slane %v5316_v36, %v13327_v59  ;;  %5522 = vperm.xlu0 %7072, %v4513_v48  }
 0x745   :  { %v6354_v54 = vsel %vm2116_vm0, %v6353_v49, %v6349_v5  ;;  %v13414_v49 = vld [vmem:[#allocation119_spill] sm:$0xff]  ;;  %v11424_v48 = vpop.permute.xlu1 %5477 }
 0x746   :  { %v6774_v20 = vsel %vm3369_vm7, %v6354_v54, %v6345_v14  ;;  %v5322_v1 = vpop.permute.xlu0 %5321  ;;  %v13412_v14 = vld [vmem:[#allocation25_spill] sm:$0xff]  ;;  %13430 = vst [vmem:[#allocation104_spill] sm:$0xff] %v11424_v48  ;;  %v13431_v5 = vld [vmem:[#allocation35_spill] sm:$0xff] }
 0x747   :  { %v6362_v44 = vrot.slane %v5322_v1, %v13327_v59  ;;  %5480 = vperm.xlu0 %7072, %v4499_v28   ;;  %v13415_v28 = vld [vmem:[#allocation47_spill] sm:$0xff]  ;;  %v13445_v48 = vld [vmem:[#allocation61_spill] sm:$0xff] }
 0x749   :  { %v6363_v56 = vsel %vm2116_vm0, %v6362_v44, %v6358_v52  ;;  %v13417_v52 = vld [vmem:[#allocation141_spill] sm:$0xff] }
 0x74a   :  { %v6775_v30 = vsel %vm3371_vm8, %v6363_v56, %v6774_v20  ;;  %v5328_v34 = vpop.permute.xlu0 %5327  ;;  %v13416_v20 = vld [vmem:[#allocation53_spill] sm:$0xff]  ;;  %v4488_v44 = vmul.f32 %v13417_v52, %v10746_v18  ;;  %v13419_v56 = vld [vmem:[#allocation55_spill] sm:$0xff] }
 0x74b   :  { %v6371_v63 = vrot.slane %v5328_v34, %v13327_v59  ;;  %5528 = vperm.xlu0 %7072, %v4515_v45   ;;  %v13420_v34 = vld [vmem:[#allocation63_spill] sm:$0xff]  ;;  %v5633_v45 = vrot.slane %v13426_v32, %v13327_v59 }
 0x74c   :  { %v13433_v32 = vld [vmem:[#allocation59_spill] sm:$0xff] }
 0x74d   :  { %v6372_v16 = vsel %vm2116_vm0, %v6371_v63, %v6367_v27  ;;  %v13422_v27 = vld [vmem:[#allocation124_spill] sm:$0xff]  ;;  %v5624_v17 = vrot.slane %v13433_v32, %v13327_v59  ;;  %v13438_v32 = vld [vmem:[#allocation123_spill] sm:$0xff] }
 0x74e   :  { %v6776_v12 = vsel %vm3373_vm9, %v6372_v16, %v6775_v30  ;;  %v5334_v35 = vpop.permute.xlu0 %5333  ;;  %v6376_v63 = vrot.slane %v13422_v27, %v13329_v4  ;;  %v13425_v30 = vld [vmem:[#allocation23_spill] sm:$0xff]  ;;  %v13428_v27 = vld [vmem:[#allocation20_spill] sm:$0xff]  ;;  %v4520_v42 = vmul.f32 %v13438_v32, %v10746_v18 }
 0x74f   :  { %v6380_v52 = vrot.slane %v5334_v35, %v13327_v59  ;;  %5486 = vperm.xlu0 %7072, %v4501_v33   ;;  %v4504_v1 = vmul.f32 %v13428_v27, %v10746_v18  ;;  %v13429_v33 = vld [vmem:[#allocation29_spill] sm:$0xff]  ;;  %v13432_v16 = vld [vmem:[#allocation31_spill] sm:$0xff] }
 0x750   :  { %v13434_v27 = vld [vmem:[#allocation117_spill] sm:$0xff] }
 0x751   :  { %v6381_v54 = vsel %vm2116_vm0, %v6380_v52, %v6376_v63  ;;  %v13435_v35 = vld [vmem:[#allocation37_spill] sm:$0xff]  ;;  %v13436_v63 = vld [vmem:[#allocation128_spill] sm:$0xff] }
 0x752   :  { %v6777_v36 = vsel %vm3375_vm10, %v6381_v54, %v6776_v12  ;;  %v5340_v47 = vpop.permute.xlu0 %5339  ;;  %v6385_v52 = vrot.slane %v13436_v63, %v13329_v4  ;;  %v5634_v54 = vsel %vm2116_vm0, %v5633_v45, %v5629_v13  ;;  %v13439_v12 = vld [vmem:[#allocation147_spill] sm:$0xff]  ;;  %v13444_v18 = vld [vmem:[#allocation57_spill] sm:$0xff]  ;;  %v5625_v45 = vsel %vm2116_vm0, %v5624_v17, %v5620_v26 }
 0x753   :  { %v6389_v39 = vrot.slane %v5340_v47, %v13327_v59  ;;  %5534 = vperm.xlu0 %7072, %v4517_v19   ;;  %v5642_v31 = vrot.slane %v13439_v12, %v13327_v59  ;;  %v13442_v47 = vld [vmem:[#allocation163_spill] sm:$0xff]  ;;  %v6704_v63 = vsel %vm3369_vm7, %v5634_v54, %v5625_v45  ;;  %v13448_v13 = vld [vmem:[#allocation65_spill] sm:$0xff]  ;;  %v13449_v26 = vrot.slane %v13407_v3, %v13329_v4  ;;  %v13451_v54 = vld [vmem:[#allocation46_spill] sm:$0xff] }
 0x754   :  { %v5651_v19 = vrot.slane %v13442_v47, %v13327_v59  ;;  %v13446_v47 = vld [vmem:[#allocation132_spill] sm:$0xff]  ;;  %v13450_v17 = vld [vmem:[#allocation15_spill] sm:$0xff]  ;;  %v5705_v45 = vrot.slane %v13451_v54, %v13327_v59 }
 0x755   :  { %v6390_v55 = vsel %vm2116_vm0, %v6389_v39, %v6385_v52  ;;  %v6394_v62 = vrot.slane %v13446_v47, %v13329_v4  ;;  %v11466_v39 = vpop.permute.xlu1 %5525  ;;  %v13454_v3 = vld [vmem:[#allocation40_spill] sm:$0xff] }
 0x756   :  { %v5346_v32 = vpop.permute.xlu0 %5345  ;;  %v6778_v12 = vsel %vm3377_vm11, %v6390_v55, %v6777_v36  ;;  %13447 = vst [vmem:[#allocation84_spill] sm:$0xff] %v11466_v39  ;;  %v5643_v55 = vsel %vm2116_vm0, %v5642_v31, %v13449_v26  ;;  %v5660_v36 = vrot.slane %v13450_v17, %v13327_v59  ;;  %v5652_v47 = vsel %vm2116_vm0, %v5651_v19, %v5647_v23  ;;  %v13455_v31 = vld [vmem:[#allocation66_spill] sm:$0xff]  ;;  %v13456_v17 = vld [vmem:[#allocation48_spill] sm:$0xff] }
 0x757   :  { %v6398_v52 = vrot.slane %v5346_v32, %v13327_v59  ;;  %5447 = vperm.xlu0 %7072, %v4488_v44   ;;  %v5669_v32 = vrot.slane %v13452_v10, %v13327_v59  ;;  %v13453_v44 = vld [vmem:[#allocation56_spill] sm:$0xff]  ;;  %v5678_v8 = vrot.slane %v13454_v3, %v13327_v59  ;;  %v5696_v26 = vrot.slane %v13455_v31, %v13327_v59 }
 0x758   :  { %v5714_v39 = vrot.slane %v13453_v44, %v13327_v59  ;;  %v5723_v57 = vrot.slane %v13456_v17, %v13327_v59  ;;  %v13457_v19 = vld [vmem:[#allocation52_spill] sm:$0xff]  ;;  %v5732_v44 = vrot.slane %v13458_v51, %v13327_v59  ;;  %v6705_v31 = vsel %vm3371_vm8, %v5643_v55, %v6704_v63 }
 0x759   :  { %v6399_v21 = vsel %vm2116_vm0, %v6398_v52, %v6394_v62  ;;  %v5687_v10 = vrot.slane %v13457_v19, %v13327_v59  ;;  %v13459_v62 = vld [vmem:[#allocation146_spill] sm:$0xff]  ;;  %v5962_v17 = vrot.slane %v13460_v7, %v13329_v4  ;;  %v13462_v19 = vrot.slane %v13416_v20, %v13329_v4 }
 0x75a   :  { %v5352_v54 = vpop.permute.xlu0 %5351  ;;  %v6779_v23 = vsel %vm3379_vm12, %v6399_v21, %v6778_v12  ;;  %v6403_v52 = vrot.slane %v13459_v62, %v13329_v4  ;;  %v13461_v21 = vrot.slane %v13411_v25, %v13329_v4  ;;  %v6706_v62 = vsel %vm3373_vm9, %v5652_v47, %v6705_v31  ;;  %v11519_v25 = vpop.permute.xlu1 %5483 }
 0x75b   :  { %v6407_v3 = vrot.slane %v5352_v54, %v13327_v59  ;;  %5495 = vperm.xlu0 %7072, %v4504_v1   ;;  %v5706_v51 = vsel %vm2116_vm0, %v5705_v45, %v13462_v19  ;;  %v13463_v1 = vrot.slane %v13412_v14, %v13329_v4  ;;  %v13464_v55 = vrot.slane %v13418_v60, %v13329_v4 }
 0x75c   :  { %v5661_v12 = vsel %vm2116_vm0, %v5660_v36, %v13461_v21  ;;  %v13465_v20 = vrot.slane %v13413_v11, %v13329_v4  ;;  %v13466_v47 = vrot.slane %v13415_v28, %v13329_v4  ;;  %v13471_v21 = vld [vmem:[#allocation97_spill] sm:$0xff] }
 0x75d   :  { %v5670_v63 = vsel %vm2116_vm0, %v5669_v32, %v13463_v1  ;;  %v5715_v54 = vsel %vm2116_vm0, %v5714_v39, %v13464_v55  ;;  %v6408_v36 = vsel %vm2116_vm0, %v6407_v3, %v6403_v52  ;;  %v13467_v32 = vrot.slane %v13419_v56, %v13329_v4  ;;  %v13474_v55 = vld [vmem:[#allocation77_spill] sm:$0xff] }
 0x75e   :  { %v5679_v45 = vsel %vm2116_vm0, %v5678_v8, %v13465_v20  ;;  %v5697_v14 = vsel %vm2116_vm0, %v5696_v26, %v13466_v47  ;;  %v5358_v39 = vpop.permute.xlu0 %5357  ;;  %v11535_v31 = vsel %vm3381_vm13, %v6408_v36, %v6779_v23  ;;  %v6707_v52 = vsel %vm3375_vm10, %v5661_v12, %v6706_v62  ;;  %v13473_v62 = vld [vmem:[#allocation73_spill] sm:$0xff]  ;;  %v13475_v20 = vld [vmem:[#allocation79_spill] sm:$0xff] }
 0x75f   :  { %v5724_v60 = vsel %vm2116_vm0, %v5723_v57, %v13467_v32  ;;  %v6711_v11 = vsel %vm3369_vm7, %v5706_v51, %v5697_v14  ;;  %v13468_v8 = vrot.slane %v13420_v34, %v13329_v4  ;;  %5543 = vperm.xlu0 %7072, %v4520_v42   ;;  %v13469_v26 = vrot.slane %v13414_v49, %v13329_v4  ;;  %v13470_v57 = vld [vmem:[#allocation11_spill] sm:$0xff]  ;;  %v13476_v14 = vld [vmem:[#allocation154_spill] sm:$0xff] }
 0x760   :  { %v5971_v3 = vrot.slane %v13470_v57, %v13329_v4  ;;  %v6712_v23 = vsel %vm3371_vm8, %v5715_v54, %v6711_v11  ;;  %v5741_v12 = vrot.slane %v13471_v21, %v13327_v59  ;;  %v6708_v19 = vsel %vm3377_vm11, %v5670_v63, %v6707_v52  ;;  %v13481_v21 = vld [vmem:[#allocation83_spill] sm:$0xff] }
 0x761   :  { %v5733_v28 = vsel %vm2116_vm0, %v5732_v44, %v13468_v8  ;;  %v5688_v56 = vsel %vm2116_vm0, %v5687_v10, %v13469_v26  ;;  %v6713_v34 = vsel %vm3373_vm9, %v5724_v60, %v6712_v23  ;;  %v13472_v44 = vld [vmem:[#allocation75_spill] sm:$0xff]  ;;  %v6416_v51 = vrot.slane %v5358_v39, %v13327_v59  ;;  %v11570_v39 = vpop.permute.xlu1 %5531 }
 0x762   :  { %v5777_v42 = vrot.slane %v13472_v44, %v13327_v59  ;;  %v6709_v49 = vsel %vm3379_vm12, %v5679_v45, %v6708_v19  ;;  %v6714_v10 = vsel %vm3375_vm10, %v5733_v28, %v6713_v34  ;;  %v5768_v1 = vrot.slane %v13473_v62, %v13327_v59  ;;  %v5364_v36 = vpop.permute.xlu0 %5363  ;;  %v13477_v60 = vld [vmem:[#allocation167_spill] sm:$0xff]  ;;  %v13479_v28 = vld [vmem:[#allocation78_spill] sm:$0xff] }
 0x763   :  { %v5786_v54 = vrot.slane %v13474_v55, %v13327_v59  ;;  %v6710_v63 = vsel %vm3381_vm13, %v5688_v56, %v6709_v49  ;;  %v5795_v47 = vrot.slane %v13475_v20, %v13327_v59  ;;  %v6412_v32 = vrot.slane %v13476_v14, %v13329_v4  ;;  %v13480_v56 = vld [vmem:[#allocation71_spill] sm:$0xff]  ;;  %v13483_v49 = vld [vmem:[#allocation85_spill] sm:$0xff] }
 0x764   :  { %v6421_v45 = vrot.slane %v13477_v60, %v13329_v4  ;;  %v6425_v52 = vrot.slane %v5364_v36, %v13327_v59  ;;  %v13478_v11 = vrot.slane %v13421_v38, %v13329_v4  ;;  %v5750_v26 = vrot.slane %v13479_v28, %v13327_v59 }
 0x765   :  { %v5759_v23 = vrot.slane %v13480_v56, %v13327_v59  ;;  %v5804_v19 = vrot.slane %v13481_v21, %v13327_v59  ;;  %v13482_v34 = vrot.slane %v13427_v15, %v13329_v4  ;;  %v5813_v62 = vrot.slane %v13483_v49, %v13327_v59  ;;  %v13486_v15 = vld [vmem:[#allocation87_spill] sm:$0xff] }
 0x766   :  { %v5742_v8 = vsel %vm2116_vm0, %v5741_v12, %v13478_v11  ;;  %v6417_v38 = vsel %vm2116_vm0, %v6416_v51, %v6412_v32  ;;  %v6426_v12 = vsel %vm2116_vm0, %v6425_v52, %v6421_v45  ;;  %v13484_v55 = vrot.slane %v13425_v30, %v13329_v4  ;;  %v5370_v11 = vpop.permute.xlu0 %5369  ;;  %v13488_v30 = vld [vmem:[#allocation91_spill] sm:$0xff] }
 0x767   :  { %v5778_v44 = vsel %vm2116_vm0, %v5777_v42, %v13482_v34  ;;  %v13485_v20 = vrot.slane %v13429_v33, %v13329_v4  ;;  %v5822_v42 = vrot.slane %v13486_v15, %v13327_v59  ;;  %v6781_v60 = vsel %vm3369_vm7, %v6426_v12, %v6417_v38  ;;  %v13497_v15 = vld [vmem:[#allocation13_spill] sm:$0xff] }
 0x768   :  { %v5769_v36 = vsel %vm2116_vm0, %v5768_v1, %v13484_v55  ;;  %v13487_v51 = vrot.slane %v13431_v5, %v13329_v4  ;;  %v5831_v45 = vrot.slane %v13488_v30, %v13327_v59  ;;  %v13489_v1 = vld [vmem:[#allocation26_spill] sm:$0xff]  ;;  %v6434_v33 = vrot.slane %v5370_v11, %v13327_v59  ;;  %v13495_v55 = vld [vmem:[#allocation44_spill] sm:$0xff] }
 0x769   :  { %v5787_v14 = vsel %vm2116_vm0, %v5786_v54, %v13485_v20  ;;  %v6430_v52 = vrot.slane %v13489_v1, %v13329_v4  ;;  %v6718_v54 = vsel %vm3369_vm7, %v5778_v44, %v5769_v36  ;;  %v13490_v28 = vrot.slane %v13432_v16, %v13329_v4  ;;  %v11629_v16 = vpop.permute.xlu1 %5489 }
 0x76a   :  { %v5796_v32 = vsel %vm2116_vm0, %v5795_v47, %v13487_v51  ;;  %v11617_v21 = vsel %vm6825_vm15, %v6710_v63, 0.0  ;;  %v6715_v5 = vsel %vm3377_vm11, %v5742_v8, %v6714_v10  ;;  %v13491_v47 = vrot.slane %v13423_v6, %v13329_v4  ;;  %v13499_v51 = vld [vmem:[#allocation70_spill] sm:$0xff] }
 0x76b   :  { %v5805_v56 = vsel %vm2116_vm0, %v5804_v19, %v13490_v28  ;;  %v6719_v49 = vsel %vm3371_vm8, %v5787_v14, %v6718_v54  ;;  %v13492_v44 = vrot.slane %v13434_v27, %v13329_v4  ;;  %v6435_v19 = vsel %vm2116_vm0, %v6434_v33, %v6430_v52  ;;  %v13501_v33 = vld [vmem:[#allocation153_spill] sm:$0xff] }
 0x76c   :  { %v5751_v34 = vsel %vm2116_vm0, %v5750_v26, %v13491_v47  ;;  %v6720_v63 = vsel %vm3373_vm9, %v5796_v32, %v6719_v49  ;;  %v13493_v10 = vrot.slane %v13435_v35, %v13329_v4  ;;  %v6782_v8 = vsel %vm3371_vm8, %v6435_v19, %v6781_v60  ;;  %v5376_v26 = vpop.permute.xlu0 %5375  ;;  %v13498_v60 = vld [vmem:[#allocation149_spill] sm:$0xff]  ;;  %v13502_v47 = vld [vmem:[#allocation76_spill] sm:$0xff] }
 0x76d   :  { %v5814_v38 = vsel %vm2116_vm0, %v5813_v62, %v13492_v44  ;;  %v13494_v12 = vrot.slane %v13424_v22, %v13329_v4  ;;  %v6721_v62 = vsel %vm3375_vm10, %v5805_v56, %v6720_v63  ;;  %v6439_v36 = vrot.slane %v13495_v55, %v13329_v4  ;;  %v13503_v49 = vld [vmem:[#allocation72_spill] sm:$0xff]  ;;  %v11673_v63 = vpop.permute.xlu1 %5537 }
 0x76e   :  { %v5823_v6 = vsel %vm2116_vm0, %v5822_v42, %v13493_v10  ;;  %v6443_v20 = vrot.slane %v5376_v26, %v13327_v59  ;;  %v13496_v35 = vrot.slane %v13437_v46, %v13329_v4  ;;  %v6052_v42 = vrot.slane %v13497_v15, %v13329_v4 }
 0x76f   :  { %v5760_v27 = vsel %vm2116_vm0, %v5759_v23, %v13494_v12  ;;  %v6061_v22 = vrot.slane %v13498_v60, %v13329_v4  ;;  %v6716_v23 = vsel %vm3379_vm12, %v5751_v34, %v6715_v5  ;;  %v6722_v11 = vsel %vm3377_vm11, %v5814_v38, %v6721_v62  ;;  %v13504_v38 = vld [vmem:[#allocation156_spill] sm:$0xff]  ;;  %v13510_v60 = vld [vmem:[#allocation103_spill] sm:$0xff] }
 0x770   :  { %v5832_v14 = vsel %vm2116_vm0, %v5831_v45, %v13496_v35  ;;  %v5921_v32 = vrot.slane %v13499_v51, %v13327_v59  ;;  %v6444_v30 = vsel %vm2116_vm0, %v6443_v20, %v6439_v36  ;;  %v6717_v1 = vsel %vm3381_vm13, %v5760_v27, %v6716_v23  ;;  %v13500_v45 = vld [vmem:[#allocation69_spill] sm:$0xff]  ;;  %v5382_v56 = vpop.permute.xlu0 %5381  ;;  %v13508_v36 = vld [vmem:[#allocation159_spill] sm:$0xff] }
 0x771   :  { %v6723_v46 = vsel %vm3379_vm12, %v5823_v6, %v6722_v11  ;;  %v6070_v52 = vrot.slane %v13500_v45, %v13329_v4  ;;  %v6079_v54 = vrot.slane %v13501_v33, %v13329_v4  ;;  %v6783_v28 = vsel %vm3373_vm9, %v6444_v30, %v6782_v8  ;;  %v13505_v6 = vld [vmem:[#allocation155_spill] sm:$0xff]  ;;  %v13506_v8 = vld [vmem:[#allocation157_spill] sm:$0xff] }
 0x772   :  { %v6724_v5 = vsel %vm3381_vm13, %v5832_v14, %v6723_v46  ;;  %v5912_v34 = vrot.slane %v13502_v47, %v13327_v59  ;;  %v5930_v44 = vrot.slane %v13503_v49, %v13327_v59  ;;  %v6448_v19 = vrot.slane %v13504_v38, %v13329_v4  ;;  %v13507_v27 = vld [vmem:[#allocation169_spill] sm:$0xff]  ;;  %v13512_v46 = vld [vmem:[#allocation164_spill] sm:$0xff] }
 0x773   :  { %v6452_v10 = vrot.slane %v5382_v56, %v13327_v59  ;;  %v6088_v26 = vrot.slane %v13505_v6, %v13329_v4  ;;  %v6097_v12 = vrot.slane %v13506_v8, %v13329_v4  ;;  %v5939_v62 = vrot.slane %v13507_v27, %v13327_v59  ;;  %v13511_v51 = vld [vmem:[#allocation81_spill] sm:$0xff]  ;;  %v13536_v8 = vld [vmem:[#allocation100_spill] sm:$0xff] }
 0x774   :  { %v11683_v55 = vsel %vm6825_vm15, %v6717_v1, 0.0  ;;  %v6106_v20 = vrot.slane %v13508_v36, %v13329_v4  ;;  %v13509_v35 = vrot.slane %v13441_v40, %v13329_v4  ;;  %v5948_v23 = vrot.slane %v13510_v60, %v13327_v59  ;;  %v5388_v56 = vpop.permute.xlu0 %5387  ;;  %v11730_v1 = vpop.permute.xlu1 %5492  ;;  %v13538_v36 = vld [vmem:[#allocation82_spill] sm:$0xff] }
 0x775   :  { %v6453_v11 = vsel %vm2116_vm0, %v6452_v10, %v6448_v19  ;;  %v6115_v30 = vrot.slane %v13511_v51, %v13329_v4  ;;  %v11700_v47 = vsel %vm6825_vm15, %v6724_v5, 0.0  ;;  %v13513_v40 = vrot.slane %v13440_v61, %v13329_v4  ;;  %v13515_v19 = vld [vmem:[#allocation54_spill] sm:$0xff] }
 0x776   :  { %v5922_v14 = vsel %vm2116_vm0, %v5921_v32, %v13509_v35  ;;  %v6784_v45 = vsel %vm3375_vm10, %v6453_v11, %v6783_v28  ;;  %v13514_v49 = vrot.slane %v13443_v53, %v13329_v4  ;;  %v6457_v10 = vrot.slane %v13515_v19, %v13329_v4  ;;  %v13516_v28 = vld [vmem:[#allocation28_spill] sm:$0xff]  ;;  %v13517_v5 = vld [vmem:[#allocation50_spill] sm:$0xff] }
 0x777   :  { %v5913_v32 = vsel %vm2116_vm0, %v5912_v34, %v13513_v40  ;;  %v6461_v27 = vrot.slane %v5388_v56, %v13327_v59  ;;  %v13518_v34 = vrot.slane %v13444_v18, %v13329_v4  ;;  %v13520_v56 = vld [vmem:[#allocation106_spill] sm:$0xff]  ;;  %v13522_v18 = vld [vmem:[#allocation151_spill] sm:$0xff]  ;;  %v6466_v35 = vrot.slane %v11122_v41, %v13329_v4 }
 0x778   :  { %v5931_v38 = vsel %vm2116_vm0, %v5930_v44, %v13514_v49  ;;  %v6732_v61 = vsel %vm3369_vm7, %v5922_v14, %v5913_v32  ;;  %v13519_v44 = vrot.slane %v13445_v48, %v13329_v4  ;;  %v5957_v40 = vrot.slane %v13520_v56, %v13327_v59  ;;  %v13521_v49 = vld [vmem:[#allocation110_spill] sm:$0xff]  ;;  %v5394_v60 = vpop.permute.xlu0 %5393 }
 0x779   :  { %v5940_v53 = vsel %vm2116_vm0, %v5939_v62, %v13518_v34  ;;  %v5966_v19 = vrot.slane %v13521_v49, %v13327_v59  ;;  %v6462_v14 = vsel %vm2116_vm0, %v6461_v27, %v6457_v10  ;;  %v6733_v32 = vsel %vm3371_vm8, %v5931_v38, %v6732_v61  ;;  %v13523_v34 = vld [vmem:[#allocation126_spill] sm:$0xff] }
 0x77a   :  { %v5949_v11 = vsel %vm2116_vm0, %v5948_v23, %v13519_v44  ;;  %v5975_v62 = vrot.slane %v13522_v18, %v13327_v59  ;;  %v6065_v48 = vrot.slane %v13523_v34, %v13327_v59  ;;  %v6785_v23 = vsel %vm3377_vm11, %v6462_v14, %v6784_v45  ;;  %v13524_v56 = vld [vmem:[#allocation130_spill] sm:$0xff] }
 0x77b   :  { %v6734_v44 = vsel %vm3373_vm9, %v5940_v53, %v6733_v32  ;;  %v6074_v49 = vrot.slane %v13524_v56, %v13327_v59  ;;  %v6470_v10 = vrot.slane %v5394_v60, %v13327_v59  ;;  %v13525_v38 = vld [vmem:[#allocation62_spill] sm:$0xff]  ;;  %v13528_v53 = vrot.slane %v13448_v13, %v13329_v4 }
 0x77c   :  { %v13526_v61 = vld [vmem:[#allocation42_spill] sm:$0xff]  ;;  %v6735_v34 = vsel %vm3375_vm10, %v5949_v11, %v6734_v44  ;;  %v5967_v41 = vsel %vm2116_vm0, %v5966_v19, %v5962_v17  ;;  %v6066_v11 = vsel %vm2116_vm0, %v6065_v48, %v6061_v22  ;;  %v5400_v27 = vpop.permute.xlu0 %5399  ;;  %v5976_v7 = vsel %vm2116_vm0, %v5975_v62, %v5971_v3  ;;  %v11776_v22 = vpop.permute.xlu1 %5540 }
 0x77d   :  { %v13527_v45 = vld [vmem:[#allocation122_spill] sm:$0xff]  ;;  %v5958_v32 = vsel %vm2116_vm0, %v5957_v40, %v13528_v53  ;;  %v6471_v18 = vsel %vm2116_vm0, %v6470_v10, %v6466_v35  ;;  %v6075_v17 = vsel %vm2116_vm0, %v6074_v49, %v6070_v52  ;;  %v6475_v35 = vrot.slane %v11149_v37, %v13329_v4  ;;  %v13532_v10 = vld [vmem:[#allocation60_spill] sm:$0xff] }
 0x77e   :  { %v6056_v14 = vrot.slane %v13527_v45, %v13327_v59  ;;  %v13529_v60 = vld [vmem:[#allocation142_spill] sm:$0xff]  ;;  %v6786_v13 = vsel %vm3379_vm12, %v6471_v18, %v6785_v23  ;;  %v6479_v48 = vrot.slane %v5400_v27, %v13327_v59  ;;  %v6241_v23 = vrot.slane %v13532_v10, %v13329_v4  ;;  %6830 = vadd.xlane.f32.xlu0 %v11617_v21 }
 0x77f   :  { %v6083_v56 = vrot.slane %v13529_v60, %v13327_v59  ;;  %v13530_v44 = vld [vmem:[#allocation150_spill] sm:$0xff]  ;;  %v6736_v52 = vsel %vm3377_vm11, %v5958_v32, %v6735_v34 }
 0x780   :  { %v6092_v45 = vrot.slane %v13530_v44, %v13327_v59  ;;  %v13531_v40 = vld [vmem:[#allocation158_spill] sm:$0xff]  ;;  %v6057_v3 = vsel %vm2116_vm0, %v6056_v14, %v6052_v42  ;;  %v6480_v49 = vsel %vm2116_vm0, %v6479_v48, %v6475_v35  ;;  %v6737_v27 = vsel %vm3379_vm12, %v5967_v41, %v6736_v52  ;;  %v5406_v42 = vpop.permute.xlu0 %5405  ;;  %v6828_v6 = vpop.xlane.xlu1 %6827  ;;  %v13534_v41 = vld [vmem:[#allocation168_spill] sm:$0xff] }
 0x781   :  { %v6101_v19 = vrot.slane %v13531_v40, %v13327_v59  ;;  %v13533_v18 = vld [vmem:[#allocation10_spill] sm:$0xff]  ;;  %v6746_v62 = vsel %vm3369_vm7, %v6066_v11, %v6057_v3  ;;  %v6084_v37 = vsel %vm2116_vm0, %v6083_v56, %v6079_v54  ;;  %v6787_v34 = vsel %vm3381_vm13, %v6480_v49, %v6786_v13 }
 0x782   :  { %v6250_v57 = vrot.slane %v13533_v18, %v13329_v4  ;;  %v6747_v53 = vsel %vm3371_vm8, %v6075_v17, %v6746_v62  ;;  %v6093_v15 = vsel %vm2116_vm0, %v6092_v45, %v6088_v26  ;;  %v6738_v33 = vsel %vm3381_vm13, %v5976_v7, %v6737_v27  ;;  %v13535_v56 = vld [vmem:[#allocation30_spill] sm:$0xff]  ;;  %6833 = vadd.xlane.f32.xlu0 %v11683_v55 }
 0x783   :  { %v6102_v54 = vsel %vm2116_vm0, %v6101_v19, %v6097_v12  ;;  %v6484_v14 = vrot.slane %v11174_v24, %v13329_v4  ;;  %v6488_v32 = vrot.slane %v5406_v42, %v13327_v59  ;;  %v6862_v26 = vsel %vm6825_vm15, %v6787_v34, 0.0  ;;  %v13543_v34 = vld [vmem:[#allocation111_spill] sm:$0xff]  ;;  %v13545_v10 = vld [vmem:[#allocation74_spill] sm:$0xff] }
 0x784   :  { %v6748_v21 = vsel %vm3373_vm9, %v6084_v37, %v6747_v53  ;;  %v6110_v60 = vrot.slane %v13534_v41, %v13327_v59  ;;  %v6119_v11 = vrot.slane %v13535_v56, %v13327_v59  ;;  %v7051_v44 = vmul.f32 -1.442695, %v6828_v6  ;;  %6863 = vadd.xlane.f32.xlu1 %v6862_v26  ;;  %v5412_v17 = vpop.permute.xlu0 %5411 }
 0x785   :  { %v6259_v12 = vrot.slane %v13536_v8, %v13329_v4  ;;  %v6749_v24 = vsel %vm3375_vm10, %v6093_v15, %v6748_v21  ;;  %v6209_v45 = vrot.slane %v11238_v29, %v13327_v59  ;;  %v6489_v13 = vsel %vm2116_vm0, %v6488_v32, %v6484_v14 }
 0x786   :  { %v6218_v7 = vrot.slane %v11244_v9, %v13327_v59  ;;  %7074 = vpow2.f32 %v7051_v44  ;;  %v6841_v40 = vsel %vm6825_vm15, %v6738_v33, 0.0  ;;  %v6750_v19 = vsel %vm3377_vm11, %v6102_v54, %v6749_v24  ;;  %v6840_v9 = vpop.xlane.xlu1 %6839  ;;  %6836 = vadd.xlane.f32.xlu0 %v11700_v47 }
 0x787   :  { %v6493_v35 = vrot.slane %v11199_v2, %v13329_v4  ;;  %v6200_v48 = vrot.slane %v11232_v43, %v13327_v59  ;;  %v6227_v29 = vrot.slane %v11250_v0, %v13327_v59  ;;  %v6497_v3 = vrot.slane %v5412_v17, %v13327_v59 }
 0x788   :  { %v6111_v55 = vsel %vm2116_vm0, %v6110_v60, %v6106_v20  ;;  %v6236_v52 = vrot.slane %v11254_v50, %v13327_v59  ;;  %v7055_v62 = vmul.f32 -1.442695, %v6840_v9  ;;  %v6120_v2 = vsel %vm2116_vm0, %v6119_v11, %v6115_v30  ;;  %v13540_v30 = vld [vmem:[#allocation102_spill] sm:$0xff] }
 0x789   :  { %v6502_v43 = vrot.slane %v11227_v58, %v13329_v4  ;;  %v13537_v0 = vrot.slane %v13516_v28, %v13329_v4  ;;  %v6245_v20 = vrot.slane %v13538_v36, %v13327_v59  ;;  %v6498_v49 = vsel %vm2116_vm0, %v6497_v3, %v6493_v35  ;;  %v5418_v28 = vpop.permute.xlu0 %5417  ;;  %v13546_v3 = vld [vmem:[#allocation68_spill] sm:$0xff] }
 0x78a   :  { %v13539_v50 = vrot.slane %v13517_v5, %v13329_v4  ;;  %v6254_v27 = vrot.slane %v13540_v30, %v13327_v59  ;;  %v6788_v58 = vsel %vm3369_vm7, %v6498_v49, %v6489_v13  ;;  %7076 = vpow2.f32 %v7055_v62  ;;  %v6846_v14 = vpop.xlane.xlu1 %6845  ;;  %6842 = vadd.xlane.f32.xlu0 %v6841_v40 }
 0x78b   :  { %v6210_v37 = vsel %vm2116_vm0, %v6209_v45, %v13537_v0  ;;  %v13541_v53 = vrot.slane %v13512_v46, %v13329_v4  ;;  %v13542_v42 = vrot.slane %v13525_v38, %v13329_v4  ;;  %v6263_v33 = vrot.slane %v13543_v34, %v13327_v59 }
 0x78c   :  { %v6219_v51 = vsel %vm2116_vm0, %v6218_v7, %v13539_v50  ;;  %v6506_v54 = vrot.slane %v5418_v28, %v13327_v59  ;;  %v13544_v47 = vrot.slane %v13526_v61, %v13329_v4  ;;  %v7057_v6 = vmul.f32 -1.442695, %v6846_v14  ;;  %v13548_v28 = vld [vmem:[#allocation8_spill] sm:$0xff] }
 0x78d   :  { %v6201_v15 = vsel %vm2116_vm0, %v6200_v48, %v13541_v53  ;;  %v6228_v5 = vsel %vm2116_vm0, %v6227_v29, %v13542_v42  ;;  %v6751_v26 = vsel %vm3379_vm12, %v6111_v55, %v6750_v19  ;;  %v6246_v21 = vsel %vm2116_vm0, %v6245_v20, %v6241_v23  ;;  %v5424_v44 = vpop.permute.xlu0 %5423 }
 0x78e   :  { %v6760_v32 = vsel %vm3369_vm7, %v6210_v37, %v6201_v15  ;;  %v6237_v46 = vsel %vm2116_vm0, %v6236_v52, %v13544_v47  ;;  %v6507_v41 = vsel %vm2116_vm0, %v6506_v54, %v6502_v43  ;;  %v6752_v60 = vsel %vm3381_vm13, %v6120_v2, %v6751_v26  ;;  %v6852_v45 = vpop.xlane.xlu1 %6851  ;;  %v13547_v37 = vld [vmem:[#allocation9_spill] sm:$0xff] }
 0x78f   :  { %v6761_v38 = vsel %vm3371_vm8, %v6219_v51, %v6760_v32  ;;  %v6255_v61 = vsel %vm2116_vm0, %v6254_v27, %v6250_v57  ;;  %v6789_v11 = vsel %vm3371_vm8, %v6507_v41, %v6788_v58  ;;  %7078 = vpow2.f32 %v7057_v6  ;;  %v13550_v26 = vld [vmem:[#allocation33_spill] sm:$0xff]  ;;  %v7138_v41 = vld [vmem:[#allocation2] sm:$0xff] }
 0x790   :  { %v6762_v56 = vsel %vm3373_vm9, %v6228_v5, %v6761_v38  ;;  %v6511_v8 = vrot.slane %v13545_v10, %v13329_v4  ;;  %v6515_v24 = vrot.slane %v5424_v44, %v13327_v59  ;;  %v6264_v13 = vsel %vm2116_vm0, %v6263_v33, %v6259_v12 }
 0x791   :  { %v6763_v23 = vsel %vm3375_vm10, %v6237_v46, %v6762_v56  ;;  %v7059_v7 = vmul.f32 -1.442695, %v6852_v45  ;;  %v6847_v17 = vsel %vm6825_vm15, %v6752_v60, 0.0  ;;  %v5430_v35 = vpop.permute.xlu0 %5429  ;;  %v6520_v12 = vrot.slane %v13546_v3, %v13329_v4  ;;  %v13549_v46 = vld [vmem:[#allocation86_spill] sm:$0xff]  ;;  %v7139_v56 = vld [vmem:[#allocation2 + $0x8] sm:$0xff]  ;;  %v7142_v3 = vld [vmem:[#allocation2 + $0x60] sm:$0xff] }
 0x792   :  { %v6764_v18 = vsel %vm3377_vm11, %v6246_v21, %v6763_v23  ;;  %v6516_v57 = vsel %vm2116_vm0, %v6515_v24, %v6511_v8  ;;  %6848 = vadd.xlane.f32.xlu0 %v6847_v17  ;;  %v6524_v9 = vrot.slane %v5430_v35, %v13327_v59  ;;  %v6529_v36 = vrot.slane %v13547_v37, %v13329_v4  ;;  %v7140_v24 = vld [vmem:[#allocation2 + $0x40] sm:$0xff]  ;;  %v13552_v35 = vld [vmem:[#allocation107_spill] sm:$0xff] }
 0x793   :  { %v6765_v40 = vsel %vm3379_vm12, %v6255_v61, %v6764_v18  ;;  %v6790_v19 = vsel %vm3373_vm9, %v6516_v57, %v6789_v11  ;;  %7080 = vpow2.f32 %v7059_v7  ;;  %v7075_v29 = vpop.eup %7074  ;;  %v6859_v51 = vsel %vm6825_vm15, %v11535_v31, 0.0  ;;  %v13553_v37 = vld [vmem:[#allocation88_spill] sm:$0xff] }
 0x794   :  { %v6766_v48 = vsel %vm3381_vm13, %v6264_v13, %v6765_v40  ;;  %v6922_v55 = vadd.f32 1.0, %v7075_v29  ;;  %v6525_v52 = vsel %vm2116_vm0, %v6524_v9, %v6520_v12  ;;  %v6538_v53 = vrot.slane %v13548_v28, %v13329_v4  ;;  %v7141_v13 = vld [vmem:[#allocation2 + $0x48] sm:$0xff]  ;;  %v13551_v40 = vld [vmem:[#allocation27_spill] sm:$0xff] }
 0x795   :  { %v6853_v62 = vsel %vm6825_vm15, %v6766_v48, 0.0  ;;  %v6791_v2 = vsel %vm3375_vm10, %v6525_v52, %v6790_v19  ;;  %v5436_v43 = vpop.permute.xlu0 %5435  ;;  %v6560_v6 = vrot.slane %v13549_v46, %v13327_v59  ;;  %v6569_v38 = vrot.slane %v13550_v26, %v13327_v59  ;;  %v7143_v9 = vld [vmem:[#allocation2 + $0x68] sm:$0xff]  ;;  %v13556_v26 = vld [vmem:[#allocation38_spill] sm:$0xff] }
 0x796   :  { %7082 = vrcp.f32 %v6922_v55  ;;  %6854 = vadd.xlane.f32.xlu0 %v6853_v62  ;;  %v6533_v20 = vrot.slane %v5436_v43, %v13327_v59  ;;  %v6632_v19 = vrot.slane %v13551_v40, %v13327_v59  ;;  %v6641_v48 = vrot.slane %v13552_v35, %v13327_v59 }
 0x797   :  { %v7077_v0 = vpop.eup %7076 }
 0x798   :  { %v6926_v49 = vadd.f32 1.0, %v7077_v0  ;;  %v6534_v50 = vsel %vm2116_vm0, %v6533_v20, %v6529_v36  ;;  %v6578_v36 = vrot.slane %v13553_v37, %v13327_v59  ;;  %v6686_v37 = vrot.slane %v11673_v63, %v13327_v59 }
 0x799   :  { %v5442_v30 = vpop.permute.xlu0 %5441  ;;  %v6792_v27 = vsel %vm3377_vm11, %v6534_v50, %v6791_v2  ;;  %v6619_v63 = vrot.slane %v11730_v1, %v13329_v4 }
 0x79a   :  { %7084 = vrcp.f32 %v6926_v49  ;;  %6860 = vadd.xlane.f32.xlu0 %v6859_v51  ;;  %v6542_v15 = vrot.slane %v5442_v30, %v13327_v59  ;;  %v7144_v49 = vld [vmem:[#allocation2 + $0x80] sm:$0xff]  ;;  %v7145_v51 = vld [vmem:[#allocation2 + $0x88] sm:$0xff] }
 0x79c   :  { %v7079_v58 = vpop.eup %7078  ;;  %v6543_v5 = vsel %vm2116_vm0, %v6542_v15, %v6538_v53  ;;  %v13554_v53 = vld [vmem:[#allocation162_spill] sm:$0xff] }
 0x79d   :  { %v6928_v42 = vadd.f32 1.0, %v7079_v58  ;;  %v5451_v34 = vpop.permute.xlu0 %5450  ;;  %v11920_v33 = vsel %vm3379_vm12, %v6543_v5, %v6792_v27  ;;  %v6650_v15 = vrot.slane %v13554_v53, %v13327_v59 }
 0x79e   :  { %v6556_v14 = vrot.slane %v5451_v34, %v13329_v4 }
 0x79f   :  { %7086 = vrcp.f32 %v6928_v42 }
 0x7a0   :  { %v7081_v31 = vpop.eup %7080  ;;  %v6561_v11 = vsel %vm2116_vm0, %v6560_v6, %v6556_v14 }
 0x7a1   :  { %v6930_v54 = vadd.f32 1.0, %v7081_v31  ;;  %v5457_v32 = vpop.permute.xlu0 %5456 }
 0x7a2   :  { %v6565_v21 = vrot.slane %v5457_v32, %v13329_v4 }
 0x7a3   :  { %7088 = vrcp.f32 %v6930_v54  ;;  %v7083_v47 = vpop.eup %7082  ;;  %v13555_v54 = vld [vmem:[#allocation58_spill] sm:$0xff] }
 0x7a4   :  { %v6970_v60 = vmul.f32 %v7138_v41, %v7083_v47  ;;  %v6971_v61 = vmul.f32 %v7139_v56, %v7083_v47  ;;  %v6570_v44 = vsel %vm2116_vm0, %v6569_v38, %v6565_v21  ;;  %v6587_v14 = vrot.slane %v13555_v54, %v13327_v59 }
 0x7a5   :  { %v6795_v10 = vsel %vm3369_vm7, %v6570_v44, %v6561_v11  ;;  %v5499_v8 = vpop.permute.xlu0 %5498  ;;  %v6659_v38 = vrot.slane %v13556_v26, %v13327_v59  ;;  %v7146_v26 = vld [vmem:[#allocation2 + $0xa0] sm:$0xff] }
 0x7a6   :  { %7002 = vst [vmem:[#allocation5] sm:$0xff] %v6970_v60  ;;  %7003 = vst [vmem:[#allocation5 + $0x8] sm:$0xff] %v6971_v61  ;;  %v6628_v18 = vrot.slane %v5499_v8, %v13329_v4  ;;  %v13557_v61 = vld [vmem:[#allocation104_spill] sm:$0xff] }
 0x7a7   :  { %v7085_v23 = vpop.eup %7084  ;;  %v6596_v11 = vrot.slane %v13557_v61, %v13327_v59 }
 0x7a8   :  { %v6978_v45 = vmul.f32 %v7140_v24, %v7085_v23  ;;  %v6979_v7 = vmul.f32 %v7141_v13, %v7085_v23  ;;  %v6633_v52 = vsel %vm2116_vm0, %v6632_v19, %v6628_v18  ;;  %v13558_v24 = vld [vmem:[#allocation84_spill] sm:$0xff] }
 0x7a9   :  { %v5505_v57 = vpop.permute.xlu0 %5504 }
 0x7aa   :  { %7010 = vst [vmem:[#allocation5 + $0x40] sm:$0xff] %v6978_v45  ;;  %7011 = vst [vmem:[#allocation5 + $0x48] sm:$0xff] %v6979_v7  ;;  %v6637_v29 = vrot.slane %v5505_v57, %v13329_v4  ;;  %v6668_v45 = vrot.slane %v13558_v24, %v13327_v59 }
 0x7ac   :  { %v7087_v17 = vpop.eup %7086  ;;  %v6642_v62 = vsel %vm2116_vm0, %v6641_v48, %v6637_v29  ;;  %v6677_v29 = vrot.slane %v11570_v39, %v13327_v59 }
 0x7ad   :  { %v6982_v12 = vmul.f32 %v7142_v3, %v7087_v17  ;;  %v6983_v55 = vmul.f32 %v7143_v9, %v7087_v17  ;;  %v6802_v2 = vsel %vm3369_vm7, %v6642_v62, %v6633_v52  ;;  %v5463_v43 = vpop.permute.xlu0 %5462  ;;  %v6605_v17 = vrot.slane %v11519_v25, %v13327_v59 }
 0x7ae   :  { %v6574_v20 = vrot.slane %v5463_v43, %v13329_v4  ;;  %v6614_v25 = vrot.slane %v11629_v16, %v13327_v59  ;;  %v13559_v16 = vld [vmem:[#allocation80_spill] sm:$0xff] }
 0x7af   :  { %7014 = vst [vmem:[#allocation5 + $0x60] sm:$0xff] %v6982_v12  ;;  %7015 = vst [vmem:[#allocation5 + $0x68] sm:$0xff] %v6983_v55 }
 0x7b0   :  { %v7089_v0 = vpop.eup %7088  ;;  %v6579_v27 = vsel %vm2116_vm0, %v6578_v36, %v6574_v20 }
 0x7b1   :  { %v6986_v50 = vmul.f32 %v7144_v49, %v7089_v0  ;;  %v6987_v30 = vmul.f32 %v7145_v51, %v7089_v0  ;;  %v6796_v58 = vsel %vm3371_vm8, %v6579_v27, %v6795_v10  ;;  %v5511_v28 = vpop.permute.xlu0 %5510  ;;  %v6547_v51 = vrot.slane %v13559_v16, %v13329_v4 }
 0x7b2   :  { %v6646_v42 = vrot.slane %v5511_v28, %v13329_v4 }
 0x7b3   :  { %7018 = vst [vmem:[#allocation5 + $0x80] sm:$0xff] %v6986_v50  ;;  %7019 = vst [vmem:[#allocation5 + $0x88] sm:$0xff] %v6987_v30 }
 0x7b4   :  { %v6651_v5 = vsel %vm2116_vm0, %v6650_v15, %v6646_v42 }
 0x7b5   :  { %v6803_v34 = vsel %vm3371_vm8, %v6651_v5, %v6802_v2  ;;  %v5469_v31 = vpop.permute.xlu0 %5468 }
 0x7b6   :  { %v6583_v32 = vrot.slane %v5469_v31, %v13329_v4 }
 0x7b8   :  { %v6588_v47 = vsel %vm2116_vm0, %v6587_v14, %v6583_v32  ;;  %v6691_v14 = vrot.slane %v11776_v22, %v13329_v4 }
 0x7b9   :  { %v6797_v46 = vsel %vm3373_vm9, %v6588_v47, %v6796_v58  ;;  %v5517_v6 = vpop.permute.xlu0 %5516 }
 0x7ba   :  { %v6655_v21 = vrot.slane %v5517_v6, %v13329_v4 }
 0x7bc   :  { %v6660_v41 = vsel %vm2116_vm0, %v6659_v38, %v6655_v21  ;;  %v7147_v21 = vld [vmem:[#allocation2 + $0xa8] sm:$0xff] }
 0x7bd   :  { %v6804_v60 = vsel %vm3373_vm9, %v6660_v41, %v6803_v34  ;;  %v5475_v56 = vpop.permute.xlu0 %5474 }
 0x7be   :  { %v6592_v44 = vrot.slane %v5475_v56, %v13329_v4 }
 0x7c0   :  { %v6597_v10 = vsel %vm2116_vm0, %v6596_v11, %v6592_v44 }
 0x7c1   :  { %v6798_v8 = vsel %vm3375_vm10, %v6597_v10, %v6797_v46  ;;  %v5523_v23 = vpop.permute.xlu0 %5522 }
 0x7c2   :  { %v6664_v13 = vrot.slane %v5523_v23, %v13329_v4 }
 0x7c4   :  { %v6669_v7 = vsel %vm2116_vm0, %v6668_v45, %v6664_v13 }
 0x7c5   :  { %v6805_v18 = vsel %vm3375_vm10, %v6669_v7, %v6804_v60  ;;  %v5481_v57 = vpop.permute.xlu0 %5480 }
 0x7c6   :  { %v6601_v40 = vrot.slane %v5481_v57, %v13329_v4 }
 0x7c8   :  { %v6606_v19 = vsel %vm2116_vm0, %v6605_v17, %v6601_v40 }
 0x7c9   :  { %v5529_v35 = vpop.permute.xlu0 %5528  ;;  %v6799_v48 = vsel %vm3377_vm11, %v6606_v19, %v6798_v8  ;;  %v6858_v9 = vpop.xlane.xlu1 %6857 }
 0x7ca   :  { %v6673_v3 = vrot.slane %v5529_v35, %v13329_v4  ;;  %v7061_v55 = vmul.f32 -1.442695, %v6858_v9 }
 0x7cc   :  { %v6678_v12 = vsel %vm2116_vm0, %v6677_v29, %v6673_v3  ;;  %7090 = vpow2.f32 %v7061_v55 }
 0x7cd   :  { %v5487_v52 = vpop.permute.xlu0 %5486  ;;  %v6806_v62 = vsel %vm3377_vm11, %v6678_v12, %v6805_v18 }
 0x7ce   :  { %v6610_v2 = vrot.slane %v5487_v52, %v13329_v4 }
 0x7d0   :  { %v6615_v43 = vsel %vm2116_vm0, %v6614_v25, %v6610_v2  ;;  %v7149_v2 = vld [vmem:[#allocation2 + $0x18] sm:$0xff] }
 0x7d1   :  { %v5535_v0 = vpop.permute.xlu0 %5534  ;;  %v6800_v39 = vsel %vm3379_vm12, %v6615_v43, %v6799_v48 }
 0x7d2   :  { %v6682_v36 = vrot.slane %v5535_v0, %v13329_v4 }
 0x7d4   :  { %v6687_v20 = vsel %vm2116_vm0, %v6686_v37, %v6682_v36  ;;  %v7150_v37 = vld [vmem:[#allocation2 + $0xc0] sm:$0xff] }
 0x7d5   :  { %v5448_v49 = vpop.permute.xlu0 %5447  ;;  %v6807_v50 = vsel %vm3379_vm12, %v6687_v20, %v6806_v62  ;;  %v7148_v62 = vld [vmem:[#allocation2 + $0x10] sm:$0xff]  ;;  %v7151_v20 = vld [vmem:[#allocation2 + $0xc8] sm:$0xff] }
 0x7d6   :  { %v6551_v30 = vrot.slane %v5448_v49, %v13327_v59 }
 0x7d8   :  { %v6552_v27 = vsel %vm2116_vm0, %v6551_v30, %v6547_v51  ;;  %v7152_v51 = vld [vmem:[#allocation2 + $0x20] sm:$0xff] }
 0x7d9   :  { %v5496_v58 = vpop.permute.xlu0 %5495  ;;  %v6794_v28 = vsel %vm3381_vm13, %v6552_v27, %v11920_v33  ;;  %v7091_v42 = vpop.eup %7090  ;;  %v7153_v27 = vld [vmem:[#allocation2 + $0x28] sm:$0xff] }
 0x7da   :  { %v6623_v53 = vrot.slane %v5496_v58, %v13327_v59  ;;  %v6865_v15 = vsel %vm6825_vm15, %v6794_v28, 0.0  ;;  %v6932_v34 = vadd.f32 1.0, %v7091_v42 }
 0x7db   :  { %6866 = vadd.xlane.f32.xlu0 %v6865_v15  ;;  %v7154_v15 = vld [vmem:[#allocation2 + $0x30] sm:$0xff] }
 0x7dc   :  { %v6624_v5 = vsel %vm2116_vm0, %v6623_v53, %v6619_v63  ;;  %7092 = vrcp.f32 %v6932_v34 }
 0x7dd   :  { %v5544_v31 = vpop.permute.xlu0 %5543  ;;  %v6801_v54 = vsel %vm3381_vm13, %v6624_v5, %v6800_v39  ;;  %v7155_v5 = vld [vmem:[#allocation2 + $0x38] sm:$0xff] }
 0x7de   :  { %v6695_v33 = vrot.slane %v5544_v31, %v13327_v59  ;;  %v6868_v32 = vsel %vm6825_vm15, %v6801_v54, 0.0 }
 0x7df   :  { %6869 = vadd.xlane.f32.xlu1 %v6868_v32  ;;  %v7157_v32 = vld [vmem:[#allocation2 + $0x58] sm:$0xff] }
 0x7e0   :  { %v6696_v1 = vsel %vm2116_vm0, %v6695_v33, %v6691_v14  ;;  %v7156_v14 = vld [vmem:[#allocation2 + $0x50] sm:$0xff] }
 0x7e1   :  { %v6808_v47 = vsel %vm3381_vm13, %v6696_v1, %v6807_v50 }
 0x7e2   :  { %v6871_v46 = vsel %vm6825_vm15, %v6808_v47, 0.0 }
 0x7e3   :  { %6872 = vadd.xlane.f32.xlu0 %v6871_v46  ;;  %v7158_v46 = vld [vmem:[#allocation2 + $0x70] sm:$0xff] }
 0x7e9   :  { %v7093_v6 = vpop.eup %7092 }
 0x7ea   :  { %v6990_v38 = vmul.f32 %v7146_v26, %v7093_v6  ;;  %v6991_v41 = vmul.f32 %v7147_v21, %v7093_v6  ;;  %v7159_v26 = vld [vmem:[#allocation2 + $0x78] sm:$0xff] }
 0x7ec   :  { %7022 = vst [vmem:[#allocation5 + $0xa0] sm:$0xff] %v6990_v38  ;;  %7023 = vst [vmem:[#allocation5 + $0xa8] sm:$0xff] %v6991_v41  ;;  %v7160_v41 = vld [vmem:[#allocation2 + $0x90] sm:$0xff] }
 0x807   :  { %v6831_v4 = vpop.xlane.xlu0 %6830 }
 0x808   :  { %v7052_v59 = vmul.f32 -1.442695, %v6831_v4 }
 0x80a   :  { %7094 = vpow2.f32 %v7052_v59  ;;  %v7161_v59 = vld [vmem:[#allocation2 + $0x98] sm:$0xff] }
 0x80b   :  { %v6834_v56 = vpop.xlane.xlu0 %6833 }
 0x80c   :  { %v7053_v61 = vmul.f32 -1.442695, %v6834_v56  ;;  %v7162_v56 = vld [vmem:[#allocation2 + $0xb0] sm:$0xff] }
 0x80d   :  { %v6864_v22 = vpop.xlane.xlu1 %6863 }
 0x80e   :  { %v7063_v60 = vmul.f32 -1.442695, %v6864_v22 }
 0x80f   :  { %v6837_v11 = vpop.xlane.xlu0 %6836 }
 0x810   :  { %7096 = vpow2.f32 %v7063_v60  ;;  %v7054_v44 = vmul.f32 -1.442695, %v6837_v11  ;;  %v7163_v11 = vld [vmem:[#allocation2 + $0xb8] sm:$0xff] }
 0x811   :  { %7098 = vpow2.f32 %v7053_v61 }
 0x812   :  { %7100 = vpow2.f32 %v7054_v44 }
 0x813   :  { %v6843_v10 = vpop.xlane.xlu0 %6842 }
 0x814   :  { %v7056_v8 = vmul.f32 -1.442695, %v6843_v10 }
 0x816   :  { %7102 = vpow2.f32 %v7056_v8 }
 0x817   :  { %v7095_v23 = vpop.eup %7094 }
 0x818   :  { %v6923_v45 = vadd.f32 1.0, %v7095_v23 }
 0x81a   :  { %7104 = vrcp.f32 %v6923_v45 }
 0x81b   :  { %v6849_v24 = vpop.xlane.xlu0 %6848 }
 0x81c   :  { %v7058_v13 = vmul.f32 -1.442695, %v6849_v24 }
 0x81d   :  { %v7097_v7 = vpop.eup %7096 }
 0x81e   :  { %v6934_v18 = vadd.f32 1.0, %v7097_v7  ;;  %v7099_v57 = vpop.eup %7098  ;;  %7106 = vpow2.f32 %v7058_v13 }
 0x81f   :  { %v6855_v17 = vpop.xlane.xlu0 %6854  ;;  %v6924_v40 = vadd.f32 1.0, %v7099_v57  ;;  %v7101_v35 = vpop.eup %7100 }
 0x820   :  { %7108 = vrcp.f32 %v6934_v18  ;;  %v7060_v19 = vmul.f32 -1.442695, %v6855_v17  ;;  %v6925_v29 = vadd.f32 1.0, %v7101_v35 }
 0x821   :  { %7110 = vrcp.f32 %v6924_v40 }
 0x822   :  { %7112 = vpow2.f32 %v7060_v19 }
 0x823   :  { %v6861_v48 = vpop.xlane.xlu0 %6860  ;;  %7114 = vrcp.f32 %v6925_v29  ;;  %v7103_v12 = vpop.eup %7102 }
 0x824   :  { %v7062_v3 = vmul.f32 -1.442695, %v6861_v48  ;;  %v6927_v9 = vadd.f32 1.0, %v7103_v12  ;;  %v7164_v48 = vld [vmem:[#allocation2 + $0xd0] sm:$0xff] }
 0x826   :  { %7116 = vpow2.f32 %v7062_v3  ;;  %v7165_v3 = vld [vmem:[#allocation2 + $0xd8] sm:$0xff] }
 0x827   :  { %7118 = vrcp.f32 %v6927_v9  ;;  %v7105_v55 = vpop.eup %7104 }
 0x828   :  { %v6972_v25 = vmul.f32 %v7148_v62, %v7105_v55  ;;  %v6973_v43 = vmul.f32 %v7149_v2, %v7105_v55  ;;  %v7166_v55 = vld [vmem:[#allocation2 + $0xe0] sm:$0xff]  ;;  %v7167_v62 = vld [vmem:[#allocation2 + $0xe8] sm:$0xff] }
 0x82a   :  { %7004 = vst [vmem:[#allocation5 + $0x10] sm:$0xff] %v6972_v25  ;;  %7005 = vst [vmem:[#allocation5 + $0x18] sm:$0xff] %v6973_v43  ;;  %v7168_v43 = vld [vmem:[#allocation2 + $0xf0] sm:$0xff] }
 0x82b   :  { %v7107_v52 = vpop.eup %7106 }
 0x82c   :  { %v6929_v39 = vadd.f32 1.0, %v7107_v52 }
 0x82d   :  { %v7109_v0 = vpop.eup %7108 }
 0x82e   :  { %v6994_v36 = vmul.f32 %v7150_v37, %v7109_v0  ;;  %v6995_v49 = vmul.f32 %v7151_v20, %v7109_v0  ;;  %v7111_v50 = vpop.eup %7110  ;;  %7120 = vrcp.f32 %v6929_v39  ;;  %v7169_v39 = vld [vmem:[#allocation2 + $0xf8] sm:$0xff] }
 0x82f   :  { %v7113_v16 = vpop.eup %7112  ;;  %v6974_v30 = vmul.f32 %v7152_v51, %v7111_v50  ;;  %v6975_v58 = vmul.f32 %v7153_v27, %v7111_v50 }
 0x830   :  { %7026 = vst [vmem:[#allocation5 + $0xc0] sm:$0xff] %v6994_v36  ;;  %7027 = vst [vmem:[#allocation5 + $0xc8] sm:$0xff] %v6995_v49  ;;  %v6931_v28 = vadd.f32 1.0, %v7113_v16  ;;  %v7115_v63 = vpop.eup %7114 }
 0x831   :  { %7006 = vst [vmem:[#allocation5 + $0x20] sm:$0xff] %v6974_v30  ;;  %7007 = vst [vmem:[#allocation5 + $0x28] sm:$0xff] %v6975_v58  ;;  %v6976_v42 = vmul.f32 %v7154_v15, %v7115_v63  ;;  %v6977_v34 = vmul.f32 %v7155_v5, %v7115_v63 }
 0x832   :  { %7122 = vrcp.f32 %v6931_v28 }
 0x833   :  { %v7117_v53 = vpop.eup %7116  ;;  %7008 = vst [vmem:[#allocation5 + $0x30] sm:$0xff] %v6976_v42  ;;  %7009 = vst [vmem:[#allocation5 + $0x38] sm:$0xff] %v6977_v34 }
 0x834   :  { %v6933_v31 = vadd.f32 1.0, %v7117_v53  ;;  %v7119_v54 = vpop.eup %7118 }
 0x835   :  { %v6980_v33 = vmul.f32 %v7156_v14, %v7119_v54  ;;  %v6981_v1 = vmul.f32 %v7157_v32, %v7119_v54 }
 0x836   :  { %7124 = vrcp.f32 %v6933_v31 }
 0x837   :  { %7012 = vst [vmem:[#allocation5 + $0x50] sm:$0xff] %v6980_v33  ;;  %7013 = vst [vmem:[#allocation5 + $0x58] sm:$0xff] %v6981_v1 }
 0x83b   :  { %v7121_v47 = vpop.eup %7120 }
 0x83c   :  { %v6984_v6 = vmul.f32 %v7158_v46, %v7121_v47  ;;  %v6985_v38 = vmul.f32 %v7159_v26, %v7121_v47 }
 0x83e   :  { %7016 = vst [vmem:[#allocation5 + $0x70] sm:$0xff] %v6984_v6  ;;  %7017 = vst [vmem:[#allocation5 + $0x78] sm:$0xff] %v6985_v38 }
 0x83f   :  { %v7123_v21 = vpop.eup %7122 }
 0x840   :  { %v6988_v4 = vmul.f32 %v7160_v41, %v7123_v21  ;;  %v6989_v22 = vmul.f32 %v7161_v59, %v7123_v21 }
 0x842   :  { %7020 = vst [vmem:[#allocation5 + $0x90] sm:$0xff] %v6988_v4  ;;  %7021 = vst [vmem:[#allocation5 + $0x98] sm:$0xff] %v6989_v22 }
 0x843   :  { %v7125_v60 = vpop.eup %7124 }
 0x844   :  { %v6992_v61 = vmul.f32 %v7162_v56, %v7125_v60  ;;  %v6993_v44 = vmul.f32 %v7163_v11, %v7125_v60 }
 0x846   :  { %7024 = vst [vmem:[#allocation5 + $0xb0] sm:$0xff] %v6992_v61  ;;  %7025 = vst [vmem:[#allocation5 + $0xb8] sm:$0xff] %v6993_v44 }
 0x864   :  { %v6867_v10 = vpop.xlane.xlu0 %6866 }
 0x865   :  { %v7064_v8 = vmul.f32 -1.442695, %v6867_v10 }
 0x867   :  { %7126 = vpow2.f32 %v7064_v8 }
 0x868   :  { %v6870_v23 = vpop.xlane.xlu1 %6869 }
 0x869   :  { %v7065_v24 = vmul.f32 -1.442695, %v6870_v23 }
 0x86b   :  { %7128 = vpow2.f32 %v7065_v24 }
 0x86c   :  { %v6873_v45 = vpop.xlane.xlu0 %6872 }
 0x86d   :  { %v7066_v13 = vmul.f32 -1.442695, %v6873_v45 }
 0x86f   :  { %7130 = vpow2.f32 %v7066_v13 }
 0x874   :  { %v7127_v7 = vpop.eup %7126 }
 0x875   :  { %v6935_v18 = vadd.f32 1.0, %v7127_v7 }
 0x877   :  { %7132 = vrcp.f32 %v6935_v18 }
 0x878   :  { %v7129_v57 = vpop.eup %7128 }
 0x879   :  { %v6936_v17 = vadd.f32 1.0, %v7129_v57 }
 0x87b   :  { %7134 = vrcp.f32 %v6936_v17 }
 0x87c   :  { %v7131_v40 = vpop.eup %7130 }
 0x87d   :  { %v6937_v19 = vadd.f32 1.0, %v7131_v40 }
 0x87f   :  { %7136 = vrcp.f32 %v6937_v19 }
 0x884   :  { %v7133_v35 = vpop.eup %7132 }
 0x885   :  { %v6996_v29 = vmul.f32 %v7164_v48, %v7133_v35  ;;  %v6997_v12 = vmul.f32 %v7165_v3, %v7133_v35 }
 0x887   :  { %7028 = vst [vmem:[#allocation5 + $0xd0] sm:$0xff] %v6996_v29  ;;  %7029 = vst [vmem:[#allocation5 + $0xd8] sm:$0xff] %v6997_v12 }
 0x888   :  { %v7135_v9 = vpop.eup %7134 }
 0x889   :  { %v6998_v52 = vmul.f32 %v7166_v55, %v7135_v9  ;;  %v6999_v25 = vmul.f32 %v7167_v62, %v7135_v9 }
 0x88b   :  { %7030 = vst [vmem:[#allocation5 + $0xe0] sm:$0xff] %v6998_v52  ;;  %7031 = vst [vmem:[#allocation5 + $0xe8] sm:$0xff] %v6999_v25 }
 0x88c   :  { %v7137_v2 = vpop.eup %7136 }
 0x88d   :  { %v7000_v0 = vmul.f32 %v7168_v43, %v7137_v2  ;;  %v7001_v37 = vmul.f32 %v7169_v39, %v7137_v2 }
 0x88f   :  { %7032 = vst [vmem:[#allocation5 + $0xf0] sm:$0xff] %v7000_v0  ;;  %7033 = vst [vmem:[#allocation5 + $0xf8] sm:$0xff] %v7001_v37 }
 0x890   :  { %7201 = shalt.err (!%p7198_p9)
}
 0x891   :  { %7045 = dma.vmem_to_hbm [thread:$0]  %s7040_s10, 4096, %s12018_s3, [#allocation4], %s7215_s15, %s7215_s15, %s7216_s16  }
 0x892   :  { %7212 = dma.done.wait [#allocation4], 4096  }
 0x893   :  { %7213 = vsyncadd [#allocation4], 4294963200 }
 0x894   :  { %7049 = vsyncpa [#allocation3], 1 }
 0x895   :  { %7050 = vsyncpa [#allocation4], 1 }

</bundles_post_ra>
